<compile_context>
chip_gen: v6e
topology: v6e:2x2x1
jax: 0.10.0
libtpu: 0.0.40
codegen_flags: <defaults>
</compile_context>

<pallas_src>
import math

import jax
import jax.numpy as jnp
import numpy as np
from jax.experimental import pallas as pl
from jax.experimental.pallas import tpu as pltpu


MATMUL_DTYPE = jnp.bfloat16   # MXU input dtype; accumulation stays f32.
NEG_INF = -1e30               # bias value for padded (fake) classes.
NCLS_PAD = 128                # lane-dense class padding.


# ----------------------------------------------------------------------------
# Trace-time data prep (reshape/pad only; all compute is inside the kernel)
# ----------------------------------------------------------------------------
def _im2col(x, ksize=3, stride=2, pad=1):
    """x: (N, H, W, C) -> patches (N, Ho*Wo, ksize*ksize*C). Layer-1 only."""
    N, H, W, C = x.shape
    Ho = (H + 2 * pad - ksize) // stride + 1
    Wo = (W + 2 * pad - ksize) // stride + 1
    xp = jnp.pad(x, ((0, 0), (pad, pad), (pad, pad), (0, 0)))
    cols = []
    for dy in range(ksize):
        for dx in range(ksize):
            cols.append(xp[:, dy:dy + stride * Ho:stride,
                           dx:dx + stride * Wo:stride, :])
    p = jnp.stack(cols, axis=3)                         # (N, Ho, Wo, 9, C)
    return p.reshape(N, Ho * Wo, ksize * ksize * C)


def _stride2_selection_matrix(hi, wi):
    """Constant 0/1 matrix T of shape (9*Ho*Wo, Hi*Wi) for a 3x3 / stride-2 /
    pad-1 conv: row t*Ho*Wo + i*Wo + j selects input pixel (2i+dy-1, 2j+dx-1)
    with t = dy*3 + dx (all-zero row where that index falls in the padding).
    A single (T @ x_flat) matmul gathers all 9 strided taps at once
    (in-kernel implicit-GEMM im2col, avoids strided sublane slicing)."""
    ho, wo = hi // 2, wi // 2
    po = ho * wo
    m = np.zeros((9 * po, hi * wi), np.float32)
    for dy in range(3):
        for dx in range(3):
            t = dy * 3 + dx
            for i in range(ho):
                r = 2 * i + dy - 1
                if not (0 <= r < hi):
                    continue
                for j in range(wo):
                    s = 2 * j + dx - 1
                    if not (0 <= s < wi):
                        continue
                    m[t * po + i * wo + j, r * wi + s] = 1.0
    return m


# ----------------------------------------------------------------------------
# Fused Pallas kernel: whole network for one image per grid step
# ----------------------------------------------------------------------------
def _classifier_kernel(p1_ref, w1_ref, b1_ref,
                       t2_ref, w2_ref, b2_ref,
                       t3_ref, w3_ref, b3_ref,
                       t4_ref, w4_ref, b4_ref,
                       wl_ref, bl_ref, o_ref):
    # ---- layer 1: im2col patches (precomputed, K padded) @ w1 + LeakyReLU ----
    y = jnp.dot(p1_ref[0], w1_ref[...], preferred_element_type=jnp.float32)
    y = y + b1_ref[...]
    y = jnp.where(y >= 0.0, y, 0.2 * y)                 # (s1*s1, 64) f32

    def conv_block(x, t_ref, w_ref, b_ref):
        """3x3/s2/p1 conv as (one big selection matmul, 9 tap matmuls), then
        LeakyReLU(0.2) and InstanceNorm2d (biased var, eps=1e-5, no affine)."""
        po = t_ref.shape[0] // 9
        cout = w_ref.shape[2]
        x_mm = x.astype(MATMUL_DTYPE)
        # One matmul gathers all 9 strided taps: (9*Po, Pi) @ (Pi, Cin).
        sel = jnp.dot(t_ref[...], x_mm, preferred_element_type=jnp.float32)
        acc = jnp.zeros((po, cout), jnp.float32)
        for tap in range(9):
            s_t = sel[tap * po:(tap + 1) * po, :].astype(MATMUL_DTYPE)
            acc = acc + jnp.dot(s_t, w_ref[tap],
                                preferred_element_type=jnp.float32)
        yv = acc + b_ref[...]
        yv = jnp.where(yv >= 0.0, yv, 0.2 * yv)
        # One-pass statistics: var = E[x^2] - mean^2 (clamped for safety).
        mean = jnp.mean(yv, axis=0, keepdims=True)
        var = jnp.mean(yv * yv, axis=0, keepdims=True) - mean * mean
        var = jnp.maximum(var, 0.0)
        return (yv - mean) * jax.lax.rsqrt(var + 1e-5)

    y = conv_block(y, t2_ref, w2_ref, b2_ref)           # (s2*s2, 128)
    y = conv_block(y, t3_ref, w3_ref, b3_ref)           # (s3*s3, 256)
    y = conv_block(y, t4_ref, w4_ref, b4_ref)           # (s4*s4, 512)

    # ---- linear head (classes padded to 128 lanes) + softmax ----------------
    feat = y.astype(MATMUL_DTYPE)                       # rows = (h, w) blocks
    logits = bl_ref[...]                                # (1, 128) f32
    for p in range(wl_ref.shape[0]):
        logits = logits + jnp.dot(feat[p:p + 1, :], wl_ref[p],
                                  preferred_element_type=jnp.float32)
    m = jnp.max(logits, axis=-1, keepdims=True)
    e = jnp.exp(logits - m)                             # padded lanes -> 0
    probs = e / jnp.sum(e, axis=-1, keepdims=True)
    o_ref[0] = probs.astype(o_ref.dtype)                # lane-dense (1, 128)


# ----------------------------------------------------------------------------
# Wrapper
# ----------------------------------------------------------------------------
def classifier_forward(img_nchw, params):
    """img_nchw: (N, C, H, W) f32; params as produced by init_params (HWIO conv
    weights, Linear weight rows in PyTorch NCHW-flatten order)."""
    N, C, H, _ = img_nchw.shape
    n_classes = params["bl"].shape[0]
    s1, s2, s3, s4 = H // 2, H // 4, H // 8, H // 16

    # Layer-1 im2col (tiny; zero-pad K 27 -> 32 so the kernel LHS is clean).
    x = jnp.transpose(img_nchw, (0, 2, 3, 1)).astype(jnp.float32)   # NHWC
    p1 = _im2col(x)                                                 # (N, s1*s1, 9C)
    k1 = p1.shape[-1]
    k1p = max(32, ((k1 + 7) // 8) * 8)
    p1 = jnp.pad(p1, ((0, 0), (0, 0), (0, k1p - k1))).astype(MATMUL_DTYPE)

    # Conv weights -> (9, Cin, Cout) bf16, biases -> (1, Cout) f32.
    w1 = jnp.pad(params["w1"].reshape(k1, 64),
                 ((0, k1p - k1), (0, 0))).astype(MATMUL_DTYPE)
    b1 = params["b1"].reshape(1, -1).astype(jnp.float32)
    w2 = params["w2"].reshape(9, 64, 128).astype(MATMUL_DTYPE)
    b2 = params["b2"].reshape(1, -1).astype(jnp.float32)
    w3 = params["w3"].reshape(9, 128, 256).astype(MATMUL_DTYPE)
    b3 = params["b3"].reshape(1, -1).astype(jnp.float32)
    w4 = params["w4"].reshape(9, 256, 512).astype(MATMUL_DTYPE)
    b4 = params["b4"].reshape(1, -1).astype(jnp.float32)

    # Linear weight: permute rows from NCHW-flatten (c, h, w) order to the
    # kernel's (h, w, c) row-block order, pad classes to 128 (lane dense).
    wl = params["wl"].reshape(512, s4, s4, n_classes)
    wl = jnp.transpose(wl, (1, 2, 0, 3)).reshape(s4 * s4, 512, n_classes)
    wl = jnp.pad(wl, ((0, 0), (0, 0), (0, NCLS_PAD - n_classes))
                 ).astype(MATMUL_DTYPE)
    bl = jnp.pad(params["bl"].astype(jnp.float32), (0, NCLS_PAD - n_classes),
                 constant_values=NEG_INF).reshape(1, NCLS_PAD)

    # Constant stride-2 tap-selection matrices (in-kernel implicit im2col).
    t2 = jnp.asarray(_stride2_selection_matrix(s1, s1), dtype=MATMUL_DTYPE)
    t3 = jnp.asarray(_stride2_selection_matrix(s2, s2), dtype=MATMUL_DTYPE)
    t4 = jnp.asarray(_stride2_selection_matrix(s3, s3), dtype=MATMUL_DTYPE)

    def full_spec(a):
        nd = a.ndim
        return pl.BlockSpec(a.shape, lambda n, _nd=nd: (0,) * _nd)  # VMEM const

    operands = (p1, w1, b1, t2, w2, b2, t3, w3, b3, t4, w4, b4, wl, bl)
    in_specs = [pl.BlockSpec((1,) + p1.shape[1:], lambda n: (n, 0, 0))]
    in_specs += [full_spec(a) for a in operands[1:]]

    out = pl.pallas_call(
        _classifier_kernel,
        out_shape=jax.ShapeDtypeStruct((N, 1, NCLS_PAD), jnp.float32),
        grid=(N,),
        in_specs=in_specs,
        out_specs=pl.BlockSpec((1, 1, NCLS_PAD), lambda n: (n, 0, 0)),
        compiler_params=pltpu.CompilerParams(
            dimension_semantics=("parallel",)),
    )(*operands)
    return out.reshape(N, NCLS_PAD)[:, :n_classes]


# ----------------------------------------------------------------------------
# Pure-JAX reference (same bf16-input / f32-accumulate contract) for validation
# ----------------------------------------------------------------------------
def _reference_forward(img_nchw, params):
    x = jnp.transpose(img_nchw, (0, 2, 3, 1)).astype(jnp.float32)

    def conv(x, w, b, norm):
        y = jax.lax.conv_general_dilated(
            x.astype(MATMUL_DTYPE), w.astype(MATMUL_DTYPE),
            window_strides=(2, 2), padding=((1, 1), (1, 1)),
            dimension_numbers=("NHWC", "HWIO", "NHWC"),
            preferred_element_type=jnp.float32)
        y = y + b
        y = jnp.where(y >= 0, y, 0.2 * y)
        if norm:
            mean = jnp.mean(y, axis=(1, 2), keepdims=True)
            var = jnp.mean(jnp.square(y - mean), axis=(1, 2), keepdims=True)
            y = (y - mean) * jax.lax.rsqrt(var + 1e-5)
        return y

    x = conv(x, params["w1"], params["b1"], False)
    x = conv(x, params["w2"], params["b2"], True)
    x = conv(x, params["w3"], params["b3"], True)
    x = conv(x, params["w4"], params["b4"], True)
    N = x.shape[0]
    feat = jnp.transpose(x, (0, 3, 1, 2)).reshape(N, -1)      # NCHW flatten
    logits = jnp.dot(feat.astype(MATMUL_DTYPE),
                     params["wl"].astype(MATMUL_DTYPE),
                     preferred_element_type=jnp.float32) + params["bl"]
    return jax.nn.softmax(logits, axis=-1)


# ----------------------------------------------------------------------------
# Deterministic parameter init (synthetic; shapes follow Classifier.__init__)
# ----------------------------------------------------------------------------
def init_params(key, channels, img_size, n_classes):
    chans = [channels, 64, 128, 256, 512]
    keys = jax.random.split(key, 2 * len(chans) + 2)
    params = {}
    for i in range(4):
        cin, cout = chans[i], chans[i + 1]
        scale = 1.0 / math.sqrt(9 * cin)
        params[f"w{i + 1}"] = scale * jax.random.normal(
            keys[2 * i], (3, 3, cin, cout), jnp.float32)
        params[f"b{i + 1}"] = scale * jax.random.normal(
            keys[2 * i + 1], (cout,), jnp.float32)
    feat_dim = 512 * (img_size // 2 ** 4) ** 2
    lscale = 1.0 / math.sqrt(feat_dim)
    params["wl"] = lscale * jax.random.normal(
        keys[-2], (feat_dim, n_classes), jnp.float32)
    params["bl"] = lscale * jax.random.normal(
        keys[-1], (n_classes,), jnp.float32)
    return params


if __name__ == "__main__":
    batch, channels, img_size, n_classes = 2, 3, 32, 10

    key = jax.random.PRNGKey(0)
    k_img, k_par = jax.random.split(key)
    img = jax.random.normal(k_img, (batch, channels, img_size, img_size),
                            jnp.float32)
    params = init_params(k_par, channels, img_size, n_classes)

    out = jax.jit(classifier_forward)(img, params)
    out = jax.block_until_ready(out)

    assert out.shape == (batch, n_classes), out.shape
    assert bool(jnp.all(jnp.isfinite(out)))
    # Softmax rows must sum to 1.
    assert bool(jnp.allclose(jnp.sum(out, axis=-1), 1.0, atol=1e-5))
    # Match the pure-JAX reference (same bf16/f32 contract; accumulation-order
    # differences only).
    ref = jax.block_until_ready(jax.jit(_reference_forward)(img, params))
    assert bool(jnp.allclose(out, ref, atol=5e-3)), \
        float(jnp.max(jnp.abs(out - ref)))
    print("KERNEL_OK")
</pallas_src>

<mosaic_0001>
module attributes {stable_mosaic.version = 11 : i64} {
  func.func @_classifier_kernel(%arg0: i32, %arg1: memref<1x256x32xbf16, #tpu.memory_space<vmem>>, %arg2: memref<32x64xbf16, #tpu.memory_space<vmem>>, %arg3: memref<1x64xf32, #tpu.memory_space<vmem>>, %arg4: memref<576x256xbf16, #tpu.memory_space<vmem>>, %arg5: memref<9x64x128xbf16, #tpu.memory_space<vmem>>, %arg6: memref<1x128xf32, #tpu.memory_space<vmem>>, %arg7: memref<144x64xbf16, #tpu.memory_space<vmem>>, %arg8: memref<9x128x256xbf16, #tpu.memory_space<vmem>>, %arg9: memref<1x256xf32, #tpu.memory_space<vmem>>, %arg10: memref<36x16xbf16, #tpu.memory_space<vmem>>, %arg11: memref<9x256x512xbf16, #tpu.memory_space<vmem>>, %arg12: memref<1x512xf32, #tpu.memory_space<vmem>>, %arg13: memref<4x512x128xbf16, #tpu.memory_space<vmem>>, %arg14: memref<1x128xf32, #tpu.memory_space<vmem>>, %arg15: memref<1x1x128xf32, #tpu.memory_space<vmem>>) attributes {dimension_semantics = [#tpu.dimension_semantics<parallel>], iteration_bounds = array<i64: 2>, scalar_prefetch = 0 : i64, scratch_operands = 0 : i64, tpu.core_type = #tpu.core_type<tc>, window_params = [{transform_indices = @transform_0, window_bounds = array<i64: 1, 256, 32>}, {pipeline_mode = #tpu.pipeline_mode<synchronous>, transform_indices = @transform_1, window_bounds = array<i64: 32, 64>}, {pipeline_mode = #tpu.pipeline_mode<synchronous>, transform_indices = @transform_2, window_bounds = array<i64: 1, 64>}, {pipeline_mode = #tpu.pipeline_mode<synchronous>, transform_indices = @transform_3, window_bounds = array<i64: 576, 256>}, {pipeline_mode = #tpu.pipeline_mode<synchronous>, transform_indices = @transform_4, window_bounds = array<i64: 9, 64, 128>}, {pipeline_mode = #tpu.pipeline_mode<synchronous>, transform_indices = @transform_5, window_bounds = array<i64: 1, 128>}, {pipeline_mode = #tpu.pipeline_mode<synchronous>, transform_indices = @transform_6, window_bounds = array<i64: 144, 64>}, {pipeline_mode = #tpu.pipeline_mode<synchronous>, transform_indices = @transform_7, window_bounds = array<i64: 9, 128, 256>}, {pipeline_mode = #tpu.pipeline_mode<synchronous>, transform_indices = @transform_8, window_bounds = array<i64: 1, 256>}, {pipeline_mode = #tpu.pipeline_mode<synchronous>, transform_indices = @transform_9, window_bounds = array<i64: 36, 16>}, {pipeline_mode = #tpu.pipeline_mode<synchronous>, transform_indices = @transform_10, window_bounds = array<i64: 9, 256, 512>}, {pipeline_mode = #tpu.pipeline_mode<synchronous>, transform_indices = @transform_11, window_bounds = array<i64: 1, 512>}, {pipeline_mode = #tpu.pipeline_mode<synchronous>, transform_indices = @transform_12, window_bounds = array<i64: 4, 512, 128>}, {pipeline_mode = #tpu.pipeline_mode<synchronous>, transform_indices = @transform_13, window_bounds = array<i64: 1, 128>}, {transform_indices = @transform_14, window_bounds = array<i64: 1, 1, 128>}]} {
    %c0 = arith.constant 0 : index
    %c0_0 = arith.constant 0 : index
    %c0_1 = arith.constant 0 : index
    %0 = vector.load %arg1[%c0, %c0_0, %c0_1] : memref<1x256x32xbf16, #tpu.memory_space<vmem>>, vector<1x256x32xbf16>
    %1 = vector.shape_cast %0 : vector<1x256x32xbf16> to vector<256x32xbf16>
    %c0_2 = arith.constant 0 : index
    %c0_3 = arith.constant 0 : index
    %2 = vector.load %arg2[%c0_2, %c0_3] : memref<32x64xbf16, #tpu.memory_space<vmem>>, vector<32x64xbf16>
    %cst = arith.constant dense<0.000000e+00> : vector<256x64xf32>
    %3 = tpu.matmul %1, %2, %cst {dimension_numbers = #tpu.dot_dimension_numbers<[1], [0], [0], [1], [0, 0, 1, 1], [], []>} : vector<256x32xbf16>, vector<32x64xbf16>, vector<256x64xf32> -> vector<256x64xf32>
    %c0_4 = arith.constant 0 : index
    %c0_5 = arith.constant 0 : index
    %4 = vector.load %arg3[%c0_4, %c0_5] : memref<1x64xf32, #tpu.memory_space<vmem>>, vector<1x64xf32>
    %5 = vector.broadcast %4 : vector<1x64xf32> to vector<256x64xf32>
    %6 = arith.addf %3, %5 : vector<256x64xf32>
    %cst_6 = arith.constant 0.000000e+00 : f32
    %7 = vector.broadcast %cst_6 : f32 to vector<256x64xf32>
    %8 = arith.cmpf oge, %6, %7 : vector<256x64xf32>
    %cst_7 = arith.constant 2.000000e-01 : f32
    %9 = vector.broadcast %cst_7 : f32 to vector<256x64xf32>
    %10 = arith.mulf %9, %6 : vector<256x64xf32>
    %11 = arith.select %8, %6, %10 : vector<256x64xi1>, vector<256x64xf32>
    %12 = arith.truncf %11 : vector<256x64xf32> to vector<256x64xbf16>
    %c0_8 = arith.constant 0 : index
    %c0_9 = arith.constant 0 : index
    %13 = vector.load %arg4[%c0_8, %c0_9] : memref<576x256xbf16, #tpu.memory_space<vmem>>, vector<576x256xbf16>
    %cst_10 = arith.constant dense<0.000000e+00> : vector<576x64xf32>
    %14 = tpu.matmul %13, %12, %cst_10 {dimension_numbers = #tpu.dot_dimension_numbers<[1], [0], [0], [1], [0, 0, 1, 1], [], []>} : vector<576x256xbf16>, vector<256x64xbf16>, vector<576x64xf32> -> vector<576x64xf32>
    %cst_11 = arith.constant 0.000000e+00 : f32
    %15 = vector.broadcast %cst_11 : f32 to vector<64x128xf32>
    %16 = vector.extract_strided_slice %14 {offsets = [0, 0], sizes = [64, 64], strides = [1, 1]} : vector<576x64xf32> to vector<64x64xf32>
    %17 = arith.truncf %16 : vector<64x64xf32> to vector<64x64xbf16>
    %c0_12 = arith.constant 0 : index
    %c0_13 = arith.constant 0 : index
    %c0_14 = arith.constant 0 : index
    %18 = vector.load %arg5[%c0_12, %c0_13, %c0_14] : memref<9x64x128xbf16, #tpu.memory_space<vmem>>, vector<1x64x128xbf16>
    %19 = vector.shape_cast %18 : vector<1x64x128xbf16> to vector<64x128xbf16>
    %cst_15 = arith.constant dense<0.000000e+00> : vector<64x128xf32>
    %20 = tpu.matmul %17, %19, %cst_15 {dimension_numbers = #tpu.dot_dimension_numbers<[1], [0], [0], [1], [0, 0, 1, 1], [], []>} : vector<64x64xbf16>, vector<64x128xbf16>, vector<64x128xf32> -> vector<64x128xf32>
    %21 = arith.addf %15, %20 : vector<64x128xf32>
    %22 = vector.extract_strided_slice %14 {offsets = [64, 0], sizes = [64, 64], strides = [1, 1]} : vector<576x64xf32> to vector<64x64xf32>
    %23 = arith.truncf %22 : vector<64x64xf32> to vector<64x64xbf16>
    %c1 = arith.constant 1 : index
    %c0_16 = arith.constant 0 : index
    %c0_17 = arith.constant 0 : index
    %24 = vector.load %arg5[%c1, %c0_16, %c0_17] : memref<9x64x128xbf16, #tpu.memory_space<vmem>>, vector<1x64x128xbf16>
    %25 = vector.shape_cast %24 : vector<1x64x128xbf16> to vector<64x128xbf16>
    %cst_18 = arith.constant dense<0.000000e+00> : vector<64x128xf32>
    %26 = tpu.matmul %23, %25, %cst_18 {dimension_numbers = #tpu.dot_dimension_numbers<[1], [0], [0], [1], [0, 0, 1, 1], [], []>} : vector<64x64xbf16>, vector<64x128xbf16>, vector<64x128xf32> -> vector<64x128xf32>
    %27 = arith.addf %21, %26 : vector<64x128xf32>
    %28 = vector.extract_strided_slice %14 {offsets = [128, 0], sizes = [64, 64], strides = [1, 1]} : vector<576x64xf32> to vector<64x64xf32>
    %29 = arith.truncf %28 : vector<64x64xf32> to vector<64x64xbf16>
    %c2 = arith.constant 2 : index
    %c0_19 = arith.constant 0 : index
    %c0_20 = arith.constant 0 : index
    %30 = vector.load %arg5[%c2, %c0_19, %c0_20] : memref<9x64x128xbf16, #tpu.memory_space<vmem>>, vector<1x64x128xbf16>
    %31 = vector.shape_cast %30 : vector<1x64x128xbf16> to vector<64x128xbf16>
    %cst_21 = arith.constant dense<0.000000e+00> : vector<64x128xf32>
    %32 = tpu.matmul %29, %31, %cst_21 {dimension_numbers = #tpu.dot_dimension_numbers<[1], [0], [0], [1], [0, 0, 1, 1], [], []>} : vector<64x64xbf16>, vector<64x128xbf16>, vector<64x128xf32> -> vector<64x128xf32>
    %33 = arith.addf %27, %32 : vector<64x128xf32>
    %34 = vector.extract_strided_slice %14 {offsets = [192, 0], sizes = [64, 64], strides = [1, 1]} : vector<576x64xf32> to vector<64x64xf32>
    %35 = arith.truncf %34 : vector<64x64xf32> to vector<64x64xbf16>
    %c3 = arith.constant 3 : index
    %c0_22 = arith.constant 0 : index
    %c0_23 = arith.constant 0 : index
    %36 = vector.load %arg5[%c3, %c0_22, %c0_23] : memref<9x64x128xbf16, #tpu.memory_space<vmem>>, vector<1x64x128xbf16>
    %37 = vector.shape_cast %36 : vector<1x64x128xbf16> to vector<64x128xbf16>
    %cst_24 = arith.constant dense<0.000000e+00> : vector<64x128xf32>
    %38 = tpu.matmul %35, %37, %cst_24 {dimension_numbers = #tpu.dot_dimension_numbers<[1], [0], [0], [1], [0, 0, 1, 1], [], []>} : vector<64x64xbf16>, vector<64x128xbf16>, vector<64x128xf32> -> vector<64x128xf32>
    %39 = arith.addf %33, %38 : vector<64x128xf32>
    %40 = vector.extract_strided_slice %14 {offsets = [256, 0], sizes = [64, 64], strides = [1, 1]} : vector<576x64xf32> to vector<64x64xf32>
    %41 = arith.truncf %40 : vector<64x64xf32> to vector<64x64xbf16>
    %c4 = arith.constant 4 : index
    %c0_25 = arith.constant 0 : index
    %c0_26 = arith.constant 0 : index
    %42 = vector.load %arg5[%c4, %c0_25, %c0_26] : memref<9x64x128xbf16, #tpu.memory_space<vmem>>, vector<1x64x128xbf16>
    %43 = vector.shape_cast %42 : vector<1x64x128xbf16> to vector<64x128xbf16>
    %cst_27 = arith.constant dense<0.000000e+00> : vector<64x128xf32>
    %44 = tpu.matmul %41, %43, %cst_27 {dimension_numbers = #tpu.dot_dimension_numbers<[1], [0], [0], [1], [0, 0, 1, 1], [], []>} : vector<64x64xbf16>, vector<64x128xbf16>, vector<64x128xf32> -> vector<64x128xf32>
    %45 = arith.addf %39, %44 : vector<64x128xf32>
    %46 = vector.extract_strided_slice %14 {offsets = [320, 0], sizes = [64, 64], strides = [1, 1]} : vector<576x64xf32> to vector<64x64xf32>
    %47 = arith.truncf %46 : vector<64x64xf32> to vector<64x64xbf16>
    %c5 = arith.constant 5 : index
    %c0_28 = arith.constant 0 : index
    %c0_29 = arith.constant 0 : index
    %48 = vector.load %arg5[%c5, %c0_28, %c0_29] : memref<9x64x128xbf16, #tpu.memory_space<vmem>>, vector<1x64x128xbf16>
    %49 = vector.shape_cast %48 : vector<1x64x128xbf16> to vector<64x128xbf16>
    %cst_30 = arith.constant dense<0.000000e+00> : vector<64x128xf32>
    %50 = tpu.matmul %47, %49, %cst_30 {dimension_numbers = #tpu.dot_dimension_numbers<[1], [0], [0], [1], [0, 0, 1, 1], [], []>} : vector<64x64xbf16>, vector<64x128xbf16>, vector<64x128xf32> -> vector<64x128xf32>
    %51 = arith.addf %45, %50 : vector<64x128xf32>
    %52 = vector.extract_strided_slice %14 {offsets = [384, 0], sizes = [64, 64], strides = [1, 1]} : vector<576x64xf32> to vector<64x64xf32>
    %53 = arith.truncf %52 : vector<64x64xf32> to vector<64x64xbf16>
    %c6 = arith.constant 6 : index
    %c0_31 = arith.constant 0 : index
    %c0_32 = arith.constant 0 : index
    %54 = vector.load %arg5[%c6, %c0_31, %c0_32] : memref<9x64x128xbf16, #tpu.memory_space<vmem>>, vector<1x64x128xbf16>
    %55 = vector.shape_cast %54 : vector<1x64x128xbf16> to vector<64x128xbf16>
    %cst_33 = arith.constant dense<0.000000e+00> : vector<64x128xf32>
    %56 = tpu.matmul %53, %55, %cst_33 {dimension_numbers = #tpu.dot_dimension_numbers<[1], [0], [0], [1], [0, 0, 1, 1], [], []>} : vector<64x64xbf16>, vector<64x128xbf16>, vector<64x128xf32> -> vector<64x128xf32>
    %57 = arith.addf %51, %56 : vector<64x128xf32>
    %58 = vector.extract_strided_slice %14 {offsets = [448, 0], sizes = [64, 64], strides = [1, 1]} : vector<576x64xf32> to vector<64x64xf32>
    %59 = arith.truncf %58 : vector<64x64xf32> to vector<64x64xbf16>
    %c7 = arith.constant 7 : index
    %c0_34 = arith.constant 0 : index
    %c0_35 = arith.constant 0 : index
    %60 = vector.load %arg5[%c7, %c0_34, %c0_35] : memref<9x64x128xbf16, #tpu.memory_space<vmem>>, vector<1x64x128xbf16>
    %61 = vector.shape_cast %60 : vector<1x64x128xbf16> to vector<64x128xbf16>
    %cst_36 = arith.constant dense<0.000000e+00> : vector<64x128xf32>
    %62 = tpu.matmul %59, %61, %cst_36 {dimension_numbers = #tpu.dot_dimension_numbers<[1], [0], [0], [1], [0, 0, 1, 1], [], []>} : vector<64x64xbf16>, vector<64x128xbf16>, vector<64x128xf32> -> vector<64x128xf32>
    %63 = arith.addf %57, %62 : vector<64x128xf32>
    %64 = vector.extract_strided_slice %14 {offsets = [512, 0], sizes = [64, 64], strides = [1, 1]} : vector<576x64xf32> to vector<64x64xf32>
    %65 = arith.truncf %64 : vector<64x64xf32> to vector<64x64xbf16>
    %c8 = arith.constant 8 : index
    %c0_37 = arith.constant 0 : index
    %c0_38 = arith.constant 0 : index
    %66 = vector.load %arg5[%c8, %c0_37, %c0_38] : memref<9x64x128xbf16, #tpu.memory_space<vmem>>, vector<1x64x128xbf16>
    %67 = vector.shape_cast %66 : vector<1x64x128xbf16> to vector<64x128xbf16>
    %cst_39 = arith.constant dense<0.000000e+00> : vector<64x128xf32>
    %68 = tpu.matmul %65, %67, %cst_39 {dimension_numbers = #tpu.dot_dimension_numbers<[1], [0], [0], [1], [0, 0, 1, 1], [], []>} : vector<64x64xbf16>, vector<64x128xbf16>, vector<64x128xf32> -> vector<64x128xf32>
    %69 = arith.addf %63, %68 : vector<64x128xf32>
    %c0_40 = arith.constant 0 : index
    %c0_41 = arith.constant 0 : index
    %70 = vector.load %arg6[%c0_40, %c0_41] : memref<1x128xf32, #tpu.memory_space<vmem>>, vector<1x128xf32>
    %71 = vector.broadcast %70 : vector<1x128xf32> to vector<64x128xf32>
    %72 = arith.addf %69, %71 : vector<64x128xf32>
    %cst_42 = arith.constant 0.000000e+00 : f32
    %73 = vector.broadcast %cst_42 : f32 to vector<64x128xf32>
    %74 = arith.cmpf oge, %72, %73 : vector<64x128xf32>
    %cst_43 = arith.constant 2.000000e-01 : f32
    %75 = vector.broadcast %cst_43 : f32 to vector<64x128xf32>
    %76 = arith.mulf %75, %72 : vector<64x128xf32>
    %77 = arith.select %74, %72, %76 : vector<64x128xi1>, vector<64x128xf32>
    %cst_44 = arith.constant dense<0.000000e+00> : vector<128xf32>
    %78 = vector.multi_reduction <add>, %77, %cst_44 [0] : vector<64x128xf32> to vector<128xf32>
    %79 = vector.shape_cast %78 : vector<128xf32> to vector<1x128xf32>
    %cst_45 = arith.constant 6.400000e+01 : f32
    %80 = vector.broadcast %cst_45 : f32 to vector<1x128xf32>
    %81 = arith.divf %79, %80 : vector<1x128xf32>
    %82 = arith.mulf %77, %77 : vector<64x128xf32>
    %cst_46 = arith.constant dense<0.000000e+00> : vector<128xf32>
    %83 = vector.multi_reduction <add>, %82, %cst_46 [0] : vector<64x128xf32> to vector<128xf32>
    %84 = vector.shape_cast %83 : vector<128xf32> to vector<1x128xf32>
    %cst_47 = arith.constant 6.400000e+01 : f32
    %85 = vector.broadcast %cst_47 : f32 to vector<1x128xf32>
    %86 = arith.divf %84, %85 : vector<1x128xf32>
    %87 = arith.mulf %81, %81 : vector<1x128xf32>
    %88 = arith.subf %86, %87 : vector<1x128xf32>
    %cst_48 = arith.constant 0.000000e+00 : f32
    %89 = vector.broadcast %cst_48 : f32 to vector<1x128xf32>
    %90 = arith.maximumf %88, %89 : vector<1x128xf32>
    %91 = vector.broadcast %81 : vector<1x128xf32> to vector<64x128xf32>
    %92 = arith.subf %77, %91 : vector<64x128xf32>
    %cst_49 = arith.constant 9.99999974E-6 : f32
    %93 = vector.broadcast %cst_49 : f32 to vector<1x128xf32>
    %94 = arith.addf %90, %93 : vector<1x128xf32>
    %95 = math.rsqrt %94 : vector<1x128xf32>
    %96 = vector.broadcast %95 : vector<1x128xf32> to vector<64x128xf32>
    %97 = arith.mulf %92, %96 : vector<64x128xf32>
    %98 = arith.truncf %97 : vector<64x128xf32> to vector<64x128xbf16>
    %c0_50 = arith.constant 0 : index
    %c0_51 = arith.constant 0 : index
    %99 = vector.load %arg7[%c0_50, %c0_51] : memref<144x64xbf16, #tpu.memory_space<vmem>>, vector<144x64xbf16>
    %cst_52 = arith.constant dense<0.000000e+00> : vector<144x128xf32>
    %100 = tpu.matmul %99, %98, %cst_52 {dimension_numbers = #tpu.dot_dimension_numbers<[1], [0], [0], [1], [0, 0, 1, 1], [], []>} : vector<144x64xbf16>, vector<64x128xbf16>, vector<144x128xf32> -> vector<144x128xf32>
    %cst_53 = arith.constant 0.000000e+00 : f32
    %101 = vector.broadcast %cst_53 : f32 to vector<16x256xf32>
    %102 = vector.extract_strided_slice %100 {offsets = [0, 0], sizes = [16, 128], strides = [1, 1]} : vector<144x128xf32> to vector<16x128xf32>
    %103 = arith.truncf %102 : vector<16x128xf32> to vector<16x128xbf16>
    %c0_54 = arith.constant 0 : index
    %c0_55 = arith.constant 0 : index
    %c0_56 = arith.constant 0 : index
    %104 = vector.load %arg8[%c0_54, %c0_55, %c0_56] : memref<9x128x256xbf16, #tpu.memory_space<vmem>>, vector<1x128x256xbf16>
    %105 = vector.shape_cast %104 : vector<1x128x256xbf16> to vector<128x256xbf16>
    %cst_57 = arith.constant dense<0.000000e+00> : vector<16x256xf32>
    %106 = tpu.matmul %103, %105, %cst_57 {dimension_numbers = #tpu.dot_dimension_numbers<[1], [0], [0], [1], [0, 0, 1, 1], [], []>} : vector<16x128xbf16>, vector<128x256xbf16>, vector<16x256xf32> -> vector<16x256xf32>
    %107 = arith.addf %101, %106 : vector<16x256xf32>
    %108 = vector.extract_strided_slice %100 {offsets = [16, 0], sizes = [16, 128], strides = [1, 1]} : vector<144x128xf32> to vector<16x128xf32>
    %109 = arith.truncf %108 : vector<16x128xf32> to vector<16x128xbf16>
    %c1_58 = arith.constant 1 : index
    %c0_59 = arith.constant 0 : index
    %c0_60 = arith.constant 0 : index
    %110 = vector.load %arg8[%c1_58, %c0_59, %c0_60] : memref<9x128x256xbf16, #tpu.memory_space<vmem>>, vector<1x128x256xbf16>
    %111 = vector.shape_cast %110 : vector<1x128x256xbf16> to vector<128x256xbf16>
    %cst_61 = arith.constant dense<0.000000e+00> : vector<16x256xf32>
    %112 = tpu.matmul %109, %111, %cst_61 {dimension_numbers = #tpu.dot_dimension_numbers<[1], [0], [0], [1], [0, 0, 1, 1], [], []>} : vector<16x128xbf16>, vector<128x256xbf16>, vector<16x256xf32> -> vector<16x256xf32>
    %113 = arith.addf %107, %112 : vector<16x256xf32>
    %114 = vector.extract_strided_slice %100 {offsets = [32, 0], sizes = [16, 128], strides = [1, 1]} : vector<144x128xf32> to vector<16x128xf32>
    %115 = arith.truncf %114 : vector<16x128xf32> to vector<16x128xbf16>
    %c2_62 = arith.constant 2 : index
    %c0_63 = arith.constant 0 : index
    %c0_64 = arith.constant 0 : index
    %116 = vector.load %arg8[%c2_62, %c0_63, %c0_64] : memref<9x128x256xbf16, #tpu.memory_space<vmem>>, vector<1x128x256xbf16>
    %117 = vector.shape_cast %116 : vector<1x128x256xbf16> to vector<128x256xbf16>
    %cst_65 = arith.constant dense<0.000000e+00> : vector<16x256xf32>
    %118 = tpu.matmul %115, %117, %cst_65 {dimension_numbers = #tpu.dot_dimension_numbers<[1], [0], [0], [1], [0, 0, 1, 1], [], []>} : vector<16x128xbf16>, vector<128x256xbf16>, vector<16x256xf32> -> vector<16x256xf32>
    %119 = arith.addf %113, %118 : vector<16x256xf32>
    %120 = vector.extract_strided_slice %100 {offsets = [48, 0], sizes = [16, 128], strides = [1, 1]} : vector<144x128xf32> to vector<16x128xf32>
    %121 = arith.truncf %120 : vector<16x128xf32> to vector<16x128xbf16>
    %c3_66 = arith.constant 3 : index
    %c0_67 = arith.constant 0 : index
    %c0_68 = arith.constant 0 : index
    %122 = vector.load %arg8[%c3_66, %c0_67, %c0_68] : memref<9x128x256xbf16, #tpu.memory_space<vmem>>, vector<1x128x256xbf16>
    %123 = vector.shape_cast %122 : vector<1x128x256xbf16> to vector<128x256xbf16>
    %cst_69 = arith.constant dense<0.000000e+00> : vector<16x256xf32>
    %124 = tpu.matmul %121, %123, %cst_69 {dimension_numbers = #tpu.dot_dimension_numbers<[1], [0], [0], [1], [0, 0, 1, 1], [], []>} : vector<16x128xbf16>, vector<128x256xbf16>, vector<16x256xf32> -> vector<16x256xf32>
    %125 = arith.addf %119, %124 : vector<16x256xf32>
    %126 = vector.extract_strided_slice %100 {offsets = [64, 0], sizes = [16, 128], strides = [1, 1]} : vector<144x128xf32> to vector<16x128xf32>
    %127 = arith.truncf %126 : vector<16x128xf32> to vector<16x128xbf16>
    %c4_70 = arith.constant 4 : index
    %c0_71 = arith.constant 0 : index
    %c0_72 = arith.constant 0 : index
    %128 = vector.load %arg8[%c4_70, %c0_71, %c0_72] : memref<9x128x256xbf16, #tpu.memory_space<vmem>>, vector<1x128x256xbf16>
    %129 = vector.shape_cast %128 : vector<1x128x256xbf16> to vector<128x256xbf16>
    %cst_73 = arith.constant dense<0.000000e+00> : vector<16x256xf32>
    %130 = tpu.matmul %127, %129, %cst_73 {dimension_numbers = #tpu.dot_dimension_numbers<[1], [0], [0], [1], [0, 0, 1, 1], [], []>} : vector<16x128xbf16>, vector<128x256xbf16>, vector<16x256xf32> -> vector<16x256xf32>
    %131 = arith.addf %125, %130 : vector<16x256xf32>
    %132 = vector.extract_strided_slice %100 {offsets = [80, 0], sizes = [16, 128], strides = [1, 1]} : vector<144x128xf32> to vector<16x128xf32>
    %133 = arith.truncf %132 : vector<16x128xf32> to vector<16x128xbf16>
    %c5_74 = arith.constant 5 : index
    %c0_75 = arith.constant 0 : index
    %c0_76 = arith.constant 0 : index
    %134 = vector.load %arg8[%c5_74, %c0_75, %c0_76] : memref<9x128x256xbf16, #tpu.memory_space<vmem>>, vector<1x128x256xbf16>
    %135 = vector.shape_cast %134 : vector<1x128x256xbf16> to vector<128x256xbf16>
    %cst_77 = arith.constant dense<0.000000e+00> : vector<16x256xf32>
    %136 = tpu.matmul %133, %135, %cst_77 {dimension_numbers = #tpu.dot_dimension_numbers<[1], [0], [0], [1], [0, 0, 1, 1], [], []>} : vector<16x128xbf16>, vector<128x256xbf16>, vector<16x256xf32> -> vector<16x256xf32>
    %137 = arith.addf %131, %136 : vector<16x256xf32>
    %138 = vector.extract_strided_slice %100 {offsets = [96, 0], sizes = [16, 128], strides = [1, 1]} : vector<144x128xf32> to vector<16x128xf32>
    %139 = arith.truncf %138 : vector<16x128xf32> to vector<16x128xbf16>
    %c6_78 = arith.constant 6 : index
    %c0_79 = arith.constant 0 : index
    %c0_80 = arith.constant 0 : index
    %140 = vector.load %arg8[%c6_78, %c0_79, %c0_80] : memref<9x128x256xbf16, #tpu.memory_space<vmem>>, vector<1x128x256xbf16>
    %141 = vector.shape_cast %140 : vector<1x128x256xbf16> to vector<128x256xbf16>
    %cst_81 = arith.constant dense<0.000000e+00> : vector<16x256xf32>
    %142 = tpu.matmul %139, %141, %cst_81 {dimension_numbers = #tpu.dot_dimension_numbers<[1], [0], [0], [1], [0, 0, 1, 1], [], []>} : vector<16x128xbf16>, vector<128x256xbf16>, vector<16x256xf32> -> vector<16x256xf32>
    %143 = arith.addf %137, %142 : vector<16x256xf32>
    %144 = vector.extract_strided_slice %100 {offsets = [112, 0], sizes = [16, 128], strides = [1, 1]} : vector<144x128xf32> to vector<16x128xf32>
    %145 = arith.truncf %144 : vector<16x128xf32> to vector<16x128xbf16>
    %c7_82 = arith.constant 7 : index
    %c0_83 = arith.constant 0 : index
    %c0_84 = arith.constant 0 : index
    %146 = vector.load %arg8[%c7_82, %c0_83, %c0_84] : memref<9x128x256xbf16, #tpu.memory_space<vmem>>, vector<1x128x256xbf16>
    %147 = vector.shape_cast %146 : vector<1x128x256xbf16> to vector<128x256xbf16>
    %cst_85 = arith.constant dense<0.000000e+00> : vector<16x256xf32>
    %148 = tpu.matmul %145, %147, %cst_85 {dimension_numbers = #tpu.dot_dimension_numbers<[1], [0], [0], [1], [0, 0, 1, 1], [], []>} : vector<16x128xbf16>, vector<128x256xbf16>, vector<16x256xf32> -> vector<16x256xf32>
    %149 = arith.addf %143, %148 : vector<16x256xf32>
    %150 = vector.extract_strided_slice %100 {offsets = [128, 0], sizes = [16, 128], strides = [1, 1]} : vector<144x128xf32> to vector<16x128xf32>
    %151 = arith.truncf %150 : vector<16x128xf32> to vector<16x128xbf16>
    %c8_86 = arith.constant 8 : index
    %c0_87 = arith.constant 0 : index
    %c0_88 = arith.constant 0 : index
    %152 = vector.load %arg8[%c8_86, %c0_87, %c0_88] : memref<9x128x256xbf16, #tpu.memory_space<vmem>>, vector<1x128x256xbf16>
    %153 = vector.shape_cast %152 : vector<1x128x256xbf16> to vector<128x256xbf16>
    %cst_89 = arith.constant dense<0.000000e+00> : vector<16x256xf32>
    %154 = tpu.matmul %151, %153, %cst_89 {dimension_numbers = #tpu.dot_dimension_numbers<[1], [0], [0], [1], [0, 0, 1, 1], [], []>} : vector<16x128xbf16>, vector<128x256xbf16>, vector<16x256xf32> -> vector<16x256xf32>
    %155 = arith.addf %149, %154 : vector<16x256xf32>
    %c0_90 = arith.constant 0 : index
    %c0_91 = arith.constant 0 : index
    %156 = vector.load %arg9[%c0_90, %c0_91] : memref<1x256xf32, #tpu.memory_space<vmem>>, vector<1x256xf32>
    %157 = vector.broadcast %156 : vector<1x256xf32> to vector<16x256xf32>
    %158 = arith.addf %155, %157 : vector<16x256xf32>
    %cst_92 = arith.constant 0.000000e+00 : f32
    %159 = vector.broadcast %cst_92 : f32 to vector<16x256xf32>
    %160 = arith.cmpf oge, %158, %159 : vector<16x256xf32>
    %cst_93 = arith.constant 2.000000e-01 : f32
    %161 = vector.broadcast %cst_93 : f32 to vector<16x256xf32>
    %162 = arith.mulf %161, %158 : vector<16x256xf32>
    %163 = arith.select %160, %158, %162 : vector<16x256xi1>, vector<16x256xf32>
    %cst_94 = arith.constant dense<0.000000e+00> : vector<256xf32>
    %164 = vector.multi_reduction <add>, %163, %cst_94 [0] : vector<16x256xf32> to vector<256xf32>
    %165 = vector.shape_cast %164 : vector<256xf32> to vector<1x256xf32>
    %cst_95 = arith.constant 1.600000e+01 : f32
    %166 = vector.broadcast %cst_95 : f32 to vector<1x256xf32>
    %167 = arith.divf %165, %166 : vector<1x256xf32>
    %168 = arith.mulf %163, %163 : vector<16x256xf32>
    %cst_96 = arith.constant dense<0.000000e+00> : vector<256xf32>
    %169 = vector.multi_reduction <add>, %168, %cst_96 [0] : vector<16x256xf32> to vector<256xf32>
    %170 = vector.shape_cast %169 : vector<256xf32> to vector<1x256xf32>
    %cst_97 = arith.constant 1.600000e+01 : f32
    %171 = vector.broadcast %cst_97 : f32 to vector<1x256xf32>
    %172 = arith.divf %170, %171 : vector<1x256xf32>
    %173 = arith.mulf %167, %167 : vector<1x256xf32>
    %174 = arith.subf %172, %173 : vector<1x256xf32>
    %cst_98 = arith.constant 0.000000e+00 : f32
    %175 = vector.broadcast %cst_98 : f32 to vector<1x256xf32>
    %176 = arith.maximumf %174, %175 : vector<1x256xf32>
    %177 = vector.broadcast %167 : vector<1x256xf32> to vector<16x256xf32>
    %178 = arith.subf %163, %177 : vector<16x256xf32>
    %cst_99 = arith.constant 9.99999974E-6 : f32
    %179 = vector.broadcast %cst_99 : f32 to vector<1x256xf32>
    %180 = arith.addf %176, %179 : vector<1x256xf32>
    %181 = math.rsqrt %180 : vector<1x256xf32>
    %182 = vector.broadcast %181 : vector<1x256xf32> to vector<16x256xf32>
    %183 = arith.mulf %178, %182 : vector<16x256xf32>
    %184 = arith.truncf %183 : vector<16x256xf32> to vector<16x256xbf16>
    %c0_100 = arith.constant 0 : index
    %c0_101 = arith.constant 0 : index
    %185 = vector.load %arg10[%c0_100, %c0_101] : memref<36x16xbf16, #tpu.memory_space<vmem>>, vector<36x16xbf16>
    %cst_102 = arith.constant dense<0.000000e+00> : vector<36x256xf32>
    %186 = tpu.matmul %185, %184, %cst_102 {dimension_numbers = #tpu.dot_dimension_numbers<[1], [0], [0], [1], [0, 0, 1, 1], [], []>} : vector<36x16xbf16>, vector<16x256xbf16>, vector<36x256xf32> -> vector<36x256xf32>
    %cst_103 = arith.constant 0.000000e+00 : f32
    %187 = vector.broadcast %cst_103 : f32 to vector<4x512xf32>
    %188 = vector.extract_strided_slice %186 {offsets = [0, 0], sizes = [4, 256], strides = [1, 1]} : vector<36x256xf32> to vector<4x256xf32>
    %189 = arith.truncf %188 : vector<4x256xf32> to vector<4x256xbf16>
    %c0_104 = arith.constant 0 : index
    %c0_105 = arith.constant 0 : index
    %c0_106 = arith.constant 0 : index
    %190 = vector.load %arg11[%c0_104, %c0_105, %c0_106] : memref<9x256x512xbf16, #tpu.memory_space<vmem>>, vector<1x256x512xbf16>
    %191 = vector.shape_cast %190 : vector<1x256x512xbf16> to vector<256x512xbf16>
    %cst_107 = arith.constant dense<0.000000e+00> : vector<4x512xf32>
    %192 = tpu.matmul %189, %191, %cst_107 {dimension_numbers = #tpu.dot_dimension_numbers<[1], [0], [0], [1], [0, 0, 1, 1], [], []>} : vector<4x256xbf16>, vector<256x512xbf16>, vector<4x512xf32> -> vector<4x512xf32>
    %193 = arith.addf %187, %192 : vector<4x512xf32>
    %194 = vector.extract_strided_slice %186 {offsets = [4, 0], sizes = [4, 256], strides = [1, 1]} : vector<36x256xf32> to vector<4x256xf32>
    %195 = arith.truncf %194 : vector<4x256xf32> to vector<4x256xbf16>
    %c1_108 = arith.constant 1 : index
    %c0_109 = arith.constant 0 : index
    %c0_110 = arith.constant 0 : index
    %196 = vector.load %arg11[%c1_108, %c0_109, %c0_110] : memref<9x256x512xbf16, #tpu.memory_space<vmem>>, vector<1x256x512xbf16>
    %197 = vector.shape_cast %196 : vector<1x256x512xbf16> to vector<256x512xbf16>
    %cst_111 = arith.constant dense<0.000000e+00> : vector<4x512xf32>
    %198 = tpu.matmul %195, %197, %cst_111 {dimension_numbers = #tpu.dot_dimension_numbers<[1], [0], [0], [1], [0, 0, 1, 1], [], []>} : vector<4x256xbf16>, vector<256x512xbf16>, vector<4x512xf32> -> vector<4x512xf32>
    %199 = arith.addf %193, %198 : vector<4x512xf32>
    %200 = vector.extract_strided_slice %186 {offsets = [8, 0], sizes = [4, 256], strides = [1, 1]} : vector<36x256xf32> to vector<4x256xf32>
    %201 = arith.truncf %200 : vector<4x256xf32> to vector<4x256xbf16>
    %c2_112 = arith.constant 2 : index
    %c0_113 = arith.constant 0 : index
    %c0_114 = arith.constant 0 : index
    %202 = vector.load %arg11[%c2_112, %c0_113, %c0_114] : memref<9x256x512xbf16, #tpu.memory_space<vmem>>, vector<1x256x512xbf16>
    %203 = vector.shape_cast %202 : vector<1x256x512xbf16> to vector<256x512xbf16>
    %cst_115 = arith.constant dense<0.000000e+00> : vector<4x512xf32>
    %204 = tpu.matmul %201, %203, %cst_115 {dimension_numbers = #tpu.dot_dimension_numbers<[1], [0], [0], [1], [0, 0, 1, 1], [], []>} : vector<4x256xbf16>, vector<256x512xbf16>, vector<4x512xf32> -> vector<4x512xf32>
    %205 = arith.addf %199, %204 : vector<4x512xf32>
    %206 = vector.extract_strided_slice %186 {offsets = [12, 0], sizes = [4, 256], strides = [1, 1]} : vector<36x256xf32> to vector<4x256xf32>
    %207 = arith.truncf %206 : vector<4x256xf32> to vector<4x256xbf16>
    %c3_116 = arith.constant 3 : index
    %c0_117 = arith.constant 0 : index
    %c0_118 = arith.constant 0 : index
    %208 = vector.load %arg11[%c3_116, %c0_117, %c0_118] : memref<9x256x512xbf16, #tpu.memory_space<vmem>>, vector<1x256x512xbf16>
    %209 = vector.shape_cast %208 : vector<1x256x512xbf16> to vector<256x512xbf16>
    %cst_119 = arith.constant dense<0.000000e+00> : vector<4x512xf32>
    %210 = tpu.matmul %207, %209, %cst_119 {dimension_numbers = #tpu.dot_dimension_numbers<[1], [0], [0], [1], [0, 0, 1, 1], [], []>} : vector<4x256xbf16>, vector<256x512xbf16>, vector<4x512xf32> -> vector<4x512xf32>
    %211 = arith.addf %205, %210 : vector<4x512xf32>
    %212 = vector.extract_strided_slice %186 {offsets = [16, 0], sizes = [4, 256], strides = [1, 1]} : vector<36x256xf32> to vector<4x256xf32>
    %213 = arith.truncf %212 : vector<4x256xf32> to vector<4x256xbf16>
    %c4_120 = arith.constant 4 : index
    %c0_121 = arith.constant 0 : index
    %c0_122 = arith.constant 0 : index
    %214 = vector.load %arg11[%c4_120, %c0_121, %c0_122] : memref<9x256x512xbf16, #tpu.memory_space<vmem>>, vector<1x256x512xbf16>
    %215 = vector.shape_cast %214 : vector<1x256x512xbf16> to vector<256x512xbf16>
    %cst_123 = arith.constant dense<0.000000e+00> : vector<4x512xf32>
    %216 = tpu.matmul %213, %215, %cst_123 {dimension_numbers = #tpu.dot_dimension_numbers<[1], [0], [0], [1], [0, 0, 1, 1], [], []>} : vector<4x256xbf16>, vector<256x512xbf16>, vector<4x512xf32> -> vector<4x512xf32>
    %217 = arith.addf %211, %216 : vector<4x512xf32>
    %218 = vector.extract_strided_slice %186 {offsets = [20, 0], sizes = [4, 256], strides = [1, 1]} : vector<36x256xf32> to vector<4x256xf32>
    %219 = arith.truncf %218 : vector<4x256xf32> to vector<4x256xbf16>
    %c5_124 = arith.constant 5 : index
    %c0_125 = arith.constant 0 : index
    %c0_126 = arith.constant 0 : index
    %220 = vector.load %arg11[%c5_124, %c0_125, %c0_126] : memref<9x256x512xbf16, #tpu.memory_space<vmem>>, vector<1x256x512xbf16>
    %221 = vector.shape_cast %220 : vector<1x256x512xbf16> to vector<256x512xbf16>
    %cst_127 = arith.constant dense<0.000000e+00> : vector<4x512xf32>
    %222 = tpu.matmul %219, %221, %cst_127 {dimension_numbers = #tpu.dot_dimension_numbers<[1], [0], [0], [1], [0, 0, 1, 1], [], []>} : vector<4x256xbf16>, vector<256x512xbf16>, vector<4x512xf32> -> vector<4x512xf32>
    %223 = arith.addf %217, %222 : vector<4x512xf32>
    %224 = vector.extract_strided_slice %186 {offsets = [24, 0], sizes = [4, 256], strides = [1, 1]} : vector<36x256xf32> to vector<4x256xf32>
    %225 = arith.truncf %224 : vector<4x256xf32> to vector<4x256xbf16>
    %c6_128 = arith.constant 6 : index
    %c0_129 = arith.constant 0 : index
    %c0_130 = arith.constant 0 : index
    %226 = vector.load %arg11[%c6_128, %c0_129, %c0_130] : memref<9x256x512xbf16, #tpu.memory_space<vmem>>, vector<1x256x512xbf16>
    %227 = vector.shape_cast %226 : vector<1x256x512xbf16> to vector<256x512xbf16>
    %cst_131 = arith.constant dense<0.000000e+00> : vector<4x512xf32>
    %228 = tpu.matmul %225, %227, %cst_131 {dimension_numbers = #tpu.dot_dimension_numbers<[1], [0], [0], [1], [0, 0, 1, 1], [], []>} : vector<4x256xbf16>, vector<256x512xbf16>, vector<4x512xf32> -> vector<4x512xf32>
    %229 = arith.addf %223, %228 : vector<4x512xf32>
    %230 = vector.extract_strided_slice %186 {offsets = [28, 0], sizes = [4, 256], strides = [1, 1]} : vector<36x256xf32> to vector<4x256xf32>
    %231 = arith.truncf %230 : vector<4x256xf32> to vector<4x256xbf16>
    %c7_132 = arith.constant 7 : index
    %c0_133 = arith.constant 0 : index
    %c0_134 = arith.constant 0 : index
    %232 = vector.load %arg11[%c7_132, %c0_133, %c0_134] : memref<9x256x512xbf16, #tpu.memory_space<vmem>>, vector<1x256x512xbf16>
    %233 = vector.shape_cast %232 : vector<1x256x512xbf16> to vector<256x512xbf16>
    %cst_135 = arith.constant dense<0.000000e+00> : vector<4x512xf32>
    %234 = tpu.matmul %231, %233, %cst_135 {dimension_numbers = #tpu.dot_dimension_numbers<[1], [0], [0], [1], [0, 0, 1, 1], [], []>} : vector<4x256xbf16>, vector<256x512xbf16>, vector<4x512xf32> -> vector<4x512xf32>
    %235 = arith.addf %229, %234 : vector<4x512xf32>
    %236 = vector.extract_strided_slice %186 {offsets = [32, 0], sizes = [4, 256], strides = [1, 1]} : vector<36x256xf32> to vector<4x256xf32>
    %237 = arith.truncf %236 : vector<4x256xf32> to vector<4x256xbf16>
    %c8_136 = arith.constant 8 : index
    %c0_137 = arith.constant 0 : index
    %c0_138 = arith.constant 0 : index
    %238 = vector.load %arg11[%c8_136, %c0_137, %c0_138] : memref<9x256x512xbf16, #tpu.memory_space<vmem>>, vector<1x256x512xbf16>
    %239 = vector.shape_cast %238 : vector<1x256x512xbf16> to vector<256x512xbf16>
    %cst_139 = arith.constant dense<0.000000e+00> : vector<4x512xf32>
    %240 = tpu.matmul %237, %239, %cst_139 {dimension_numbers = #tpu.dot_dimension_numbers<[1], [0], [0], [1], [0, 0, 1, 1], [], []>} : vector<4x256xbf16>, vector<256x512xbf16>, vector<4x512xf32> -> vector<4x512xf32>
    %241 = arith.addf %235, %240 : vector<4x512xf32>
    %c0_140 = arith.constant 0 : index
    %c0_141 = arith.constant 0 : index
    %242 = vector.load %arg12[%c0_140, %c0_141] : memref<1x512xf32, #tpu.memory_space<vmem>>, vector<1x512xf32>
    %243 = vector.broadcast %242 : vector<1x512xf32> to vector<4x512xf32>
    %244 = arith.addf %241, %243 : vector<4x512xf32>
    %cst_142 = arith.constant 0.000000e+00 : f32
    %245 = vector.broadcast %cst_142 : f32 to vector<4x512xf32>
    %246 = arith.cmpf oge, %244, %245 : vector<4x512xf32>
    %cst_143 = arith.constant 2.000000e-01 : f32
    %247 = vector.broadcast %cst_143 : f32 to vector<4x512xf32>
    %248 = arith.mulf %247, %244 : vector<4x512xf32>
    %249 = arith.select %246, %244, %248 : vector<4x512xi1>, vector<4x512xf32>
    %cst_144 = arith.constant dense<0.000000e+00> : vector<512xf32>
    %250 = vector.multi_reduction <add>, %249, %cst_144 [0] : vector<4x512xf32> to vector<512xf32>
    %251 = vector.shape_cast %250 : vector<512xf32> to vector<1x512xf32>
    %cst_145 = arith.constant 4.000000e+00 : f32
    %252 = vector.broadcast %cst_145 : f32 to vector<1x512xf32>
    %253 = arith.divf %251, %252 : vector<1x512xf32>
    %254 = arith.mulf %249, %249 : vector<4x512xf32>
    %cst_146 = arith.constant dense<0.000000e+00> : vector<512xf32>
    %255 = vector.multi_reduction <add>, %254, %cst_146 [0] : vector<4x512xf32> to vector<512xf32>
    %256 = vector.shape_cast %255 : vector<512xf32> to vector<1x512xf32>
    %cst_147 = arith.constant 4.000000e+00 : f32
    %257 = vector.broadcast %cst_147 : f32 to vector<1x512xf32>
    %258 = arith.divf %256, %257 : vector<1x512xf32>
    %259 = arith.mulf %253, %253 : vector<1x512xf32>
    %260 = arith.subf %258, %259 : vector<1x512xf32>
    %cst_148 = arith.constant 0.000000e+00 : f32
    %261 = vector.broadcast %cst_148 : f32 to vector<1x512xf32>
    %262 = arith.maximumf %260, %261 : vector<1x512xf32>
    %263 = vector.broadcast %253 : vector<1x512xf32> to vector<4x512xf32>
    %264 = arith.subf %249, %263 : vector<4x512xf32>
    %cst_149 = arith.constant 9.99999974E-6 : f32
    %265 = vector.broadcast %cst_149 : f32 to vector<1x512xf32>
    %266 = arith.addf %262, %265 : vector<1x512xf32>
    %267 = math.rsqrt %266 : vector<1x512xf32>
    %268 = vector.broadcast %267 : vector<1x512xf32> to vector<4x512xf32>
    %269 = arith.mulf %264, %268 : vector<4x512xf32>
    %270 = arith.truncf %269 : vector<4x512xf32> to vector<4x512xbf16>
    %c0_150 = arith.constant 0 : index
    %c0_151 = arith.constant 0 : index
    %271 = vector.load %arg14[%c0_150, %c0_151] : memref<1x128xf32, #tpu.memory_space<vmem>>, vector<1x128xf32>
    %272 = vector.extract_strided_slice %270 {offsets = [0, 0], sizes = [1, 512], strides = [1, 1]} : vector<4x512xbf16> to vector<1x512xbf16>
    %c0_152 = arith.constant 0 : index
    %c0_153 = arith.constant 0 : index
    %c0_154 = arith.constant 0 : index
    %273 = vector.load %arg13[%c0_152, %c0_153, %c0_154] : memref<4x512x128xbf16, #tpu.memory_space<vmem>>, vector<1x512x128xbf16>
    %274 = vector.shape_cast %273 : vector<1x512x128xbf16> to vector<512x128xbf16>
    %cst_155 = arith.constant dense<0.000000e+00> : vector<1x128xf32>
    %275 = tpu.matmul %272, %274, %cst_155 {dimension_numbers = #tpu.dot_dimension_numbers<[1], [0], [0], [1], [0, 0, 1, 1], [], []>} : vector<1x512xbf16>, vector<512x128xbf16>, vector<1x128xf32> -> vector<1x128xf32>
    %276 = arith.addf %271, %275 : vector<1x128xf32>
    %277 = vector.extract_strided_slice %270 {offsets = [1, 0], sizes = [1, 512], strides = [1, 1]} : vector<4x512xbf16> to vector<1x512xbf16>
    %c1_156 = arith.constant 1 : index
    %c0_157 = arith.constant 0 : index
    %c0_158 = arith.constant 0 : index
    %278 = vector.load %arg13[%c1_156, %c0_157, %c0_158] : memref<4x512x128xbf16, #tpu.memory_space<vmem>>, vector<1x512x128xbf16>
    %279 = vector.shape_cast %278 : vector<1x512x128xbf16> to vector<512x128xbf16>
    %cst_159 = arith.constant dense<0.000000e+00> : vector<1x128xf32>
    %280 = tpu.matmul %277, %279, %cst_159 {dimension_numbers = #tpu.dot_dimension_numbers<[1], [0], [0], [1], [0, 0, 1, 1], [], []>} : vector<1x512xbf16>, vector<512x128xbf16>, vector<1x128xf32> -> vector<1x128xf32>
    %281 = arith.addf %276, %280 : vector<1x128xf32>
    %282 = vector.extract_strided_slice %270 {offsets = [2, 0], sizes = [1, 512], strides = [1, 1]} : vector<4x512xbf16> to vector<1x512xbf16>
    %c2_160 = arith.constant 2 : index
    %c0_161 = arith.constant 0 : index
    %c0_162 = arith.constant 0 : index
    %283 = vector.load %arg13[%c2_160, %c0_161, %c0_162] : memref<4x512x128xbf16, #tpu.memory_space<vmem>>, vector<1x512x128xbf16>
    %284 = vector.shape_cast %283 : vector<1x512x128xbf16> to vector<512x128xbf16>
    %cst_163 = arith.constant dense<0.000000e+00> : vector<1x128xf32>
    %285 = tpu.matmul %282, %284, %cst_163 {dimension_numbers = #tpu.dot_dimension_numbers<[1], [0], [0], [1], [0, 0, 1, 1], [], []>} : vector<1x512xbf16>, vector<512x128xbf16>, vector<1x128xf32> -> vector<1x128xf32>
    %286 = arith.addf %281, %285 : vector<1x128xf32>
    %287 = vector.extract_strided_slice %270 {offsets = [3, 0], sizes = [1, 512], strides = [1, 1]} : vector<4x512xbf16> to vector<1x512xbf16>
    %c3_164 = arith.constant 3 : index
    %c0_165 = arith.constant 0 : index
    %c0_166 = arith.constant 0 : index
    %288 = vector.load %arg13[%c3_164, %c0_165, %c0_166] : memref<4x512x128xbf16, #tpu.memory_space<vmem>>, vector<1x512x128xbf16>
    %289 = vector.shape_cast %288 : vector<1x512x128xbf16> to vector<512x128xbf16>
    %cst_167 = arith.constant dense<0.000000e+00> : vector<1x128xf32>
    %290 = tpu.matmul %287, %289, %cst_167 {dimension_numbers = #tpu.dot_dimension_numbers<[1], [0], [0], [1], [0, 0, 1, 1], [], []>} : vector<1x512xbf16>, vector<512x128xbf16>, vector<1x128xf32> -> vector<1x128xf32>
    %291 = arith.addf %286, %290 : vector<1x128xf32>
    %cst_168 = arith.constant dense<0xFF800000> : vector<1xf32>
    %292 = vector.multi_reduction <maximumf>, %291, %cst_168 [1] : vector<1x128xf32> to vector<1xf32>
    %293 = vector.shape_cast %292 : vector<1xf32> to vector<1x1xf32>
    %294 = vector.broadcast %293 : vector<1x1xf32> to vector<1x128xf32>
    %295 = arith.subf %291, %294 : vector<1x128xf32>
    %296 = math.exp %295 : vector<1x128xf32>
    %cst_169 = arith.constant dense<0.000000e+00> : vector<1xf32>
    %297 = vector.multi_reduction <add>, %296, %cst_169 [1] : vector<1x128xf32> to vector<1xf32>
    %298 = vector.shape_cast %297 : vector<1xf32> to vector<1x1xf32>
    %299 = vector.broadcast %298 : vector<1x1xf32> to vector<1x128xf32>
    %300 = arith.divf %296, %299 : vector<1x128xf32>
    %c0_170 = arith.constant 0 : index
    %c0_171 = arith.constant 0 : index
    %c0_172 = arith.constant 0 : index
    %301 = vector.load %arg15[%c0_170, %c0_171, %c0_172] : memref<1x1x128xf32, #tpu.memory_space<vmem>>, vector<1x1x128xf32>
    %302 = vector.shape_cast %301 : vector<1x1x128xf32> to vector<1x128xf32>
    %303 = vector.shape_cast %300 : vector<1x128xf32> to vector<1x1x128xf32>
    tpu.vector_store %arg15[%c0_170, %c0_171, %c0_172], %303 {strides = array<i32>} : memref<1x1x128xf32, #tpu.memory_space<vmem>>, vector<1x1x128xf32>,
    return
  }
  func.func @transform_0(%arg0: i32) -> (i32, i32, i32) {
    %c0_i32 = arith.constant 0 : i32
    %c0_i32_0 = arith.constant 0 : i32
    %c0_i32_1 = arith.constant 0 : i32
    return %arg0, %c0_i32, %c0_i32_0 : i32, i32, i32
  }
  func.func @transform_1(%arg0: i32) -> (i32, i32) {
    %c0_i32 = arith.constant 0 : i32
    %c0_i32_0 = arith.constant 0 : i32
    %c0_i32_1 = arith.constant 0 : i32
    return %c0_i32, %c0_i32_0 : i32, i32
  }
  func.func @transform_2(%arg0: i32) -> (i32, i32) {
    %c0_i32 = arith.constant 0 : i32
    %c0_i32_0 = arith.constant 0 : i32
    %c0_i32_1 = arith.constant 0 : i32
    return %c0_i32, %c0_i32_0 : i32, i32
  }
  func.func @transform_3(%arg0: i32) -> (i32, i32) {
    %c0_i32 = arith.constant 0 : i32
    %c0_i32_0 = arith.constant 0 : i32
    %c0_i32_1 = arith.constant 0 : i32
    return %c0_i32, %c0_i32_0 : i32, i32
  }
  func.func @transform_4(%arg0: i32) -> (i32, i32, i32) {
    %c0_i32 = arith.constant 0 : i32
    %c0_i32_0 = arith.constant 0 : i32
    %c0_i32_1 = arith.constant 0 : i32
    %c0_i32_2 = arith.constant 0 : i32
    return %c0_i32, %c0_i32_0, %c0_i32_1 : i32, i32, i32
  }
  func.func @transform_5(%arg0: i32) -> (i32, i32) {
    %c0_i32 = arith.constant 0 : i32
    %c0_i32_0 = arith.constant 0 : i32
    %c0_i32_1 = arith.constant 0 : i32
    return %c0_i32, %c0_i32_0 : i32, i32
  }
  func.func @transform_6(%arg0: i32) -> (i32, i32) {
    %c0_i32 = arith.constant 0 : i32
    %c0_i32_0 = arith.constant 0 : i32
    %c0_i32_1 = arith.constant 0 : i32
    return %c0_i32, %c0_i32_0 : i32, i32
  }
  func.func @transform_7(%arg0: i32) -> (i32, i32, i32) {
    %c0_i32 = arith.constant 0 : i32
    %c0_i32_0 = arith.constant 0 : i32
    %c0_i32_1 = arith.constant 0 : i32
    %c0_i32_2 = arith.constant 0 : i32
    return %c0_i32, %c0_i32_0, %c0_i32_1 : i32, i32, i32
  }
  func.func @transform_8(%arg0: i32) -> (i32, i32) {
    %c0_i32 = arith.constant 0 : i32
    %c0_i32_0 = arith.constant 0 : i32
    %c0_i32_1 = arith.constant 0 : i32
    return %c0_i32, %c0_i32_0 : i32, i32
  }
  func.func @transform_9(%arg0: i32) -> (i32, i32) {
    %c0_i32 = arith.constant 0 : i32
    %c0_i32_0 = arith.constant 0 : i32
    %c0_i32_1 = arith.constant 0 : i32
    return %c0_i32, %c0_i32_0 : i32, i32
  }
  func.func @transform_10(%arg0: i32) -> (i32, i32, i32) {
    %c0_i32 = arith.constant 0 : i32
    %c0_i32_0 = arith.constant 0 : i32
    %c0_i32_1 = arith.constant 0 : i32
    %c0_i32_2 = arith.constant 0 : i32
    return %c0_i32, %c0_i32_0, %c0_i32_1 : i32, i32, i32
  }
  func.func @transform_11(%arg0: i32) -> (i32, i32) {
    %c0_i32 = arith.constant 0 : i32
    %c0_i32_0 = arith.constant 0 : i32
    %c0_i32_1 = arith.constant 0 : i32
    return %c0_i32, %c0_i32_0 : i32, i32
  }
  func.func @transform_12(%arg0: i32) -> (i32, i32, i32) {
    %c0_i32 = arith.constant 0 : i32
    %c0_i32_0 = arith.constant 0 : i32
    %c0_i32_1 = arith.constant 0 : i32
    %c0_i32_2 = arith.constant 0 : i32
    return %c0_i32, %c0_i32_0, %c0_i32_1 : i32, i32, i32
  }
  func.func @transform_13(%arg0: i32) -> (i32, i32) {
    %c0_i32 = arith.constant 0 : i32
    %c0_i32_0 = arith.constant 0 : i32
    %c0_i32_1 = arith.constant 0 : i32
    return %c0_i32, %c0_i32_0 : i32, i32
  }
  func.func @transform_14(%arg0: i32) -> (i32, i32, i32) {
    %c0_i32 = arith.constant 0 : i32
    %c0_i32_0 = arith.constant 0 : i32
    %c0_i32_1 = arith.constant 0 : i32
    return %arg0, %c0_i32, %c0_i32_0 : i32, i32, i32
  }
}

</mosaic_0001>

<bundles_post_ra>
// kernel: classifier_forward.1
= control target key start
LH: loop header
LB: loop body
LE: loop exit
PB: predicated region body
PF: predicated region fallthrough
CT: control target
= control target key end

     0   :  { %s18094_s0 = inlined_call_operand.vmem [shape: bf16[2,256,32], index: 0, kind: input, shape index: {}]   ;;  %s18095_s1 = inlined_call_operand.vmem [shape: bf16[32,64], index: 1, kind: input, shape index: {}]   ;;  %s18096_s2 = inlined_call_operand.vmem [shape: f32[1,64], index: 2, kind: input, shape index: {}]   ;;  %s18097_s3 = inlined_call_operand.vmem [shape: bf16[576,256], index: 3, kind: input, shape index: {}]   ;;  %s18098_s4 = inlined_call_operand.vmem [shape: bf16[9,64,128], index: 4, kind: input, shape index: {}]   ;;  %s18099_s5 = inlined_call_operand.vmem [shape: f32[1,128], index: 5, kind: input, shape index: {}]   ;;  %s18100_s6 = inlined_call_operand.vmem [shape: bf16[144,64], index: 6, kind: input, shape index: {}]   ;;  %s18101_s7 = inlined_call_operand.vmem [shape: bf16[9,128,256], index: 7, kind: input, shape index: {}]   ;;  %s18102_s8 = inlined_call_operand.vmem [shape: f32[1,256], index: 8, kind: input, shape index: {}]   ;;  %s18103_s9 = inlined_call_operand.vmem [shape: bf16[36,16], index: 9, kind: input, shape index: {}]   ;;  %s18104_s10 = inlined_call_operand.vmem [shape: bf16[9,256,512], index: 10, kind: input, shape index: {}]   ;;  %s18105_s11 = inlined_call_operand.vmem [shape: f32[1,512], index: 11, kind: input, shape index: {}]   ;;  %s18106_s12 = inlined_call_operand.vmem [shape: bf16[4,512,128], index: 12, kind: input, shape index: {}]   ;;  %s18107_s13 = inlined_call_operand.vmem [shape: f32[1,128], index: 13, kind: input, shape index: {}]   ;;  %s18108_s14 = inlined_call_operand.hbm [shape: f32[2,1,128], index: 14, kind: output, shape index: {}]  }
   0x1   :  { %18110 = sst [smem:[#allocation7_spill]] %s18094_s0 }
   0x2   :  { %18111 = sst [smem:[#allocation8_spill]] %s18095_s1 }
   0x3   :  { %18112 = sst [smem:[#allocation9_spill]] %s18096_s2 }
   0x4   :  { %19 = vsyncpa [#allocation3], 0 }
   0x5   :  { %21 = vsyncpa [#allocation3 + $0x1], 0  ;;  %s14441_s29 = smov 0   ;;  %s14443_s30 = smov 0  }
   0x6   :  { %s14445_s15 = smov 0   ;;  %s14447_s16 = smov 0  }
   0x7 LB: > { %18113 = sst [smem:[#allocation5_spill]] %s14356_s15  ;;  %s14462_s17 = sadd.s32 4294967295, %s14360_s16   ;;  %s14360_s16 = sphi %s14447_s16, %s18124_s16   ;;  %s14356_s15 = sphi %s14445_s15, %s18121_s15   ;;  %s14352_s30 = sphi %s14443_s30, %s18123_s30   ;;  %s14348_s29 = sphi %s14441_s29, %s18122_s29  }
   0x8   : > { %s10397_s18 = sadd.s32 4294967294, %s14360_s16   ;;  %s14466_s19 = sadd.s32 1, %s14360_s16  }
   0x9   : > { %s333_s20 = sadd.s32 1, %s14356_s15  ;;  %s330_s21 = ssub.s32 %s14360_s16, %s14466_s19 }
   0xa   : > { %p343_p0 = scmp.ne.s32.totalorder %s14356_s15, %s14352_s30  ;;  %p331_p1 = scmp.eq.s32.totalorder %s330_s21, 0 }
   0xb   : > { %p344_p2 = scmp.eq.s32.totalorder %s14462_s17, 1  ;;  %p349_p3 = scmp.ne.s32.totalorder %s14352_s30, %s14348_s29 }
   0xc   : > { %p350_p4 = scmp.eq.s32.totalorder %s10397_s18, 1  ;;  %p10400_p7 = scmp.ge.s32.totalorder %s14360_s16, 1 }
   0xd   : > { %s14477_s22 = scalar_select %p331_p1, %s14356_s15, %s333_s20  }
   0xe   : > { %p14479_p5 = por %p344_p2, %p343_p0  ;;  %p14483_p6 = por %p350_p4, %p349_p3 }
   0xf   : > { %18114 = sst [smem:[#allocation6_spill]] %s14477_s22  ;;  %p415_p8 = scmp.lt.s32.totalorder %s14360_s16, 3 }
  0x11   : > { %p416_p9 = pnand %p10400_p7, %p415_p8 }
  0x12   : > { %s18117_s1 = sld [smem:[#allocation8_spill]] (!%p416_p9)  ;;  %p460_p10 = scmp.lt.s32.totalorder (!%p416_p9), %s14462_s17, 1 }
  0x13   : > { %419 = sbr.rel (%p416_p9) target bundleno = 3307 (0xceb), region = 76  ;;  %s18118_s0 = sld [smem:[#allocation7_spill]] (!%p416_p9) }
  0x14   : > { %s18119_s2 = sld [smem:[#allocation9_spill]] (!%p416_p9)  ;;  %s458_s25 = sand.u32 (!%p416_p9), 1, %s14352_s30  }
  0x15   : > { %s459_s26 = scalar_lea.vmem (!%p416_p9), [#allocation2], %s458_s25  ;;  %s14365_s22 = smov (!%p416_p9), [#allocation2]  }
  0x16   : > { %s10342_s27 = sshll.u32 (!%p416_p9), %s459_s26, 4  ;;  %s10343_s27 = int_to_ptr.vmem [resolvable:$true] %s10342_s27 }
  0x17   : > { %s14300_s21 = scalar_lea.vmem (!%p416_p9), %s10343_s27, 16 }
  0x18   : > { %v12900_v0 = vld [vmem:[%s18117_s1 + $0x8] sm:$0xff]   ;;  %v12901_v1 = vld [vmem:[%s18117_s1] sm:$0xff]   ;;  %s461_s18 = scalar_select %p460_p10, %s14462_s17, 1  ;;  %vm601_vm0 = vcmask 261120   ;;  %v14362_v18 = vmov 0  }
  0x19   : > { %12634 = vmatprep.subr.bf16.mxu1 %v12900_v0  ;;  %v12920_v19 = vld [vmem:[%s18097_s3 + $0x4] ss:$8 sps:$4 sm:$0xff]   ;;  %p14301_p11 = scmp.ne.s32.totalorder %s10343_s27, %s14300_s21  ;;  %s14304_s1 = sshll.u32 %s14365_s22, 4  ;;  %s14305_s1 = int_to_ptr.vmem [resolvable:$false] %s14304_s1 }
  0x1a   : > { %12635 = vmatpush3.bf16.msra.mxu1 %v12900_v0  ;;  %s12354_s20 = sshll.u32 %s461_s18, 7  ;;  %v14551_v31 = vld [vmem:[%s18119_s2] ss:$0 sm:$0xff]  ;;  %p14307_p0 = scmp.lt.s32.totalorder %s10343_s27, %s14305_s1 }
  0x1b   : > { %12636 = vmatprep.subr.bf16.mxu1 %v12901_v1  ;;  %s14500_s15 = scalar_lea.vmem %s18118_s0, %s12354_s20  ;;  %s10330_s20 = scalar_lea.sflag [#allocation3], %s458_s25 }
  0x1c   : > { %v12902_v2 = vld [vmem:[%s14500_s15] sm:$0xff]   ;;  %v12903_v3 = vld [vmem:[%s14500_s15 + $0x8] sm:$0xff]   ;;  %v12904_v4 = vld [vmem:[%s14500_s15 + $0x10] sm:$0xff]   ;;  %p14302_p12 = pnand %p14301_p11, %p14479_p5 }
  0x1d   : > { %12638 = vmatprep.mubr.msk.bf16.mxu1 %vm601_vm0, %v12902_v2  ;;  %v12905_v5 = vld [vmem:[%s14500_s15 + $0x18] sm:$0xff]   ;;  %v12906_v6 = vld [vmem:[%s14500_s15 + $0x20] sm:$0xff]   ;;  %v12907_v7 = vld [vmem:[%s14500_s15 + $0x28] sm:$0xff]  }
  0x1e   : > { %12637 = vmatpush3.bf16.msra.mxu1 %v12901_v1  ;;  %v12908_v8 = vld [vmem:[%s14500_s15 + $0x30] sm:$0xff]   ;;  %v12909_v9 = vld [vmem:[%s14500_s15 + $0x38] sm:$0xff]   ;;  %v12910_v10 = vld [vmem:[%s14500_s15 + $0x40] sm:$0xff]   ;;  %p14303_p13 = pneg %p14302_p12 }
  0x1f   : > { %v12911_v11 = vld [vmem:[%s14500_s15 + $0x48] sm:$0xff]   ;;  %v12912_v12 = vld [vmem:[%s14500_s15 + $0x50] sm:$0xff]   ;;  %v12913_v13 = vld [vmem:[%s14500_s15 + $0x58] sm:$0xff]   ;;  %1355 = vmatprep.subr.bf16.mxu1 %v14362_v18 }
  0x20   : > { %v12914_v14 = vld [vmem:[%s14500_s15 + $0x60] sm:$0xff]   ;;  %v12915_v15 = vld [vmem:[%s14500_s15 + $0x68] sm:$0xff]   ;;  %v12916_v16 = vld [vmem:[%s14500_s15 + $0x70] sm:$0xff]  }
  0x21   : > { %12639 = vmatmul.mubr.msk.bf16.vlgmr.msra.gmra.mxu1 %vm601_vm0, %v12903_v3  ;;  %v12917_v17 = vld [vmem:[%s14500_s15 + $0x78] sm:$0xff]   ;;  %s12351_s15 = sshll.u32 %s14462_s17, 4  ;;  %s14306_s17 = scalar_lea.vmem %s14305_s1, 32 }
  0x22   : > { %12642 = vmatprep.mubr.msk.bf16.mxu1 %vm601_vm0, %v12904_v4  ;;  %s10340_s0 = scalar_lea.hbm %s18108_s14, %s12351_s15  ;;  %p14308_p1 = scmp.lt.s32.totalorder %s14306_s17, %s14300_s21 }
  0x24   : > { %p14309_p2 = por %p14308_p1, %p14307_p0 }
  0x26   : > { %p14310_p3 = pnand %p14309_p2, %p14303_p13 }
  0x29   : > { %12643 = vmatmul.mubr.msk.bf16.gmra.mxu1 %vm601_vm0, %v12905_v5 }
  0x2a   : > { %12646 = vmatprep.mubr.msk.bf16.mxu1 %vm601_vm0, %v12906_v6 }
  0x31   : > { %12647 = vmatmul.mubr.msk.bf16.gmra.mxu1 %vm601_vm0, %v12907_v7 }
  0x32   : > { %12650 = vmatprep.mubr.msk.bf16.mxu1 %vm601_vm0, %v12908_v8 }
  0x39   : > { %12651 = vmatmul.mubr.msk.bf16.gmra.mxu1 %vm601_vm0, %v12909_v9 }
  0x3a   : > { %12654 = vmatprep.mubr.msk.bf16.mxu1 %vm601_vm0, %v12910_v10 }
  0x41   : > { %12655 = vmatmul.mubr.msk.bf16.gmra.mxu1 %vm601_vm0, %v12911_v11 }
  0x42   : > { %12658 = vmatprep.mubr.msk.bf16.mxu1 %vm601_vm0, %v12912_v12 }
  0x49   : > { %12659 = vmatmul.mubr.msk.bf16.gmra.mxu1 %vm601_vm0, %v12913_v13 }
  0x4a   : > { %12662 = vmatprep.mubr.msk.bf16.mxu1 %vm601_vm0, %v12914_v14 }
  0x51   : > { %12663 = vmatmul.mubr.msk.bf16.gmra.mxu1 %vm601_vm0, %v12915_v15 }
  0x52   : > { %12666 = vmatprep.mubr.msk.bf16.mxu1 %vm601_vm0, %v12916_v16 }
  0x59   : > { %12667 = vmatmul.mubr.msk.bf16.gmra.mxu1 %vm601_vm0, %v12917_v17 }
  0x5a   : > { %1387 = vmatprep.mubr.bf16.mxu1 %v12920_v19 }
  0xe1   : > { %v14538_v20 = vpop.f32.mrf.mxu1 }
  0xe3   : > { %v14540_v21 = vpop.f32.mrf.mxu1 }
  0xe5   : > { %v14542_v22 = vpop.f32.mrf.mxu1 }
  0xe6   : > { %v696_v15 = vadd.f32 %v14542_v22, %v14551_v31 }
  0xe7   : > { %v14544_v23 = vpop.f32.mrf.mxu1 }
  0xe8   : > { %vm814_vm13 = vcmp.ge.f32.partialorder %v696_v15, 0.0 }
  0xe9   : > { %v12644_v24 = vpop.f32.mrf.mxu1 }
  0xea   : > { %v709_v1 = vadd.f32 %v12644_v24, %v14551_v31  ;;  %v693_v24 = vadd.f32 %v14538_v20, %v14551_v31 }
  0xeb   : > { %v14546_v25 = vpop.f32.mrf.mxu1 }
  0xec   : > { %v849_v10 = vmul.f32 0.2, %v709_v1  ;;  %v701_v11 = vadd.f32 %v14551_v31, %v14546_v25  ;;  %vm817_vm10 = vcmp.ge.f32.partialorder %v709_v1, 0.0  ;;  %vm813_vm14 = vcmp.ge.f32.partialorder %v693_v24, 0.0 }
  0xed   : > { %v12645_v26 = vpop.f32.mrf.mxu1 }
  0xee   : > { %v712_v61 = vadd.f32 %v12645_v26, %v14551_v31  ;;  %v881_v26 = vsel %vm817_vm10, %v709_v1, %v849_v10  ;;  %v847_v25 = vmul.f32 0.2, %v701_v11  ;;  %vm815_vm12 = vcmp.ge.f32.partialorder %v701_v11, 0.0 }
  0xef   : > { %v703_v27 = vpop.f32.mrf.mxu1 }
  0xf0   : > { %v850_v6 = vmul.f32 0.2, %v712_v61  ;;  %v704_v7 = vadd.f32 %v14551_v31, %v703_v27  ;;  %vm818_vm9 = vcmp.ge.f32.partialorder %v712_v61, 0.0  ;;  %v879_v20 = vsel %vm815_vm12, %v701_v11, %v847_v25 }
  0xf1   : > { %v12648_v28 = vpop.f32.mrf.mxu1 }
  0xf2   : > { %v725_v44 = vadd.f32 %v12648_v28, %v14551_v31  ;;  %v882_v16 = vsel %vm818_vm9, %v712_v61, %v850_v6  ;;  %v848_v17 = vmul.f32 0.2, %v704_v7  ;;  %vm816_vm11 = vcmp.ge.f32.partialorder %v704_v7, 0.0 }
  0xf3   : > { %v716_v29 = vpop.f32.mrf.mxu1  ;;  %v910_v27 = vpack.c.bf16 %v882_v16, %v881_v26 }
  0xf4   : > { %v853_v56 = vmul.f32 0.2, %v725_v44  ;;  %v717_v57 = vadd.f32 %v14551_v31, %v716_v29  ;;  %vm821_vm6 = vcmp.ge.f32.partialorder %v725_v44, 0.0  ;;  %v846_v29 = vmul.f32 0.2, %v696_v15 }
  0xf5   : > { %v12649_v30 = vpop.f32.mrf.mxu1  ;;  %v880_v22 = vsel %vm816_vm11, %v704_v7, %v848_v17 }
  0xf6   : > { %v728_v41 = vadd.f32 %v12649_v30, %v14551_v31  ;;  %v885_v2 = vsel %vm821_vm6, %v725_v44, %v853_v56  ;;  %v851_v3 = vmul.f32 0.2, %v717_v57  ;;  %vm819_vm8 = vcmp.ge.f32.partialorder %v717_v57, 0.0 }
  0xf7   : > { %v719_v32 = vpop.f32.mrf.mxu1  ;;  %v688_v30 = vadd.f32 %v14551_v31, %v14544_v23 }
  0xf8   : > { %v854_v52 = vmul.f32 0.2, %v728_v41  ;;  %v720_v53 = vadd.f32 %v14551_v31, %v719_v32  ;;  %vm822_vm5 = vcmp.ge.f32.partialorder %v728_v41, 0.0  ;;  %v883_v12 = vsel %vm819_vm8, %v717_v57, %v851_v3 }
  0xf9   : > { %v12652_v33 = vpop.f32.mrf.mxu1  ;;  %vm812_vm15 = vcmp.ge.f32.partialorder %v688_v30, 0.0 }
  0xfa   : > { %v741_v34 = vadd.f32 %v12652_v33, %v14551_v31  ;;  %v886_v62 = vsel %vm822_vm5, %v728_v41, %v854_v52  ;;  %v852_v63 = vmul.f32 0.2, %v720_v53  ;;  %vm820_vm7 = vcmp.ge.f32.partialorder %v720_v53, 0.0 }
  0xfb   : > { %v732_v35 = vpop.f32.mrf.mxu1  ;;  %v912_v4 = vpack.c.bf16 %v886_v62, %v885_v2  ;;  %v845_v33 = vmul.f32 0.2, %v693_v24 }
  0xfc   : > { %v733_v36 = vadd.f32 %v14551_v31, %v732_v35  ;;  %v857_v38 = vmul.f32 0.2, %v741_v34  ;;  %vm825_vm1 = vcmp.ge.f32.partialorder %v741_v34, 0.0  ;;  %v884_v8 = vsel %vm820_vm7, %v720_v53, %v852_v63 }
  0xfd   : > { %v12653_v37 = vpop.f32.mrf.mxu1  ;;  %v911_v13 = vpack.c.bf16 %v884_v8, %v883_v12  ;;  %v909_v35 = vpack.c.bf16 %v880_v22, %v879_v20  ;;  %v877_v23 = vsel %vm813_vm14, %v693_v24, %v845_v33 }
  0xfe   : > { %v744_v39 = vadd.f32 %v12653_v37, %v14551_v31  ;;  %v855_v45 = vmul.f32 0.2, %v733_v36  ;;  %v889_v47 = vsel %vm825_vm1, %v741_v34, %v857_v38  ;;  %vm823_vm4 = vcmp.ge.f32.partialorder %v733_v36, 0.0 }
  0xff   : > { %v735_v40 = vpop.f32.mrf.mxu1  ;;  %v685_v34 = vadd.f32 %v14551_v31, %v14540_v21  ;;  %v878_v37 = vsel %vm814_vm13, %v696_v15, %v846_v29  ;;  %v844_v38 = vmul.f32 0.2, %v688_v30 }
 0x100   : > { %vm826_vm2 = vcmp.ge.f32.partialorder %v744_v39, 0.0  ;;  %v858_v42 = vmul.f32 0.2, %v744_v39  ;;  %v736_v43 = vadd.f32 %v14551_v31, %v735_v40  ;;  %v887_v58 = vsel %vm823_vm4, %v733_v36, %v855_v45 }
 0x101   : > { %v14559_v46 = vpop.f32.mrf.mxu1  ;;  %v843_v40 = vmul.f32 0.2, %v685_v34  ;;  %vm811_vm0 = vcmp.ge.f32.partialorder %v685_v34, 0.0 }
 0x102   : > { %v890_v48 = vsel %vm826_vm2, %v744_v39, %v858_v42  ;;  %vm824_vm3 = vcmp.ge.f32.partialorder %v736_v43, 0.0  ;;  %v856_v49 = vmul.f32 0.2, %v736_v43  ;;  %v908_v42 = vpack.c.bf16 %v878_v37, %v877_v23 }
 0x103   : > { %v914_v50 = vpack.c.bf16 %v890_v48, %v889_v47  ;;  %v14561_v51 = vpop.f32.mrf.mxu1  ;;  %v875_v47 = vsel %vm811_vm0, %v685_v34, %v843_v40 }
 0x104   : > { %v888_v54 = vsel %vm824_vm3, %v736_v43, %v856_v49  ;;  %v876_v43 = vsel %vm812_vm15, %v688_v30, %v844_v38 }
 0x105   : > { %v14564_v55 = vpop.f32.mrf.mxu1  ;;  %1356 = vmatpush1.bf16.msra.mxu1 %v914_v50  ;;  %v913_v59 = vpack.c.bf16 %v888_v54, %v887_v58  ;;  %v907_v50 = vpack.c.bf16 %v876_v43, %v875_v47  ;;  %v12924_v43 = vld [vmem:[%s18097_s3 + $0x24] ss:$8 sps:$4 sm:$0xff]   ;;  %v12929_v47 = vld [vmem:[%s18097_s3 + $0x30] ss:$8 sps:$4 sm:$0xff]  }
 0x106   : > { %1357 = vmatprep.subr.bf16.mxu1 %v14362_v18 }
 0x107   : > { %v14568_v60 = vpop.f32.mrf.mxu1 }
 0x108   : > { %v752_v34 = vadd.f32 %v14551_v31, %v14568_v60 }
 0x109   : > { %v14571_v0 = vpop.f32.mrf.mxu1  ;;  %1358 = vmatpush1.bf16.msra.mxu1 %v913_v59 }
 0x10a   : > { %1359 = vmatprep.subr.bf16.mxu1 %v14362_v18  ;;  %v860_v38 = vmul.f32 0.2, %v752_v34  ;;  %vm828_vm15 = vcmp.ge.f32.partialorder %v752_v34, 0.0 }
 0x10b   : > { %v14575_v5 = vpop.f32.mrf.mxu1 }
 0x10c   : > { %v765_v25 = vadd.f32 %v14551_v31, %v14575_v5  ;;  %v892_v40 = vsel %vm828_vm15, %v752_v34, %v860_v38  ;;  %v12984_v34 = vld [vmem:[%s18097_s3 + $0x160] ss:$8 sps:$4 sm:$0xff]   ;;  %vm4453_vm15 = vcmask 130048  }
 0x10d   : > { %v14578_v9 = vpop.f32.mrf.mxu1  ;;  %1360 = vmatpush1.bf16.msra.mxu1 %v912_v4 }
 0x10e   : > { %1361 = vmatprep.subr.bf16.mxu1 %v14362_v18  ;;  %v776_v10 = vadd.f32 %v14578_v9, %v14551_v31  ;;  %vm831_vm12 = vcmp.ge.f32.partialorder %v765_v25, 0.0 }
 0x10f   : > { %v14583_v14 = vpop.f32.mrf.mxu1 }
 0x110   : > { %v768_v24 = vadd.f32 %v14551_v31, %v14583_v14  ;;  %vm834_vm9 = vcmp.ge.f32.partialorder %v776_v10, 0.0  ;;  %v757_v14 = vadd.f32 %v14559_v46, %v14551_v31 }
 0x111   : > { %v12664_v19 = vpop.f32.mrf.mxu1  ;;  %1362 = vmatpush1.bf16.msra.mxu1 %v911_v13  ;;  %v773_v13 = vadd.f32 %v14571_v0, %v14551_v31 }
 0x112   : > { %1363 = vmatprep.subr.bf16.mxu1 %v14362_v18  ;;  %v789_v57 = vadd.f32 %v12664_v19, %v14551_v31  ;;  %v866_v19 = vmul.f32 0.2, %v776_v10  ;;  %v864_v30 = vmul.f32 0.2, %v768_v24  ;;  %vm832_vm11 = vcmp.ge.f32.partialorder %v768_v24, 0.0 }
 0x113   : > { %v780_v28 = vpop.f32.mrf.mxu1  ;;  %v865_v9 = vmul.f32 0.2, %v773_v13  ;;  %vm833_vm10 = vcmp.ge.f32.partialorder %v773_v13, 0.0  ;;  %vm829_vm14 = vcmp.ge.f32.partialorder %v757_v14, 0.0 }
 0x114   : > { %v869_v4 = vmul.f32 0.2, %v789_v57  ;;  %v781_v6 = vadd.f32 %v14551_v31, %v780_v28  ;;  %vm837_vm6 = vcmp.ge.f32.partialorder %v789_v57, 0.0  ;;  %v760_v28 = vadd.f32 %v14564_v55, %v14551_v31 }
 0x115   : > { %v12665_v32 = vpop.f32.mrf.mxu1  ;;  %1364 = vmatpush1.bf16.msra.mxu1 %v910_v27  ;;  %v898_v29 = vsel %vm834_vm9, %v776_v10, %v866_v19  ;;  %v897_v22 = vsel %vm833_vm10, %v773_v13, %v865_v9  ;;  %v896_v20 = vsel %vm832_vm11, %v768_v24, %v864_v30  ;;  %v861_v55 = vmul.f32 0.2, %v757_v14  ;;  %v13006_v10 = vld [vmem:[%s18098_s4 + $0x30] sm:$0xff]   ;;  %v13010_v13 = vld [vmem:[%s18098_s4 + $0x28] sm:$0xff]  }
 0x116   : > { %1365 = vmatprep.subr.bf16.mxu1 %v14362_v18  ;;  %v792_v53 = vadd.f32 %v12665_v32, %v14551_v31  ;;  %v901_v15 = vsel %vm837_vm6, %v789_v57, %v869_v4  ;;  %v867_v16 = vmul.f32 0.2, %v781_v6  ;;  %vm835_vm8 = vcmp.ge.f32.partialorder %v781_v6, 0.0  ;;  %v12941_v57 = vld [vmem:[%s18097_s3 + $0x70] ss:$8 sps:$4 sm:$0xff]  }
 0x117   : > { %v783_v36 = vpop.f32.mrf.mxu1  ;;  %v863_v32 = vmul.f32 0.2, %v765_v25  ;;  %v918_v5 = vpack.c.bf16 %v898_v29, %v897_v22  ;;  %v862_v33 = vmul.f32 0.2, %v760_v28  ;;  %vm830_vm13 = vcmp.ge.f32.partialorder %v760_v28, 0.0 }
 0x118   : > { %v870_v1 = vmul.f32 0.2, %v792_v53  ;;  %v784_v2 = vadd.f32 %v14551_v31, %v783_v36  ;;  %vm838_vm5 = vcmp.ge.f32.partialorder %v792_v53, 0.0  ;;  %v899_v27 = vsel %vm835_vm8, %v781_v6, %v867_v16  ;;  %v12954_v4 = vld [vmem:[%s18097_s3 + $0xc4] ss:$8 sps:$4 sm:$0xff]  }
 0x119   : > { %v12668_v39 = vpop.f32.mrf.mxu1  ;;  %1366 = vmatpush1.bf16.msra.mxu1 %v909_v35  ;;  %v749_v35 = vadd.f32 %v14551_v31, %v14561_v51  ;;  %v895_v36 = vsel %vm831_vm12, %v765_v25, %v863_v32  ;;  %v894_v37 = vsel %vm830_vm13, %v760_v28, %v862_v33  ;;  %v12956_v6 = vld [vmem:[%s18097_s3 + $0xc0] ss:$8 sps:$4 sm:$0xff]   ;;  %v12965_v19 = vld [vmem:[%s18097_s3 + $0xf0] ss:$8 sps:$4 sm:$0xff]   ;;  %v12966_v24 = vld [vmem:[%s18097_s3 + $0x104] ss:$8 sps:$4 sm:$0xff]  }
 0x11a   : > { %v805_v41 = vadd.f32 %v12668_v39, %v14551_v31  ;;  %1367 = vmatprep.subr.bf16.mxu1 %v14362_v18  ;;  %v902_v11 = vsel %vm838_vm5, %v792_v53, %v870_v1  ;;  %v868_v12 = vmul.f32 0.2, %v784_v2  ;;  %vm836_vm7 = vcmp.ge.f32.partialorder %v784_v2, 0.0  ;;  %v12936_v53 = vld [vmem:[%s18097_s3 + $0x64] ss:$8 sps:$4 sm:$0xff]  }
 0x11b   : > { %v796_v21 = vpop.f32.mrf.mxu1  ;;  %v920_v17 = vpack.c.bf16 %v902_v11, %v901_v15  ;;  %v917_v46 = vpack.c.bf16 %v896_v20, %v895_v36  ;;  %v893_v39 = vsel %vm829_vm14, %v757_v14, %v861_v55  ;;  %v859_v23 = vmul.f32 0.2, %v749_v35  ;;  %v12950_v1 = vld [vmem:[%s18097_s3 + $0xa0] ss:$8 sps:$4 sm:$0xff]   ;;  %v12959_v11 = vld [vmem:[%s18097_s3 + $0xd0] ss:$8 sps:$4 sm:$0xff]  }
 0x11c   : > { %v797_v44 = vadd.f32 %v14551_v31, %v796_v21  ;;  %v873_v48 = vmul.f32 0.2, %v805_v41  ;;  %vm841_vm1 = vcmp.ge.f32.partialorder %v805_v41, 0.0  ;;  %v900_v26 = vsel %vm836_vm7, %v784_v2, %v868_v12  ;;  %v12923_v21 = vld [vmem:[%s18097_s3 + $0x10] ss:$8 sps:$4 sm:$0xff]   ;;  %v13011_v15 = vld [vmem:[%s18098_s4 + $0x20] sm:$0xff]  }
 0x11d   : > { %v12669_v45 = vpop.f32.mrf.mxu1  ;;  %1368 = vmatpush1.bf16.msra.mxu1 %v908_v42  ;;  %v919_v0 = vpack.c.bf16 %v900_v26, %v899_v27  ;;  %vm827_vm0 = vcmp.ge.f32.partialorder %v749_v35, 0.0  ;;  %v916_v60 = vpack.c.bf16 %v894_v37, %v893_v39  ;;  %v12921_v42 = vld [vmem:[%s18097_s3 + $0x14] ss:$8 sps:$4 sm:$0xff]   ;;  %v12960_v12 = vld [vmem:[%s18097_s3 + $0xe4] ss:$8 sps:$4 sm:$0xff]  }
 0x11e   : > { %v808_v49 = vadd.f32 %v12669_v45, %v14551_v31  ;;  %1369 = vmatprep.subr.bf16.mxu1 %v14362_v18  ;;  %v871_v58 = vmul.f32 0.2, %v797_v44  ;;  %v905_v59 = vsel %vm841_vm1, %v805_v41, %v873_v48  ;;  %vm839_vm4 = vcmp.ge.f32.partialorder %v797_v44, 0.0  ;;  %v12927_v45 = vld [vmem:[%s18097_s3 + $0x34] ss:$8 sps:$4 sm:$0xff]  }
 0x11f   : > { %v799_v52 = vpop.f32.mrf.mxu1  ;;  %v891_v41 = vsel %vm827_vm0, %v749_v35, %v859_v23  ;;  %v12930_v48 = vld [vmem:[%s18097_s3 + $0x44] ss:$8 sps:$4 sm:$0xff]   ;;  %v12951_v2 = vld [vmem:[%s18097_s3 + $0xb4] ss:$8 sps:$4 sm:$0xff]   ;;  %v12962_v16 = vld [vmem:[%s18097_s3 + $0xe0] ss:$8 sps:$4 sm:$0xff]  }
 0x120   : > { %vm842_vm2 = vcmp.ge.f32.partialorder %v808_v49, 0.0  ;;  %v874_v54 = vmul.f32 0.2, %v808_v49  ;;  %v800_v56 = vadd.f32 %v14551_v31, %v799_v52  ;;  %v903_v7 = vsel %vm839_vm4, %v797_v44, %v871_v58  ;;  %v12918_v31 = vld [vmem:[%s18097_s3] ss:$8 sps:$4 sm:$0xff]   ;;  %v14740_v26 = vld [vmem:[%s18098_s4 + $0x18] sm:$0xff]  }
 0x121   : > { %1370 = vmatpush1.bf16.msra.mxu1 %v907_v50  ;;  %v915_v51 = vpack.c.bf16 %v892_v40, %v891_v41  ;;  %v12926_v44 = vld [vmem:[%s18097_s3 + $0x20] ss:$8 sps:$4 sm:$0xff]   ;;  %v12933_v50 = vld [vmem:[%s18097_s3 + $0x54] ss:$8 sps:$4 sm:$0xff]   ;;  %v12935_v52 = vld [vmem:[%s18097_s3 + $0x50] ss:$8 sps:$4 sm:$0xff]  }
 0x122   : > { %v906_v61 = vsel %vm842_vm2, %v808_v49, %v874_v54  ;;  %vm840_vm3 = vcmp.ge.f32.partialorder %v800_v56, 0.0  ;;  %v872_v62 = vmul.f32 0.2, %v800_v56  ;;  %1371 = vmatprep.subr.bf16.mxu1 %v14362_v18  ;;  %v12932_v49 = vld [vmem:[%s18097_s3 + $0x40] ss:$8 sps:$4 sm:$0xff]   ;;  %vm1725_vm1 = vcmask 523264  }
 0x123   : > { %v922_v63 = vpack.c.bf16 %v906_v61, %v905_v59  ;;  %v12938_v54 = vld [vmem:[%s18097_s3 + $0x60] ss:$8 sps:$4 sm:$0xff]   ;;  %v12942_v58 = vld [vmem:[%s18097_s3 + $0x84] ss:$8 sps:$4 sm:$0xff]   ;;  %v12945_v61 = vld [vmem:[%s18097_s3 + $0x94] ss:$8 sps:$4 sm:$0xff]  }
 0x124   : > { %v904_v3 = vsel %vm840_vm3, %v800_v56, %v872_v62  ;;  %v12939_v56 = vld [vmem:[%s18097_s3 + $0x74] ss:$8 sps:$4 sm:$0xff]   ;;  %v12944_v59 = vld [vmem:[%s18097_s3 + $0x80] ss:$8 sps:$4 sm:$0xff]   ;;  %v12947_v62 = vld [vmem:[%s18097_s3 + $0x90] ss:$8 sps:$4 sm:$0xff]  }
 0x125   : > { %1372 = vmatpush2.bf16.msra.mxu1 %v922_v63  ;;  %v921_v8 = vpack.c.bf16 %v904_v3, %v903_v7  ;;  %v12948_v63 = vld [vmem:[%s18097_s3 + $0xa4] ss:$8 sps:$4 sm:$0xff]   ;;  %v12953_v3 = vld [vmem:[%s18097_s3 + $0xb0] ss:$8 sps:$4 sm:$0xff]   ;;  %v12957_v7 = vld [vmem:[%s18097_s3 + $0xd4] ss:$8 sps:$4 sm:$0xff]  }
 0x126   : > { %1373 = vmatprep.subr.bf16.mxu1 %v14362_v18  ;;  %v12968_v9 = vld [vmem:[%s18097_s3 + $0x100] ss:$8 sps:$4 sm:$0xff]   ;;  %v12969_v25 = vld [vmem:[%s18097_s3 + $0x114] ss:$8 sps:$4 sm:$0xff]   ;;  %v12971_v27 = vld [vmem:[%s18097_s3 + $0x110] ss:$8 sps:$4 sm:$0xff]  }
 0x127   : > { %v12974_v28 = vld [vmem:[%s18097_s3 + $0x120] ss:$8 sps:$4 sm:$0xff]   ;;  %v12975_v29 = vld [vmem:[%s18097_s3 + $0x134] ss:$8 sps:$4 sm:$0xff]   ;;  %v12977_v30 = vld [vmem:[%s18097_s3 + $0x130] ss:$8 sps:$4 sm:$0xff]  }
 0x128   : > { %v12980_v14 = vld [vmem:[%s18097_s3 + $0x144] ss:$8 sps:$4 sm:$0xff]   ;;  %v12978_v22 = vld [vmem:[%s18097_s3 + $0x140] ss:$8 sps:$4 sm:$0xff]   ;;  %v12983_v32 = vld [vmem:[%s18097_s3 + $0x154] ss:$8 sps:$4 sm:$0xff]  }
 0x129   : > { %1374 = vmatpush2.bf16.msra.mxu1 %v921_v8  ;;  %v13005_v8 = vld [vmem:[%s18098_s4 + $0x38] sm:$0xff]   ;;  %v12986_v33 = vld [vmem:[%s18097_s3 + $0x164] ss:$8 sps:$4 sm:$0xff]   ;;  %v12990_v36 = vld [vmem:[%s18097_s3 + $0x180] ss:$8 sps:$4 sm:$0xff]   ;;  %vm14364_vm2 = vmmov 0  }
 0x12a   : > { %1375 = vmatprep.subr.bf16.mxu1 %v14362_v18  ;;  %12670 = vmatprep.subr.bf16.mxu0 %v13005_v8  ;;  %v12989_v20 = vld [vmem:[%s18097_s3 + $0x174] ss:$8 sps:$4 sm:$0xff]   ;;  %v12987_v55 = vld [vmem:[%s18097_s3 + $0x170] ss:$8 sps:$4 sm:$0xff]   ;;  %v12992_v35 = vld [vmem:[%s18097_s3 + $0x184] ss:$8 sps:$4 sm:$0xff]  }
 0x12b   : > { %12671 = vmatpush3.bf16.msra.mxu0 %v13005_v8  ;;  %v12993_v23 = vld [vmem:[%s18097_s3 + $0x190] ss:$8 sps:$4 sm:$0xff]   ;;  %v13012_v8 = vld [vmem:[%s18097_s3 + $0x1e0] ss:$8 sps:$4 sm:$0xff]  }
 0x12c   : > { %12672 = vmatprep.subr.bf16.mxu0 %v13006_v10 }
 0x12d   : > { %1376 = vmatpush2.bf16.msra.mxu1 %v920_v17  ;;  %v12963_v17 = vld [vmem:[%s18097_s3 + $0xf4] ss:$8 sps:$4 sm:$0xff]  }
 0x12e   : > { %1377 = vmatprep.subr.bf16.mxu1 %v14362_v18 }
 0x12f   : > { %12673 = vmatpush3.bf16.msra.mxu0 %v13006_v10 }
 0x130   : > { %12674 = vmatprep.subr.bf16.mxu0 %v13010_v13 }
 0x131   : > { %1378 = vmatpush2.bf16.msra.mxu1 %v919_v0  ;;  %v12972_v0 = vld [vmem:[%s18097_s3 + $0x124] ss:$8 sps:$4 sm:$0xff]  }
 0x132   : > { %1379 = vmatprep.subr.bf16.mxu1 %v14362_v18 }
 0x133   : > { %12675 = vmatpush3.bf16.msra.mxu0 %v13010_v13 }
 0x134   : > { %12676 = vmatprep.subr.bf16.mxu0 %v13011_v15 }
 0x135   : > { %1380 = vmatpush2.bf16.msra.mxu1 %v918_v5  ;;  %v12981_v5 = vld [vmem:[%s18097_s3 + $0x150] ss:$8 sps:$4 sm:$0xff]  }
 0x136   : > { %1381 = vmatprep.subr.bf16.mxu1 %v14362_v18 }
 0x137   : > { %12677 = vmatpush3.bf16.msra.mxu0 %v13011_v15 }
 0x138   : > { %12686 = vmatprep.subr.bf16.mxu0 %v14740_v26 }
 0x139   : > { %1382 = vmatpush2.bf16.msra.mxu1 %v917_v46  ;;  %v12995_v46 = vld [vmem:[%s18097_s3 + $0x194] ss:$8 sps:$4 sm:$0xff]  }
 0x13a   : > { %1383 = vmatprep.subr.bf16.mxu1 %v14362_v18 }
 0x13d   : > { %1384 = vmatpush2.bf16.msra.mxu1 %v916_v60  ;;  %v12998_v60 = vld [vmem:[%s18097_s3 + $0x1a4] ss:$8 sps:$4 sm:$0xff]  }
 0x13e   : > { %1385 = vmatprep.subr.bf16.mxu1 %v14362_v18 }
 0x141   : > { %1386 = vmatpush2.bf16.msra.mxu1 %v915_v51 }
 0x144   : > { %1388 = vmatmul.mubr.bf16.vlgmr.msra.gmra.mxu1 %v12918_v31 }
 0x145   : > { %1395 = vmatprep.mubr.bf16.mxu1 %v12921_v42  ;;  %v12996_v42 = vld [vmem:[%s18097_s3 + $0x1a0] ss:$8 sps:$4 sm:$0xff]  }
 0x14c   : > { %1396 = vmatmul.mubr.bf16.gmra.mxu1 %v12923_v21  ;;  %v13001_v21 = vld [vmem:[%s18097_s3 + $0x1b4] ss:$8 sps:$4 sm:$0xff]  }
 0x14d   : > { %1403 = vmatprep.mubr.bf16.mxu1 %v12924_v43 }
 0x154   : > { %1404 = vmatmul.mubr.bf16.gmra.mxu1 %v12926_v44 }
 0x155   : > { %1411 = vmatprep.mubr.bf16.mxu1 %v12927_v45 }
 0x15c   : > { %1412 = vmatmul.mubr.bf16.gmra.mxu1 %v12929_v47 }
 0x15d   : > { %1419 = vmatprep.mubr.bf16.mxu1 %v12930_v48  ;;  %v12999_v48 = vld [vmem:[%s18097_s3 + $0x1b0] ss:$8 sps:$4 sm:$0xff]  }
 0x164   : > { %1420 = vmatmul.mubr.bf16.gmra.mxu1 %v12932_v49  ;;  %v13004_v49 = vld [vmem:[%s18097_s3 + $0x1c4] ss:$8 sps:$4 sm:$0xff]  }
 0x165   : > { %1427 = vmatprep.mubr.bf16.mxu1 %v12933_v50 }
 0x16c   : > { %1428 = vmatmul.mubr.bf16.gmra.mxu1 %v12935_v52 }
 0x16d   : > { %1435 = vmatprep.mubr.bf16.mxu1 %v12936_v53 }
 0x174   : > { %1436 = vmatmul.mubr.bf16.gmra.mxu1 %v12938_v54 }
 0x175   : > { %1443 = vmatprep.mubr.bf16.mxu1 %v12939_v56  ;;  %v13002_v56 = vld [vmem:[%s18097_s3 + $0x1c0] ss:$8 sps:$4 sm:$0xff]  }
 0x17c   : > { %1444 = vmatmul.mubr.bf16.gmra.mxu1 %v12941_v57  ;;  %v13009_v57 = vld [vmem:[%s18097_s3 + $0x1d4] ss:$8 sps:$4 sm:$0xff]  }
 0x17d   : > { %1451 = vmatprep.mubr.bf16.mxu1 %v12942_v58 }
 0x184   : > { %1452 = vmatmul.mubr.bf16.gmra.mxu1 %v12944_v59 }
 0x185   : > { %1459 = vmatprep.mubr.bf16.mxu1 %v12945_v61 }
 0x18c   : > { %1460 = vmatmul.mubr.bf16.gmra.mxu1 %v12947_v62 }
 0x18d   : > { %1467 = vmatprep.mubr.bf16.mxu1 %v12948_v63  ;;  %v13007_v63 = vld [vmem:[%s18097_s3 + $0x1d0] ss:$8 sps:$4 sm:$0xff]  }
 0x194   : > { %1468 = vmatmul.mubr.bf16.gmra.mxu1 %v12950_v1 }
 0x195   : > { %1475 = vmatprep.mubr.bf16.mxu1 %v12951_v2  ;;  %v13014_v2 = vld [vmem:[%s18097_s3 + $0x1e4] ss:$8 sps:$4 sm:$0xff]  }
 0x19c   : > { %1476 = vmatmul.mubr.bf16.gmra.mxu1 %v12953_v3 }
 0x19d   : > { %1483 = vmatprep.mubr.bf16.mxu1 %v12954_v4 }
 0x1a4   : > { %1484 = vmatmul.mubr.bf16.gmra.mxu1 %v12956_v6 }
 0x1a5   : > { %1491 = vmatprep.mubr.bf16.mxu1 %v12957_v7 }
 0x1ac   : > { %1492 = vmatmul.mubr.bf16.gmra.mxu1 %v12959_v11  ;;  %v13017_v11 = vld [vmem:[%s18097_s3 + $0x1f4] ss:$8 sps:$4 sm:$0xff]  }
 0x1ad   : > { %1499 = vmatprep.mubr.bf16.mxu1 %v12960_v12  ;;  %v13019_v12 = vld [vmem:[%s18098_s4 + $0x10] sm:$0xff]  }
 0x1b4   : > { %1500 = vmatmul.mubr.bf16.gmra.mxu1 %v12962_v16  ;;  %v13023_v16 = vld [vmem:[%s18098_s4 + $0x8] sm:$0xff]  }
 0x1b5   : > { %1507 = vmatprep.mubr.bf16.mxu1 %v12963_v17 }
 0x1bc   : > { %1508 = vmatmul.mubr.bf16.gmra.mxu1 %v12965_v19 }
 0x1bd   : > { %1515 = vmatprep.mubr.bf16.mxu1 %v12966_v24  ;;  %v13015_v24 = vld [vmem:[%s18097_s3 + $0x1f0] ss:$8 sps:$4 sm:$0xff]  }
 0x1c4   : > { %1516 = vmatmul.mubr.bf16.gmra.mxu1 %v12968_v9 }
 0x1c5   : > { %1523 = vmatprep.mubr.bf16.mxu1 %v12969_v25  ;;  %v13022_v25 = vld [vmem:[%s18097_s3 + $0x204] ss:$8 sps:$4 sm:$0xff]  }
 0x1cc   : > { %1524 = vmatmul.mubr.bf16.gmra.mxu1 %v12971_v27 }
 0x1cd   : > { %1531 = vmatprep.mubr.bf16.mxu1 %v12972_v0 }
 0x1d4   : > { %1532 = vmatmul.mubr.bf16.gmra.mxu1 %v12974_v28  ;;  %v13028_v28 = vld [vmem:[%s18098_s4 + $0x58] sm:$0xff]  }
 0x1d5   : > { %1539 = vmatprep.mubr.bf16.mxu1 %v12975_v29 }
 0x1dc   : > { %1540 = vmatmul.mubr.bf16.gmra.mxu1 %v12977_v30 }
 0x1dd   : > { %1547 = vmatprep.mubr.bf16.mxu1 %v12980_v14  ;;  %v13020_v14 = vld [vmem:[%s18097_s3 + $0x200] ss:$8 sps:$4 sm:$0xff]  }
 0x1e4   : > { %1548 = vmatmul.mubr.bf16.gmra.mxu1 %v12978_v22 }
 0x1e5   : > { %1555 = vmatprep.mubr.bf16.mxu1 %v12983_v32  ;;  %v13027_v32 = vld [vmem:[%s18097_s3 + $0x214] ss:$8 sps:$4 sm:$0xff]  }
 0x1ec   : > { %1556 = vmatmul.mubr.bf16.gmra.mxu1 %v12981_v5 }
 0x1ed   : > { %1563 = vmatprep.mubr.bf16.mxu1 %v12986_v33 }
 0x1f4   : > { %1564 = vmatmul.mubr.bf16.gmra.mxu1 %v12984_v34 }
 0x1f5   : > { %1571 = vmatprep.mubr.bf16.mxu1 %v12989_v20 }
 0x1fc   : > { %1572 = vmatmul.mubr.bf16.gmra.mxu1 %v12987_v55 }
 0x1fd   : > { %1579 = vmatprep.mubr.bf16.mxu1 %v12992_v35  ;;  %v13025_v35 = vld [vmem:[%s18097_s3 + $0x210] ss:$8 sps:$4 sm:$0xff]  }
 0x204   : > { %v14797_v37 = vpop.f32.mrf.mxu1  ;;  %1580 = vmatmul.mubr.bf16.gmra.mxu1 %v12990_v36 }
 0x205   : > { %1587 = vmatprep.mubr.bf16.mxu1 %v12995_v46  ;;  %v13032_v46 = vld [vmem:[%s18097_s3 + $0x224] ss:$8 sps:$4 sm:$0xff]  }
 0x206   : > { %v1391_v38 = vpop.f32.mrf.mxu1 }
 0x208   : > { %v14799_v39 = vpop.f32.mrf.mxu1 }
 0x209   : > { %v1676_v5 = vpack.c.bf16 %v14799_v39, %v14797_v37  ;;  %v13029_v39 = vld [vmem:[%s18098_s4 + $0x50] sm:$0xff]  }
 0x20a   : > { %v1394_v40 = vpop.f32.mrf.mxu1 }
 0x20b   : > { %v13033_v40 = vld [vmem:[%s18098_s4 + $0x48] sm:$0xff]  }
 0x20c   : > { %v14807_v41 = vpop.f32.mrf.mxu1  ;;  %1588 = vmatmul.mubr.bf16.gmra.mxu1 %v12993_v23 }
 0x20d   : > { %1595 = vmatprep.mubr.bf16.mxu1 %v12998_v60 }
 0x20e   : > { %v1399_v31 = vpop.f32.mrf.mxu1 }
 0x20f   : > { %v13030_v31 = vld [vmem:[%s18097_s3 + $0x220] ss:$8 sps:$4 sm:$0xff]  }
 0x210   : > { %v14809_v51 = vpop.f32.mrf.mxu1 }
 0x211   : > { %v1677_v36 = vpack.c.bf16 %v14809_v51, %v14807_v41 }
 0x212   : > { %v1402_v43 = vpop.f32.mrf.mxu1 }
 0x214   : > { %v14817_v44 = vpop.f32.mrf.mxu1  ;;  %1596 = vmatmul.mubr.bf16.gmra.mxu1 %v12996_v42  ;;  %v13037_v42 = vld [vmem:[%s18097_s3 + $0x234] ss:$8 sps:$4 sm:$0xff]  }
 0x215   : > { %1603 = vmatprep.mubr.bf16.mxu1 %v13001_v21 }
 0x216   : > { %v1407_v45 = vpop.f32.mrf.mxu1 }
 0x218   : > { %v14819_v47 = vpop.f32.mrf.mxu1 }
 0x219   : > { %v1678_v37 = vpack.c.bf16 %v14819_v47, %v14817_v44  ;;  %v13034_v44 = vld [vmem:[%s18098_s4 + $0x40] sm:$0xff]  }
 0x21a   : > { %v1410_v50 = vpop.f32.mrf.mxu1 }
 0x21b   : > { %v13035_v50 = vld [vmem:[%s18097_s3 + $0x230] ss:$8 sps:$4 sm:$0xff]  }
 0x21c   : > { %v14827_v52 = vpop.f32.mrf.mxu1  ;;  %1604 = vmatmul.mubr.bf16.gmra.mxu1 %v12999_v48  ;;  %v13038_v48 = vld [vmem:[%s18098_s4 + $0x78] sm:$0xff]  }
 0x21d   : > { %1611 = vmatprep.mubr.bf16.mxu1 %v13004_v49 }
 0x21e   : > { %v1415_v53 = vpop.f32.mrf.mxu1 }
 0x220   : > { %v14829_v54 = vpop.f32.mrf.mxu1 }
 0x221   : > { %v1679_v51 = vpack.c.bf16 %v14829_v54, %v14827_v52 }
 0x222   : > { %v1418_v58 = vpop.f32.mrf.mxu1 }
 0x224   : > { %v1421_v59 = vpop.f32.mrf.mxu1  ;;  %1612 = vmatmul.mubr.bf16.gmra.mxu1 %v13002_v56  ;;  %v13039_v56 = vld [vmem:[%s18098_s4 + $0x70] sm:$0xff]  }
 0x225   : > { %1619 = vmatprep.mubr.bf16.mxu1 %v13009_v57 }
 0x226   : > { %v1423_v61 = vpop.f32.mrf.mxu1 }
 0x228   : > { %v1424_v62 = vpop.f32.mrf.mxu1 }
 0x229   : > { %v1688_v1 = vpack.c.bf16 %v1424_v62, %v1421_v59  ;;  %v13040_v59 = vld [vmem:[%s18098_s4 + $0x68] sm:$0xff]  }
 0x22a   : > { %v1426_v3 = vpop.f32.mrf.mxu1 }
 0x22b   : > { %12678 = vmatprep.mubr.msk.bf16.mxu0 %vm1725_vm1, %v1688_v1  ;;  %v13041_v1 = vld [vmem:[%s18098_s4 + $0x60] sm:$0xff]  }
 0x22c   : > { %v1429_v4 = vpop.f32.mrf.mxu1  ;;  %1620 = vmatmul.mubr.bf16.gmra.mxu1 %v13007_v63 }
 0x22d   : > { %1627 = vmatprep.mubr.bf16.mxu1 %v13014_v2 }
 0x22e   : > { %v1431_v6 = vpop.f32.mrf.mxu1 }
 0x230   : > { %v1432_v7 = vpop.f32.mrf.mxu1 }
 0x231   : > { %v1689_v10 = vpack.c.bf16 %v1432_v7, %v1429_v4  ;;  %v13042_v4 = vld [vmem:[%s18098_s4 + $0x98] sm:$0xff]  }
 0x232   : > { %v1434_v13 = vpop.f32.mrf.mxu1 }
 0x233   : > { %12679 = vmatmul.mubr.msk.bf16.vlgmr.msra.gmra.mxu0 %vm1725_vm1, %v1689_v10 }
 0x234   : > { %v1437_v15 = vpop.f32.mrf.mxu1  ;;  %1628 = vmatmul.mubr.bf16.gmra.mxu1 %v13012_v8  ;;  %12687 = vmatpush3.bf16.msra.mxu0 %v14740_v26  ;;  %v13024_v26 = vld [vmem:[%s18098_s4] sm:$0xff]  }
 0x235   : > { %1635 = vmatprep.mubr.bf16.mxu1 %v13017_v11  ;;  %12688 = vmatprep.subr.bf16.mxu0 %v13019_v12 }
 0x236   : > { %v1439_v17 = vpop.f32.mrf.mxu1 }
 0x238   : > { %v1440_v19 = vpop.f32.mrf.mxu1  ;;  %12689 = vmatpush3.bf16.msra.mxu0 %v13019_v12 }
 0x239   : > { %v1690_v9 = vpack.c.bf16 %v1440_v19, %v1437_v15  ;;  %12690 = vmatprep.subr.bf16.mxu0 %v13023_v16  ;;  %v13043_v15 = vld [vmem:[%s18098_s4 + $0x90] sm:$0xff]   ;;  %v13044_v19 = vld [vmem:[%s18098_s4 + $0x88] sm:$0xff]  }
 0x23a   : > { %v1442_v27 = vpop.f32.mrf.mxu1 }
 0x23b   : > { %12682 = vmatprep.mubr.msk.bf16.mxu0 %vm1725_vm1, %v1690_v9 }
 0x23c   : > { %v1445_v0 = vpop.f32.mrf.mxu1  ;;  %1636 = vmatmul.mubr.bf16.gmra.mxu1 %v13015_v24  ;;  %12691 = vmatpush3.bf16.msra.mxu0 %v13023_v16 }
 0x23d   : > { %1643 = vmatprep.mubr.bf16.mxu1 %v13022_v25  ;;  %12692 = vmatprep.subr.bf16.mxu0 %v13024_v26 }
 0x23e   : > { %v1447_v29 = vpop.f32.mrf.mxu1 }
 0x240   : > { %v1448_v30 = vpop.f32.mrf.mxu1  ;;  %12693 = vmatpush3.bf16.msra.mxu0 %v13024_v26  ;;  %v13045_v26 = vld [vmem:[%s18098_s4 + $0x80] sm:$0xff]  }
 0x241   : > { %v1691_v22 = vpack.c.bf16 %v1448_v30, %v1445_v0  ;;  %12702 = vmatprep.subr.bf16.mxu0 %v13028_v28 }
 0x242   : > { %v1450_v33 = vpop.f32.mrf.mxu1 }
 0x243   : > { %12683 = vmatmul.mubr.msk.bf16.gmra.mxu0 %vm1725_vm1, %v1691_v22 }
 0x244   : > { %v1453_v34 = vpop.f32.mrf.mxu1  ;;  %1644 = vmatmul.mubr.bf16.gmra.mxu1 %v13020_v14  ;;  %12694 = vmatprep.mubr.msk.bf16.mxu0 %vm1725_vm1, %v1676_v5 }
 0x245   : > { %1651 = vmatprep.mubr.bf16.mxu1 %v13027_v32 }
 0x246   : > { %v1455_v20 = vpop.f32.mrf.mxu1 }
 0x248   : > { %v1456_v55 = vpop.f32.mrf.mxu1 }
 0x249   : > { %v1904_v21 = vpack.c.bf16 %v1456_v55, %v1453_v34 }
 0x24a   : > { %v1458_v38 = vpop.f32.mrf.mxu1 }
 0x24b   : > { %12695 = vmatmul.mubr.msk.bf16.vlgmr.msra.gmra.mxu0 %vm1725_vm1, %v1677_v36 }
 0x24c   : > { %v1461_v23 = vpop.f32.mrf.mxu1  ;;  %1652 = vmatmul.mubr.bf16.gmra.mxu1 %v13025_v35  ;;  %12698 = vmatprep.mubr.msk.bf16.mxu0 %vm1725_vm1, %v1678_v37  ;;  %v13047_v37 = vld [vmem:[%s18098_s4 + $0xb0] sm:$0xff]  }
 0x24d   : > { %12703 = vmatpush3.bf16.msra.mxu0 %v13028_v28  ;;  %1659 = vmatprep.mubr.bf16.mxu1 %v13032_v46  ;;  %v13046_v28 = vld [vmem:[%s18098_s4 + $0xb8] sm:$0xff]  }
 0x24e   : > { %v1463_v60 = vpop.f32.mrf.mxu1  ;;  %12704 = vmatprep.subr.bf16.mxu0 %v13029_v39 }
 0x250   : > { %v1464_v41 = vpop.f32.mrf.mxu1 }
 0x251   : > { %12705 = vmatpush3.bf16.msra.mxu0 %v13029_v39  ;;  %v1905_v53 = vpack.c.bf16 %v1464_v41, %v1461_v23  ;;  %v13048_v23 = vld [vmem:[%s18098_s4 + $0xa8] sm:$0xff]  }
 0x252   : > { %v1466_v43 = vpop.f32.mrf.mxu1  ;;  %12706 = vmatprep.subr.bf16.mxu0 %v13033_v40 }
 0x253   : > { %12699 = vmatmul.mubr.msk.bf16.gmra.mxu0 %vm1725_vm1, %v1679_v51 }
 0x254   : > { %v1469_v45 = vpop.f32.mrf.mxu1  ;;  %1660 = vmatmul.mubr.bf16.gmra.mxu1 %v13030_v31  ;;  %12710 = vmatprep.mubr.msk.bf16.mxu0 %vm1725_vm1, %v1904_v21  ;;  %v13049_v31 = vld [vmem:[%s18098_s4 + $0xa0] sm:$0xff]   ;;  %v13050_v21 = vld [vmem:[%s18098_s4 + $0xd8] sm:$0xff]  }
 0x255   : > { %12707 = vmatpush3.bf16.msra.mxu0 %v13033_v40  ;;  %1667 = vmatprep.mubr.bf16.mxu1 %v13037_v42 }
 0x256   : > { %v1471_v47 = vpop.f32.mrf.mxu1  ;;  %12708 = vmatprep.subr.bf16.mxu0 %v13034_v44 }
 0x258   : > { %v1472_v49 = vpop.f32.mrf.mxu1 }
 0x259   : > { %v1906_v52 = vpack.c.bf16 %v1472_v49, %v1469_v45  ;;  %12709 = vmatpush3.bf16.msra.mxu0 %v13034_v44 }
 0x25a   : > { %v1474_v54 = vpop.f32.mrf.mxu1  ;;  %12718 = vmatprep.subr.bf16.mxu0 %v13038_v48 }
 0x25c   : > { %12711 = vmatmul.mubr.msk.bf16.vlgmr.msra.gmra.mxu0 %vm1725_vm1, %v1905_v53  ;;  %v1477_v57 = vpop.f32.mrf.mxu1  ;;  %1668 = vmatmul.mubr.bf16.gmra.mxu1 %v13035_v50 }
 0x25d   : > { %12714 = vmatprep.mubr.msk.bf16.mxu0 %vm1725_vm1, %v1906_v52  ;;  %12719 = vmatpush3.bf16.msra.mxu0 %v13038_v48 }
 0x25e   : > { %v1479_v58 = vpop.f32.mrf.mxu1  ;;  %12720 = vmatprep.subr.bf16.mxu0 %v13039_v56  ;;  %3900 = vmatprep.mubr.bf16.mxu1 %v14362_v18 }
 0x260   : > { %v1480_v61 = vpop.f32.mrf.mxu1 }
 0x261   : > { %v1907_v62 = vpack.c.bf16 %v1480_v61, %v1477_v57  ;;  %12721 = vmatpush3.bf16.msra.mxu0 %v13039_v56 }
 0x262   : > { %v1482_v63 = vpop.f32.mrf.mxu1  ;;  %12722 = vmatprep.subr.bf16.mxu0 %v13040_v59 }
 0x263   : > { %v13052_v63 = vld [vmem:[%s18098_s4 + $0xc8] sm:$0xff]  }
 0x264   : > { %12715 = vmatmul.mubr.msk.bf16.gmra.mxu0 %vm1725_vm1, %v1907_v62  ;;  %v1485_v2 = vpop.f32.mrf.mxu1 }
 0x265   : > { %12723 = vmatpush3.bf16.msra.mxu0 %v13040_v59  ;;  %v13051_v59 = vld [vmem:[%s18098_s4 + $0xd0] sm:$0xff]  }
 0x266   : > { %v1487_v3 = vpop.f32.mrf.mxu1  ;;  %12724 = vmatprep.subr.bf16.mxu0 %v13041_v1 }
 0x268   : > { %v1488_v6 = vpop.f32.mrf.mxu1 }
 0x269   : > { %v2026_v7 = vpack.c.bf16 %v1488_v6, %v1485_v2  ;;  %12725 = vmatpush3.bf16.msra.mxu0 %v13041_v1 }
 0x26a   : > { %v1490_v8 = vpop.f32.mrf.mxu1  ;;  %12734 = vmatprep.subr.bf16.mxu0 %v13042_v4 }
 0x26b   : > { %12726 = vmatprep.mubr.msk.bf16.mxu0 %vm1725_vm1, %v2026_v7  ;;  %v13054_v8 = vld [vmem:[%s18098_s4 + $0xf8] sm:$0xff]  }
 0x26c   : > { %v1493_v10 = vpop.f32.mrf.mxu1 }
 0x26e   : > { %v1495_v11 = vpop.f32.mrf.mxu1 }
 0x270   : > { %v1496_v12 = vpop.f32.mrf.mxu1 }
 0x271   : > { %v2027_v13 = vpack.c.bf16 %v1496_v12, %v1493_v10 }
 0x272   : > { %v1498_v16 = vpop.f32.mrf.mxu1 }
 0x273   : > { %12727 = vmatmul.mubr.msk.bf16.vlgmr.msra.gmra.mxu0 %vm1725_vm1, %v2027_v13 }
 0x274   : > { %v1501_v17 = vpop.f32.mrf.mxu1  ;;  %12735 = vmatpush3.bf16.msra.mxu0 %v13042_v4  ;;  %v13053_v4 = vld [vmem:[%s18098_s4 + $0xc0] sm:$0xff]  }
 0x275   : > { %12736 = vmatprep.subr.bf16.mxu0 %v13043_v15 }
 0x276   : > { %v1503_v24 = vpop.f32.mrf.mxu1 }
 0x278   : > { %v1504_v9 = vpop.f32.mrf.mxu1  ;;  %12737 = vmatpush3.bf16.msra.mxu0 %v13043_v15 }
 0x279   : > { %v2028_v25 = vpack.c.bf16 %v1504_v9, %v1501_v17  ;;  %12738 = vmatprep.subr.bf16.mxu0 %v13044_v19 }
 0x27a   : > { %v1506_v27 = vpop.f32.mrf.mxu1 }
 0x27b   : > { %12730 = vmatprep.mubr.msk.bf16.mxu0 %vm1725_vm1, %v2028_v25 }
 0x27c   : > { %v1509_v0 = vpop.f32.mrf.mxu1  ;;  %12739 = vmatpush3.bf16.msra.mxu0 %v13044_v19 }
 0x27d   : > { %12740 = vmatprep.subr.bf16.mxu0 %v13045_v26 }
 0x27e   : > { %v1511_v29 = vpop.f32.mrf.mxu1 }
 0x280   : > { %v1512_v30 = vpop.f32.mrf.mxu1  ;;  %12741 = vmatpush3.bf16.msra.mxu0 %v13045_v26 }
 0x281   : > { %v2029_v14 = vpack.c.bf16 %v1512_v30, %v1509_v0  ;;  %12750 = vmatprep.subr.bf16.mxu0 %v13046_v28  ;;  %v13055_v0 = vld [vmem:[%s18098_s4 + $0xf0] sm:$0xff]   ;;  %v13056_v30 = vld [vmem:[%s18098_s4 + $0xe8] sm:$0xff]  }
 0x282   : > { %v1514_v22 = vpop.f32.mrf.mxu1 }
 0x283   : > { %12731 = vmatmul.mubr.msk.bf16.gmra.mxu0 %vm1725_vm1, %v2029_v14 }
 0x284   : > { %v1517_v32 = vpop.f32.mrf.mxu1 }
 0x286   : > { %v1519_v5 = vpop.f32.mrf.mxu1 }
 0x287   : > { %v13057_v5 = vld [vmem:[%s18098_s4 + $0xe0] sm:$0xff]  }
 0x288   : > { %v1520_v33 = vpop.f32.mrf.mxu1 }
 0x289   : > { %v2148_v34 = vpack.c.bf16 %v1520_v33, %v1517_v32 }
 0x28a   : > { %v1522_v20 = vpop.f32.mrf.mxu1 }
 0x28b   : > { %12742 = vmatprep.mubr.msk.bf16.mxu0 %vm1725_vm1, %v2148_v34  ;;  %v13058_v20 = vld [vmem:[%s18098_s4 + $0x118] sm:$0xff]  }
 0x28c   : > { %v1525_v55 = vpop.f32.mrf.mxu1 }
 0x28e   : > { %v1527_v35 = vpop.f32.mrf.mxu1 }
 0x290   : > { %v1528_v36 = vpop.f32.mrf.mxu1 }
 0x291   : > { %v2149_v46 = vpack.c.bf16 %v1528_v36, %v1525_v55 }
 0x292   : > { %v1530_v38 = vpop.f32.mrf.mxu1 }
 0x293   : > { %12743 = vmatmul.mubr.msk.bf16.vlgmr.msra.gmra.mxu0 %vm1725_vm1, %v2149_v46 }
 0x294   : > { %v1533_v39 = vpop.f32.mrf.mxu1  ;;  %12751 = vmatpush3.bf16.msra.mxu0 %v13046_v28 }
 0x295   : > { %12752 = vmatprep.subr.bf16.mxu0 %v13047_v37 }
 0x296   : > { %v1535_v60 = vpop.f32.mrf.mxu1 }
 0x298   : > { %v1536_v40 = vpop.f32.mrf.mxu1  ;;  %12753 = vmatpush3.bf16.msra.mxu0 %v13047_v37 }
 0x299   : > { %v2150_v41 = vpack.c.bf16 %v1536_v40, %v1533_v39  ;;  %12754 = vmatprep.subr.bf16.mxu0 %v13048_v23 }
 0x29a   : > { %v1538_v51 = vpop.f32.mrf.mxu1 }
 0x29b   : > { %12746 = vmatprep.mubr.msk.bf16.mxu0 %vm1725_vm1, %v2150_v41 }
 0x29c   : > { %v1541_v42 = vpop.f32.mrf.mxu1  ;;  %12755 = vmatpush3.bf16.msra.mxu0 %v13048_v23 }
 0x29d   : > { %12756 = vmatprep.subr.bf16.mxu0 %v13049_v31 }
 0x29e   : > { %v1543_v43 = vpop.f32.mrf.mxu1 }
 0x2a0   : > { %v1544_v44 = vpop.f32.mrf.mxu1  ;;  %12757 = vmatpush3.bf16.msra.mxu0 %v13049_v31 }
 0x2a1   : > { %v2151_v45 = vpack.c.bf16 %v1544_v44, %v1541_v42  ;;  %12766 = vmatprep.subr.bf16.mxu0 %v13050_v21  ;;  %v13059_v42 = vld [vmem:[%s18098_s4 + $0x110] sm:$0xff]  }
 0x2a2   : > { %v1546_v47 = vpop.f32.mrf.mxu1 }
 0x2a3   : > { %12747 = vmatmul.mubr.msk.bf16.gmra.mxu0 %vm1725_vm1, %v2151_v45  ;;  %v13060_v45 = vld [vmem:[%s18098_s4 + $0x108] sm:$0xff]  }
 0x2a4   : > { %v1549_v48 = vpop.f32.mrf.mxu1 }
 0x2a6   : > { %v1551_v49 = vpop.f32.mrf.mxu1 }
 0x2a8   : > { %v1552_v50 = vpop.f32.mrf.mxu1 }
 0x2a9   : > { %v2270_v52 = vpack.c.bf16 %v1552_v50, %v1549_v48 }
 0x2aa   : > { %v1554_v53 = vpop.f32.mrf.mxu1 }
 0x2ab   : > { %12758 = vmatprep.mubr.msk.bf16.mxu0 %vm1725_vm1, %v2270_v52  ;;  %v13061_v52 = vld [vmem:[%s18098_s4 + $0x100] sm:$0xff]  }
 0x2ac   : > { %v1557_v54 = vpop.f32.mrf.mxu1 }
 0x2ae   : > { %v1559_v56 = vpop.f32.mrf.mxu1 }
 0x2b0   : > { %v1560_v57 = vpop.f32.mrf.mxu1 }
 0x2b1   : > { %v2271_v58 = vpack.c.bf16 %v1560_v57, %v1557_v54 }
 0x2b2   : > { %v1562_v61 = vpop.f32.mrf.mxu1 }
 0x2b3   : > { %12759 = vmatmul.mubr.msk.bf16.vlgmr.msra.gmra.mxu0 %vm1725_vm1, %v2271_v58 }
 0x2b4   : > { %v1565_v62 = vpop.f32.mrf.mxu1  ;;  %12767 = vmatpush3.bf16.msra.mxu0 %v13050_v21 }
 0x2b5   : > { %12768 = vmatprep.subr.bf16.mxu0 %v13051_v59 }
 0x2b6   : > { %v1567_v1 = vpop.f32.mrf.mxu1 }
 0x2b8   : > { %v1568_v2 = vpop.f32.mrf.mxu1  ;;  %12769 = vmatpush3.bf16.msra.mxu0 %v13051_v59 }
 0x2b9   : > { %v2272_v3 = vpack.c.bf16 %v1568_v2, %v1565_v62  ;;  %12770 = vmatprep.subr.bf16.mxu0 %v13052_v63 }
 0x2ba   : > { %v1570_v6 = vpop.f32.mrf.mxu1 }
 0x2bb   : > { %12762 = vmatprep.mubr.msk.bf16.mxu0 %vm1725_vm1, %v2272_v3 }
 0x2bc   : > { %v1573_v7 = vpop.f32.mrf.mxu1  ;;  %12771 = vmatpush3.bf16.msra.mxu0 %v13052_v63 }
 0x2bd   : > { %12772 = vmatprep.subr.bf16.mxu0 %v13053_v4 }
 0x2be   : > { %v1575_v10 = vpop.f32.mrf.mxu1 }
 0x2c0   : > { %v1576_v11 = vpop.f32.mrf.mxu1  ;;  %12773 = vmatpush3.bf16.msra.mxu0 %v13053_v4 }
 0x2c1   : > { %v2273_v12 = vpack.c.bf16 %v1576_v11, %v1573_v7  ;;  %12782 = vmatprep.subr.bf16.mxu0 %v13054_v8 }
 0x2c2   : > { %v1578_v13 = vpop.f32.mrf.mxu1 }
 0x2c3   : > { %12763 = vmatmul.mubr.msk.bf16.gmra.mxu0 %vm1725_vm1, %v2273_v12 }
 0x2c4   : > { %v1581_v15 = vpop.f32.mrf.mxu1 }
 0x2c6   : > { %v1583_v16 = vpop.f32.mrf.mxu1 }
 0x2c8   : > { %v1584_v17 = vpop.f32.mrf.mxu1 }
 0x2c9   : > { %v2392_v19 = vpack.c.bf16 %v1584_v17, %v1581_v15 }
 0x2ca   : > { %v1586_v24 = vpop.f32.mrf.mxu1 }
 0x2cb   : > { %12774 = vmatprep.mubr.msk.bf16.mxu0 %vm1725_vm1, %v2392_v19 }
 0x2cc   : > { %v1589_v9 = vpop.f32.mrf.mxu1 }
 0x2ce   : > { %v1591_v25 = vpop.f32.mrf.mxu1 }
 0x2d0   : > { %v1592_v26 = vpop.f32.mrf.mxu1 }
 0x2d1   : > { %v2393_v27 = vpack.c.bf16 %v1592_v26, %v1589_v9 }
 0x2d2   : > { %v1594_v28 = vpop.f32.mrf.mxu1 }
 0x2d3   : > { %12775 = vmatmul.mubr.msk.bf16.vlgmr.msra.gmra.mxu0 %vm1725_vm1, %v2393_v27 }
 0x2d4   : > { %v1597_v29 = vpop.f32.mrf.mxu1  ;;  %12783 = vmatpush3.bf16.msra.mxu0 %v13054_v8 }
 0x2d5   : > { %12784 = vmatprep.subr.bf16.mxu0 %v13055_v0 }
 0x2d6   : > { %v1599_v14 = vpop.f32.mrf.mxu1 }
 0x2d8   : > { %v1600_v22 = vpop.f32.mrf.mxu1  ;;  %12785 = vmatpush3.bf16.msra.mxu0 %v13055_v0 }
 0x2d9   : > { %v2394_v32 = vpack.c.bf16 %v1600_v22, %v1597_v29  ;;  %12786 = vmatprep.subr.bf16.mxu0 %v13056_v30 }
 0x2da   : > { %v1602_v33 = vpop.f32.mrf.mxu1 }
 0x2db   : > { %12778 = vmatprep.mubr.msk.bf16.mxu0 %vm1725_vm1, %v2394_v32 }
 0x2dc   : > { %v1605_v34 = vpop.f32.mrf.mxu1  ;;  %12787 = vmatpush3.bf16.msra.mxu0 %v13056_v30 }
 0x2dd   : > { %12788 = vmatprep.subr.bf16.mxu0 %v13057_v5 }
 0x2de   : > { %v1607_v55 = vpop.f32.mrf.mxu1 }
 0x2e0   : > { %v1608_v35 = vpop.f32.mrf.mxu1  ;;  %12789 = vmatpush3.bf16.msra.mxu0 %v13057_v5 }
 0x2e1   : > { %v2395_v36 = vpack.c.bf16 %v1608_v35, %v1605_v34  ;;  %12798 = vmatprep.subr.bf16.mxu0 %v13058_v20 }
 0x2e2   : > { %v1610_v46 = vpop.f32.mrf.mxu1 }
 0x2e3   : > { %12779 = vmatmul.mubr.msk.bf16.gmra.mxu0 %vm1725_vm1, %v2395_v36 }
 0x2e4   : > { %v1613_v37 = vpop.f32.mrf.mxu1 }
 0x2e6   : > { %v1615_v38 = vpop.f32.mrf.mxu1 }
 0x2e8   : > { %v1616_v39 = vpop.f32.mrf.mxu1 }
 0x2e9   : > { %v2514_v23 = vpack.c.bf16 %v1616_v39, %v1613_v37 }
 0x2ea   : > { %v1618_v60 = vpop.f32.mrf.mxu1 }
 0x2eb   : > { %12790 = vmatprep.mubr.msk.bf16.mxu0 %vm1725_vm1, %v2514_v23 }
 0x2ec   : > { %v1621_v40 = vpop.f32.mrf.mxu1 }
 0x2ee   : > { %v1623_v41 = vpop.f32.mrf.mxu1 }
 0x2f0   : > { %v1624_v31 = vpop.f32.mrf.mxu1 }
 0x2f1   : > { %v2515_v51 = vpack.c.bf16 %v1624_v31, %v1621_v40 }
 0x2f2   : > { %v1626_v21 = vpop.f32.mrf.mxu1 }
 0x2f3   : > { %12791 = vmatmul.mubr.msk.bf16.vlgmr.msra.gmra.mxu0 %vm1725_vm1, %v2515_v51  ;;  %v12680_v44 = vpop.f32.mrf.mxu0 }
 0x2f4   : > { %v1629_v43 = vpop.f32.mrf.mxu1  ;;  %12799 = vmatpush3.bf16.msra.mxu0 %v13058_v20 }
 0x2f5   : > { %12800 = vmatprep.subr.bf16.mxu0 %v13059_v42  ;;  %v1772_v49 = vpop.f32.mrf.mxu0 }
 0x2f6   : > { %v1631_v47 = vpop.f32.mrf.mxu1 }
 0x2f7   : > { %v12681_v56 = vpop.f32.mrf.mxu0 }
 0x2f8   : > { %v1632_v48 = vpop.f32.mrf.mxu1  ;;  %12801 = vmatpush3.bf16.msra.mxu0 %v13059_v42 }
 0x2f9   : > { %v2516_v50 = vpack.c.bf16 %v1632_v48, %v1629_v43  ;;  %12802 = vmatprep.subr.bf16.mxu0 %v13060_v45  ;;  %v15010_v59 = vpop.f32.mrf.mxu0 }
 0x2fa   : > { %v1634_v53 = vpop.f32.mrf.mxu1 }
 0x2fb   : > { %12794 = vmatprep.mubr.msk.bf16.mxu0 %vm1725_vm1, %v2516_v50 }
 0x2fc   : > { %v1637_v54 = vpop.f32.mrf.mxu1  ;;  %12803 = vmatpush3.bf16.msra.mxu0 %v13060_v45 }
 0x2fd   : > { %12804 = vmatprep.subr.bf16.mxu0 %v13061_v52 }
 0x2fe   : > { %v1639_v57 = vpop.f32.mrf.mxu1 }
 0x300   : > { %v1640_v58 = vpop.f32.mrf.mxu1  ;;  %12805 = vmatpush3.bf16.msra.mxu0 %v13061_v52 }
 0x301   : > { %v2517_v61 = vpack.c.bf16 %v1640_v58, %v1637_v54 }
 0x302   : > { %v1642_v62 = vpop.f32.mrf.mxu1 }
 0x303   : > { %v12684_v63 = vpop.f32.mrf.mxu0  ;;  %12795 = vmatmul.mubr.msk.bf16.gmra.mxu0 %vm1725_vm1, %v2517_v61 }
 0x304   : > { %v1645_v1 = vpop.f32.mrf.mxu1 }
 0x305   : > { %v1788_v2 = vpop.f32.mrf.mxu0 }
 0x306   : > { %v1647_v3 = vpop.f32.mrf.mxu1 }
 0x307   : > { %v12685_v4 = vpop.f32.mrf.mxu0 }
 0x308   : > { %v1648_v6 = vpop.f32.mrf.mxu1 }
 0x309   : > { %v2636_v7 = vpack.c.bf16 %v1648_v6, %v1645_v1  ;;  %v15013_v8 = vpop.f32.mrf.mxu0 }
 0x30a   : > { %v1650_v10 = vpop.f32.mrf.mxu1 }
 0x30b   : > { %v12696_v11 = vpop.f32.mrf.mxu0  ;;  %12806 = vmatprep.mubr.msk.bf16.mxu0 %vm1725_vm1, %v2636_v7 }
 0x30c   : > { %v1882_v12 = vadd.f32 %v12696_v11, %v12680_v44  ;;  %v1653_v13 = vpop.f32.mrf.mxu1 }
 0x30d   : > { %v1873_v15 = vpop.f32.mrf.mxu0 }
 0x30e   : > { %v1874_v16 = vadd.f32 %v1873_v15, %v1772_v49  ;;  %v1655_v17 = vpop.f32.mrf.mxu1 }
 0x30f   : > { %v12697_v19 = vpop.f32.mrf.mxu0 }
 0x310   : > { %v1885_v24 = vadd.f32 %v12697_v19, %v12681_v56  ;;  %v1656_v9 = vpop.f32.mrf.mxu1 }
 0x311   : > { %v2637_v25 = vpack.c.bf16 %v1656_v9, %v1653_v13  ;;  %v15016_v26 = vpop.f32.mrf.mxu0 }
 0x312   : > { %v1658_v27 = vpop.f32.mrf.mxu1 }
 0x313   : > { %v12700_v0 = vpop.f32.mrf.mxu0  ;;  %12807 = vmatmul.mubr.msk.bf16.vlgmr.msra.gmra.mxu0 %vm1725_vm1, %v2637_v25 }
 0x314   : > { %v1898_v28 = vadd.f32 %v12700_v0, %v12684_v63  ;;  %v1661_v29 = vpop.f32.mrf.mxu1  ;;  %v14363_v0 = vmov 0.0  }
 0x315   : > { %v1889_v30 = vpop.f32.mrf.mxu0  ;;  %12814 = vmatprep.subr.bf16.mxu0 %v14363_v0 }
 0x316   : > { %v1890_v14 = vadd.f32 %v1889_v30, %v1788_v2  ;;  %v1663_v22 = vpop.f32.mrf.mxu1 }
 0x317   : > { %v12701_v32 = vpop.f32.mrf.mxu0 }
 0x318   : > { %v1901_v5 = vadd.f32 %v12701_v32, %v12685_v4  ;;  %v1664_v33 = vpop.f32.mrf.mxu1 }
 0x319   : > { %v2638_v34 = vpack.c.bf16 %v1664_v33, %v1661_v29  ;;  %v15019_v20 = vpop.f32.mrf.mxu0 }
 0x31a   : > { %v1666_v55 = vpop.f32.mrf.mxu1 }
 0x31b   : > { %12810 = vmatprep.mubr.msk.bf16.mxu0 %vm1725_vm1, %v2638_v34 }
 0x31c   : > { %v12712_v35 = vpop.f32.mrf.mxu0  ;;  %v1669_v36 = vpop.f32.mrf.mxu1 }
 0x31d   : > { %v2020_v46 = vadd.f32 %v12712_v35, %v1882_v12 }
 0x31e   : > { %v1987_v37 = vpop.f32.mrf.mxu0  ;;  %v1671_v38 = vpop.f32.mrf.mxu1 }
 0x31f   : > { %v2018_v39 = vadd.f32 %v1987_v37, %v1874_v16  ;;  %v13065_v37 = vld [vmem:[%s18101_s7 + $0x2f0] ss:$8 sps:$4 sm:$0xff]   ;;  %v13067_v38 = vld [vmem:[%s18101_s7 + $0x2f4] ss:$8 sps:$4 sm:$0xff]  }
 0x320   : > { %v12713_v23 = vpop.f32.mrf.mxu0  ;;  %v1672_v60 = vpop.f32.mrf.mxu1  ;;  %3868 = vmatprep.subr.bf16.mxu1 %v13067_v38 }
 0x321   : > { %v2021_v40 = vadd.f32 %v12713_v23, %v1885_v24  ;;  %v2639_v41 = vpack.c.bf16 %v1672_v60, %v1669_v36  ;;  %3869 = vmatpush1.bf16.msra.mxu1 %v13065_v37 }
 0x322   : > { %v15022_v31 = vpop.f32.mrf.mxu0  ;;  %v1674_v51 = vpop.f32.mrf.mxu1 }
 0x323   : > { %12811 = vmatmul.mubr.msk.bf16.gmra.mxu0 %vm1725_vm1, %v2639_v41  ;;  %v13071_v41 = vld [vmem:[%s18101_s7 + $0x2e4] ss:$8 sps:$4 sm:$0xff]  }
 0x324   : > { %v12716_v42 = vpop.f32.mrf.mxu0  ;;  %12822 = vmatprep.mubr.msk.bf16.mxu0 %vm14364_vm2, %v14363_v0  ;;  %3870 = vmatprep.subr.bf16.mxu1 %v13071_v41 }
 0x325   : > { %v2024_v21 = vadd.f32 %v12716_v42, %v1898_v28  ;;  %v1877_v42 = vadd.f32 %v15016_v26, %v15010_v59 }
 0x326   : > { %v2003_v43 = vpop.f32.mrf.mxu0 }
 0x327   : > { %v2022_v44 = vadd.f32 %v2003_v43, %v1890_v14 }
 0x328   : > { %v12717_v45 = vpop.f32.mrf.mxu0 }
 0x329   : > { %v2025_v47 = vadd.f32 %v12717_v45, %v1901_v5 }
 0x32a   : > { %v15025_v48 = vpop.f32.mrf.mxu0 }
 0x333   : > { %v12728_v49 = vpop.f32.mrf.mxu0 }
 0x334   : > { %v2142_v50 = vadd.f32 %v12728_v49, %v2020_v46 }
 0x335   : > { %v2109_v52 = vpop.f32.mrf.mxu0 }
 0x336   : > { %v2140_v53 = vadd.f32 %v2109_v52, %v2018_v39 }
 0x337   : > { %v12729_v54 = vpop.f32.mrf.mxu0 }
 0x338   : > { %v2143_v56 = vadd.f32 %v12729_v54, %v2021_v40  ;;  %v13069_v40 = vld [vmem:[%s18101_s7 + $0x2e0] ss:$8 sps:$4 sm:$0xff]  }
 0x339   : > { %v2112_v57 = vpop.f32.mrf.mxu0  ;;  %3871 = vmatpush1.bf16.msra.mxu1 %v13069_v40 }
 0x343   : > { %v12732_v58 = vpop.f32.mrf.mxu0 }
 0x344   : > { %v2146_v61 = vadd.f32 %v12732_v58, %v2024_v21 }
 0x345   : > { %v2125_v62 = vpop.f32.mrf.mxu0 }
 0x346   : > { %v15027_v63 = vadd.f32 %v2125_v62, %v2022_v44  ;;  %v2019_v44 = vadd.f32 %v15022_v31, %v1877_v42  ;;  %v15086_v31 = vld [vmem:[%s18099_s5] ss:$0 sm:$0xff] }
 0x347   : > { %v12733_v1 = vpop.f32.mrf.mxu0 }
 0x348   : > { %v15029_v2 = vadd.f32 %v12733_v1, %v2025_v47 }
 0x349   : > { %v15031_v3 = vpop.f32.mrf.mxu0 }
 0x353   : > { %v12744_v4 = vpop.f32.mrf.mxu0 }
 0x354   : > { %v2264_v6 = vadd.f32 %v12744_v4, %v2142_v50  ;;  %v2141_v50 = vadd.f32 %v2112_v57, %v2019_v44 }
 0x355   : > { %v2231_v7 = vpop.f32.mrf.mxu0 }
 0x356   : > { %v2262_v43 = vadd.f32 %v2231_v7, %v2140_v53  ;;  %v13080_v7 = vld [vmem:[%s18101_s7 + $0x2d0] ss:$8 sps:$4 sm:$0xff]  }
 0x357   : > { %v12745_v10 = vpop.f32.mrf.mxu0 }
 0x358   : > { %v2265_v47 = vadd.f32 %v12745_v10, %v2143_v56  ;;  %v13082_v10 = vld [vmem:[%s18101_s7 + $0x2d4] ss:$8 sps:$4 sm:$0xff]  }
 0x359   : > { %v2234_v11 = vpop.f32.mrf.mxu0  ;;  %3872 = vmatprep.subr.bf16.mxu1 %v13082_v10 }
 0x35a   : > { %v2263_v62 = vadd.f32 %v2234_v11, %v2141_v50  ;;  %3873 = vmatpush1.bf16.msra.mxu1 %v13080_v7 }
 0x363   : > { %v12748_v12 = vpop.f32.mrf.mxu0 }
 0x364   : > { %v15033_v13 = vadd.f32 %v12748_v12, %v2146_v61 }
 0x365   : > { %v15035_v15 = vpop.f32.mrf.mxu0 }
 0x367   : > { %v15037_v16 = vpop.f32.mrf.mxu0 }
 0x369   : > { %v15039_v17 = vpop.f32.mrf.mxu0 }
 0x373   : > { %v12760_v19 = vpop.f32.mrf.mxu0 }
 0x374   : > { %v2386_v45 = vadd.f32 %v12760_v19, %v2264_v6 }
 0x375   : > { %v2353_v24 = vpop.f32.mrf.mxu0 }
 0x376   : > { %v2384_v49 = vadd.f32 %v2353_v24, %v2262_v43 }
 0x377   : > { %v12761_v9 = vpop.f32.mrf.mxu0 }
 0x378   : > { %v2387_v58 = vadd.f32 %v12761_v9, %v2265_v47 }
 0x379   : > { %v2356_v25 = vpop.f32.mrf.mxu0 }
 0x37a   : > { %v2385_v59 = vadd.f32 %v2356_v25, %v2263_v62 }
 0x383   : > { %v15041_v27 = vpop.f32.mrf.mxu0 }
 0x384   : > { %v2390_v41 = vadd.f32 %v15041_v27, %v15033_v13 }
 0x385   : > { %v15044_v28 = vpop.f32.mrf.mxu0 }
 0x387   : > { %v15046_v29 = vpop.f32.mrf.mxu0 }
 0x389   : > { %v15048_v30 = vpop.f32.mrf.mxu0 }
 0x393   : > { %v12776_v14 = vpop.f32.mrf.mxu0 }
 0x394   : > { %v2508_v52 = vadd.f32 %v12776_v14, %v2386_v45  ;;  %v1893_v14 = vadd.f32 %v15019_v20, %v15013_v8 }
 0x395   : > { %v2475_v22 = vpop.f32.mrf.mxu0 }
 0x396   : > { %v2506_v61 = vadd.f32 %v2475_v22, %v2384_v49 }
 0x397   : > { %v12777_v32 = vpop.f32.mrf.mxu0 }
 0x398   : > { %v2509_v12 = vadd.f32 %v12777_v32, %v2387_v58 }
 0x399   : > { %v2478_v5 = vpop.f32.mrf.mxu0 }
 0x39a   : > { %v2507_v57 = vadd.f32 %v2478_v5, %v2385_v59 }
 0x3a3   : > { %v15050_v33 = vpop.f32.mrf.mxu0 }
 0x3a5   : > { %v15054_v34 = vpop.f32.mrf.mxu0 }
 0x3a7   : > { %v15056_v55 = vpop.f32.mrf.mxu0 }
 0x3a9   : > { %v15058_v35 = vpop.f32.mrf.mxu0 }
 0x3b3   : > { %v12792_v36 = vpop.f32.mrf.mxu0 }
 0x3b4   : > { %v2630_v1 = vadd.f32 %v12792_v36, %v2508_v52  ;;  %v2023_v36 = vadd.f32 %v15025_v48, %v1893_v14 }
 0x3b5   : > { %v2597_v46 = vpop.f32.mrf.mxu0 }
 0x3b6   : > { %v2628_v37 = vadd.f32 %v2597_v46, %v2506_v61  ;;  %v2266_v46 = vadd.f32 %v15035_v15, %v15027_v63  ;;  %v2145_v40 = vadd.f32 %v15031_v3, %v2023_v36  ;;  %v2269_v63 = vadd.f32 %v15037_v16, %v15029_v2 }
 0x3b7   : > { %v12793_v39 = vpop.f32.mrf.mxu0  ;;  %v2512_v15 = vadd.f32 %v15050_v33, %v2390_v41 }
 0x3b8   : > { %v2631_v53 = vadd.f32 %v12793_v39, %v2509_v12  ;;  %v2388_v8 = vadd.f32 %v15044_v28, %v2266_v46  ;;  %v2267_v43 = vadd.f32 %v15039_v17, %v2145_v40  ;;  %v2391_v16 = vadd.f32 %v15046_v29, %v2269_v63 }
 0x3b9   : > { %v2600_v23 = vpop.f32.mrf.mxu0 }
 0x3ba   : > { %v2629_v24 = vadd.f32 %v2600_v23, %v2507_v57  ;;  %v2510_v3 = vadd.f32 %v15054_v34, %v2388_v8  ;;  %v2389_v17 = vadd.f32 %v15048_v30, %v2267_v43  ;;  %v2513_v58 = vadd.f32 %v15056_v55, %v2391_v16  ;;  %v13099_v55 = vld [vmem:[%s18101_s7 + $0x2c4] ss:$8 sps:$4 sm:$0xff]  }
 0x3bb   : > { %3874 = vmatprep.subr.bf16.mxu1 %v13099_v55 }
 0x3bc   : > { %v2511_v61 = vadd.f32 %v15058_v35, %v2389_v17 }
 0x3c3   : > { %v15066_v60 = vpop.f32.mrf.mxu0 }
 0x3c4   : > { %v2634_v27 = vadd.f32 %v15066_v60, %v2512_v15 }
 0x3c5   : > { %v15074_v51 = vpop.f32.mrf.mxu0 }
 0x3c6   : > { %v2632_v33 = vadd.f32 %v15074_v51, %v2510_v3 }
 0x3c7   : > { %v15078_v21 = vpop.f32.mrf.mxu0 }
 0x3c9   : > { %v15081_v54 = vpop.f32.mrf.mxu0 }
 0x3ca   : > { %v2633_v35 = vadd.f32 %v15081_v54, %v2511_v61 }
 0x3d3   : > { %v12808_v4 = vpop.f32.mrf.mxu0 }
 0x3d4   : > { %v2752_v26 = vadd.f32 %v12808_v4, %v2630_v1  ;;  %v2635_v4 = vadd.f32 %v15078_v21, %v2513_v58 }
 0x3d5   : > { %v2719_v38 = vpop.f32.mrf.mxu0 }
 0x3d6   : > { %v2750_v56 = vadd.f32 %v2719_v38, %v2628_v37  ;;  %v2767_v9 = vadd.f32 %v15086_v31, %v2752_v26  ;;  %v13097_v37 = vld [vmem:[%s18101_s7 + $0x2c0] ss:$8 sps:$4 sm:$0xff]  }
 0x3d7   : > { %v12809_v6 = vpop.f32.mrf.mxu0  ;;  %3875 = vmatpush1.bf16.msra.mxu1 %v13097_v37 }
 0x3d8   : > { %v2765_v11 = vadd.f32 %v15086_v31, %v2750_v56  ;;  %v2753_v19 = vadd.f32 %v12809_v6, %v2631_v53  ;;  %v2783_v39 = vmul.f32 0.2, %v2767_v9  ;;  %vm2775_vm4 = vcmp.ge.f32.partialorder %v2767_v9, 0.0 }
 0x3d9   : > { %v2722_v25 = vpop.f32.mrf.mxu0 }
 0x3da   : > { %v2781_v22 = vmul.f32 0.2, %v2765_v11  ;;  %v2768_v32 = vadd.f32 %v15086_v31, %v2753_v19  ;;  %v2751_v5 = vadd.f32 %v2722_v25, %v2629_v24  ;;  %vm2773_vm3 = vcmp.ge.f32.partialorder %v2765_v11, 0.0 }
 0x3db   : > { %v15114_v44 = vsel %vm2775_vm4, %v2767_v9, %v2783_v39 }
 0x3dc   : > { %v2766_v23 = vadd.f32 %v15086_v31, %v2751_v5  ;;  %v15107_v20 = vsel %vm2773_vm3, %v2765_v11, %v2781_v22  ;;  %v2784_v42 = vmul.f32 0.2, %v2768_v32  ;;  %vm2776_vm6 = vcmp.ge.f32.partialorder %v2768_v32, 0.0 }
 0x3dd   : > { %v2812_v28 = vmul.f32 %v15107_v20, %v15107_v20  ;;  %v2814_v60 = vmul.f32 %v15114_v44, %v15114_v44 }
 0x3de   : > { %vm2774_vm5 = vcmp.ge.f32.partialorder %v2766_v23, 0.0  ;;  %v2782_v48 = vmul.f32 0.2, %v2766_v23  ;;  %v15128_v34 = vsel %vm2776_vm6, %v2768_v32, %v2784_v42 }
 0x3df   : > { %v2815_v29 = vmul.f32 %v15128_v34, %v15128_v34 }
 0x3e0   : > { %v15116_v13 = vsel %vm2774_vm5, %v2766_v23, %v2782_v48  ;;  %vm10316_vm5 = vcmask 1040384  }
 0x3e1   : > { %v2797_v45 = vadd.f32 %v15116_v13, %v15107_v20  ;;  %v2813_v2 = vmul.f32 %v15116_v13, %v15116_v13 }
 0x3e3   : > { %v12812_v47 = vpop.f32.mrf.mxu0  ;;  %v2798_v49 = vadd.f32 %v2797_v45, %v15114_v44  ;;  %v2820_v50 = vadd.f32 %v2813_v2, %v2812_v28 }
 0x3e4   : > { %v2756_v52 = vadd.f32 %v12812_v47, %v2634_v27 }
 0x3e5   : > { %v2735_v62 = vpop.f32.mrf.mxu0  ;;  %v2821_v30 = vadd.f32 %v2820_v50, %v2814_v60  ;;  %v2799_v1 = vadd.f32 %v2798_v49, %v15128_v34 }
 0x3e6   : > { %v2754_v51 = vadd.f32 %v2735_v62, %v2632_v33  ;;  %v2771_v59 = vadd.f32 %v15086_v31, %v2756_v52 }
 0x3e7   : > { %v12813_v12 = vpop.f32.mrf.mxu0  ;;  %v2822_v38 = vadd.f32 %v2821_v30, %v2815_v29 }
 0x3e8   : > { %v2769_v26 = vadd.f32 %v15086_v31, %v2754_v51  ;;  %v2757_v53 = vadd.f32 %v12813_v12, %v2635_v4  ;;  %v2787_v7 = vmul.f32 0.2, %v2771_v59  ;;  %vm2779_vm8 = vcmp.ge.f32.partialorder %v2771_v59, 0.0 }
 0x3e9   : > { %v2738_v56 = vpop.f32.mrf.mxu0 }
 0x3ea   : > { %vm2777_vm7 = vcmp.ge.f32.partialorder %v2769_v26, 0.0  ;;  %v2785_v21 = vmul.f32 0.2, %v2769_v26  ;;  %v2755_v57 = vadd.f32 %v2738_v56, %v2633_v35  ;;  %v2772_v6 = vadd.f32 %v15086_v31, %v2757_v53 }
 0x3eb   : > { %v2795_v14 = vsel %vm2779_vm8, %v2771_v59, %v2787_v7  ;;  %v13079_v7 = vld [vmem:[%s18101_s7 + $0xe4] ss:$8 sps:$4 sm:$0xff]  }
 0x3ec   : > { %v2793_v10 = vsel %vm2777_vm7, %v2769_v26, %v2785_v21  ;;  %v2770_v11 = vadd.f32 %v15086_v31, %v2755_v57  ;;  %v2788_v24 = vmul.f32 0.2, %v2772_v6  ;;  %vm2780_vm10 = vcmp.ge.f32.partialorder %v2772_v6, 0.0 }
 0x3ed   : > { %v2800_v54 = vadd.f32 %v2799_v1, %v2793_v10  ;;  %v2816_v19 = vmul.f32 %v2793_v10, %v2793_v10  ;;  %v2818_v46 = vmul.f32 %v2795_v14, %v2795_v14 }
 0x3ee   : > { %vm2778_vm9 = vcmp.ge.f32.partialorder %v2770_v11, 0.0  ;;  %v2786_v9 = vmul.f32 0.2, %v2770_v11  ;;  %v2796_v36 = vsel %vm2780_vm10, %v2772_v6, %v2788_v24  ;;  %v13074_v6 = vld [vmem:[%s18101_s7 + $0xf0] ss:$8 sps:$4 sm:$0xff]  }
 0x3ef   : > { %v2823_v25 = vadd.f32 %v2822_v38, %v2816_v19  ;;  %v2819_v40 = vmul.f32 %v2796_v36, %v2796_v36  ;;  %v13083_v19 = vld [vmem:[%s18101_s7 + $0xd0] ss:$8 sps:$4 sm:$0xff]   ;;  %v13089_v24 = vld [vmem:[%s18101_s7 + $0xc4] ss:$8 sps:$4 sm:$0xff]  }
 0x3f0   : > { %v2794_v22 = vsel %vm2778_vm9, %v2770_v11, %v2786_v9  ;;  %v13085_v11 = vld [vmem:[%s18101_s7 + $0xd4] ss:$8 sps:$4 sm:$0xff]   ;;  %v13087_v9 = vld [vmem:[%s18101_s7 + $0xc0] ss:$8 sps:$4 sm:$0xff]  }
 0x3f1   : > { %v2801_v32 = vadd.f32 %v2800_v54, %v2794_v22  ;;  %v2817_v5 = vmul.f32 %v2794_v22, %v2794_v22  ;;  %v13063_v54 = vld [vmem:[%s18100_s6 + $0x8] sm:$0xff]  }
 0x3f3   : > { %v2802_v39 = vadd.f32 %v2801_v32, %v2795_v14  ;;  %v2824_v23 = vadd.f32 %v2823_v25, %v2817_v5  ;;  %v13093_v25 = vld [vmem:[%s18101_s7 + $0xb4] ss:$8 sps:$4 sm:$0xff]   ;;  %v13096_v32 = vld [vmem:[%s18101_s7 + $0xa4] ss:$8 sps:$4 sm:$0xff]   ;;  %v13094_v5 = vld [vmem:[%s18101_s7 + $0xa0] ss:$8 sps:$4 sm:$0xff]  }
 0x3f5   : > { %v2803_v41 = vadd.f32 %v2802_v39, %v2796_v36  ;;  %v2825_v8 = vadd.f32 %v2824_v23, %v2818_v46  ;;  %v13072_v46 = vld [vmem:[%s18100_s6 + $0x20] sm:$0xff]   ;;  %v13073_v39 = vld [vmem:[%s18100_s6 + $0x28] sm:$0xff]   ;;  %v13086_v23 = vld [vmem:[%s18100_s6 + $0x30] sm:$0xff]  }
 0x3f7   : > { %v2804_v31 = vrot.slane %v2803_v41, 4  ;;  %v2826_v42 = vadd.f32 %v2825_v8, %v2819_v40  ;;  %v13090_v40 = vld [vmem:[%s18100_s6 + $0x38] sm:$0xff]  }
 0x3f8   : > { %v13101_v8 = vld [vmem:[%s18101_s7 + $0x90] ss:$8 sps:$4 sm:$0xff]  }
 0x3f9   : > { %v2805_v48 = vadd.f32 %v2804_v31, %v2803_v41  ;;  %v2827_v63 = vrot.slane %v2826_v42, 4  ;;  %v13100_v41 = vld [vmem:[%s18100_s6 + $0x40] sm:$0xff]   ;;  %v13103_v31 = vld [vmem:[%s18101_s7 + $0x94] ss:$8 sps:$4 sm:$0xff]  }
 0x3fb   : > { %v2806_v15 = vrot.slane %v2805_v48, 2  ;;  %v2828_v43 = vadd.f32 %v2827_v63, %v2826_v42  ;;  %v13106_v42 = vld [vmem:[%s18101_s7 + $0x84] ss:$8 sps:$4 sm:$0xff]   ;;  %v13122_v63 = vld [vmem:[%s18101_s7 + $0x2b0] ss:$8 sps:$4 sm:$0xff]  }
 0x3fd   : > { %v2807_v3 = vadd.f32 %v2806_v15, %v2805_v48  ;;  %v2829_v27 = vrot.slane %v2828_v43, 2  ;;  %v13109_v48 = vld [vmem:[%s18101_s7 + $0x74] ss:$8 sps:$4 sm:$0xff]  }
 0x3fe   : > { %v13124_v15 = vld [vmem:[%s18101_s7 + $0x2b4] ss:$8 sps:$4 sm:$0xff]  }
 0x3ff   : > { %v2808_v28 = vrot.slane %v2807_v3, 1  ;;  %v2830_v45 = vadd.f32 %v2829_v27, %v2828_v43  ;;  %3876 = vmatprep.subr.bf16.mxu1 %v13124_v15  ;;  %v13152_v43 = vld [vmem:[%s18101_s7 + $0x2a0] ss:$8 sps:$4 sm:$0xff]   ;;  %v13182_v27 = vld [vmem:[%s18101_s7 + $0x290] ss:$8 sps:$4 sm:$0xff]  }
 0x400   : > { %3877 = vmatpush1.bf16.msra.mxu1 %v13122_v63  ;;  %v13140_v15 = vld [vmem:[%s18101_s7 + $0x150] ss:$8 sps:$4 sm:$0xff]  }
 0x401   : > { %v2809_v2 = vadd.f32 %v2808_v28, %v2807_v3  ;;  %v2831_v16 = vrot.slane %v2830_v45, 1  ;;  %v13154_v3 = vld [vmem:[%s18101_s7 + $0x2a4] ss:$8 sps:$4 sm:$0xff]   ;;  %v13184_v28 = vld [vmem:[%s18101_s7 + $0x294] ss:$8 sps:$4 sm:$0xff]  }
 0x402   : > { %3878 = vmatprep.subr.bf16.mxu1 %v13154_v3  ;;  %v13145_v3 = vld [vmem:[%s18101_s7 + $0x144] ss:$8 sps:$4 sm:$0xff]  }
 0x403   : > { %v2811_v17 = vmul.f32 0.015625, %v2809_v2  ;;  %v2832_v33 = vadd.f32 %v2831_v16, %v2830_v45 }
 0x404   : > { %3879 = vmatpush1.bf16.msra.mxu1 %v13152_v43 }
 0x405   : > { %v2833_v47 = vmul.f32 0.015625, %v2832_v33  ;;  %v2834_v60 = vmul.f32 %v2811_v17, %v2811_v17  ;;  %v2843_v49 = vsub.f32 %v2795_v14, %v2811_v17  ;;  %v2844_v50 = vsub.f32 %v2796_v36, %v2811_v17  ;;  %v13064_v14 = vld [vmem:[%s18100_s6 + $0x10] sm:$0xff]   ;;  %v13068_v36 = vld [vmem:[%s18100_s6 + $0x18] sm:$0xff]   ;;  %3880 = vmatprep.subr.bf16.mxu1 %v13184_v28 }
 0x406   : > { %v2841_v52 = vsub.f32 %v2793_v10, %v2811_v17  ;;  %v2839_v58 = vsub.f32 %v15114_v44, %v2811_v17  ;;  %v2840_v61 = vsub.f32 %v15128_v34, %v2811_v17  ;;  %v2837_v29 = vsub.f32 %v15107_v20, %v2811_v17  ;;  %v13076_v20 = vld [vmem:[%s18101_s7 + $0xf4] ss:$8 sps:$4 sm:$0xff]   ;;  %v13077_v10 = vld [vmem:[%s18101_s7 + $0xe0] ss:$8 sps:$4 sm:$0xff]  }
 0x407   : > { %v2835_v62 = vsub.f32 %v2833_v47, %v2834_v60  ;;  %v2842_v1 = vsub.f32 %v2794_v22, %v2811_v17  ;;  %v2838_v12 = vsub.f32 %v15116_v13, %v2811_v17  ;;  %v13062_v13 = vld [vmem:[%s18100_s6] sm:$0xff]   ;;  %v13091_v22 = vld [vmem:[%s18101_s7 + $0xb0] ss:$8 sps:$4 sm:$0xff]  }
 0x408   : > { %3881 = vmatpush1.bf16.msra.mxu1 %v13182_v27  ;;  %v13230_v27 = vld [vmem:[%s18101_s7 + $0x3d0] ss:$8 sps:$4 sm:$0xff]  }
 0x409   : > { %v2836_v30 = vmax.f32 %v2835_v62, 0.0 }
 0x40b   : > { %v2845_v51 = vadd.f32 1e-05, %v2836_v30 }
 0x40d   : > { %14282 = vrsqrt.f32 %v2845_v51  ;;  %v13220_v51 = vld [vmem:[%s18101_s7 + $0x3f4] ss:$8 sps:$4 sm:$0xff]  }
 0x41a   : > { %v14283_v4 = vpop.eup %14282 }
 0x41b   : > { %v2853_v37 = vmul.f32 %v14283_v4, %v2843_v49  ;;  %v2854_v55 = vmul.f32 %v14283_v4, %v2844_v50  ;;  %v2851_v35 = vmul.f32 %v14283_v4, %v2841_v52  ;;  %v2852_v59 = vmul.f32 %v14283_v4, %v2842_v1  ;;  %v13107_v49 = vld [vmem:[%s18101_s7 + $0x70] ss:$8 sps:$4 sm:$0xff]   ;;  %v13212_v50 = vld [vmem:[%s18101_s7 + $0x280] ss:$8 sps:$4 sm:$0xff]   ;;  %v13214_v52 = vld [vmem:[%s18101_s7 + $0x284] ss:$8 sps:$4 sm:$0xff]  }
 0x41c   : > { %v2849_v26 = vmul.f32 %v14283_v4, %v2839_v58  ;;  %v2850_v38 = vmul.f32 %v14283_v4, %v2840_v61  ;;  %v2847_v53 = vmul.f32 %v14283_v4, %v2837_v29  ;;  %v2848_v44 = vmul.f32 %v14283_v4, %v2838_v12  ;;  %v13112_v61 = vld [vmem:[%s18101_s7 + $0x64] ss:$8 sps:$4 sm:$0xff]   ;;  %3882 = vmatprep.subr.bf16.mxu1 %v13214_v52  ;;  %v13110_v29 = vld [vmem:[%s18101_s7 + $0x60] ss:$8 sps:$4 sm:$0xff]   ;;  %v13115_v1 = vld [vmem:[%s18101_s7 + $0x54] ss:$8 sps:$4 sm:$0xff]  }
 0x41d   : > { %v2858_v56 = vpack.c.bf16 %v2854_v55, %v2853_v37  ;;  %v2857_v34 = vpack.c.bf16 %v2852_v59, %v2851_v35  ;;  %3883 = vmatpush1.bf16.msra.mxu1 %v13212_v50  ;;  %v13113_v12 = vld [vmem:[%s18101_s7 + $0x50] ss:$8 sps:$4 sm:$0xff]   ;;  %v13118_v55 = vld [vmem:[%s18101_s7 + $0x44] ss:$8 sps:$4 sm:$0xff]   ;;  %v13116_v59 = vld [vmem:[%s18101_s7 + $0x40] ss:$8 sps:$4 sm:$0xff]  }
 0x41e   : > { %v2856_v21 = vpack.c.bf16 %v2850_v38, %v2849_v26  ;;  %v2855_v57 = vpack.c.bf16 %v2848_v44, %v2847_v53  ;;  %4158 = vmatprep.subr.bf16.mxu1 %v13220_v51  ;;  %v13121_v38 = vld [vmem:[%s18101_s7 + $0x34] ss:$8 sps:$4 sm:$0xff]   ;;  %v13119_v44 = vld [vmem:[%s18101_s7 + $0x30] ss:$8 sps:$4 sm:$0xff]   ;;  %v13149_v51 = vld [vmem:[%s18101_s7 + $0x120] ss:$8 sps:$4 sm:$0xff]  }
 0x41f   : > { %12815 = vmatpush3.bf16.msra.mxu0 %v2858_v56  ;;  %v13146_v50 = vld [vmem:[%s18101_s7 + $0x130] ss:$8 sps:$4 sm:$0xff]  }
 0x420   : > { %12816 = vmatprep.subr.bf16.mxu0 %v14363_v0 }
 0x423   : > { %12817 = vmatpush3.bf16.msra.mxu0 %v2857_v34  ;;  %v13127_v34 = vld [vmem:[%s18101_s7 + $0x24] ss:$8 sps:$4 sm:$0xff]  }
 0x424   : > { %12818 = vmatprep.subr.bf16.mxu0 %v14363_v0 }
 0x427   : > { %12819 = vmatpush3.bf16.msra.mxu0 %v2856_v21 }
 0x428   : > { %12820 = vmatprep.subr.bf16.mxu0 %v14363_v0 }
 0x42b   : > { %12821 = vmatpush3.bf16.msra.mxu0 %v2855_v57 }
 0x42c   : > { %3169 = vmatprep.subr.bf16.mxu0 %v13076_v20  ;;  %v13125_v20 = vld [vmem:[%s18101_s7 + $0x20] ss:$8 sps:$4 sm:$0xff]  }
 0x42e   : > { %12823 = vmatmul.mubr.msk.bf16.vlgmr.msra.gmra.mxu0 %vm1725_vm1, %v13062_v13 }
 0x42f   : > { %12826 = vmatprep.mubr.msk.bf16.mxu0 %vm14364_vm2, %v14363_v0  ;;  %3170 = vmatpush1.bf16.msra.mxu0 %v13074_v6  ;;  %v13130_v6 = vld [vmem:[%s18101_s7 + $0x14] ss:$8 sps:$4 sm:$0xff]  }
 0x430   : > { %3171 = vmatprep.subr.bf16.mxu0 %v13079_v7 }
 0x433   : > { %3172 = vmatpush1.bf16.msra.mxu0 %v13077_v10  ;;  %v13128_v10 = vld [vmem:[%s18101_s7 + $0x10] ss:$8 sps:$4 sm:$0xff]  }
 0x434   : > { %3173 = vmatprep.subr.bf16.mxu0 %v13085_v11 }
 0x436   : > { %12827 = vmatmul.mubr.msk.bf16.gmra.mxu0 %vm1725_vm1, %v13063_v54  ;;  %v13133_v54 = vld [vmem:[%s18101_s7 + $0x4] ss:$8 sps:$4 sm:$0xff]  }
 0x437   : > { %12830 = vmatprep.mubr.msk.bf16.mxu0 %vm14364_vm2, %v14363_v0  ;;  %3174 = vmatpush1.bf16.msra.mxu0 %v13083_v19 }
 0x438   : > { %3175 = vmatprep.subr.bf16.mxu0 %v13089_v24 }
 0x43b   : > { %3176 = vmatpush1.bf16.msra.mxu0 %v13087_v9  ;;  %v13131_v9 = vld [vmem:[%s18101_s7] ss:$8 sps:$4 sm:$0xff]  }
 0x43c   : > { %3177 = vmatprep.subr.bf16.mxu0 %v13093_v25 }
 0x43e   : > { %12831 = vmatmul.mubr.msk.bf16.gmra.mxu0 %vm1725_vm1, %v13064_v14  ;;  %v13136_v14 = vld [vmem:[%s18101_s7 + $0x174] ss:$8 sps:$4 sm:$0xff]  }
 0x43f   : > { %12834 = vmatprep.mubr.msk.bf16.mxu0 %vm14364_vm2, %v14363_v0  ;;  %3178 = vmatpush1.bf16.msra.mxu0 %v13091_v22 }
 0x440   : > { %3179 = vmatprep.subr.bf16.mxu0 %v13096_v32  ;;  %v13134_v32 = vld [vmem:[%s18101_s7 + $0x170] ss:$8 sps:$4 sm:$0xff]  }
 0x443   : > { %3180 = vmatpush1.bf16.msra.mxu0 %v13094_v5 }
 0x444   : > { %3181 = vmatprep.subr.bf16.mxu0 %v13103_v31 }
 0x446   : > { %12835 = vmatmul.mubr.msk.bf16.gmra.mxu0 %vm1725_vm1, %v13068_v36 }
 0x447   : > { %12838 = vmatprep.mubr.msk.bf16.mxu0 %vm14364_vm2, %v14363_v0  ;;  %3182 = vmatpush1.bf16.msra.mxu0 %v13101_v8  ;;  %v13137_v8 = vld [vmem:[%s18101_s7 + $0x160] ss:$8 sps:$4 sm:$0xff]  }
 0x448   : > { %3183 = vmatprep.subr.bf16.mxu0 %v13106_v42  ;;  %v13224_v42 = vld [vmem:[%s18101_s7 + $0x3e0] ss:$8 sps:$4 sm:$0xff]  }
 0x44e   : > { %12839 = vmatmul.mubr.msk.bf16.gmra.mxu0 %vm1725_vm1, %v13072_v46  ;;  %v13139_v46 = vld [vmem:[%s18101_s7 + $0x164] ss:$8 sps:$4 sm:$0xff]  }
 0x44f   : > { %12842 = vmatprep.mubr.msk.bf16.mxu0 %vm14364_vm2, %v14363_v0 }
 0x456   : > { %12843 = vmatmul.mubr.msk.bf16.gmra.mxu0 %vm1725_vm1, %v13073_v39 }
 0x457   : > { %12846 = vmatprep.mubr.msk.bf16.mxu0 %vm14364_vm2, %v14363_v0 }
 0x45e   : > { %12847 = vmatmul.mubr.msk.bf16.gmra.mxu0 %vm1725_vm1, %v13086_v23  ;;  %v13218_v23 = vld [vmem:[%s18101_s7 + $0x3f0] ss:$8 sps:$4 sm:$0xff]  }
 0x45f   : > { %12850 = vmatprep.mubr.msk.bf16.mxu0 %vm14364_vm2, %v14363_v0 }
 0x466   : > { %12851 = vmatmul.mubr.msk.bf16.gmra.mxu0 %vm1725_vm1, %v13090_v40  ;;  %v13226_v40 = vld [vmem:[%s18101_s7 + $0x3e4] ss:$8 sps:$4 sm:$0xff]  }
 0x467   : > { %12854 = vmatprep.mubr.msk.bf16.mxu0 %vm14364_vm2, %v14363_v0  ;;  %v13104_v0 = vld [vmem:[%s18101_s7 + $0x80] ss:$8 sps:$4 sm:$0xff]  }
 0x468   : > { %3184 = vmatpush1.bf16.msra.mxu0 %v13104_v0  ;;  %v13142_v0 = vld [vmem:[%s18101_s7 + $0x154] ss:$8 sps:$4 sm:$0xff]  }
 0x469   : > { %3292 = vmatprep.subr.bf16.mxu0 %v13109_v48  ;;  %v13232_v48 = vld [vmem:[%s18101_s7 + $0x3d4] ss:$8 sps:$4 sm:$0xff]  }
 0x46e   : > { %12855 = vmatmul.mubr.msk.bf16.gmra.mxu0 %vm1725_vm1, %v13100_v41  ;;  %vm8826_vm1 = vcmask 1043456  }
 0x46f   : > { %3201 = vmatprep.mubr.bf16.mxu0 %v14362_v18 }
 0x4ee   : > { %v15279_v45 = vpop.f32.mrf.mxu0 }
 0x4f0   : > { %v12824_v2 = vpop.f32.mrf.mxu0 }
 0x4f2   : > { %v15281_v16 = vpop.f32.mrf.mxu0 }
 0x4f3   : > { %v3054_v36 = vpack.c.bf16 %v15281_v16, %v15279_v45  ;;  %v13238_v45 = vld [vmem:[%s18101_s7 + $0x3c4] ss:$8 sps:$4 sm:$0xff]   ;;  %v13143_v16 = vld [vmem:[%s18101_s7 + $0x140] ss:$8 sps:$4 sm:$0xff]  }
 0x4f4   : > { %v12825_v17 = vpop.f32.mrf.mxu0 }
 0x4f6   : > { %v2991_v33 = vpop.f32.mrf.mxu0 }
 0x4f8   : > { %v12828_v47 = vpop.f32.mrf.mxu0 }
 0x4f9   : > { %v13236_v47 = vld [vmem:[%s18101_s7 + $0x3c0] ss:$8 sps:$4 sm:$0xff]  }
 0x4fa   : > { %v2994_v60 = vpop.f32.mrf.mxu0 }
 0x4fb   : > { %v3071_v58 = vpack.c.bf16 %v2994_v60, %v2991_v33  ;;  %v13148_v33 = vld [vmem:[%s18101_s7 + $0x134] ss:$8 sps:$4 sm:$0xff]  }
 0x4fc   : > { %v12829_v62 = vpop.f32.mrf.mxu0  ;;  %v13244_v60 = vld [vmem:[%s18101_s7 + $0x3b4] ss:$8 sps:$4 sm:$0xff]  }
 0x4fd   : > { %3202 = vmatmul.mubr.bf16.vlgmr.msra.gmra.mxu0 %v3071_v58  ;;  %v13151_v58 = vld [vmem:[%s18101_s7 + $0x124] ss:$8 sps:$4 sm:$0xff]  }
 0x4fe   : > { %3293 = vmatpush1.bf16.msra.mxu0 %v13107_v49  ;;  %3324 = vmatprep.mubr.bf16.mxu0 %v14362_v18  ;;  %v15299_v30 = vpop.f32.mrf.mxu0  ;;  %v13250_v62 = vld [vmem:[%s18101_s7 + $0x3a4] ss:$8 sps:$4 sm:$0xff]  }
 0x4ff   : > { %3294 = vmatprep.subr.bf16.mxu0 %v13112_v61  ;;  %v13242_v61 = vld [vmem:[%s18101_s7 + $0x3b0] ss:$8 sps:$4 sm:$0xff]  }
 0x500   : > { %v12832_v4 = vpop.f32.mrf.mxu0 }
 0x501   : > { %v13248_v4 = vld [vmem:[%s18101_s7 + $0x3a0] ss:$8 sps:$4 sm:$0xff]  }
 0x502   : > { %3295 = vmatpush1.bf16.msra.mxu0 %v13110_v29  ;;  %v15310_v37 = vpop.f32.mrf.mxu0 }
 0x503   : > { %3296 = vmatprep.subr.bf16.mxu0 %v13115_v1  ;;  %v13157_v1 = vld [vmem:[%s18101_s7 + $0x114] ss:$8 sps:$4 sm:$0xff]  }
 0x504   : > { %v12833_v35 = vpop.f32.mrf.mxu0 }
 0x505   : > { %v13155_v35 = vld [vmem:[%s18101_s7 + $0x110] ss:$8 sps:$4 sm:$0xff]  }
 0x506   : > { %3297 = vmatpush1.bf16.msra.mxu0 %v13113_v12  ;;  %v15318_v26 = vpop.f32.mrf.mxu0  ;;  %v13256_v12 = vld [vmem:[%s18101_s7 + $0x394] ss:$8 sps:$4 sm:$0xff]  }
 0x507   : > { %3298 = vmatprep.subr.bf16.mxu0 %v13118_v55 }
 0x508   : > { %v12836_v53 = vpop.f32.mrf.mxu0 }
 0x509   : > { %v13254_v53 = vld [vmem:[%s18101_s7 + $0x390] ss:$8 sps:$4 sm:$0xff]  }
 0x50a   : > { %3299 = vmatpush1.bf16.msra.mxu0 %v13116_v59  ;;  %v15326_v56 = vpop.f32.mrf.mxu0 }
 0x50b   : > { %3300 = vmatprep.subr.bf16.mxu0 %v13121_v38  ;;  %v3480_v21 = vpack.c.bf16 %v15326_v56, %v15318_v26  ;;  %v13160_v38 = vld [vmem:[%s18101_s7 + $0x104] ss:$8 sps:$4 sm:$0xff]   ;;  %v13197_v56 = vld [vmem:[%s18101_s7 + $0x240] ss:$8 sps:$4 sm:$0xff]  }
 0x50c   : > { %v12837_v57 = vpop.f32.mrf.mxu0  ;;  %v13199_v26 = vld [vmem:[%s18101_s7 + $0x244] ss:$8 sps:$4 sm:$0xff]  }
 0x50e   : > { %3301 = vmatpush1.bf16.msra.mxu0 %v13119_v44  ;;  %v15336_v13 = vpop.f32.mrf.mxu0  ;;  %v13262_v44 = vld [vmem:[%s18101_s7 + $0x384] ss:$8 sps:$4 sm:$0xff]  }
 0x50f   : > { %3302 = vmatprep.subr.bf16.mxu0 %v13127_v34 }
 0x510   : > { %v12840_v7 = vpop.f32.mrf.mxu0 }
 0x511   : > { %v13163_v7 = vld [vmem:[%s18101_s7 + $0x1f4] ss:$8 sps:$4 sm:$0xff]  }
 0x512   : > { %3303 = vmatpush1.bf16.msra.mxu0 %v13125_v20  ;;  %v15344_v11 = vpop.f32.mrf.mxu0  ;;  %v13158_v20 = vld [vmem:[%s18101_s7 + $0x100] ss:$8 sps:$4 sm:$0xff]  }
 0x513   : > { %3304 = vmatprep.subr.bf16.mxu0 %v13130_v6  ;;  %v3625_v19 = vpack.c.bf16 %v15344_v11, %v15336_v13  ;;  %v13235_v13 = vld [vmem:[%s18101_s7 + $0x344] ss:$8 sps:$4 sm:$0xff]   ;;  %v13233_v11 = vld [vmem:[%s18101_s7 + $0x340] ss:$8 sps:$4 sm:$0xff]  }
 0x514   : > { %v12841_v24 = vpop.f32.mrf.mxu0 }
 0x515   : > { %v3335_v24 = vpack.c.bf16 %v15310_v37, %v15299_v30  ;;  %v13169_v30 = vld [vmem:[%s18101_s7 + $0x1d4] ss:$8 sps:$4 sm:$0xff]   ;;  %v13167_v37 = vld [vmem:[%s18101_s7 + $0x1d0] ss:$8 sps:$4 sm:$0xff]  }
 0x516   : > { %3305 = vmatpush1.bf16.msra.mxu0 %v13128_v10  ;;  %v3023_v25 = vpop.f32.mrf.mxu0  ;;  %v13260_v10 = vld [vmem:[%s18101_s7 + $0x380] ss:$8 sps:$4 sm:$0xff]  }
 0x517   : > { %3306 = vmatprep.subr.bf16.mxu0 %v13133_v54  ;;  %v13161_v54 = vld [vmem:[%s18101_s7 + $0x1f0] ss:$8 sps:$4 sm:$0xff]  }
 0x518   : > { %v12844_v22 = vpop.f32.mrf.mxu0 }
 0x519   : > { %v13172_v22 = vld [vmem:[%s18101_s7 + $0x1c4] ss:$8 sps:$4 sm:$0xff]  }
 0x51a   : > { %3307 = vmatpush1.bf16.msra.mxu0 %v13131_v9  ;;  %v3026_v5 = vpop.f32.mrf.mxu0  ;;  %v13166_v9 = vld [vmem:[%s18101_s7 + $0x1e4] ss:$8 sps:$4 sm:$0xff]  }
 0x51b   : > { %3433 = vmatprep.subr.bf16.mxu0 %v13136_v14  ;;  %v3770_v39 = vpack.c.bf16 %v3026_v5, %v3023_v25  ;;  %v13164_v14 = vld [vmem:[%s18101_s7 + $0x1e0] ss:$8 sps:$4 sm:$0xff]   ;;  %v13175_v5 = vld [vmem:[%s18101_s7 + $0x1b4] ss:$8 sps:$4 sm:$0xff]  }
 0x51c   : > { %v12845_v41 = vpop.f32.mrf.mxu0 }
 0x51d   : > { %3325 = vmatmul.mubr.bf16.vlgmr.msra.gmra.mxu0 %v3054_v36  ;;  %3901 = vmatmul.mubr.bf16.vlgmr.msra.gmra.mxu1 %v3770_v39  ;;  %v13173_v36 = vld [vmem:[%s18101_s7 + $0x1b0] ss:$8 sps:$4 sm:$0xff]   ;;  %v13176_v39 = vld [vmem:[%s18101_s7 + $0x1a0] ss:$8 sps:$4 sm:$0xff]   ;;  %v13187_v41 = vld [vmem:[%s18101_s7 + $0x184] ss:$8 sps:$4 sm:$0xff]  }
 0x51e   : > { %3434 = vmatpush1.bf16.msra.mxu0 %v13134_v32  ;;  %3465 = vmatprep.mubr.bf16.mxu0 %v14362_v18  ;;  %v15375_v31 = vpop.f32.mrf.mxu0  ;;  %v13170_v32 = vld [vmem:[%s18101_s7 + $0x1c0] ss:$8 sps:$4 sm:$0xff]  }
 0x51f   : > { %3435 = vmatprep.subr.bf16.mxu0 %v13139_v46  ;;  %4159 = vmatpush1.bf16.msra.mxu1 %v13218_v23  ;;  %v13178_v46 = vld [vmem:[%s18101_s7 + $0x1a4] ss:$8 sps:$4 sm:$0xff]   ;;  %v13181_v23 = vld [vmem:[%s18101_s7 + $0x194] ss:$8 sps:$4 sm:$0xff]  }
 0x520   : > { %4160 = vmatprep.subr.bf16.mxu1 %v13226_v40  ;;  %v12848_v63 = vpop.f32.mrf.mxu0  ;;  %4190 = vmatprep.mubr.bf16.mxu1 %v14362_v18  ;;  %v13179_v40 = vld [vmem:[%s18101_s7 + $0x190] ss:$8 sps:$4 sm:$0xff]  }
 0x521   : > { %v13191_v63 = vld [vmem:[%s18101_s7 + $0x260] ss:$8 sps:$4 sm:$0xff]  }
 0x522   : > { %3436 = vmatpush1.bf16.msra.mxu0 %v13137_v8  ;;  %v15390_v43 = vpop.f32.mrf.mxu0  ;;  %v13185_v8 = vld [vmem:[%s18101_s7 + $0x180] ss:$8 sps:$4 sm:$0xff]  }
 0x523   : > { %3437 = vmatprep.subr.bf16.mxu0 %v13142_v0  ;;  %4161 = vmatpush1.bf16.msra.mxu1 %v13224_v42  ;;  %v3915_v28 = vpack.c.bf16 %v15390_v43, %v15375_v31  ;;  %v13190_v0 = vld [vmem:[%s18101_s7 + $0x274] ss:$8 sps:$4 sm:$0xff]   ;;  %v13188_v42 = vld [vmem:[%s18101_s7 + $0x270] ss:$8 sps:$4 sm:$0xff]   ;;  %v13274_v31 = vld [vmem:[%s18101_s7 + $0x444] ss:$8 sps:$4 sm:$0xff]  }
 0x524   : > { %4162 = vmatprep.subr.bf16.mxu1 %v13232_v48  ;;  %v12849_v2 = vpop.f32.mrf.mxu0  ;;  %v13193_v48 = vld [vmem:[%s18101_s7 + $0x264] ss:$8 sps:$4 sm:$0xff]   ;;  %v13272_v43 = vld [vmem:[%s18101_s7 + $0x440] ss:$8 sps:$4 sm:$0xff]  }
 0x525   : > { %v13203_v2 = vld [vmem:[%s18101_s7 + $0x220] ss:$8 sps:$4 sm:$0xff]  }
 0x526   : > { %3438 = vmatpush1.bf16.msra.mxu0 %v13140_v15  ;;  %v3039_v17 = vpop.f32.mrf.mxu0  ;;  %v13196_v15 = vld [vmem:[%s18101_s7 + $0x254] ss:$8 sps:$4 sm:$0xff]  }
 0x527   : > { %3439 = vmatprep.subr.bf16.mxu0 %v13145_v3  ;;  %4163 = vmatpush1.bf16.msra.mxu1 %v13230_v27  ;;  %v13194_v3 = vld [vmem:[%s18101_s7 + $0x250] ss:$8 sps:$4 sm:$0xff]  }
 0x528   : > { %4164 = vmatprep.subr.bf16.mxu1 %v13238_v45  ;;  %v12852_v49 = vpop.f32.mrf.mxu0  ;;  %v13200_v27 = vld [vmem:[%s18101_s7 + $0x230] ss:$8 sps:$4 sm:$0xff]   ;;  %v13205_v45 = vld [vmem:[%s18101_s7 + $0x224] ss:$8 sps:$4 sm:$0xff]  }
 0x529   : > { %v13215_v49 = vld [vmem:[%s18101_s7 + $0x370] ss:$8 sps:$4 sm:$0xff]  }
 0x52a   : > { %3440 = vmatpush1.bf16.msra.mxu0 %v13143_v16  ;;  %v3042_v52 = vpop.f32.mrf.mxu0  ;;  %v13208_v16 = vld [vmem:[%s18101_s7 + $0x214] ss:$8 sps:$4 sm:$0xff]  }
 0x52b   : > { %3441 = vmatprep.subr.bf16.mxu0 %v13148_v33  ;;  %4165 = vmatpush1.bf16.msra.mxu1 %v13236_v47  ;;  %v4060_v25 = vpack.c.bf16 %v3042_v52, %v3039_v17  ;;  %v13206_v17 = vld [vmem:[%s18101_s7 + $0x210] ss:$8 sps:$4 sm:$0xff]   ;;  %v13211_v33 = vld [vmem:[%s18101_s7 + $0x204] ss:$8 sps:$4 sm:$0xff]   ;;  %v13209_v47 = vld [vmem:[%s18101_s7 + $0x200] ss:$8 sps:$4 sm:$0xff]  }
 0x52c   : > { %4166 = vmatprep.subr.bf16.mxu1 %v13244_v60  ;;  %v12853_v29 = vpop.f32.mrf.mxu0  ;;  %v13217_v60 = vld [vmem:[%s18101_s7 + $0x374] ss:$8 sps:$4 sm:$0xff]   ;;  %v13221_v52 = vld [vmem:[%s18101_s7 + $0x360] ss:$8 sps:$4 sm:$0xff]  }
 0x52d   : > { %v13247_v29 = vld [vmem:[%s18101_s7 + $0x324] ss:$8 sps:$4 sm:$0xff]  }
 0x52e   : > { %3442 = vmatpush1.bf16.msra.mxu0 %v13146_v50  ;;  %v15439_v55 = vpop.f32.mrf.mxu0  ;;  %v13223_v50 = vld [vmem:[%s18101_s7 + $0x364] ss:$8 sps:$4 sm:$0xff]  }
 0x52f   : > { %3443 = vmatprep.subr.bf16.mxu0 %v13151_v58  ;;  %4167 = vmatpush1.bf16.msra.mxu1 %v13242_v61  ;;  %v13229_v58 = vld [vmem:[%s18101_s7 + $0x354] ss:$8 sps:$4 sm:$0xff]   ;;  %v13227_v61 = vld [vmem:[%s18101_s7 + $0x350] ss:$8 sps:$4 sm:$0xff]  }
 0x530   : > { %4168 = vmatprep.subr.bf16.mxu1 %v13250_v62  ;;  %v12856_v59 = vpop.f32.mrf.mxu0  ;;  %v13239_v62 = vld [vmem:[%s18101_s7 + $0x330] ss:$8 sps:$4 sm:$0xff]  }
 0x531   : > { %v13265_v59 = vld [vmem:[%s18101_s7 + $0x474] ss:$8 sps:$4 sm:$0xff]  }
 0x532   : > { %3444 = vmatpush1.bf16.msra.mxu0 %v13149_v51  ;;  %v15453_v34 = vpop.f32.mrf.mxu0  ;;  %v13245_v51 = vld [vmem:[%s18101_s7 + $0x320] ss:$8 sps:$4 sm:$0xff]  }
 0x533   : > { %3445 = vmatprep.subr.bf16.mxu0 %v13157_v1  ;;  %4169 = vmatpush1.bf16.msra.mxu1 %v13248_v4  ;;  %v4205_v57 = vpack.c.bf16 %v15453_v34, %v15439_v55  ;;  %v13253_v1 = vld [vmem:[%s18101_s7 + $0x314] ss:$8 sps:$4 sm:$0xff]   ;;  %v13251_v4 = vld [vmem:[%s18101_s7 + $0x310] ss:$8 sps:$4 sm:$0xff]  }
 0x534   : > { %4170 = vmatprep.subr.bf16.mxu1 %v13256_v12  ;;  %v12857_v6 = vpop.f32.mrf.mxu0  ;;  %v13259_v12 = vld [vmem:[%s18101_s7 + $0x304] ss:$8 sps:$4 sm:$0xff]  }
 0x535   : > { %v13269_v6 = vld [vmem:[%s18101_s7 + $0x450] ss:$8 sps:$4 sm:$0xff]   ;;  %v13293_v55 = vld [vmem:[%s18104_s10 + $0x2ec] ss:$16 sps:$4 sm:$0xff]  }
 0x536   : > { %3446 = vmatpush1.bf16.msra.mxu0 %v13155_v35  ;;  %v13257_v35 = vld [vmem:[%s18101_s7 + $0x300] ss:$8 sps:$4 sm:$0xff]   ;;  %v13299_v34 = vld [vmem:[%s18104_s10 + $0x2cc] ss:$16 sps:$4 sm:$0xff]  }
 0x537   : > { %3447 = vmatprep.subr.bf16.mxu0 %v13160_v38  ;;  %4171 = vmatpush1.bf16.msra.mxu1 %v13254_v53  ;;  %v13263_v38 = vld [vmem:[%s18101_s7 + $0x470] ss:$8 sps:$4 sm:$0xff]   ;;  %v13268_v53 = vld [vmem:[%s18101_s7 + $0x464] ss:$8 sps:$4 sm:$0xff]  }
 0x538   : > { %4172 = vmatprep.subr.bf16.mxu1 %v13262_v44  ;;  %v13266_v44 = vld [vmem:[%s18101_s7 + $0x460] ss:$8 sps:$4 sm:$0xff]  }
 0x53a   : > { %3448 = vmatpush1.bf16.msra.mxu0 %v13158_v20  ;;  %v13271_v20 = vld [vmem:[%s18101_s7 + $0x454] ss:$8 sps:$4 sm:$0xff]  }
 0x53b   : > { %3578 = vmatprep.subr.bf16.mxu0 %v13163_v7  ;;  %4173 = vmatpush1.bf16.msra.mxu1 %v13260_v10  ;;  %v13275_v7 = vld [vmem:[%s18101_s7 + $0x430] ss:$8 sps:$4 sm:$0xff]   ;;  %v13280_v10 = vld [vmem:[%s18101_s7 + $0x424] ss:$8 sps:$4 sm:$0xff]  }
 0x53d   : > { %3466 = vmatmul.mubr.bf16.vlgmr.msra.gmra.mxu0 %v3335_v24  ;;  %v13283_v24 = vld [vmem:[%s18101_s7 + $0x414] ss:$8 sps:$4 sm:$0xff]  }
 0x53e   : > { %3579 = vmatpush1.bf16.msra.mxu0 %v13161_v54  ;;  %3610 = vmatprep.mubr.bf16.mxu0 %v14362_v18  ;;  %v13278_v54 = vld [vmem:[%s18101_s7 + $0x420] ss:$8 sps:$4 sm:$0xff]  }
 0x53f   : > { %3580 = vmatprep.subr.bf16.mxu0 %v13166_v9  ;;  %4191 = vmatmul.mubr.bf16.vlgmr.msra.gmra.mxu1 %v4060_v25  ;;  %v13281_v9 = vld [vmem:[%s18101_s7 + $0x410] ss:$8 sps:$4 sm:$0xff]   ;;  %v13286_v25 = vld [vmem:[%s18101_s7 + $0x404] ss:$8 sps:$4 sm:$0xff]  }
 0x540   : > { %4495 = vmatprep.mubr.bf16.mxu1 %v14362_v18 }
 0x542   : > { %3581 = vmatpush1.bf16.msra.mxu0 %v13164_v14  ;;  %v13284_v14 = vld [vmem:[%s18101_s7 + $0x400] ss:$8 sps:$4 sm:$0xff]  }
 0x543   : > { %3582 = vmatprep.subr.bf16.mxu0 %v13169_v30 }
 0x546   : > { %3583 = vmatpush1.bf16.msra.mxu0 %v13167_v37 }
 0x547   : > { %3584 = vmatprep.subr.bf16.mxu0 %v13172_v22 }
 0x54a   : > { %3585 = vmatpush1.bf16.msra.mxu0 %v13170_v32 }
 0x54b   : > { %3586 = vmatprep.subr.bf16.mxu0 %v13175_v5 }
 0x54e   : > { %3587 = vmatpush1.bf16.msra.mxu0 %v13173_v36  ;;  %v13291_v36 = vld [vmem:[%s18104_s10 + $0x2e8] ss:$16 sps:$4 sm:$0xff]  }
 0x54f   : > { %3588 = vmatprep.subr.bf16.mxu0 %v13178_v46 }
 0x552   : > { %3589 = vmatpush1.bf16.msra.mxu0 %v13176_v39 }
 0x553   : > { %3590 = vmatprep.subr.bf16.mxu0 %v13181_v23  ;;  %v13305_v23 = vld [vmem:[%s18104_s10 + $0x2ac] ss:$16 sps:$4 sm:$0xff]  }
 0x556   : > { %3591 = vmatpush1.bf16.msra.mxu0 %v13179_v40  ;;  %v13303_v40 = vld [vmem:[%s18104_s10 + $0x2a8] ss:$16 sps:$4 sm:$0xff]  }
 0x557   : > { %3592 = vmatprep.subr.bf16.mxu0 %v13187_v41 }
 0x55a   : > { %3593 = vmatpush1.bf16.msra.mxu0 %v13185_v8  ;;  %v13311_v8 = vld [vmem:[%s18104_s10 + $0x28c] ss:$16 sps:$4 sm:$0xff]  }
 0x55b   : > { %3723 = vmatprep.subr.bf16.mxu0 %v13190_v0 }
 0x55d   : > { %3611 = vmatmul.mubr.bf16.vlgmr.msra.gmra.mxu0 %v3480_v21  ;;  %v13202_v21 = vld [vmem:[%s18101_s7 + $0x234] ss:$8 sps:$4 sm:$0xff]  }
 0x55e   : > { %3724 = vmatpush1.bf16.msra.mxu0 %v13188_v42  ;;  %3755 = vmatprep.mubr.bf16.mxu0 %v14362_v18  ;;  %v13309_v42 = vld [vmem:[%s18104_s10 + $0x288] ss:$16 sps:$4 sm:$0xff]  }
 0x55f   : > { %3725 = vmatprep.subr.bf16.mxu0 %v13193_v48  ;;  %v13317_v48 = vld [vmem:[%s18104_s10 + $0x26c] ss:$16 sps:$4 sm:$0xff]  }
 0x562   : > { %3726 = vmatpush1.bf16.msra.mxu0 %v13191_v63 }
 0x563   : > { %3727 = vmatprep.subr.bf16.mxu0 %v13196_v15  ;;  %v13315_v15 = vld [vmem:[%s18104_s10 + $0x268] ss:$16 sps:$4 sm:$0xff]  }
 0x566   : > { %3728 = vmatpush1.bf16.msra.mxu0 %v13194_v3  ;;  %v13323_v3 = vld [vmem:[%s18104_s10 + $0x24c] ss:$16 sps:$4 sm:$0xff]  }
 0x567   : > { %3729 = vmatprep.subr.bf16.mxu0 %v13199_v26 }
 0x56a   : > { %3730 = vmatpush1.bf16.msra.mxu0 %v13197_v56  ;;  %v13321_v56 = vld [vmem:[%s18104_s10 + $0x248] ss:$16 sps:$4 sm:$0xff]  }
 0x56b   : > { %3731 = vmatprep.subr.bf16.mxu0 %v13202_v21  ;;  %v13329_v21 = vld [vmem:[%s18104_s10 + $0x22c] ss:$16 sps:$4 sm:$0xff]  }
 0x56e   : > { %3732 = vmatpush1.bf16.msra.mxu0 %v13200_v27 }
 0x56f   : > { %3733 = vmatprep.subr.bf16.mxu0 %v13205_v45  ;;  %v13327_v45 = vld [vmem:[%s18104_s10 + $0x228] ss:$16 sps:$4 sm:$0xff]  }
 0x572   : > { %3734 = vmatpush1.bf16.msra.mxu0 %v13203_v2 }
 0x573   : > { %3735 = vmatprep.subr.bf16.mxu0 %v13208_v16  ;;  %v13335_v16 = vld [vmem:[%s18104_s10 + $0x20c] ss:$16 sps:$4 sm:$0xff]  }
 0x576   : > { %3736 = vmatpush1.bf16.msra.mxu0 %v13206_v17  ;;  %v13333_v17 = vld [vmem:[%s18104_s10 + $0x208] ss:$16 sps:$4 sm:$0xff]  }
 0x577   : > { %3737 = vmatprep.subr.bf16.mxu0 %v13211_v33 }
 0x57a   : > { %3738 = vmatpush1.bf16.msra.mxu0 %v13209_v47  ;;  %v13341_v47 = vld [vmem:[%s18104_s10 + $0x3ec] ss:$16 sps:$4 sm:$0xff]  }
 0x57b   : > { %4013 = vmatprep.subr.bf16.mxu0 %v13217_v60  ;;  %v13339_v60 = vld [vmem:[%s18104_s10 + $0x3e8] ss:$16 sps:$4 sm:$0xff]  }
 0x57d   : > { %3756 = vmatmul.mubr.bf16.vlgmr.msra.gmra.mxu0 %v3625_v19  ;;  %v13241_v19 = vld [vmem:[%s18101_s7 + $0x334] ss:$8 sps:$4 sm:$0xff]  }
 0x57e   : > { %4014 = vmatpush1.bf16.msra.mxu0 %v13215_v49  ;;  %4045 = vmatprep.mubr.bf16.mxu0 %v14362_v18 }
 0x57f   : > { %4015 = vmatprep.subr.bf16.mxu0 %v13223_v50  ;;  %v13347_v50 = vld [vmem:[%s18104_s10 + $0x3cc] ss:$16 sps:$4 sm:$0xff]  }
 0x582   : > { %4016 = vmatpush1.bf16.msra.mxu0 %v13221_v52  ;;  %v13345_v52 = vld [vmem:[%s18104_s10 + $0x3c8] ss:$16 sps:$4 sm:$0xff]  }
 0x583   : > { %4017 = vmatprep.subr.bf16.mxu0 %v13229_v58 }
 0x586   : > { %4018 = vmatpush1.bf16.msra.mxu0 %v13227_v61  ;;  %v13353_v61 = vld [vmem:[%s18104_s10 + $0x3ac] ss:$16 sps:$4 sm:$0xff]  }
 0x587   : > { %4019 = vmatprep.subr.bf16.mxu0 %v13235_v13 }
 0x58a   : > { %4020 = vmatpush1.bf16.msra.mxu0 %v13233_v11  ;;  %v13351_v11 = vld [vmem:[%s18104_s10 + $0x3a8] ss:$16 sps:$4 sm:$0xff]  }
 0x58b   : > { %4021 = vmatprep.subr.bf16.mxu0 %v13241_v19  ;;  %v13359_v19 = vld [vmem:[%s18104_s10 + $0x38c] ss:$16 sps:$4 sm:$0xff]  }
 0x58e   : > { %4022 = vmatpush1.bf16.msra.mxu0 %v13239_v62 }
 0x58f   : > { %4023 = vmatprep.subr.bf16.mxu0 %v13247_v29 }
 0x592   : > { %4024 = vmatpush1.bf16.msra.mxu0 %v13245_v51  ;;  %v13357_v51 = vld [vmem:[%s18104_s10 + $0x388] ss:$16 sps:$4 sm:$0xff]  }
 0x593   : > { %4025 = vmatprep.subr.bf16.mxu0 %v13253_v1  ;;  %v13366_v1 = vld [vmem:[%s18104_s10 + $0x36c] ss:$16 sps:$4 sm:$0xff]  }
 0x596   : > { %4026 = vmatpush1.bf16.msra.mxu0 %v13251_v4 }
 0x597   : > { %4027 = vmatprep.subr.bf16.mxu0 %v13259_v12 }
 0x59a   : > { %4028 = vmatpush1.bf16.msra.mxu0 %v13257_v35  ;;  %v13364_v35 = vld [vmem:[%s18104_s10 + $0x368] ss:$16 sps:$4 sm:$0xff]  }
 0x59b   : > { %4303 = vmatprep.subr.bf16.mxu0 %v13265_v59 }
 0x59d   : > { %4046 = vmatmul.mubr.bf16.vlgmr.msra.gmra.mxu0 %v3915_v28  ;;  %v13277_v28 = vld [vmem:[%s18101_s7 + $0x434] ss:$8 sps:$4 sm:$0xff]  }
 0x59e   : > { %4304 = vmatpush1.bf16.msra.mxu0 %v13263_v38  ;;  %4335 = vmatprep.mubr.bf16.mxu0 %v14362_v18  ;;  %v13372_v38 = vld [vmem:[%s18104_s10 + $0x34c] ss:$16 sps:$4 sm:$0xff]  }
 0x59f   : > { %4305 = vmatprep.subr.bf16.mxu0 %v13268_v53 }
 0x5a2   : > { %4306 = vmatpush1.bf16.msra.mxu0 %v13266_v44 }
 0x5a3   : > { %4307 = vmatprep.subr.bf16.mxu0 %v13271_v20 }
 0x5a6   : > { %4308 = vmatpush1.bf16.msra.mxu0 %v13269_v6 }
 0x5a7   : > { %4309 = vmatprep.subr.bf16.mxu0 %v13274_v31  ;;  %v13370_v31 = vld [vmem:[%s18104_s10 + $0x348] ss:$16 sps:$4 sm:$0xff]  }
 0x5aa   : > { %4310 = vmatpush1.bf16.msra.mxu0 %v13272_v43 }
 0x5ab   : > { %4311 = vmatprep.subr.bf16.mxu0 %v13277_v28 }
 0x5ae   : > { %4312 = vmatpush1.bf16.msra.mxu0 %v13275_v7 }
 0x5af   : > { %4313 = vmatprep.subr.bf16.mxu0 %v13280_v10 }
 0x5b2   : > { %4314 = vmatpush1.bf16.msra.mxu0 %v13278_v54  ;;  %v4352_v54 = vlaneseq }
 0x5b3   : > { %4315 = vmatprep.subr.bf16.mxu0 %v13283_v24  ;;  %v13379_v24 = vld [vmem:[%s18104_s10 + $0x32c] ss:$16 sps:$4 sm:$0xff]  }
 0x5b6   : > { %4316 = vmatpush1.bf16.msra.mxu0 %v13281_v9 }
 0x5b7   : > { %4317 = vmatprep.subr.bf16.mxu0 %v13286_v25 }
 0x5ba   : > { %4318 = vmatpush1.bf16.msra.mxu0 %v13284_v14 }
 0x5bb   : > { %5022 = vmatprep.subr.bf16.mxu0 %v13293_v55 }
 0x5bd   : > { %4336 = vmatmul.mubr.bf16.vlgmr.msra.gmra.mxu0 %v4205_v57  ;;  %v15674_v30 = vpop.f32.mrf.mxu0  ;;  %v13297_v57 = vld [vmem:[%s18104_s10 + $0x2c8] ss:$16 sps:$4 sm:$0xff]  }
 0x5be   : > { %5023 = vmatpush1.bf16.msra.mxu0 %v13291_v36 }
 0x5bf   : > { %v15676_v37 = vpop.f32.mrf.mxu0  ;;  %5024 = vmatprep.subr.bf16.mxu0 %v13299_v34  ;;  %v15790_v34 = vshrl.u32 %v4352_v54, 7 }
 0x5c1   : > { %v15678_v22 = vpop.f32.mrf.mxu0 }
 0x5c2   : > { %5025 = vmatpush1.bf16.msra.mxu0 %v13297_v57 }
 0x5c3   : > { %v15680_v32 = vpop.f32.mrf.mxu0  ;;  %5026 = vmatprep.subr.bf16.mxu0 %v13305_v23 }
 0x5c6   : > { %5027 = vmatpush1.bf16.msra.mxu0 %v13303_v40 }
 0x5c7   : > { %5028 = vmatprep.subr.bf16.mxu0 %v13311_v8 }
 0x5ca   : > { %5029 = vmatpush1.bf16.msra.mxu0 %v13309_v42 }
 0x5cb   : > { %5030 = vmatprep.subr.bf16.mxu0 %v13317_v48 }
 0x5ce   : > { %5031 = vmatpush1.bf16.msra.mxu0 %v13315_v15 }
 0x5cf   : > { %5032 = vmatprep.subr.bf16.mxu0 %v13323_v3 }
 0x5d2   : > { %5033 = vmatpush1.bf16.msra.mxu0 %v13321_v56 }
 0x5d3   : > { %5034 = vmatprep.subr.bf16.mxu0 %v13329_v21 }
 0x5d6   : > { %5035 = vmatpush1.bf16.msra.mxu0 %v13327_v45 }
 0x5d7   : > { %5036 = vmatprep.subr.bf16.mxu0 %v13335_v16 }
 0x5da   : > { %5037 = vmatpush1.bf16.msra.mxu0 %v13333_v17 }
 0x5db   : > { %5038 = vmatprep.subr.bf16.mxu0 %v13341_v47 }
 0x5dd   : > { %v15682_v5 = vpop.f32.mrf.mxu0  ;;  %v3902_v29 = vpop.f32.mrf.mxu1 }
 0x5de   : > { %5039 = vmatpush2.bf16.msra.mxu0 %v13339_v60  ;;  %v3327_v59 = vadd.f32 %v15682_v5, %v15674_v30 }
 0x5df   : > { %v15687_v46 = vpop.f32.mrf.mxu0  ;;  %5040 = vmatprep.subr.bf16.mxu0 %v13347_v50  ;;  %v3904_v12 = vpop.f32.mrf.mxu1 }
 0x5e0   : > { %v3329_v44 = vadd.f32 %v15687_v46, %v15676_v37  ;;  %v13377_v37 = vld [vmem:[%s18104_s10 + $0x328] ss:$16 sps:$4 sm:$0xff]  }
 0x5e1   : > { %v15698_v39 = vpop.f32.mrf.mxu0  ;;  %v3906_v6 = vpop.f32.mrf.mxu1 }
 0x5e2   : > { %5041 = vmatpush2.bf16.msra.mxu0 %v13345_v52  ;;  %v3331_v28 = vadd.f32 %v15698_v39, %v15678_v22 }
 0x5e3   : > { %v15706_v41 = vpop.f32.mrf.mxu0  ;;  %5042 = vmatprep.subr.bf16.mxu0 %v13353_v61  ;;  %v3908_v30 = vpop.f32.mrf.mxu1 }
 0x5e4   : > { %v3333_v5 = vadd.f32 %v15706_v41, %v15680_v32  ;;  %v4350_v41 = vld [vmem:[%s18102_s8] sm:$0x3] }
 0x5e6   : > { %5043 = vmatpush2.bf16.msra.mxu0 %v13351_v11 }
 0x5e7   : > { %5044 = vmatprep.subr.bf16.mxu0 %v13359_v19 }
 0x5ea   : > { %5045 = vmatpush2.bf16.msra.mxu0 %v13357_v51 }
 0x5eb   : > { %5046 = vmatprep.subr.bf16.mxu0 %v13366_v1 }
 0x5ee   : > { %5047 = vmatpush2.bf16.msra.mxu0 %v13364_v35 }
 0x5ef   : > { %5048 = vmatprep.subr.bf16.mxu0 %v13372_v38 }
 0x5f2   : > { %5049 = vmatpush2.bf16.msra.mxu0 %v13370_v31 }
 0x5f3   : > { %5050 = vmatprep.subr.bf16.mxu0 %v13379_v24 }
 0x5f6   : > { %5051 = vmatpush2.bf16.msra.mxu0 %v13377_v37 }
 0x5fd   : > { %v3467_v0 = vpop.f32.mrf.mxu0 }
 0x5fe   : > { %v3476_v20 = vadd.f32 %v3467_v0, %v3327_v59 }
 0x5ff   : > { %v3469_v63 = vpop.f32.mrf.mxu0  ;;  %v4192_v55 = vpop.f32.mrf.mxu1 }
 0x600   : > { %v3477_v7 = vadd.f32 %v3469_v63, %v3329_v44  ;;  %v4354_v63 = vsub.s32 0, %v15790_v34 }
 0x601   : > { %v3471_v26 = vpop.f32.mrf.mxu0  ;;  %v4194_v48 = vpop.f32.mrf.mxu1 }
 0x602   : > { %v3478_v9 = vadd.f32 %v3471_v26, %v3331_v28  ;;  %v4358_v26 = vsub.s32 1, %v15790_v34 }
 0x603   : > { %v15729_v27 = vpop.f32.mrf.mxu0  ;;  %v4196_v45 = vpop.f32.mrf.mxu1 }
 0x604   : > { %v3479_v57 = vadd.f32 %v15729_v27, %v3333_v5  ;;  %v4359_v60 = vrot.slane %v4350_v41, %v4358_v26 }
 0x61d   : > { %v3612_v2 = vpop.f32.mrf.mxu0 }
 0x61e   : > { %v3621_v10 = vadd.f32 %v3612_v2, %v3476_v20  ;;  %v4355_v2 = vrot.slane %v4350_v41, %v4354_v63 }
 0x61f   : > { %v3614_v33 = vpop.f32.mrf.mxu0 }
 0x620   : > { %v3622_v25 = vadd.f32 %v3614_v33, %v3477_v7 }
 0x621   : > { %v3616_v49 = vpop.f32.mrf.mxu0 }
 0x622   : > { %v3623_v36 = vadd.f32 %v3616_v49, %v3478_v9 }
 0x623   : > { %v3618_v58 = vpop.f32.mrf.mxu0 }
 0x624   : > { %v3624_v40 = vadd.f32 %v3618_v58, %v3479_v57  ;;  %v4198_v58 = vpop.f32.mrf.mxu1 }
 0x63d   : > { %v3757_v13 = vpop.f32.mrf.mxu0 }
 0x63e   : > { %v3766_v14 = vadd.f32 %v3757_v13, %v3621_v10 }
 0x63f   : > { %v3759_v62 = vpop.f32.mrf.mxu0 }
 0x640   : > { %v3767_v46 = vadd.f32 %v3759_v62, %v3622_v25  ;;  %v3911_v39 = vadd.f32 %v3902_v29, %v3766_v14 }
 0x641   : > { %v3761_v4 = vpop.f32.mrf.mxu0 }
 0x642   : > { %v3768_v23 = vadd.f32 %v3761_v4, %v3623_v36  ;;  %v3912_v0 = vadd.f32 %v3904_v12, %v3767_v46 }
 0x643   : > { %v3763_v53 = vpop.f32.mrf.mxu0 }
 0x644   : > { %v3769_v32 = vadd.f32 %v3763_v53, %v3624_v40  ;;  %v3913_v15 = vadd.f32 %v3906_v6, %v3768_v23 }
 0x646   : > { %v3914_v16 = vadd.f32 %v3908_v30, %v3769_v32 }
 0x65d   : > { %v4047_v43 = vpop.f32.mrf.mxu0 }
 0x65e   : > { %v4056_v42 = vadd.f32 %v4047_v43, %v3911_v39 }
 0x65f   : > { %v4049_v22 = vpop.f32.mrf.mxu0 }
 0x660   : > { %v4057_v3 = vadd.f32 %v4049_v22, %v3912_v0  ;;  %v4201_v21 = vadd.f32 %v4192_v55, %v4056_v42 }
 0x661   : > { %v4051_v8 = vpop.f32.mrf.mxu0 }
 0x662   : > { %v4058_v27 = vadd.f32 %v4051_v8, %v3913_v15  ;;  %v4202_v33 = vadd.f32 %v4194_v48, %v4057_v3 }
 0x663   : > { %v4053_v56 = vpop.f32.mrf.mxu0 }
 0x664   : > { %v4059_v49 = vadd.f32 %v4053_v56, %v3914_v16  ;;  %v4203_v52 = vadd.f32 %v4196_v45, %v4058_v27 }
 0x666   : > { %v4204_v51 = vadd.f32 %v4198_v58, %v4059_v49 }
 0x67d   : > { %v4337_v17 = vpop.f32.mrf.mxu0 }
 0x67e   : > { %v4346_v47 = vadd.f32 %v4337_v17, %v4201_v21 }
 0x67f   : > { %v4339_v50 = vpop.f32.mrf.mxu0 }
 0x680   : > { %v4362_v61 = vadd.f32 %v4355_v2, %v4346_v47  ;;  %v4347_v13 = vadd.f32 %v4339_v50, %v4202_v33 }
 0x681   : > { %v4341_v11 = vpop.f32.mrf.mxu0 }
 0x682   : > { %vm4366_vm11 = vcmp.ge.f32.partialorder %v4362_v61, 0.0  ;;  %v4370_v19 = vmul.f32 0.2, %v4362_v61  ;;  %v4363_v62 = vadd.f32 %v4359_v60, %v4347_v13  ;;  %v4348_v29 = vadd.f32 %v4341_v11, %v4203_v52 }
 0x683   : > { %v4343_v1 = vpop.f32.mrf.mxu0 }
 0x684   : > { %v4371_v4 = vmul.f32 0.2, %v4363_v62  ;;  %v4364_v12 = vadd.f32 %v4355_v2, %v4348_v29  ;;  %v15802_v35 = vsel %vm4366_vm11, %v4362_v61, %v4370_v19  ;;  %vm4367_vm12 = vcmp.ge.f32.partialorder %v4363_v62, 0.0 }
 0x685   : > { %v4349_v59 = vadd.f32 %v4343_v1, %v4204_v51  ;;  %v4395_v44 = vmul.f32 %v15802_v35, %v15802_v35 }
 0x686   : > { %vm4368_vm13 = vcmp.ge.f32.partialorder %v4364_v12, 0.0  ;;  %v4372_v38 = vmul.f32 0.2, %v4364_v12  ;;  %v4375_v20 = vsel %vm4367_vm12, %v4363_v62, %v4371_v4 }
 0x687   : > { %v4365_v53 = vadd.f32 %v4359_v60, %v4349_v59  ;;  %v4396_v24 = vmul.f32 %v4375_v20, %v4375_v20 }
 0x688   : > { %v4376_v6 = vsel %vm4368_vm13, %v4364_v12, %v4372_v38 }
 0x689   : > { %v4378_v31 = vadd.f32 %v4376_v6, %v15802_v35  ;;  %v4397_v43 = vmul.f32 %v4376_v6, %v4376_v6  ;;  %vm4369_vm14 = vcmp.ge.f32.partialorder %v4365_v53, 0.0  ;;  %v4373_v28 = vmul.f32 0.2, %v4365_v53 }
 0x68b   : > { %v4379_v7 = vrot.slane %v4378_v31, 4  ;;  %v4399_v10 = vadd.f32 %v4397_v43, %v4395_v44  ;;  %v4377_v54 = vsel %vm4369_vm14, %v4365_v53, %v4373_v28  ;;  %v13290_v44 = vld [vmem:[%s18104_s10 + $0x2e4] ss:$16 sps:$4 sm:$0xff]   ;;  %v13294_v43 = vld [vmem:[%s18104_s10 + $0x2c0] ss:$16 sps:$4 sm:$0xff]  }
 0x68c   : > { %v4385_v9 = vadd.f32 %v4377_v54, %v4375_v20  ;;  %v4398_v25 = vmul.f32 %v4377_v54, %v4377_v54  ;;  %v13302_v28 = vld [vmem:[%s18104_s10 + $0x2a4] ss:$16 sps:$4 sm:$0xff]  }
 0x68d   : > { %v4380_v14 = vadd.f32 %v4379_v7, %v4378_v31  ;;  %v4400_v30 = vrot.slane %v4399_v10, 4  ;;  %v13360_v7 = vld [vmem:[%s18103_s9 + $0x8] sm:$0xff]  }
 0x68e   : > { %v4386_v37 = vrot.slane %v4385_v9, 4  ;;  %v4406_v5 = vadd.f32 %v4398_v25, %v4396_v24  ;;  %v13306_v24 = vld [vmem:[%s18104_s10 + $0x280] ss:$16 sps:$4 sm:$0xff]  }
 0x68f   : > { %v4381_v22 = vrot.slane %v4380_v14, 2  ;;  %v4401_v36 = vadd.f32 %v4400_v30, %v4399_v10  ;;  %v13300_v10 = vld [vmem:[%s18104_s10 + $0x2a0] ss:$16 sps:$4 sm:$0xff]   ;;  %v13320_v30 = vld [vmem:[%s18104_s10 + $0x244] ss:$16 sps:$4 sm:$0xff]  }
 0x690   : > { %v4387_v46 = vadd.f32 %v4386_v37, %v4385_v9  ;;  %v4407_v55 = vrot.slane %v4406_v5, 4  ;;  %v13314_v9 = vld [vmem:[%s18104_s10 + $0x264] ss:$16 sps:$4 sm:$0xff]   ;;  %v13373_v25 = vld [vmem:[%s18103_s9 + $0x10] ss:$0 sps:$4 sm:$0x33]  }
 0x691   : > { %v4382_v57 = vadd.f32 %v4381_v22, %v4380_v14  ;;  %v4402_v39 = vrot.slane %v4401_v36, 2  ;;  %v13312_v14 = vld [vmem:[%s18104_s10 + $0x260] ss:$16 sps:$4 sm:$0xff]   ;;  %v13326_v37 = vld [vmem:[%s18104_s10 + $0x224] ss:$16 sps:$4 sm:$0xff]  }
 0x692   : > { %v4388_v23 = vrot.slane %v4387_v46, 2  ;;  %v4408_v40 = vadd.f32 %v4407_v55, %v4406_v5  ;;  %v13324_v5 = vld [vmem:[%s18104_s10 + $0x220] ss:$16 sps:$4 sm:$0xff]   ;;  %v13332_v22 = vld [vmem:[%s18104_s10 + $0x204] ss:$16 sps:$4 sm:$0xff]  }
 0x693   : > { %v4383_v8 = vrot.slane %v4382_v57, 1  ;;  %v4403_v0 = vadd.f32 %v4402_v39, %v4401_v36  ;;  %v13330_v36 = vld [vmem:[%s18104_s10 + $0x200] ss:$16 sps:$4 sm:$0xff]  }
 0x694   : > { %v4389_v42 = vadd.f32 %v4388_v23, %v4387_v46  ;;  %v4409_v48 = vrot.slane %v4408_v40, 2  ;;  %v13338_v46 = vld [vmem:[%s18104_s10 + $0x3e4] ss:$16 sps:$4 sm:$0xff]   ;;  %v13336_v55 = vld [vmem:[%s18104_s10 + $0x3e0] ss:$16 sps:$4 sm:$0xff]  }
 0x695   : > { %v4384_v32 = vadd.f32 %v4383_v8, %v4382_v57  ;;  %v4404_v41 = vrot.slane %v4403_v0, 1  ;;  %v13344_v57 = vld [vmem:[%s18104_s10 + $0x3c4] ss:$16 sps:$4 sm:$0xff]   ;;  %v13342_v39 = vld [vmem:[%s18104_s10 + $0x3c0] ss:$16 sps:$4 sm:$0xff]  }
 0x696   : > { %v4410_v15 = vadd.f32 %v4409_v48, %v4408_v40  ;;  %v4390_v3 = vrot.slane %v4389_v42, 1  ;;  %v13350_v23 = vld [vmem:[%s18104_s10 + $0x3a4] ss:$16 sps:$4 sm:$0xff]   ;;  %v13348_v40 = vld [vmem:[%s18104_s10 + $0x3a0] ss:$16 sps:$4 sm:$0xff]  }
 0x697   : > { %v4393_v56 = vmul.f32 0.0625, %v4384_v32  ;;  %v4405_v21 = vadd.f32 %v4404_v41, %v4403_v0  ;;  %v13356_v8 = vld [vmem:[%s18104_s10 + $0x384] ss:$16 sps:$4 sm:$0xff]   ;;  %v13354_v0 = vld [vmem:[%s18104_s10 + $0x380] ss:$16 sps:$4 sm:$0xff]  }
 0x698   : > { %v4411_v27 = vrot.slane %v4410_v15, 1  ;;  %v4391_v45 = vadd.f32 %v4390_v3, %v4389_v42  ;;  %v13363_v42 = vld [vmem:[%s18104_s10 + $0x364] ss:$16 sps:$4 sm:$0xff]   ;;  %v13361_v48 = vld [vmem:[%s18104_s10 + $0x360] ss:$16 sps:$4 sm:$0xff]  }
 0x699   : > { %v4413_v2 = vmul.f32 0.0625, %v4405_v21  ;;  %v4415_v16 = vmul.f32 %v4393_v56, %v4393_v56  ;;  %v4423_v19 = vsub.f32 %v4376_v6, %v4393_v56  ;;  %v4421_v62 = vsub.f32 %v15802_v35, %v4393_v56  ;;  %v13287_v6 = vld [vmem:[%s18103_s9] sm:$0xff]   ;;  %v13385_v21 = vld [vmem:[%s18104_s10 + $0x30c] ss:$16 sps:$4 sm:$0xff]  }
 0x69a   : > { %v4412_v17 = vadd.f32 %v4411_v27, %v4410_v15  ;;  %v4394_v33 = vmul.f32 0.0625, %v4391_v45  ;;  %v13288_v35 = vld [vmem:[%s18104_s10 + $0x2e0] ss:$16 sps:$4 sm:$0xff]   ;;  %v13369_v32 = vld [vmem:[%s18104_s10 + $0x344] ss:$16 sps:$4 sm:$0xff]   ;;  %5052 = vmatprep.subr.bf16.mxu0 %v13385_v21 }
 0x69b   : > { %v4417_v47 = vsub.f32 %v4413_v2, %v4415_v16  ;;  %v13367_v41 = vld [vmem:[%s18104_s10 + $0x340] ss:$16 sps:$4 sm:$0xff]   ;;  %v13376_v15 = vld [vmem:[%s18104_s10 + $0x324] ss:$16 sps:$4 sm:$0xff]   ;;  %v13383_v45 = vld [vmem:[%s18104_s10 + $0x308] ss:$16 sps:$4 sm:$0xff]  }
 0x69c   : > { %v4414_v60 = vmul.f32 0.0625, %v4412_v17  ;;  %v4416_v49 = vmul.f32 %v4394_v33, %v4394_v33  ;;  %v4422_v29 = vsub.f32 %v4375_v20, %v4394_v33  ;;  %v4424_v51 = vsub.f32 %v4377_v54, %v4394_v33  ;;  %v13296_v20 = vld [vmem:[%s18104_s10 + $0x2c4] ss:$16 sps:$4 sm:$0xff]   ;;  %v13374_v3 = vld [vmem:[%s18104_s10 + $0x320] ss:$16 sps:$4 sm:$0xff]   ;;  %5053 = vmatpush2.bf16.msra.mxu0 %v13383_v45 }
 0x69d   : > { %v4419_v50 = vmax.f32 %v4417_v47, 0.0  ;;  %v13308_v54 = vld [vmem:[%s18104_s10 + $0x284] ss:$16 sps:$4 sm:$0xff]   ;;  %v13380_v27 = vld [vmem:[%s18104_s10 + $0x300] ss:$16 sps:$4 sm:$0xff]  }
 0x69e   : > { %v4418_v52 = vsub.f32 %v4414_v60, %v4416_v49  ;;  %v13382_v56 = vld [vmem:[%s18104_s10 + $0x304] ss:$16 sps:$4 sm:$0xff]   ;;  %v13391_v16 = vld [vmem:[%s18104_s10 + $0xec] ss:$16 sps:$4 sm:$0xff]   ;;  %v13458_v21 = vld [vmem:[%s18104_s10 + $0x160] ss:$16 sps:$4 sm:$0xff]  }
 0x69f   : > { %v4425_v58 = vadd.f32 1e-05, %v4419_v50  ;;  %v13388_v2 = vld [vmem:[%s18104_s10 + $0xe4] ss:$16 sps:$4 sm:$0xff]   ;;  %5424 = vmatprep.subr.bf16.mxu0 %v13391_v16  ;;  %v13386_v50 = vld [vmem:[%s18104_s10 + $0xe0] ss:$16 sps:$4 sm:$0xff]  }
 0x6a0   : > { %v4420_v61 = vmax.f32 %v4418_v52, 0.0  ;;  %v13389_v52 = vld [vmem:[%s18104_s10 + $0xe8] ss:$16 sps:$4 sm:$0xff]   ;;  %v13469_v16 = vld [vmem:[%s18104_s10 + $0x14c] ss:$16 sps:$4 sm:$0xff]  }
 0x6a1   : > { %14284 = vrsqrt.f32 %v4425_v58 }
 0x6a2   : > { %v4426_v13 = vadd.f32 1e-05, %v4420_v61  ;;  %v13394_v61 = vld [vmem:[%s18104_s10 + $0xc4] ss:$16 sps:$4 sm:$0xff]  }
 0x6a4   : > { %14286 = vrsqrt.f32 %v4426_v13  ;;  %v13397_v13 = vld [vmem:[%s18104_s10 + $0xcc] ss:$16 sps:$4 sm:$0xff]  }
 0x6ae   : > { %v14285_v11 = vpop.eup %14284 }
 0x6af   : > { %v4429_v4 = vmul.f32 %v14285_v11, %v4421_v62  ;;  %v4431_v12 = vmul.f32 %v14285_v11, %v4423_v19  ;;  %v13392_v11 = vld [vmem:[%s18104_s10 + $0xc0] ss:$16 sps:$4 sm:$0xff]   ;;  %v13395_v19 = vld [vmem:[%s18104_s10 + $0xc8] ss:$16 sps:$4 sm:$0xff]   ;;  %v13400_v62 = vld [vmem:[%s18104_s10 + $0xa4] ss:$16 sps:$4 sm:$0xff]  }
 0x6b1   : > { %v14287_v1 = vpop.eup %14286  ;;  %v4433_v31 = vpack.c.bf16 %v4431_v12, %v4429_v4  ;;  %v13406_v4 = vld [vmem:[%s18104_s10 + $0x84] ss:$16 sps:$4 sm:$0xff]   ;;  %v13409_v12 = vld [vmem:[%s18104_s10 + $0x8c] ss:$16 sps:$4 sm:$0xff]  }
 0x6b2   : > { %v4430_v59 = vmul.f32 %v14287_v1, %v4422_v29  ;;  %v4432_v38 = vmul.f32 %v14287_v1, %v4424_v51  ;;  %v13403_v29 = vld [vmem:[%s18104_s10 + $0xac] ss:$16 sps:$4 sm:$0xff]   ;;  %v13398_v51 = vld [vmem:[%s18104_s10 + $0xa0] ss:$16 sps:$4 sm:$0xff]   ;;  %v13401_v1 = vld [vmem:[%s18104_s10 + $0xa8] ss:$16 sps:$4 sm:$0xff]  }
 0x6b4   : > { %v4434_v53 = vpack.c.bf16 %v4432_v38, %v4430_v59  ;;  %v13404_v59 = vld [vmem:[%s18104_s10 + $0x80] ss:$16 sps:$4 sm:$0xff]   ;;  %v13407_v38 = vld [vmem:[%s18104_s10 + $0x88] ss:$16 sps:$4 sm:$0xff]  }
 0x6b6   : > { %4477 = vmatprep.subr.bf16.mxu1 %v4434_v53  ;;  %v13412_v53 = vld [vmem:[%s18104_s10 + $0x64] ss:$16 sps:$4 sm:$0xff]  }
 0x6b7   : > { %4478 = vmatpush1.bf16.msra.mxu1 %v4433_v31  ;;  %v13410_v31 = vld [vmem:[%s18104_s10 + $0x60] ss:$16 sps:$4 sm:$0xff]  }
 0x6b8   : > { %4981 = vmatprep.subr.bf16.mxu1 %v13290_v44  ;;  %v13415_v44 = vld [vmem:[%s18104_s10 + $0x6c] ss:$16 sps:$4 sm:$0xff]  }
 0x6ba   : > { %10940 = vmatmul.mubr.msk.bf16.vlgmr.msra.gmra.mxu1 %vm4453_vm15, %v13287_v6  ;;  %v13413_v6 = vld [vmem:[%s18104_s10 + $0x68] ss:$16 sps:$4 sm:$0xff]  }
 0x6bb   : > { %4982 = vmatpush1.bf16.msra.mxu1 %v13288_v35  ;;  %4505 = vmatprep.mubr.bf16.mxu1 %v14362_v18  ;;  %v13418_v35 = vld [vmem:[%s18104_s10 + $0x44] ss:$16 sps:$4 sm:$0xff]  }
 0x6bc   : > { %4983 = vmatprep.subr.bf16.mxu1 %v13296_v20  ;;  %v13421_v20 = vld [vmem:[%s18104_s10 + $0x4c] ss:$16 sps:$4 sm:$0xff]  }
 0x6bf   : > { %4984 = vmatpush1.bf16.msra.mxu1 %v13294_v43  ;;  %v13416_v43 = vld [vmem:[%s18104_s10 + $0x40] ss:$16 sps:$4 sm:$0xff]  }
 0x6c0   : > { %4985 = vmatprep.subr.bf16.mxu1 %v13302_v28  ;;  %v13419_v28 = vld [vmem:[%s18104_s10 + $0x48] ss:$16 sps:$4 sm:$0xff]  }
 0x6c2   : > { %10941 = vmatmul.mubr.msk.bf16.gmra.mxu1 %vm4453_vm15, %v13360_v7  ;;  %v13424_v7 = vld [vmem:[%s18104_s10 + $0x24] ss:$16 sps:$4 sm:$0xff]  }
 0x6c3   : > { %4986 = vmatpush1.bf16.msra.mxu1 %v13300_v10  ;;  %4515 = vmatprep.mubr.bf16.mxu1 %v14362_v18  ;;  %v13318_v18 = vld [vmem:[%s18104_s10 + $0x240] ss:$16 sps:$4 sm:$0xff]   ;;  %v13427_v10 = vld [vmem:[%s18104_s10 + $0x2c] ss:$16 sps:$4 sm:$0xff]  }
 0x6c4   : > { %4987 = vmatprep.subr.bf16.mxu1 %v13308_v54  ;;  %v13422_v54 = vld [vmem:[%s18104_s10 + $0x20] ss:$16 sps:$4 sm:$0xff]  }
 0x6c7   : > { %4988 = vmatpush1.bf16.msra.mxu1 %v13306_v24  ;;  %v13425_v24 = vld [vmem:[%s18104_s10 + $0x28] ss:$16 sps:$4 sm:$0xff]  }
 0x6c8   : > { %4989 = vmatprep.subr.bf16.mxu1 %v13314_v9  ;;  %v13430_v9 = vld [vmem:[%s18104_s10 + $0x4] ss:$16 sps:$4 sm:$0xff]  }
 0x6ca   : > { %10942 = vmatmul.mubr.msk.bf16.gmra.mxu1 %vm4453_vm15, %v13373_v25  ;;  %v13433_v25 = vld [vmem:[%s18104_s10 + $0xc] ss:$16 sps:$4 sm:$0xff]  }
 0x6cb   : > { %4990 = vmatpush1.bf16.msra.mxu1 %v13312_v14  ;;  %v13428_v14 = vld [vmem:[%s18104_s10] ss:$16 sps:$4 sm:$0xff]  }
 0x6cc   : > { %4991 = vmatprep.subr.bf16.mxu1 %v13320_v30  ;;  %v13431_v30 = vld [vmem:[%s18104_s10 + $0x8] ss:$16 sps:$4 sm:$0xff]  }
 0x6cf   : > { %4992 = vmatpush1.bf16.msra.mxu1 %v13318_v18  ;;  %v13436_v18 = vld [vmem:[%s18104_s10 + $0x1e4] ss:$16 sps:$4 sm:$0xff]  }
 0x6d0   : > { %4993 = vmatprep.subr.bf16.mxu1 %v13326_v37  ;;  %v13439_v37 = vld [vmem:[%s18104_s10 + $0x1ec] ss:$16 sps:$4 sm:$0xff]  }
 0x6d3   : > { %4994 = vmatpush1.bf16.msra.mxu1 %v13324_v5  ;;  %v13434_v5 = vld [vmem:[%s18104_s10 + $0x1e0] ss:$16 sps:$4 sm:$0xff]  }
 0x6d4   : > { %4995 = vmatprep.subr.bf16.mxu1 %v13332_v22  ;;  %v13437_v22 = vld [vmem:[%s18104_s10 + $0x1e8] ss:$16 sps:$4 sm:$0xff]  }
 0x6d7   : > { %4996 = vmatpush1.bf16.msra.mxu1 %v13330_v36  ;;  %v13442_v36 = vld [vmem:[%s18104_s10 + $0x1c4] ss:$16 sps:$4 sm:$0xff]  }
 0x6d8   : > { %4997 = vmatprep.subr.bf16.mxu1 %v13338_v46  ;;  %v13445_v46 = vld [vmem:[%s18104_s10 + $0x1cc] ss:$16 sps:$4 sm:$0xff]  }
 0x6db   : > { %4998 = vmatpush2.bf16.msra.mxu1 %v13336_v55  ;;  %v13440_v55 = vld [vmem:[%s18104_s10 + $0x1c0] ss:$16 sps:$4 sm:$0xff]  }
 0x6dc   : > { %4999 = vmatprep.subr.bf16.mxu1 %v13344_v57  ;;  %v13443_v57 = vld [vmem:[%s18104_s10 + $0x1c8] ss:$16 sps:$4 sm:$0xff]  }
 0x6df   : > { %5000 = vmatpush2.bf16.msra.mxu1 %v13342_v39  ;;  %v13448_v39 = vld [vmem:[%s18104_s10 + $0x1a4] ss:$16 sps:$4 sm:$0xff]  }
 0x6e0   : > { %5001 = vmatprep.subr.bf16.mxu1 %v13350_v23  ;;  %v13451_v23 = vld [vmem:[%s18104_s10 + $0x1ac] ss:$16 sps:$4 sm:$0xff]  }
 0x6e3   : > { %5002 = vmatpush2.bf16.msra.mxu1 %v13348_v40  ;;  %v13446_v40 = vld [vmem:[%s18104_s10 + $0x1a0] ss:$16 sps:$4 sm:$0xff]  }
 0x6e4   : > { %5003 = vmatprep.subr.bf16.mxu1 %v13356_v8  ;;  %v13449_v8 = vld [vmem:[%s18104_s10 + $0x1a8] ss:$16 sps:$4 sm:$0xff]  }
 0x6e7   : > { %5004 = vmatpush2.bf16.msra.mxu1 %v13354_v0  ;;  %v13454_v0 = vld [vmem:[%s18104_s10 + $0x184] ss:$16 sps:$4 sm:$0xff]  }
 0x6e8   : > { %5005 = vmatprep.subr.bf16.mxu1 %v13363_v42  ;;  %v13457_v42 = vld [vmem:[%s18104_s10 + $0x18c] ss:$16 sps:$4 sm:$0xff]  }
 0x6eb   : > { %5006 = vmatpush2.bf16.msra.mxu1 %v13361_v48 }
 0x6ec   : > { %5007 = vmatprep.subr.bf16.mxu1 %v13369_v32  ;;  %v13452_v32 = vld [vmem:[%s18104_s10 + $0x180] ss:$16 sps:$4 sm:$0xff]  }
 0x6ef   : > { %5008 = vmatpush2.bf16.msra.mxu1 %v13367_v41  ;;  %v13455_v41 = vld [vmem:[%s18104_s10 + $0x188] ss:$16 sps:$4 sm:$0xff]  }
 0x6f0   : > { %5009 = vmatprep.subr.bf16.mxu1 %v13376_v15  ;;  %v13460_v15 = vld [vmem:[%s18104_s10 + $0x164] ss:$16 sps:$4 sm:$0xff]  }
 0x6f3   : > { %5010 = vmatpush2.bf16.msra.mxu1 %v13374_v3  ;;  %v13463_v3 = vld [vmem:[%s18104_s10 + $0x16c] ss:$16 sps:$4 sm:$0xff]  }
 0x6f4   : > { %5011 = vmatprep.subr.bf16.mxu1 %v13382_v56 }
 0x6f7   : > { %5012 = vmatpush2.bf16.msra.mxu1 %v13380_v27  ;;  %v13461_v27 = vld [vmem:[%s18104_s10 + $0x168] ss:$16 sps:$4 sm:$0xff]  }
 0x6f8   : > { %5383 = vmatprep.subr.bf16.mxu1 %v13388_v2  ;;  %v13466_v2 = vld [vmem:[%s18104_s10 + $0x144] ss:$16 sps:$4 sm:$0xff]  }
 0x77a   : > { %v4497_v17 = vpop.f32.mrf.mxu1 }
 0x77b   : > { %v15930_v33 = vpack.c.bf16 %v4497_v17, %v4497_v17 }
 0x77c   : > { %v4499_v47 = vpop.f32.mrf.mxu1 }
 0x77d   : > { %v4525_v60 = vpack.c.bf16 %v4499_v47, %v4499_v47  ;;  %v4657_v58 = vrot.slane %v15930_v33, 2  ;;  %v13464_v47 = vld [vmem:[%s18104_s10 + $0x140] ss:$16 sps:$4 sm:$0xff]  }
 0x77e   : > { %v16065_v48 = vpop.f32.mrf.mxu1 }
 0x77f   : > { %v4658_v49 = vrot.slane %v4525_v60, 2 }
 0x780   : > { %v4503_v56 = vpop.f32.mrf.mxu1 }
 0x781   : > { %5013 = vmatprep.mubr.bf16.mxu1 %v4658_v49  ;;  %5054 = vmatprep.mubr.bf16.mxu0 %v4658_v49 }
 0x782   : > { %5014 = vmatmul.mubr.bf16.vlgmr.msra.gmra.mxu1 %v4657_v58  ;;  %5055 = vmatmul.mubr.bf16.vlgmr.msra.gmra.mxu0 %v4657_v58  ;;  %v16085_v45 = vpop.f32.mrf.mxu1 }
 0x783   : > { %5384 = vmatpush1.bf16.msra.mxu1 %v13386_v50  ;;  %5425 = vmatpush1.bf16.msra.mxu0 %v13389_v52  ;;  %v13472_v50 = vld [vmem:[%s18104_s10 + $0x124] ss:$16 sps:$4 sm:$0xff]   ;;  %v13475_v52 = vld [vmem:[%s18104_s10 + $0x12c] ss:$16 sps:$4 sm:$0xff]  }
 0x784   : > { %5415 = vmatprep.mubr.bf16.mxu1 %v4525_v60  ;;  %5456 = vmatprep.mubr.bf16.mxu0 %v4525_v60  ;;  %v16093_v17 = vpop.f32.mrf.mxu1  ;;  %v13467_v60 = vld [vmem:[%s18104_s10 + $0x148] ss:$16 sps:$4 sm:$0xff]  }
 0x785   : > { %5385 = vmatprep.subr.bf16.mxu1 %v13394_v61  ;;  %5426 = vmatprep.subr.bf16.mxu0 %v13397_v13  ;;  %v13470_v61 = vld [vmem:[%s18104_s10 + $0x120] ss:$16 sps:$4 sm:$0xff]   ;;  %v13473_v13 = vld [vmem:[%s18104_s10 + $0x128] ss:$16 sps:$4 sm:$0xff]  }
 0x786   : > { %v16101_v49 = vpop.f32.mrf.mxu1 }
 0x787   : > { %5386 = vmatpush1.bf16.msra.mxu1 %v13392_v11  ;;  %5427 = vmatpush1.bf16.msra.mxu0 %v13395_v19  ;;  %v13478_v19 = vld [vmem:[%s18104_s10 + $0x104] ss:$16 sps:$4 sm:$0xff]  }
 0x788   : > { %5387 = vmatprep.subr.bf16.mxu1 %v13400_v62  ;;  %5428 = vmatprep.subr.bf16.mxu0 %v13403_v29  ;;  %v16109_v58 = vpop.f32.mrf.mxu1  ;;  %v13481_v62 = vld [vmem:[%s18104_s10 + $0x10c] ss:$16 sps:$4 sm:$0xff]  }
 0x78a   : > { %v16117_v11 = vpop.f32.mrf.mxu1 }
 0x78b   : > { %5388 = vmatpush1.bf16.msra.mxu1 %v13398_v51  ;;  %5429 = vmatpush1.bf16.msra.mxu0 %v13401_v1  ;;  %v13476_v51 = vld [vmem:[%s18104_s10 + $0x100] ss:$16 sps:$4 sm:$0xff]   ;;  %v13479_v1 = vld [vmem:[%s18104_s10 + $0x108] ss:$16 sps:$4 sm:$0xff]  }
 0x78c   : > { %5389 = vmatprep.subr.bf16.mxu1 %v13406_v4  ;;  %5430 = vmatprep.subr.bf16.mxu0 %v13409_v12  ;;  %v16125_v29 = vpop.f32.mrf.mxu1  ;;  %v13484_v12 = vld [vmem:[%s18104_s10 + $0x4e4] ss:$16 sps:$4 sm:$0xff]  }
 0x78e   : > { %v4521_v4 = vpop.f32.mrf.mxu1 }
 0x78f   : > { %5390 = vmatpush1.bf16.msra.mxu1 %v13404_v59  ;;  %5431 = vmatpush1.bf16.msra.mxu0 %v13407_v38  ;;  %v13487_v59 = vld [vmem:[%s18104_s10 + $0x4ec] ss:$16 sps:$4 sm:$0xff]   ;;  %v13557_v4 = vld [vmem:[%s18104_s10 + $0x568] ss:$16 sps:$4 sm:$0xff]  }
 0x790   : > { %5391 = vmatprep.subr.bf16.mxu1 %v13412_v53  ;;  %5432 = vmatprep.subr.bf16.mxu0 %v13415_v44  ;;  %v4522_v38 = vpop.f32.mrf.mxu1  ;;  %v13482_v53 = vld [vmem:[%s18104_s10 + $0x4e0] ss:$16 sps:$4 sm:$0xff]   ;;  %v13485_v44 = vld [vmem:[%s18104_s10 + $0x4e8] ss:$16 sps:$4 sm:$0xff]  }
 0x791   : > { %v13560_v38 = vld [vmem:[%s18104_s10 + $0x540] ss:$16 sps:$4 sm:$0xff]  }
 0x793   : > { %5392 = vmatpush1.bf16.msra.mxu1 %v13410_v31  ;;  %5433 = vmatpush1.bf16.msra.mxu0 %v13413_v6  ;;  %v16145_v31 = vpack.c.bf16 %v4503_v56, %v4503_v56  ;;  %v13490_v6 = vld [vmem:[%s18104_s10 + $0x4c4] ss:$16 sps:$4 sm:$0xff]  }
 0x794   : > { %5393 = vmatprep.subr.bf16.mxu1 %v13418_v35  ;;  %5434 = vmatprep.subr.bf16.mxu0 %v13421_v20  ;;  %v13493_v35 = vld [vmem:[%s18104_s10 + $0x4cc] ss:$16 sps:$4 sm:$0xff]   ;;  %v13488_v20 = vld [vmem:[%s18104_s10 + $0x4c0] ss:$16 sps:$4 sm:$0xff]   ;;  %v13538_v56 = vld [vmem:[%s18104_s10 + $0x5c4] ss:$16 sps:$4 sm:$0xff]  }
 0x797   : > { %5394 = vmatpush1.bf16.msra.mxu1 %v13416_v43  ;;  %5435 = vmatpush1.bf16.msra.mxu0 %v13419_v28  ;;  %v13491_v43 = vld [vmem:[%s18104_s10 + $0x4c8] ss:$16 sps:$4 sm:$0xff]   ;;  %v13496_v28 = vld [vmem:[%s18104_s10 + $0x4a4] ss:$16 sps:$4 sm:$0xff]  }
 0x798   : > { %5395 = vmatprep.subr.bf16.mxu1 %v13424_v7  ;;  %5436 = vmatprep.subr.bf16.mxu0 %v13427_v10  ;;  %v13494_v7 = vld [vmem:[%s18104_s10 + $0x4a0] ss:$16 sps:$4 sm:$0xff]   ;;  %v13497_v10 = vld [vmem:[%s18104_s10 + $0x4a8] ss:$16 sps:$4 sm:$0xff]  }
 0x79b   : > { %5396 = vmatpush1.bf16.msra.mxu1 %v13422_v54  ;;  %5437 = vmatpush1.bf16.msra.mxu0 %v13425_v24  ;;  %v13502_v54 = vld [vmem:[%s18104_s10 + $0x484] ss:$16 sps:$4 sm:$0xff]   ;;  %v13505_v24 = vld [vmem:[%s18104_s10 + $0x48c] ss:$16 sps:$4 sm:$0xff]  }
 0x79c   : > { %5397 = vmatprep.subr.bf16.mxu1 %v13430_v9  ;;  %5438 = vmatprep.subr.bf16.mxu0 %v13433_v25  ;;  %v13500_v9 = vld [vmem:[%s18104_s10 + $0x480] ss:$16 sps:$4 sm:$0xff]   ;;  %v13503_v25 = vld [vmem:[%s18104_s10 + $0x488] ss:$16 sps:$4 sm:$0xff]  }
 0x79f   : > { %5398 = vmatpush1.bf16.msra.mxu1 %v13428_v14  ;;  %5439 = vmatpush1.bf16.msra.mxu0 %v13431_v30  ;;  %v13508_v14 = vld [vmem:[%s18104_s10 + $0x464] ss:$16 sps:$4 sm:$0xff]   ;;  %v13511_v30 = vld [vmem:[%s18104_s10 + $0x46c] ss:$16 sps:$4 sm:$0xff]  }
 0x7a0   : > { %5399 = vmatprep.subr.bf16.mxu1 %v13436_v18  ;;  %5440 = vmatprep.subr.bf16.mxu0 %v13439_v37  ;;  %v13506_v18 = vld [vmem:[%s18104_s10 + $0x460] ss:$16 sps:$4 sm:$0xff]   ;;  %v13509_v37 = vld [vmem:[%s18104_s10 + $0x468] ss:$16 sps:$4 sm:$0xff]  }
 0x7a3   : > { %5400 = vmatpush2.bf16.msra.mxu1 %v13434_v5  ;;  %5441 = vmatpush2.bf16.msra.mxu0 %v13437_v22  ;;  %v13514_v5 = vld [vmem:[%s18104_s10 + $0x444] ss:$16 sps:$4 sm:$0xff]   ;;  %v13517_v22 = vld [vmem:[%s18104_s10 + $0x44c] ss:$16 sps:$4 sm:$0xff]  }
 0x7a4   : > { %5401 = vmatprep.subr.bf16.mxu1 %v13442_v36  ;;  %5442 = vmatprep.subr.bf16.mxu0 %v13445_v46  ;;  %v13512_v36 = vld [vmem:[%s18104_s10 + $0x440] ss:$16 sps:$4 sm:$0xff]   ;;  %v13515_v46 = vld [vmem:[%s18104_s10 + $0x448] ss:$16 sps:$4 sm:$0xff]  }
 0x7a7   : > { %5402 = vmatpush2.bf16.msra.mxu1 %v13440_v55  ;;  %5443 = vmatpush2.bf16.msra.mxu0 %v13443_v57  ;;  %v13520_v55 = vld [vmem:[%s18104_s10 + $0x424] ss:$16 sps:$4 sm:$0xff]   ;;  %v13523_v57 = vld [vmem:[%s18104_s10 + $0x42c] ss:$16 sps:$4 sm:$0xff]  }
 0x7a8   : > { %5403 = vmatprep.subr.bf16.mxu1 %v13448_v39  ;;  %5444 = vmatprep.subr.bf16.mxu0 %v13451_v23  ;;  %v13518_v39 = vld [vmem:[%s18104_s10 + $0x420] ss:$16 sps:$4 sm:$0xff]   ;;  %v13521_v23 = vld [vmem:[%s18104_s10 + $0x428] ss:$16 sps:$4 sm:$0xff]  }
 0x7ab   : > { %5404 = vmatpush2.bf16.msra.mxu1 %v13446_v40  ;;  %5445 = vmatpush2.bf16.msra.mxu0 %v13449_v8  ;;  %v13526_v40 = vld [vmem:[%s18104_s10 + $0x404] ss:$16 sps:$4 sm:$0xff]   ;;  %v13529_v8 = vld [vmem:[%s18104_s10 + $0x40c] ss:$16 sps:$4 sm:$0xff]  }
 0x7ac   : > { %5405 = vmatprep.subr.bf16.mxu1 %v13454_v0  ;;  %5446 = vmatprep.subr.bf16.mxu0 %v13457_v42  ;;  %v13524_v0 = vld [vmem:[%s18104_s10 + $0x400] ss:$16 sps:$4 sm:$0xff]   ;;  %v13527_v42 = vld [vmem:[%s18104_s10 + $0x408] ss:$16 sps:$4 sm:$0xff]  }
 0x7af   : > { %5406 = vmatpush2.bf16.msra.mxu1 %v13452_v32  ;;  %5447 = vmatpush2.bf16.msra.mxu0 %v13455_v41  ;;  %v13532_v32 = vld [vmem:[%s18104_s10 + $0x5e4] ss:$16 sps:$4 sm:$0xff]   ;;  %v13535_v41 = vld [vmem:[%s18104_s10 + $0x5ec] ss:$16 sps:$4 sm:$0xff]  }
 0x7b0   : > { %5407 = vmatprep.subr.bf16.mxu1 %v13460_v15  ;;  %5448 = vmatprep.subr.bf16.mxu0 %v13463_v3  ;;  %v13530_v15 = vld [vmem:[%s18104_s10 + $0x5e0] ss:$16 sps:$4 sm:$0xff]   ;;  %v13533_v3 = vld [vmem:[%s18104_s10 + $0x5e8] ss:$16 sps:$4 sm:$0xff]  }
 0x7b3   : > { %5408 = vmatpush2.bf16.msra.mxu1 %v13458_v21  ;;  %5449 = vmatpush2.bf16.msra.mxu0 %v13461_v27  ;;  %v13541_v21 = vld [vmem:[%s18104_s10 + $0x5cc] ss:$16 sps:$4 sm:$0xff]   ;;  %v13536_v27 = vld [vmem:[%s18104_s10 + $0x5c0] ss:$16 sps:$4 sm:$0xff]  }
 0x7b4   : > { %5409 = vmatprep.subr.bf16.mxu1 %v13466_v2  ;;  %5450 = vmatprep.subr.bf16.mxu0 %v13469_v16  ;;  %v13539_v2 = vld [vmem:[%s18104_s10 + $0x5c8] ss:$16 sps:$4 sm:$0xff]   ;;  %v13544_v16 = vld [vmem:[%s18104_s10 + $0x5a4] ss:$16 sps:$4 sm:$0xff]  }
 0x7b7   : > { %5410 = vmatpush2.bf16.msra.mxu1 %v13464_v47  ;;  %5451 = vmatpush2.bf16.msra.mxu0 %v13467_v60  ;;  %v13547_v47 = vld [vmem:[%s18104_s10 + $0x5ac] ss:$16 sps:$4 sm:$0xff]   ;;  %v13542_v60 = vld [vmem:[%s18104_s10 + $0x5a0] ss:$16 sps:$4 sm:$0xff]  }
 0x7b8   : > { %5411 = vmatprep.subr.bf16.mxu1 %v13472_v50  ;;  %5452 = vmatprep.subr.bf16.mxu0 %v13475_v52  ;;  %v13545_v50 = vld [vmem:[%s18104_s10 + $0x5a8] ss:$16 sps:$4 sm:$0xff]   ;;  %v13550_v52 = vld [vmem:[%s18104_s10 + $0x584] ss:$16 sps:$4 sm:$0xff]  }
 0x7bb   : > { %5412 = vmatpush2.bf16.msra.mxu1 %v13470_v61  ;;  %5453 = vmatpush2.bf16.msra.mxu0 %v13473_v13  ;;  %v13553_v61 = vld [vmem:[%s18104_s10 + $0x58c] ss:$16 sps:$4 sm:$0xff]   ;;  %v13548_v13 = vld [vmem:[%s18104_s10 + $0x580] ss:$16 sps:$4 sm:$0xff]  }
 0x7bc   : > { %5413 = vmatprep.subr.bf16.mxu1 %v13478_v19  ;;  %5454 = vmatprep.subr.bf16.mxu0 %v13481_v62  ;;  %v13551_v19 = vld [vmem:[%s18104_s10 + $0x588] ss:$16 sps:$4 sm:$0xff]   ;;  %v13556_v62 = vld [vmem:[%s18104_s10 + $0x564] ss:$16 sps:$4 sm:$0xff]  }
 0x7bf   : > { %5414 = vmatpush2.bf16.msra.mxu1 %v13476_v51  ;;  %5455 = vmatpush2.bf16.msra.mxu0 %v13479_v1  ;;  %v13559_v51 = vld [vmem:[%s18104_s10 + $0x56c] ss:$16 sps:$4 sm:$0xff]   ;;  %v13554_v1 = vld [vmem:[%s18104_s10 + $0x560] ss:$16 sps:$4 sm:$0xff]  }
 0x7c0   : > { %5852 = vmatprep.subr.bf16.mxu1 %v13484_v12  ;;  %5893 = vmatprep.subr.bf16.mxu0 %v13487_v59  ;;  %v13562_v12 = vld [vmem:[%s18104_s10 + $0x544] ss:$16 sps:$4 sm:$0xff]   ;;  %v13565_v59 = vld [vmem:[%s18104_s10 + $0x54c] ss:$16 sps:$4 sm:$0xff]  }
 0x7c2   : > { %5416 = vmatmul.mubr.bf16.vlgmr.msra.gmra.mxu1 %v15930_v33  ;;  %5457 = vmatmul.mubr.bf16.vlgmr.msra.gmra.mxu0 %v15930_v33  ;;  %v13499_v33 = vld [vmem:[%s18104_s10 + $0x4ac] ss:$16 sps:$4 sm:$0xff]  }
 0x7c3   : > { %5853 = vmatpush1.bf16.msra.mxu1 %v13482_v53  ;;  %5884 = vmatprep.mubr.bf16.mxu1 %v16145_v31  ;;  %v13563_v53 = vld [vmem:[%s18104_s10 + $0x548] ss:$16 sps:$4 sm:$0xff]  }
 0x7c4   : > { %5894 = vmatpush1.bf16.msra.mxu0 %v13485_v44  ;;  %5925 = vmatprep.mubr.bf16.mxu0 %v16145_v31  ;;  %v13568_v44 = vld [vmem:[%s18104_s10 + $0x524] ss:$16 sps:$4 sm:$0xff]  }
 0x7c5   : > { %5854 = vmatprep.subr.bf16.mxu1 %v13490_v6  ;;  %5895 = vmatprep.subr.bf16.mxu0 %v13493_v35  ;;  %v13571_v6 = vld [vmem:[%s18104_s10 + $0x52c] ss:$16 sps:$4 sm:$0xff]   ;;  %v13566_v35 = vld [vmem:[%s18104_s10 + $0x520] ss:$16 sps:$4 sm:$0xff]  }
 0x7c7   : > { %5855 = vmatpush1.bf16.msra.mxu1 %v13488_v20  ;;  %v13569_v20 = vld [vmem:[%s18104_s10 + $0x528] ss:$16 sps:$4 sm:$0xff]  }
 0x7c8   : > { %5896 = vmatpush1.bf16.msra.mxu0 %v13491_v43  ;;  %5856 = vmatprep.subr.bf16.mxu1 %v13496_v28  ;;  %v13574_v43 = vld [vmem:[%s18104_s10 + $0x504] ss:$16 sps:$4 sm:$0xff]   ;;  %v13577_v28 = vld [vmem:[%s18104_s10 + $0x50c] ss:$16 sps:$4 sm:$0xff]  }
 0x7c9   : > { %5897 = vmatprep.subr.bf16.mxu0 %v13499_v33  ;;  %v13572_v33 = vld [vmem:[%s18104_s10 + $0x500] ss:$16 sps:$4 sm:$0xff]  }
 0x7cb   : > { %5857 = vmatpush1.bf16.msra.mxu1 %v13494_v7  ;;  %v13575_v7 = vld [vmem:[%s18104_s10 + $0x508] ss:$16 sps:$4 sm:$0xff]  }
 0x7cc   : > { %5898 = vmatpush1.bf16.msra.mxu0 %v13497_v10  ;;  %5858 = vmatprep.subr.bf16.mxu1 %v13502_v54  ;;  %v13580_v10 = vld [vmem:[%s18104_s10 + $0x6e4] ss:$16 sps:$4 sm:$0xff]   ;;  %v13583_v54 = vld [vmem:[%s18104_s10 + $0x6ec] ss:$16 sps:$4 sm:$0xff]  }
 0x7cd   : > { %5899 = vmatprep.subr.bf16.mxu0 %v13505_v24  ;;  %v13578_v24 = vld [vmem:[%s18104_s10 + $0x6e0] ss:$16 sps:$4 sm:$0xff]  }
 0x7cf   : > { %5859 = vmatpush1.bf16.msra.mxu1 %v13500_v9  ;;  %v16342_v9 = vpack.c.bf16 %v16065_v48, %v16065_v48  ;;  %v13589_v48 = vld [vmem:[%s18104_s10 + $0x6cc] ss:$16 sps:$4 sm:$0xff]  }
 0x7d0   : > { %5900 = vmatpush1.bf16.msra.mxu0 %v13503_v25  ;;  %5860 = vmatprep.subr.bf16.mxu1 %v13508_v14  ;;  %v13581_v25 = vld [vmem:[%s18104_s10 + $0x6e8] ss:$16 sps:$4 sm:$0xff]   ;;  %v13586_v14 = vld [vmem:[%s18104_s10 + $0x6c4] ss:$16 sps:$4 sm:$0xff]  }
 0x7d1   : > { %5901 = vmatprep.subr.bf16.mxu0 %v13511_v30  ;;  %v6006_v30 = vrot.slane %v16145_v31, 2  ;;  %v13592_v31 = vld [vmem:[%s18104_s10 + $0x6a4] ss:$16 sps:$4 sm:$0xff]  }
 0x7d3   : > { %5861 = vmatpush1.bf16.msra.mxu1 %v13506_v18  ;;  %v13584_v18 = vld [vmem:[%s18104_s10 + $0x6c0] ss:$16 sps:$4 sm:$0xff]  }
 0x7d4   : > { %5902 = vmatpush1.bf16.msra.mxu0 %v13509_v37  ;;  %5862 = vmatprep.subr.bf16.mxu1 %v13514_v5  ;;  %v13587_v37 = vld [vmem:[%s18104_s10 + $0x6c8] ss:$16 sps:$4 sm:$0xff]   ;;  %v13595_v5 = vld [vmem:[%s18104_s10 + $0x6ac] ss:$16 sps:$4 sm:$0xff]  }
 0x7d5   : > { %5903 = vmatprep.subr.bf16.mxu0 %v13517_v22  ;;  %v13590_v22 = vld [vmem:[%s18104_s10 + $0x6a0] ss:$16 sps:$4 sm:$0xff]  }
 0x7d7   : > { %5863 = vmatpush1.bf16.msra.mxu1 %v13512_v36  ;;  %v13593_v36 = vld [vmem:[%s18104_s10 + $0x6a8] ss:$16 sps:$4 sm:$0xff]  }
 0x7d8   : > { %5904 = vmatpush1.bf16.msra.mxu0 %v13515_v46  ;;  %5864 = vmatprep.subr.bf16.mxu1 %v13520_v55  ;;  %v13598_v46 = vld [vmem:[%s18104_s10 + $0x684] ss:$16 sps:$4 sm:$0xff]   ;;  %v13601_v55 = vld [vmem:[%s18104_s10 + $0x68c] ss:$16 sps:$4 sm:$0xff]  }
 0x7d9   : > { %5905 = vmatprep.subr.bf16.mxu0 %v13523_v57  ;;  %v13596_v57 = vld [vmem:[%s18104_s10 + $0x680] ss:$16 sps:$4 sm:$0xff]  }
 0x7db   : > { %5865 = vmatpush1.bf16.msra.mxu1 %v13518_v39  ;;  %v13599_v39 = vld [vmem:[%s18104_s10 + $0x688] ss:$16 sps:$4 sm:$0xff]  }
 0x7dc   : > { %5906 = vmatpush1.bf16.msra.mxu0 %v13521_v23  ;;  %5866 = vmatprep.subr.bf16.mxu1 %v13526_v40  ;;  %v13604_v23 = vld [vmem:[%s18104_s10 + $0x664] ss:$16 sps:$4 sm:$0xff]   ;;  %v13607_v40 = vld [vmem:[%s18104_s10 + $0x66c] ss:$16 sps:$4 sm:$0xff]  }
 0x7dd   : > { %5907 = vmatprep.subr.bf16.mxu0 %v13529_v8  ;;  %v13602_v8 = vld [vmem:[%s18104_s10 + $0x660] ss:$16 sps:$4 sm:$0xff]  }
 0x7df   : > { %5867 = vmatpush1.bf16.msra.mxu1 %v13524_v0  ;;  %v13605_v0 = vld [vmem:[%s18104_s10 + $0x668] ss:$16 sps:$4 sm:$0xff]  }
 0x7e0   : > { %5908 = vmatpush1.bf16.msra.mxu0 %v13527_v42  ;;  %5868 = vmatprep.subr.bf16.mxu1 %v13532_v32  ;;  %v13610_v42 = vld [vmem:[%s18104_s10 + $0x644] ss:$16 sps:$4 sm:$0xff]   ;;  %v13613_v32 = vld [vmem:[%s18104_s10 + $0x64c] ss:$16 sps:$4 sm:$0xff]  }
 0x7e1   : > { %5909 = vmatprep.subr.bf16.mxu0 %v13535_v41  ;;  %v13608_v41 = vld [vmem:[%s18104_s10 + $0x640] ss:$16 sps:$4 sm:$0xff]  }
 0x7e3   : > { %5869 = vmatpush2.bf16.msra.mxu1 %v13530_v15  ;;  %v13611_v15 = vld [vmem:[%s18104_s10 + $0x648] ss:$16 sps:$4 sm:$0xff]  }
 0x7e4   : > { %5910 = vmatpush2.bf16.msra.mxu0 %v13533_v3  ;;  %5870 = vmatprep.subr.bf16.mxu1 %v13538_v56  ;;  %v13616_v3 = vld [vmem:[%s18104_s10 + $0x624] ss:$16 sps:$4 sm:$0xff]   ;;  %v13619_v56 = vld [vmem:[%s18104_s10 + $0x62c] ss:$16 sps:$4 sm:$0xff]  }
 0x7e5   : > { %5911 = vmatprep.subr.bf16.mxu0 %v13541_v21  ;;  %v13614_v21 = vld [vmem:[%s18104_s10 + $0x620] ss:$16 sps:$4 sm:$0xff]  }
 0x7e7   : > { %5871 = vmatpush2.bf16.msra.mxu1 %v13536_v27  ;;  %v13617_v27 = vld [vmem:[%s18104_s10 + $0x628] ss:$16 sps:$4 sm:$0xff]  }
 0x7e8   : > { %5912 = vmatpush2.bf16.msra.mxu0 %v13539_v2  ;;  %5872 = vmatprep.subr.bf16.mxu1 %v13544_v16  ;;  %v13622_v2 = vld [vmem:[%s18104_s10 + $0x604] ss:$16 sps:$4 sm:$0xff]   ;;  %v13625_v16 = vld [vmem:[%s18104_s10 + $0x60c] ss:$16 sps:$4 sm:$0xff]  }
 0x7e9   : > { %5913 = vmatprep.subr.bf16.mxu0 %v13547_v47  ;;  %v13620_v47 = vld [vmem:[%s18104_s10 + $0x600] ss:$16 sps:$4 sm:$0xff]  }
 0x7eb   : > { %5873 = vmatpush2.bf16.msra.mxu1 %v13542_v60  ;;  %v13623_v60 = vld [vmem:[%s18104_s10 + $0x608] ss:$16 sps:$4 sm:$0xff]  }
 0x7ec   : > { %5914 = vmatpush2.bf16.msra.mxu0 %v13545_v50  ;;  %5874 = vmatprep.subr.bf16.mxu1 %v13550_v52  ;;  %v13628_v50 = vld [vmem:[%s18104_s10 + $0x7e4] ss:$16 sps:$4 sm:$0xff]   ;;  %v13631_v52 = vld [vmem:[%s18104_s10 + $0x7ec] ss:$16 sps:$4 sm:$0xff]  }
 0x7ed   : > { %5915 = vmatprep.subr.bf16.mxu0 %v13553_v61  ;;  %v13626_v61 = vld [vmem:[%s18104_s10 + $0x7e0] ss:$16 sps:$4 sm:$0xff]  }
 0x7ef   : > { %5875 = vmatpush2.bf16.msra.mxu1 %v13548_v13  ;;  %v13629_v13 = vld [vmem:[%s18104_s10 + $0x7e8] ss:$16 sps:$4 sm:$0xff]  }
 0x7f0   : > { %5916 = vmatpush2.bf16.msra.mxu0 %v13551_v19  ;;  %5876 = vmatprep.subr.bf16.mxu1 %v13556_v62  ;;  %v13634_v19 = vld [vmem:[%s18104_s10 + $0x7c4] ss:$16 sps:$4 sm:$0xff]   ;;  %v13637_v62 = vld [vmem:[%s18104_s10 + $0x7cc] ss:$16 sps:$4 sm:$0xff]  }
 0x7f1   : > { %5917 = vmatprep.subr.bf16.mxu0 %v13559_v51  ;;  %v13632_v51 = vld [vmem:[%s18104_s10 + $0x7c0] ss:$16 sps:$4 sm:$0xff]  }
 0x7f3   : > { %5877 = vmatpush2.bf16.msra.mxu1 %v13554_v1  ;;  %v13635_v1 = vld [vmem:[%s18104_s10 + $0x7c8] ss:$16 sps:$4 sm:$0xff]  }
 0x7f4   : > { %5918 = vmatpush2.bf16.msra.mxu0 %v13557_v4  ;;  %5878 = vmatprep.subr.bf16.mxu1 %v13562_v12  ;;  %v13640_v4 = vld [vmem:[%s18104_s10 + $0x7a4] ss:$16 sps:$4 sm:$0xff]   ;;  %v13643_v12 = vld [vmem:[%s18104_s10 + $0x7ac] ss:$16 sps:$4 sm:$0xff]  }
 0x7f5   : > { %5919 = vmatprep.subr.bf16.mxu0 %v13565_v59  ;;  %v13638_v59 = vld [vmem:[%s18104_s10 + $0x7a0] ss:$16 sps:$4 sm:$0xff]  }
 0x7f7   : > { %5879 = vmatpush2.bf16.msra.mxu1 %v13560_v38  ;;  %v13641_v38 = vld [vmem:[%s18104_s10 + $0x7a8] ss:$16 sps:$4 sm:$0xff]  }
 0x7f8   : > { %5920 = vmatpush2.bf16.msra.mxu0 %v13563_v53  ;;  %5880 = vmatprep.subr.bf16.mxu1 %v13568_v44  ;;  %v13646_v53 = vld [vmem:[%s18104_s10 + $0x784] ss:$16 sps:$4 sm:$0xff]   ;;  %v13649_v44 = vld [vmem:[%s18104_s10 + $0x78c] ss:$16 sps:$4 sm:$0xff]  }
 0x7f9   : > { %5921 = vmatprep.subr.bf16.mxu0 %v13571_v6  ;;  %v13644_v6 = vld [vmem:[%s18104_s10 + $0x780] ss:$16 sps:$4 sm:$0xff]  }
 0x7fb   : > { %5881 = vmatpush2.bf16.msra.mxu1 %v13566_v35  ;;  %v13647_v35 = vld [vmem:[%s18104_s10 + $0x788] ss:$16 sps:$4 sm:$0xff]  }
 0x7fc   : > { %5922 = vmatpush2.bf16.msra.mxu0 %v13569_v20  ;;  %5882 = vmatprep.subr.bf16.mxu1 %v13574_v43  ;;  %v13652_v20 = vld [vmem:[%s18104_s10 + $0x764] ss:$16 sps:$4 sm:$0xff]   ;;  %v13655_v43 = vld [vmem:[%s18104_s10 + $0x76c] ss:$16 sps:$4 sm:$0xff]  }
 0x7fd   : > { %5923 = vmatprep.subr.bf16.mxu0 %v13577_v28  ;;  %v13650_v28 = vld [vmem:[%s18104_s10 + $0x760] ss:$16 sps:$4 sm:$0xff]  }
 0x7ff   : > { %5883 = vmatpush2.bf16.msra.mxu1 %v13572_v33  ;;  %v13653_v33 = vld [vmem:[%s18104_s10 + $0x768] ss:$16 sps:$4 sm:$0xff]  }
 0x800   : > { %5924 = vmatpush2.bf16.msra.mxu0 %v13575_v7  ;;  %6329 = vmatprep.subr.bf16.mxu1 %v13580_v10  ;;  %v13658_v7 = vld [vmem:[%s18104_s10 + $0x744] ss:$16 sps:$4 sm:$0xff]   ;;  %v13661_v10 = vld [vmem:[%s18104_s10 + $0x74c] ss:$16 sps:$4 sm:$0xff]  }
 0x801   : > { %6370 = vmatprep.subr.bf16.mxu0 %v13583_v54  ;;  %v13656_v54 = vld [vmem:[%s18104_s10 + $0x740] ss:$16 sps:$4 sm:$0xff]  }
 0x802   : > { %5885 = vmatmul.mubr.bf16.vlgmr.msra.gmra.mxu1 %v16342_v9 }
 0x803   : > { %5926 = vmatmul.mubr.bf16.vlgmr.msra.gmra.mxu0 %v16342_v9  ;;  %6330 = vmatpush1.bf16.msra.mxu1 %v13578_v24  ;;  %v13659_v24 = vld [vmem:[%s18104_s10 + $0x748] ss:$16 sps:$4 sm:$0xff]  }
 0x804   : > { %6361 = vmatprep.mubr.bf16.mxu1 %v6006_v30  ;;  %6371 = vmatpush1.bf16.msra.mxu0 %v13581_v25  ;;  %v13664_v25 = vld [vmem:[%s18104_s10 + $0x724] ss:$16 sps:$4 sm:$0xff]  }
 0x805   : > { %6402 = vmatprep.mubr.bf16.mxu0 %v6006_v30  ;;  %6331 = vmatprep.subr.bf16.mxu1 %v13586_v14  ;;  %v13667_v14 = vld [vmem:[%s18104_s10 + $0x72c] ss:$16 sps:$4 sm:$0xff]   ;;  %v13662_v30 = vld [vmem:[%s18104_s10 + $0x720] ss:$16 sps:$4 sm:$0xff]  }
 0x806   : > { %6372 = vmatprep.subr.bf16.mxu0 %v13589_v48  ;;  %v13665_v48 = vld [vmem:[%s18104_s10 + $0x728] ss:$16 sps:$4 sm:$0xff]  }
 0x807   : > { %6332 = vmatpush1.bf16.msra.mxu1 %v13584_v18  ;;  %v13670_v18 = vld [vmem:[%s18104_s10 + $0x704] ss:$16 sps:$4 sm:$0xff]  }
 0x808   : > { %6373 = vmatpush1.bf16.msra.mxu0 %v13587_v37  ;;  %6333 = vmatprep.subr.bf16.mxu1 %v13592_v31  ;;  %v13673_v37 = vld [vmem:[%s18104_s10 + $0x70c] ss:$16 sps:$4 sm:$0xff]   ;;  %v13668_v31 = vld [vmem:[%s18104_s10 + $0x700] ss:$16 sps:$4 sm:$0xff]  }
 0x809   : > { %6374 = vmatprep.subr.bf16.mxu0 %v13595_v5  ;;  %v13671_v5 = vld [vmem:[%s18104_s10 + $0x708] ss:$16 sps:$4 sm:$0xff]  }
 0x80b   : > { %6334 = vmatpush1.bf16.msra.mxu1 %v13590_v22  ;;  %v13676_v22 = vld [vmem:[%s18104_s10 + $0x8e4] ss:$16 sps:$4 sm:$0xff]  }
 0x80c   : > { %6375 = vmatpush1.bf16.msra.mxu0 %v13593_v36  ;;  %6335 = vmatprep.subr.bf16.mxu1 %v13598_v46  ;;  %v13679_v36 = vld [vmem:[%s18104_s10 + $0x8ec] ss:$16 sps:$4 sm:$0xff]   ;;  %v13674_v46 = vld [vmem:[%s18104_s10 + $0x8e0] ss:$16 sps:$4 sm:$0xff]  }
 0x80d   : > { %6376 = vmatprep.subr.bf16.mxu0 %v13601_v55  ;;  %v6005_v55 = vrot.slane %v16342_v9, 2  ;;  %v13685_v9 = vld [vmem:[%s18104_s10 + $0x8cc] ss:$16 sps:$4 sm:$0xff]  }
 0x80f   : > { %6336 = vmatpush1.bf16.msra.mxu1 %v13596_v57  ;;  %v13677_v57 = vld [vmem:[%s18104_s10 + $0x8e8] ss:$16 sps:$4 sm:$0xff]  }
 0x810   : > { %6377 = vmatpush1.bf16.msra.mxu0 %v13599_v39  ;;  %6337 = vmatprep.subr.bf16.mxu1 %v13604_v23  ;;  %v13682_v39 = vld [vmem:[%s18104_s10 + $0x8c4] ss:$16 sps:$4 sm:$0xff]   ;;  %v16548_v23 = vpack.c.bf16 %v16093_v17, %v16093_v17 }
 0x811   : > { %6378 = vmatprep.subr.bf16.mxu0 %v13607_v40 }
 0x813   : > { %6338 = vmatpush1.bf16.msra.mxu1 %v13602_v8 }
 0x814   : > { %6379 = vmatpush1.bf16.msra.mxu0 %v13605_v0  ;;  %6339 = vmatprep.subr.bf16.mxu1 %v13610_v42  ;;  %v13680_v0 = vld [vmem:[%s18104_s10 + $0x8c0] ss:$16 sps:$4 sm:$0xff]  }
 0x815   : > { %6380 = vmatprep.subr.bf16.mxu0 %v13613_v32  ;;  %v13683_v32 = vld [vmem:[%s18104_s10 + $0x8c8] ss:$16 sps:$4 sm:$0xff]  }
 0x817   : > { %6340 = vmatpush1.bf16.msra.mxu1 %v13608_v41  ;;  %v13688_v41 = vld [vmem:[%s18104_s10 + $0x8a4] ss:$16 sps:$4 sm:$0xff]  }
 0x818   : > { %6381 = vmatpush1.bf16.msra.mxu0 %v13611_v15  ;;  %6341 = vmatprep.subr.bf16.mxu1 %v13616_v3  ;;  %v13691_v15 = vld [vmem:[%s18104_s10 + $0x8ac] ss:$16 sps:$4 sm:$0xff]  }
 0x819   : > { %6382 = vmatprep.subr.bf16.mxu0 %v13619_v56 }
 0x81b   : > { %6342 = vmatpush1.bf16.msra.mxu1 %v13614_v21  ;;  %v13686_v21 = vld [vmem:[%s18104_s10 + $0x8a0] ss:$16 sps:$4 sm:$0xff]  }
 0x81c   : > { %6383 = vmatpush1.bf16.msra.mxu0 %v13617_v27  ;;  %6343 = vmatprep.subr.bf16.mxu1 %v13622_v2 }
 0x81d   : > { %6384 = vmatprep.subr.bf16.mxu0 %v13625_v16  ;;  %v13689_v16 = vld [vmem:[%s18104_s10 + $0x8a8] ss:$16 sps:$4 sm:$0xff]  }
 0x81f   : > { %6344 = vmatpush1.bf16.msra.mxu1 %v13620_v47  ;;  %v13694_v47 = vld [vmem:[%s18104_s10 + $0x884] ss:$16 sps:$4 sm:$0xff]  }
 0x820   : > { %6385 = vmatpush1.bf16.msra.mxu0 %v13623_v60  ;;  %6345 = vmatprep.subr.bf16.mxu1 %v13628_v50  ;;  %v13697_v60 = vld [vmem:[%s18104_s10 + $0x88c] ss:$16 sps:$4 sm:$0xff]   ;;  %v13692_v50 = vld [vmem:[%s18104_s10 + $0x880] ss:$16 sps:$4 sm:$0xff]  }
 0x821   : > { %6386 = vmatprep.subr.bf16.mxu0 %v13631_v52  ;;  %v13695_v52 = vld [vmem:[%s18104_s10 + $0x888] ss:$16 sps:$4 sm:$0xff]  }
 0x823   : > { %6346 = vmatpush2.bf16.msra.mxu1 %v13626_v61  ;;  %v13700_v61 = vld [vmem:[%s18104_s10 + $0x864] ss:$16 sps:$4 sm:$0xff]  }
 0x824   : > { %6387 = vmatpush2.bf16.msra.mxu0 %v13629_v13  ;;  %6347 = vmatprep.subr.bf16.mxu1 %v13634_v19  ;;  %v13703_v13 = vld [vmem:[%s18104_s10 + $0x86c] ss:$16 sps:$4 sm:$0xff]   ;;  %v13698_v19 = vld [vmem:[%s18104_s10 + $0x860] ss:$16 sps:$4 sm:$0xff]  }
 0x825   : > { %6388 = vmatprep.subr.bf16.mxu0 %v13637_v62  ;;  %v13701_v62 = vld [vmem:[%s18104_s10 + $0x868] ss:$16 sps:$4 sm:$0xff]  }
 0x827   : > { %6348 = vmatpush2.bf16.msra.mxu1 %v13632_v51  ;;  %v13706_v51 = vld [vmem:[%s18104_s10 + $0x844] ss:$16 sps:$4 sm:$0xff]  }
 0x828   : > { %6389 = vmatpush2.bf16.msra.mxu0 %v13635_v1  ;;  %6349 = vmatprep.subr.bf16.mxu1 %v13640_v4  ;;  %v13709_v1 = vld [vmem:[%s18104_s10 + $0x84c] ss:$16 sps:$4 sm:$0xff]   ;;  %v13704_v4 = vld [vmem:[%s18104_s10 + $0x840] ss:$16 sps:$4 sm:$0xff]  }
 0x829   : > { %6390 = vmatprep.subr.bf16.mxu0 %v13643_v12  ;;  %v13707_v12 = vld [vmem:[%s18104_s10 + $0x848] ss:$16 sps:$4 sm:$0xff]  }
 0x82b   : > { %6350 = vmatpush2.bf16.msra.mxu1 %v13638_v59  ;;  %v13712_v59 = vld [vmem:[%s18104_s10 + $0x824] ss:$16 sps:$4 sm:$0xff]  }
 0x82c   : > { %6391 = vmatpush2.bf16.msra.mxu0 %v13641_v38  ;;  %6351 = vmatprep.subr.bf16.mxu1 %v13646_v53  ;;  %v13715_v38 = vld [vmem:[%s18104_s10 + $0x82c] ss:$16 sps:$4 sm:$0xff]   ;;  %v13710_v53 = vld [vmem:[%s18104_s10 + $0x820] ss:$16 sps:$4 sm:$0xff]  }
 0x82d   : > { %6392 = vmatprep.subr.bf16.mxu0 %v13649_v44  ;;  %v13713_v44 = vld [vmem:[%s18104_s10 + $0x828] ss:$16 sps:$4 sm:$0xff]  }
 0x82f   : > { %6352 = vmatpush2.bf16.msra.mxu1 %v13644_v6  ;;  %v13718_v6 = vld [vmem:[%s18104_s10 + $0x804] ss:$16 sps:$4 sm:$0xff]  }
 0x830   : > { %6393 = vmatpush2.bf16.msra.mxu0 %v13647_v35  ;;  %6353 = vmatprep.subr.bf16.mxu1 %v13652_v20  ;;  %v13721_v35 = vld [vmem:[%s18104_s10 + $0x80c] ss:$16 sps:$4 sm:$0xff]   ;;  %v13716_v20 = vld [vmem:[%s18104_s10 + $0x800] ss:$16 sps:$4 sm:$0xff]  }
 0x831   : > { %6394 = vmatprep.subr.bf16.mxu0 %v13655_v43  ;;  %v13719_v43 = vld [vmem:[%s18104_s10 + $0x808] ss:$16 sps:$4 sm:$0xff]  }
 0x833   : > { %6354 = vmatpush2.bf16.msra.mxu1 %v13650_v28  ;;  %v13724_v28 = vld [vmem:[%s18104_s10 + $0x9e4] ss:$16 sps:$4 sm:$0xff]  }
 0x834   : > { %6395 = vmatpush2.bf16.msra.mxu0 %v13653_v33  ;;  %6355 = vmatprep.subr.bf16.mxu1 %v13658_v7  ;;  %v13727_v33 = vld [vmem:[%s18104_s10 + $0x9ec] ss:$16 sps:$4 sm:$0xff]   ;;  %v13722_v7 = vld [vmem:[%s18104_s10 + $0x9e0] ss:$16 sps:$4 sm:$0xff]  }
 0x835   : > { %6396 = vmatprep.subr.bf16.mxu0 %v13661_v10  ;;  %v13725_v10 = vld [vmem:[%s18104_s10 + $0x9e8] ss:$16 sps:$4 sm:$0xff]  }
 0x837   : > { %6356 = vmatpush2.bf16.msra.mxu1 %v13656_v54  ;;  %v13730_v54 = vld [vmem:[%s18104_s10 + $0x9c4] ss:$16 sps:$4 sm:$0xff]  }
 0x838   : > { %6397 = vmatpush2.bf16.msra.mxu0 %v13659_v24  ;;  %6357 = vmatprep.subr.bf16.mxu1 %v13664_v25  ;;  %v13733_v24 = vld [vmem:[%s18104_s10 + $0x9cc] ss:$16 sps:$4 sm:$0xff]   ;;  %v13728_v25 = vld [vmem:[%s18104_s10 + $0x9c0] ss:$16 sps:$4 sm:$0xff]  }
 0x839   : > { %6398 = vmatprep.subr.bf16.mxu0 %v13667_v14  ;;  %v13731_v14 = vld [vmem:[%s18104_s10 + $0x9c8] ss:$16 sps:$4 sm:$0xff]  }
 0x83b   : > { %6358 = vmatpush2.bf16.msra.mxu1 %v13662_v30  ;;  %v13736_v30 = vld [vmem:[%s18104_s10 + $0x9a4] ss:$16 sps:$4 sm:$0xff]  }
 0x83c   : > { %6399 = vmatpush2.bf16.msra.mxu0 %v13665_v48  ;;  %6359 = vmatprep.subr.bf16.mxu1 %v13670_v18  ;;  %v13739_v48 = vld [vmem:[%s18104_s10 + $0x9ac] ss:$16 sps:$4 sm:$0xff]   ;;  %v13734_v18 = vld [vmem:[%s18104_s10 + $0x9a0] ss:$16 sps:$4 sm:$0xff]  }
 0x83d   : > { %6400 = vmatprep.subr.bf16.mxu0 %v13673_v37  ;;  %v13737_v37 = vld [vmem:[%s18104_s10 + $0x9a8] ss:$16 sps:$4 sm:$0xff]  }
 0x83f   : > { %6360 = vmatpush2.bf16.msra.mxu1 %v13668_v31  ;;  %v13742_v31 = vld [vmem:[%s18104_s10 + $0x984] ss:$16 sps:$4 sm:$0xff]  }
 0x840   : > { %6401 = vmatpush2.bf16.msra.mxu0 %v13671_v5  ;;  %6802 = vmatprep.subr.bf16.mxu1 %v13676_v22  ;;  %v13745_v5 = vld [vmem:[%s18104_s10 + $0x98c] ss:$16 sps:$4 sm:$0xff]   ;;  %v13740_v22 = vld [vmem:[%s18104_s10 + $0x980] ss:$16 sps:$4 sm:$0xff]  }
 0x841   : > { %6843 = vmatprep.subr.bf16.mxu0 %v13679_v36  ;;  %v13743_v36 = vld [vmem:[%s18104_s10 + $0x988] ss:$16 sps:$4 sm:$0xff]  }
 0x842   : > { %6362 = vmatmul.mubr.bf16.vlgmr.msra.gmra.mxu1 %v6005_v55  ;;  %v16550_v40 = vpop.f32.mrf.mxu1  ;;  %v16552_v8 = vpop.f32.mrf.mxu0 }
 0x843   : > { %6403 = vmatmul.mubr.bf16.vlgmr.msra.gmra.mxu0 %v6005_v55  ;;  %6803 = vmatpush1.bf16.msra.mxu1 %v13674_v46  ;;  %v13748_v46 = vld [vmem:[%s18104_s10 + $0x964] ss:$16 sps:$4 sm:$0xff]   ;;  %v13751_v55 = vld [vmem:[%s18104_s10 + $0x96c] ss:$16 sps:$4 sm:$0xff]  }
 0x844   : > { %6834 = vmatprep.mubr.bf16.mxu1 %v16548_v23  ;;  %6844 = vmatpush1.bf16.msra.mxu0 %v13677_v57  ;;  %v16561_v17 = vpop.f32.mrf.mxu1  ;;  %v16563_v42 = vpop.f32.mrf.mxu0  ;;  %v13746_v57 = vld [vmem:[%s18104_s10 + $0x960] ss:$16 sps:$4 sm:$0xff]  }
 0x845   : > { %6875 = vmatprep.mubr.bf16.mxu0 %v16548_v23  ;;  %6804 = vmatprep.subr.bf16.mxu1 %v13682_v39  ;;  %v13749_v39 = vld [vmem:[%s18104_s10 + $0x968] ss:$16 sps:$4 sm:$0xff]  }
 0x846   : > { %6845 = vmatprep.subr.bf16.mxu0 %v13685_v9  ;;  %v5019_v3 = vpop.f32.mrf.mxu1  ;;  %v5060_v56 = vpop.f32.mrf.mxu0  ;;  %v13754_v9 = vld [vmem:[%s18104_s10 + $0x944] ss:$16 sps:$4 sm:$0xff]  }
 0x847   : > { %6805 = vmatpush1.bf16.msra.mxu1 %v13680_v0  ;;  %v13757_v0 = vld [vmem:[%s18104_s10 + $0x94c] ss:$16 sps:$4 sm:$0xff]   ;;  %v13758_v56 = vld [vmem:[%s18104_s10 + $0x920] ss:$16 sps:$4 sm:$0xff]  }
 0x848   : > { %6846 = vmatpush1.bf16.msra.mxu0 %v13683_v32  ;;  %v5020_v27 = vpop.f32.mrf.mxu1  ;;  %v5061_v2 = vpop.f32.mrf.mxu0  ;;  %6806 = vmatprep.subr.bf16.mxu1 %v13688_v41  ;;  %v13752_v32 = vld [vmem:[%s18104_s10 + $0x940] ss:$16 sps:$4 sm:$0xff]   ;;  %v13755_v41 = vld [vmem:[%s18104_s10 + $0x948] ss:$16 sps:$4 sm:$0xff]   ;;  %v13763_v3 = vld [vmem:[%s18104_s10 + $0x92c] ss:$16 sps:$4 sm:$0xff]  }
 0x849   : > { %6847 = vmatprep.subr.bf16.mxu0 %v13691_v15  ;;  %v13760_v15 = vld [vmem:[%s18104_s10 + $0x924] ss:$16 sps:$4 sm:$0xff]   ;;  %v13769_v2 = vld [vmem:[%s18104_s10 + $0x90c] ss:$16 sps:$4 sm:$0xff]  }
 0x84a   : > { %v13766_v27 = vld [vmem:[%s18104_s10 + $0x904] ss:$16 sps:$4 sm:$0xff]  }
 0x84b   : > { %6807 = vmatpush1.bf16.msra.mxu1 %v13686_v21  ;;  %v13761_v21 = vld [vmem:[%s18104_s10 + $0x928] ss:$16 sps:$4 sm:$0xff]  }
 0x84c   : > { %6848 = vmatpush1.bf16.msra.mxu0 %v13689_v16  ;;  %6808 = vmatprep.subr.bf16.mxu1 %v13694_v47  ;;  %v13764_v16 = vld [vmem:[%s18104_s10 + $0x900] ss:$16 sps:$4 sm:$0xff]   ;;  %v13767_v47 = vld [vmem:[%s18104_s10 + $0x908] ss:$16 sps:$4 sm:$0xff]  }
 0x84d   : > { %6849 = vmatprep.subr.bf16.mxu0 %v13697_v60  ;;  %v13772_v60 = vld [vmem:[%s18104_s10 + $0xae4] ss:$16 sps:$4 sm:$0xff]  }
 0x84f   : > { %6809 = vmatpush1.bf16.msra.mxu1 %v13692_v50  ;;  %v13775_v50 = vld [vmem:[%s18104_s10 + $0xaec] ss:$16 sps:$4 sm:$0xff]  }
 0x850   : > { %6850 = vmatpush1.bf16.msra.mxu0 %v13695_v52  ;;  %6810 = vmatprep.subr.bf16.mxu1 %v13700_v61  ;;  %v13770_v52 = vld [vmem:[%s18104_s10 + $0xae0] ss:$16 sps:$4 sm:$0xff]   ;;  %v16748_v61 = vpack.c.bf16 %v16085_v45, %v16085_v45  ;;  %v13781_v45 = vld [vmem:[%s18104_s10 + $0xacc] ss:$16 sps:$4 sm:$0xff]  }
 0x851   : > { %6851 = vmatprep.subr.bf16.mxu0 %v13703_v13  ;;  %v13773_v13 = vld [vmem:[%s18104_s10 + $0xae8] ss:$16 sps:$4 sm:$0xff]  }
 0x853   : > { %6811 = vmatpush1.bf16.msra.mxu1 %v13698_v19  ;;  %v13778_v19 = vld [vmem:[%s18104_s10 + $0xac4] ss:$16 sps:$4 sm:$0xff]  }
 0x854   : > { %6852 = vmatpush1.bf16.msra.mxu0 %v13701_v62  ;;  %6812 = vmatprep.subr.bf16.mxu1 %v13706_v51 }
 0x855   : > { %6853 = vmatprep.subr.bf16.mxu0 %v13709_v1  ;;  %v6956_v1 = vrot.slane %v16548_v23, 2 }
 0x857   : > { %6813 = vmatpush1.bf16.msra.mxu1 %v13704_v4 }
 0x858   : > { %6854 = vmatpush1.bf16.msra.mxu0 %v13707_v12  ;;  %6814 = vmatprep.subr.bf16.mxu1 %v13712_v59  ;;  %v13776_v59 = vld [vmem:[%s18104_s10 + $0xac0] ss:$16 sps:$4 sm:$0xff]  }
 0x859   : > { %6855 = vmatprep.subr.bf16.mxu0 %v13715_v38 }
 0x85b   : > { %6815 = vmatpush1.bf16.msra.mxu1 %v13710_v53  ;;  %v13779_v53 = vld [vmem:[%s18104_s10 + $0xac8] ss:$16 sps:$4 sm:$0xff]  }
 0x85c   : > { %6856 = vmatpush1.bf16.msra.mxu0 %v13713_v44  ;;  %6816 = vmatprep.subr.bf16.mxu1 %v13718_v6  ;;  %v13787_v6 = vld [vmem:[%s18104_s10 + $0xaac] ss:$16 sps:$4 sm:$0xff]  }
 0x85d   : > { %6857 = vmatprep.subr.bf16.mxu0 %v13721_v35 }
 0x85f   : > { %6817 = vmatpush1.bf16.msra.mxu1 %v13716_v20 }
 0x860   : > { %6858 = vmatpush1.bf16.msra.mxu0 %v13719_v43  ;;  %6818 = vmatprep.subr.bf16.mxu1 %v13724_v28  ;;  %v13782_v43 = vld [vmem:[%s18104_s10 + $0xaa0] ss:$16 sps:$4 sm:$0xff]  }
 0x861   : > { %6859 = vmatprep.subr.bf16.mxu0 %v13727_v33  ;;  %v13790_v33 = vld [vmem:[%s18104_s10 + $0xa84] ss:$16 sps:$4 sm:$0xff]  }
 0x863   : > { %6819 = vmatpush2.bf16.msra.mxu1 %v13722_v7  ;;  %v13793_v7 = vld [vmem:[%s18104_s10 + $0xa8c] ss:$16 sps:$4 sm:$0xff]  }
 0x864   : > { %6860 = vmatpush2.bf16.msra.mxu0 %v13725_v10  ;;  %6820 = vmatprep.subr.bf16.mxu1 %v13730_v54  ;;  %v13788_v10 = vld [vmem:[%s18104_s10 + $0xa80] ss:$16 sps:$4 sm:$0xff]   ;;  %v13791_v54 = vld [vmem:[%s18104_s10 + $0xa88] ss:$16 sps:$4 sm:$0xff]  }
 0x865   : > { %6861 = vmatprep.subr.bf16.mxu0 %v13733_v24  ;;  %v13796_v24 = vld [vmem:[%s18104_s10 + $0xa64] ss:$16 sps:$4 sm:$0xff]  }
 0x867   : > { %6821 = vmatpush2.bf16.msra.mxu1 %v13728_v25  ;;  %v13799_v25 = vld [vmem:[%s18104_s10 + $0xa6c] ss:$16 sps:$4 sm:$0xff]  }
 0x868   : > { %6862 = vmatpush2.bf16.msra.mxu0 %v13731_v14  ;;  %6822 = vmatprep.subr.bf16.mxu1 %v13736_v30  ;;  %v13794_v14 = vld [vmem:[%s18104_s10 + $0xa60] ss:$16 sps:$4 sm:$0xff]   ;;  %v13797_v30 = vld [vmem:[%s18104_s10 + $0xa68] ss:$16 sps:$4 sm:$0xff]  }
 0x869   : > { %6863 = vmatprep.subr.bf16.mxu0 %v13739_v48  ;;  %v13802_v48 = vld [vmem:[%s18104_s10 + $0xa44] ss:$16 sps:$4 sm:$0xff]  }
 0x86b   : > { %6823 = vmatpush2.bf16.msra.mxu1 %v13734_v18  ;;  %v13805_v18 = vld [vmem:[%s18104_s10 + $0xa4c] ss:$16 sps:$4 sm:$0xff]  }
 0x86c   : > { %6864 = vmatpush2.bf16.msra.mxu0 %v13737_v37  ;;  %6824 = vmatprep.subr.bf16.mxu1 %v13742_v31  ;;  %v13800_v37 = vld [vmem:[%s18104_s10 + $0xa40] ss:$16 sps:$4 sm:$0xff]   ;;  %v13803_v31 = vld [vmem:[%s18104_s10 + $0xa48] ss:$16 sps:$4 sm:$0xff]  }
 0x86d   : > { %6865 = vmatprep.subr.bf16.mxu0 %v13745_v5  ;;  %v13808_v5 = vld [vmem:[%s18104_s10 + $0xa24] ss:$16 sps:$4 sm:$0xff]  }
 0x86f   : > { %6825 = vmatpush2.bf16.msra.mxu1 %v13740_v22  ;;  %v13811_v22 = vld [vmem:[%s18104_s10 + $0xa2c] ss:$16 sps:$4 sm:$0xff]  }
 0x870   : > { %6866 = vmatpush2.bf16.msra.mxu0 %v13743_v36  ;;  %6826 = vmatprep.subr.bf16.mxu1 %v13748_v46  ;;  %v13806_v36 = vld [vmem:[%s18104_s10 + $0xa20] ss:$16 sps:$4 sm:$0xff]   ;;  %v13809_v46 = vld [vmem:[%s18104_s10 + $0xa28] ss:$16 sps:$4 sm:$0xff]  }
 0x871   : > { %6867 = vmatprep.subr.bf16.mxu0 %v13751_v55  ;;  %v13814_v55 = vld [vmem:[%s18104_s10 + $0xa04] ss:$16 sps:$4 sm:$0xff]  }
 0x873   : > { %6827 = vmatpush2.bf16.msra.mxu1 %v13746_v57  ;;  %v13817_v57 = vld [vmem:[%s18104_s10 + $0xa0c] ss:$16 sps:$4 sm:$0xff]  }
 0x874   : > { %6868 = vmatpush2.bf16.msra.mxu0 %v13749_v39  ;;  %6828 = vmatprep.subr.bf16.mxu1 %v13754_v9  ;;  %v13812_v39 = vld [vmem:[%s18104_s10 + $0xa00] ss:$16 sps:$4 sm:$0xff]   ;;  %v13815_v9 = vld [vmem:[%s18104_s10 + $0xa08] ss:$16 sps:$4 sm:$0xff]  }
 0x875   : > { %6869 = vmatprep.subr.bf16.mxu0 %v13757_v0  ;;  %v13820_v0 = vld [vmem:[%s18104_s10 + $0xbe4] ss:$16 sps:$4 sm:$0xff]  }
 0x877   : > { %6829 = vmatpush2.bf16.msra.mxu1 %v13752_v32  ;;  %v13823_v32 = vld [vmem:[%s18104_s10 + $0xbec] ss:$16 sps:$4 sm:$0xff]  }
 0x878   : > { %6870 = vmatpush2.bf16.msra.mxu0 %v13755_v41  ;;  %6830 = vmatprep.subr.bf16.mxu1 %v13760_v15  ;;  %v13818_v41 = vld [vmem:[%s18104_s10 + $0xbe0] ss:$16 sps:$4 sm:$0xff]   ;;  %v13821_v15 = vld [vmem:[%s18104_s10 + $0xbe8] ss:$16 sps:$4 sm:$0xff]  }
 0x879   : > { %6871 = vmatprep.subr.bf16.mxu0 %v13763_v3  ;;  %v13826_v3 = vld [vmem:[%s18104_s10 + $0xbc4] ss:$16 sps:$4 sm:$0xff]  }
 0x87b   : > { %6831 = vmatpush2.bf16.msra.mxu1 %v13758_v56  ;;  %v13829_v56 = vld [vmem:[%s18104_s10 + $0xbcc] ss:$16 sps:$4 sm:$0xff]  }
 0x87c   : > { %6872 = vmatpush2.bf16.msra.mxu0 %v13761_v21  ;;  %6832 = vmatprep.subr.bf16.mxu1 %v13766_v27  ;;  %v13824_v21 = vld [vmem:[%s18104_s10 + $0xbc0] ss:$16 sps:$4 sm:$0xff]   ;;  %v13827_v27 = vld [vmem:[%s18104_s10 + $0xbc8] ss:$16 sps:$4 sm:$0xff]  }
 0x87d   : > { %6873 = vmatprep.subr.bf16.mxu0 %v13769_v2  ;;  %v13832_v2 = vld [vmem:[%s18104_s10 + $0xba4] ss:$16 sps:$4 sm:$0xff]  }
 0x87f   : > { %6833 = vmatpush2.bf16.msra.mxu1 %v13764_v16  ;;  %v13835_v16 = vld [vmem:[%s18104_s10 + $0xbac] ss:$16 sps:$4 sm:$0xff]  }
 0x880   : > { %6874 = vmatpush2.bf16.msra.mxu0 %v13767_v47  ;;  %7279 = vmatprep.subr.bf16.mxu1 %v13772_v60  ;;  %v13830_v47 = vld [vmem:[%s18104_s10 + $0xba0] ss:$16 sps:$4 sm:$0xff]   ;;  %v13833_v60 = vld [vmem:[%s18104_s10 + $0xba8] ss:$16 sps:$4 sm:$0xff]  }
 0x881   : > { %7320 = vmatprep.subr.bf16.mxu0 %v13775_v50  ;;  %v13838_v50 = vld [vmem:[%s18104_s10 + $0xb84] ss:$16 sps:$4 sm:$0xff]  }
 0x882   : > { %v5417_v62 = vpop.f32.mrf.mxu1  ;;  %v5458_v51 = vpop.f32.mrf.mxu0  ;;  %6835 = vmatmul.mubr.bf16.vlgmr.msra.gmra.mxu1 %v16748_v61 }
 0x883   : > { %v16762_v4 = vadd.f32 %v5417_v62, %v16550_v40  ;;  %v16765_v12 = vadd.f32 %v5458_v51, %v16552_v8  ;;  %6876 = vmatmul.mubr.bf16.vlgmr.msra.gmra.mxu0 %v16748_v61  ;;  %7280 = vmatpush1.bf16.msra.mxu1 %v13770_v52  ;;  %v13784_v40 = vld [vmem:[%s18104_s10 + $0xaa4] ss:$16 sps:$4 sm:$0xff]   ;;  %v13841_v52 = vld [vmem:[%s18104_s10 + $0xb8c] ss:$16 sps:$4 sm:$0xff]  }
 0x884   : > { %7311 = vmatprep.mubr.bf16.mxu1 %v6956_v1  ;;  %7321 = vmatpush1.bf16.msra.mxu0 %v13773_v13  ;;  %v5419_v23 = vpop.f32.mrf.mxu1  ;;  %v5460_v38 = vpop.f32.mrf.mxu0  ;;  %v13836_v13 = vld [vmem:[%s18104_s10 + $0xb80] ss:$16 sps:$4 sm:$0xff]   ;;  %v13844_v62 = vld [vmem:[%s18104_s10 + $0xb64] ss:$16 sps:$4 sm:$0xff]   ;;  %v13847_v51 = vld [vmem:[%s18104_s10 + $0xb6c] ss:$16 sps:$4 sm:$0xff]  }
 0x885   : > { %7352 = vmatprep.mubr.bf16.mxu0 %v6956_v1  ;;  %v16778_v8 = vadd.f32 %v5419_v23, %v16561_v17  ;;  %v16781_v44 = vadd.f32 %v5460_v38, %v16563_v42  ;;  %7281 = vmatprep.subr.bf16.mxu1 %v13778_v19  ;;  %v13785_v42 = vld [vmem:[%s18104_s10 + $0xaa8] ss:$16 sps:$4 sm:$0xff]   ;;  %v13842_v1 = vld [vmem:[%s18104_s10 + $0xb60] ss:$16 sps:$4 sm:$0xff]   ;;  %v13853_v23 = vld [vmem:[%s18104_s10 + $0xb4c] ss:$16 sps:$4 sm:$0xff]  }
 0x886   : > { %v5421_v35 = vpop.f32.mrf.mxu1  ;;  %v5462_v20 = vpop.f32.mrf.mxu0  ;;  %7322 = vmatprep.subr.bf16.mxu0 %v13781_v45  ;;  %v13839_v19 = vld [vmem:[%s18104_s10 + $0xb88] ss:$16 sps:$4 sm:$0xff]   ;;  %v13848_v38 = vld [vmem:[%s18104_s10 + $0xb40] ss:$16 sps:$4 sm:$0xff]  }
 0x887   : > { %7282 = vmatpush1.bf16.msra.mxu1 %v13776_v59  ;;  %v13845_v45 = vld [vmem:[%s18104_s10 + $0xb68] ss:$16 sps:$4 sm:$0xff]   ;;  %v13850_v59 = vld [vmem:[%s18104_s10 + $0xb44] ss:$16 sps:$4 sm:$0xff]   ;;  %v13854_v35 = vld [vmem:[%s18104_s10 + $0xb20] ss:$16 sps:$4 sm:$0xff]  }
 0x888   : > { %7323 = vmatpush1.bf16.msra.mxu0 %v13779_v53  ;;  %v5422_v28 = vpop.f32.mrf.mxu1  ;;  %v5463_v17 = vpop.f32.mrf.mxu0  ;;  %7283 = vmatprep.subr.bf16.mxu1 %v13784_v40  ;;  %v13851_v53 = vld [vmem:[%s18104_s10 + $0xb48] ss:$16 sps:$4 sm:$0xff]   ;;  %v13856_v40 = vld [vmem:[%s18104_s10 + $0xb24] ss:$16 sps:$4 sm:$0xff]  }
 0x889   : > { %7324 = vmatprep.subr.bf16.mxu0 %v13787_v6  ;;  %v13859_v6 = vld [vmem:[%s18104_s10 + $0xb2c] ss:$16 sps:$4 sm:$0xff]   ;;  %v13857_v20 = vld [vmem:[%s18104_s10 + $0xb28] ss:$16 sps:$4 sm:$0xff]   ;;  %v13860_v17 = vld [vmem:[%s18104_s10 + $0xb00] ss:$16 sps:$4 sm:$0xff]  }
 0x88a   : > { %v13865_v28 = vld [vmem:[%s18104_s10 + $0xb0c] ss:$16 sps:$4 sm:$0xff]  }
 0x88b   : > { %7284 = vmatpush1.bf16.msra.mxu1 %v13782_v43  ;;  %v13862_v43 = vld [vmem:[%s18104_s10 + $0xb04] ss:$16 sps:$4 sm:$0xff]  }
 0x88c   : > { %7325 = vmatpush1.bf16.msra.mxu0 %v13785_v42  ;;  %7285 = vmatprep.subr.bf16.mxu1 %v13790_v33  ;;  %v13863_v42 = vld [vmem:[%s18104_s10 + $0xb08] ss:$16 sps:$4 sm:$0xff]   ;;  %v13868_v33 = vld [vmem:[%s18104_s10 + $0xce4] ss:$16 sps:$4 sm:$0xff]  }
 0x88d   : > { %7326 = vmatprep.subr.bf16.mxu0 %v13793_v7  ;;  %v13871_v7 = vld [vmem:[%s18104_s10 + $0xcec] ss:$16 sps:$4 sm:$0xff]  }
 0x88f   : > { %7286 = vmatpush1.bf16.msra.mxu1 %v13788_v10  ;;  %v13866_v10 = vld [vmem:[%s18104_s10 + $0xce0] ss:$16 sps:$4 sm:$0xff]  }
 0x890   : > { %7327 = vmatpush1.bf16.msra.mxu0 %v13791_v54  ;;  %7287 = vmatprep.subr.bf16.mxu1 %v13796_v24  ;;  %v6955_v54 = vrot.slane %v16748_v61, 2  ;;  %v13869_v24 = vld [vmem:[%s18104_s10 + $0xce8] ss:$16 sps:$4 sm:$0xff]   ;;  %v13877_v61 = vld [vmem:[%s18104_s10 + $0xccc] ss:$16 sps:$4 sm:$0xff]  }
 0x891   : > { %7328 = vmatprep.subr.bf16.mxu0 %v13799_v25  ;;  %v13874_v25 = vld [vmem:[%s18104_s10 + $0xcc4] ss:$16 sps:$4 sm:$0xff]  }
 0x893   : > { %7288 = vmatpush1.bf16.msra.mxu1 %v13794_v14  ;;  %v16966_v14 = vpack.c.bf16 %v16109_v58, %v16109_v58 }
 0x894   : > { %7329 = vmatpush1.bf16.msra.mxu0 %v13797_v30  ;;  %7289 = vmatprep.subr.bf16.mxu1 %v13802_v48 }
 0x895   : > { %7330 = vmatprep.subr.bf16.mxu0 %v13805_v18 }
 0x897   : > { %7290 = vmatpush1.bf16.msra.mxu1 %v13800_v37  ;;  %v13872_v37 = vld [vmem:[%s18104_s10 + $0xcc0] ss:$16 sps:$4 sm:$0xff]  }
 0x898   : > { %7331 = vmatpush1.bf16.msra.mxu0 %v13803_v31  ;;  %7291 = vmatprep.subr.bf16.mxu1 %v13808_v5  ;;  %v13875_v5 = vld [vmem:[%s18104_s10 + $0xcc8] ss:$16 sps:$4 sm:$0xff]  }
 0x899   : > { %7332 = vmatprep.subr.bf16.mxu0 %v13811_v22 }
 0x89b   : > { %7292 = vmatpush1.bf16.msra.mxu1 %v13806_v36 }
 0x89c   : > { %7333 = vmatpush1.bf16.msra.mxu0 %v13809_v46  ;;  %7293 = vmatprep.subr.bf16.mxu1 %v13814_v55 }
 0x89d   : > { %7334 = vmatprep.subr.bf16.mxu0 %v13817_v57 }
 0x89f   : > { %7294 = vmatpush1.bf16.msra.mxu1 %v13812_v39  ;;  %v13878_v39 = vld [vmem:[%s18104_s10 + $0xca0] ss:$16 sps:$4 sm:$0xff]  }
 0x8a0   : > { %7335 = vmatpush1.bf16.msra.mxu0 %v13815_v9  ;;  %7295 = vmatprep.subr.bf16.mxu1 %v13820_v0  ;;  %v13881_v9 = vld [vmem:[%s18104_s10 + $0xca8] ss:$16 sps:$4 sm:$0xff]  }
 0x8a1   : > { %7336 = vmatprep.subr.bf16.mxu0 %v13823_v32  ;;  %v13889_v32 = vld [vmem:[%s18104_s10 + $0xc8c] ss:$16 sps:$4 sm:$0xff]  }
 0x8a3   : > { %7296 = vmatpush2.bf16.msra.mxu1 %v13818_v41  ;;  %v13884_v41 = vld [vmem:[%s18104_s10 + $0xc80] ss:$16 sps:$4 sm:$0xff]  }
 0x8a4   : > { %7337 = vmatpush2.bf16.msra.mxu0 %v13821_v15  ;;  %7297 = vmatprep.subr.bf16.mxu1 %v13826_v3  ;;  %v13887_v15 = vld [vmem:[%s18104_s10 + $0xc88] ss:$16 sps:$4 sm:$0xff]   ;;  %v13892_v3 = vld [vmem:[%s18104_s10 + $0xc64] ss:$16 sps:$4 sm:$0xff]  }
 0x8a5   : > { %7338 = vmatprep.subr.bf16.mxu0 %v13829_v56  ;;  %v13895_v56 = vld [vmem:[%s18104_s10 + $0xc6c] ss:$16 sps:$4 sm:$0xff]  }
 0x8a7   : > { %7298 = vmatpush2.bf16.msra.mxu1 %v13824_v21  ;;  %v13890_v21 = vld [vmem:[%s18104_s10 + $0xc60] ss:$16 sps:$4 sm:$0xff]  }
 0x8a8   : > { %7339 = vmatpush2.bf16.msra.mxu0 %v13827_v27  ;;  %7299 = vmatprep.subr.bf16.mxu1 %v13832_v2  ;;  %v13893_v27 = vld [vmem:[%s18104_s10 + $0xc68] ss:$16 sps:$4 sm:$0xff]   ;;  %v13898_v2 = vld [vmem:[%s18104_s10 + $0xc44] ss:$16 sps:$4 sm:$0xff]  }
 0x8a9   : > { %7340 = vmatprep.subr.bf16.mxu0 %v13835_v16  ;;  %v13901_v16 = vld [vmem:[%s18104_s10 + $0xc4c] ss:$16 sps:$4 sm:$0xff]  }
 0x8ab   : > { %7300 = vmatpush2.bf16.msra.mxu1 %v13830_v47  ;;  %v13896_v47 = vld [vmem:[%s18104_s10 + $0xc40] ss:$16 sps:$4 sm:$0xff]  }
 0x8ac   : > { %7341 = vmatpush2.bf16.msra.mxu0 %v13833_v60  ;;  %7301 = vmatprep.subr.bf16.mxu1 %v13838_v50  ;;  %v13899_v60 = vld [vmem:[%s18104_s10 + $0xc48] ss:$16 sps:$4 sm:$0xff]   ;;  %v13904_v50 = vld [vmem:[%s18104_s10 + $0xc24] ss:$16 sps:$4 sm:$0xff]  }
 0x8ad   : > { %7342 = vmatprep.subr.bf16.mxu0 %v13841_v52  ;;  %v13907_v52 = vld [vmem:[%s18104_s10 + $0xc2c] ss:$16 sps:$4 sm:$0xff]  }
 0x8af   : > { %7302 = vmatpush2.bf16.msra.mxu1 %v13836_v13  ;;  %v13902_v13 = vld [vmem:[%s18104_s10 + $0xc20] ss:$16 sps:$4 sm:$0xff]  }
 0x8b0   : > { %7343 = vmatpush2.bf16.msra.mxu0 %v13839_v19  ;;  %7303 = vmatprep.subr.bf16.mxu1 %v13844_v62  ;;  %v13905_v19 = vld [vmem:[%s18104_s10 + $0xc28] ss:$16 sps:$4 sm:$0xff]   ;;  %v13910_v62 = vld [vmem:[%s18104_s10 + $0xc04] ss:$16 sps:$4 sm:$0xff]  }
 0x8b1   : > { %7344 = vmatprep.subr.bf16.mxu0 %v13847_v51  ;;  %v13913_v51 = vld [vmem:[%s18104_s10 + $0xc0c] ss:$16 sps:$4 sm:$0xff]  }
 0x8b3   : > { %7304 = vmatpush2.bf16.msra.mxu1 %v13842_v1  ;;  %v13908_v1 = vld [vmem:[%s18104_s10 + $0xc00] ss:$16 sps:$4 sm:$0xff]  }
 0x8b4   : > { %7345 = vmatpush2.bf16.msra.mxu0 %v13845_v45  ;;  %7305 = vmatprep.subr.bf16.mxu1 %v13850_v59  ;;  %v13911_v45 = vld [vmem:[%s18104_s10 + $0xc08] ss:$16 sps:$4 sm:$0xff]   ;;  %v13916_v59 = vld [vmem:[%s18104_s10 + $0xde4] ss:$16 sps:$4 sm:$0xff]  }
 0x8b5   : > { %7346 = vmatprep.subr.bf16.mxu0 %v13853_v23  ;;  %v13919_v23 = vld [vmem:[%s18104_s10 + $0xdec] ss:$16 sps:$4 sm:$0xff]  }
 0x8b7   : > { %7306 = vmatpush2.bf16.msra.mxu1 %v13848_v38  ;;  %v13914_v38 = vld [vmem:[%s18104_s10 + $0xde0] ss:$16 sps:$4 sm:$0xff]  }
 0x8b8   : > { %7347 = vmatpush2.bf16.msra.mxu0 %v13851_v53  ;;  %7307 = vmatprep.subr.bf16.mxu1 %v13856_v40  ;;  %v13917_v53 = vld [vmem:[%s18104_s10 + $0xde8] ss:$16 sps:$4 sm:$0xff]   ;;  %v13922_v40 = vld [vmem:[%s18104_s10 + $0xdc4] ss:$16 sps:$4 sm:$0xff]  }
 0x8b9   : > { %7348 = vmatprep.subr.bf16.mxu0 %v13859_v6  ;;  %v13925_v6 = vld [vmem:[%s18104_s10 + $0xdcc] ss:$16 sps:$4 sm:$0xff]  }
 0x8bb   : > { %7308 = vmatpush2.bf16.msra.mxu1 %v13854_v35  ;;  %v13920_v35 = vld [vmem:[%s18104_s10 + $0xdc0] ss:$16 sps:$4 sm:$0xff]  }
 0x8bc   : > { %7349 = vmatpush2.bf16.msra.mxu0 %v13857_v20  ;;  %7309 = vmatprep.subr.bf16.mxu1 %v13862_v43  ;;  %v13923_v20 = vld [vmem:[%s18104_s10 + $0xdc8] ss:$16 sps:$4 sm:$0xff]   ;;  %v13928_v43 = vld [vmem:[%s18104_s10 + $0xda4] ss:$16 sps:$4 sm:$0xff]  }
 0x8bd   : > { %7350 = vmatprep.subr.bf16.mxu0 %v13865_v28  ;;  %v13931_v28 = vld [vmem:[%s18104_s10 + $0xdac] ss:$16 sps:$4 sm:$0xff]  }
 0x8bf   : > { %7310 = vmatpush2.bf16.msra.mxu1 %v13860_v17  ;;  %v13926_v17 = vld [vmem:[%s18104_s10 + $0xda0] ss:$16 sps:$4 sm:$0xff]  }
 0x8c0   : > { %7351 = vmatpush2.bf16.msra.mxu0 %v13863_v42  ;;  %7752 = vmatprep.subr.bf16.mxu1 %v13868_v33  ;;  %v13929_v42 = vld [vmem:[%s18104_s10 + $0xda8] ss:$16 sps:$4 sm:$0xff]   ;;  %v13934_v33 = vld [vmem:[%s18104_s10 + $0xd84] ss:$16 sps:$4 sm:$0xff]  }
 0x8c1   : > { %7793 = vmatprep.subr.bf16.mxu0 %v13871_v7  ;;  %v13937_v7 = vld [vmem:[%s18104_s10 + $0xd8c] ss:$16 sps:$4 sm:$0xff]  }
 0x8c2   : > { %v5886_v30 = vpop.f32.mrf.mxu1  ;;  %7312 = vmatmul.mubr.bf16.vlgmr.msra.gmra.mxu1 %v6955_v54 }
 0x8c3   : > { %v16972_v48 = vadd.f32 %v5886_v30, %v16762_v4  ;;  %v5927_v18 = vpop.f32.mrf.mxu0  ;;  %7353 = vmatmul.mubr.bf16.vlgmr.msra.gmra.mxu0 %v6955_v54  ;;  %7753 = vmatpush1.bf16.msra.mxu1 %v13866_v10  ;;  %v13880_v4 = vld [vmem:[%s18104_s10 + $0xca4] ss:$16 sps:$4 sm:$0xff]   ;;  %v13932_v10 = vld [vmem:[%s18104_s10 + $0xd80] ss:$16 sps:$4 sm:$0xff]   ;;  %v13935_v54 = vld [vmem:[%s18104_s10 + $0xd88] ss:$16 sps:$4 sm:$0xff]  }
 0x8c4   : > { %v16978_v31 = vadd.f32 %v5927_v18, %v16765_v12  ;;  %7784 = vmatprep.mubr.bf16.mxu1 %v16966_v14  ;;  %7794 = vmatpush1.bf16.msra.mxu0 %v13869_v24  ;;  %v5888_v58 = vpop.f32.mrf.mxu1  ;;  %v13883_v12 = vld [vmem:[%s18104_s10 + $0xcac] ss:$16 sps:$4 sm:$0xff]   ;;  %v13940_v24 = vld [vmem:[%s18104_s10 + $0xd64] ss:$16 sps:$4 sm:$0xff]   ;;  %v13938_v30 = vld [vmem:[%s18104_s10 + $0xd60] ss:$16 sps:$4 sm:$0xff]  }
 0x8c5   : > { %7825 = vmatprep.mubr.bf16.mxu0 %v16966_v14  ;;  %v16989_v22 = vadd.f32 %v5888_v58, %v16778_v8  ;;  %v5929_v36 = vpop.f32.mrf.mxu0  ;;  %7754 = vmatprep.subr.bf16.mxu1 %v13874_v25  ;;  %v13943_v25 = vld [vmem:[%s18104_s10 + $0xd6c] ss:$16 sps:$4 sm:$0xff]   ;;  %v13946_v18 = vld [vmem:[%s18104_s10 + $0xd44] ss:$16 sps:$4 sm:$0xff]   ;;  %v13944_v58 = vld [vmem:[%s18104_s10 + $0xd40] ss:$16 sps:$4 sm:$0xff]  }
 0x8c6   : > { %v16995_v46 = vadd.f32 %v5929_v36, %v16781_v44  ;;  %v5890_v55 = vpop.f32.mrf.mxu1  ;;  %7795 = vmatprep.subr.bf16.mxu0 %v13877_v61  ;;  %v13886_v44 = vld [vmem:[%s18104_s10 + $0xc84] ss:$16 sps:$4 sm:$0xff]   ;;  %v13941_v61 = vld [vmem:[%s18104_s10 + $0xd68] ss:$16 sps:$4 sm:$0xff]   ;;  %v13955_v36 = vld [vmem:[%s18104_s10 + $0xd2c] ss:$16 sps:$4 sm:$0xff]  }
 0x8c7   : > { %v5931_v57 = vpop.f32.mrf.mxu0  ;;  %7755 = vmatpush1.bf16.msra.mxu1 %v13872_v37  ;;  %v13949_v37 = vld [vmem:[%s18104_s10 + $0xd4c] ss:$16 sps:$4 sm:$0xff]   ;;  %v13953_v55 = vld [vmem:[%s18104_s10 + $0xd28] ss:$16 sps:$4 sm:$0xff]  }
 0x8c8   : > { %7796 = vmatpush1.bf16.msra.mxu0 %v13875_v5  ;;  %v5891_v8 = vpop.f32.mrf.mxu1  ;;  %7756 = vmatprep.subr.bf16.mxu1 %v13880_v4  ;;  %v13947_v5 = vld [vmem:[%s18104_s10 + $0xd48] ss:$16 sps:$4 sm:$0xff]   ;;  %v13952_v4 = vld [vmem:[%s18104_s10 + $0xd24] ss:$16 sps:$4 sm:$0xff]  }
 0x8c9   : > { %v5932_v0 = vpop.f32.mrf.mxu0  ;;  %7797 = vmatprep.subr.bf16.mxu0 %v13883_v12  ;;  %v13950_v12 = vld [vmem:[%s18104_s10 + $0xd20] ss:$16 sps:$4 sm:$0xff]   ;;  %v13958_v57 = vld [vmem:[%s18104_s10 + $0xd04] ss:$16 sps:$4 sm:$0xff]  }
 0x8ca   : > { %v13956_v8 = vld [vmem:[%s18104_s10 + $0xd00] ss:$16 sps:$4 sm:$0xff]   ;;  %v13967_v0 = vld [vmem:[%s18104_s10 + $0xeec] ss:$16 sps:$4 sm:$0xff]  }
 0x8cb   : > { %7757 = vmatpush1.bf16.msra.mxu1 %v13878_v39  ;;  %v13961_v39 = vld [vmem:[%s18104_s10 + $0xd0c] ss:$16 sps:$4 sm:$0xff]  }
 0x8cc   : > { %7798 = vmatpush1.bf16.msra.mxu0 %v13881_v9  ;;  %7758 = vmatprep.subr.bf16.mxu1 %v13886_v44  ;;  %v13959_v9 = vld [vmem:[%s18104_s10 + $0xd08] ss:$16 sps:$4 sm:$0xff]   ;;  %v13964_v44 = vld [vmem:[%s18104_s10 + $0xee4] ss:$16 sps:$4 sm:$0xff]  }
 0x8cd   : > { %7799 = vmatprep.subr.bf16.mxu0 %v13889_v32  ;;  %v13962_v32 = vld [vmem:[%s18104_s10 + $0xee0] ss:$16 sps:$4 sm:$0xff]  }
 0x8cf   : > { %7759 = vmatpush1.bf16.msra.mxu1 %v13884_v41  ;;  %v17170_v41 = vpack.c.bf16 %v16101_v49, %v16101_v49  ;;  %v13973_v49 = vld [vmem:[%s18104_s10 + $0xecc] ss:$16 sps:$4 sm:$0xff]  }
 0x8d0   : > { %7800 = vmatpush1.bf16.msra.mxu0 %v13887_v15  ;;  %7760 = vmatprep.subr.bf16.mxu1 %v13892_v3  ;;  %v13965_v15 = vld [vmem:[%s18104_s10 + $0xee8] ss:$16 sps:$4 sm:$0xff]   ;;  %v13970_v3 = vld [vmem:[%s18104_s10 + $0xec4] ss:$16 sps:$4 sm:$0xff]  }
 0x8d1   : > { %7801 = vmatprep.subr.bf16.mxu0 %v13895_v56 }
 0x8d3   : > { %7761 = vmatpush1.bf16.msra.mxu1 %v13890_v21  ;;  %v7906_v21 = vrot.slane %v16966_v14, 2 }
 0x8d4   : > { %7802 = vmatpush1.bf16.msra.mxu0 %v13893_v27  ;;  %7762 = vmatprep.subr.bf16.mxu1 %v13898_v2 }
 0x8d5   : > { %7803 = vmatprep.subr.bf16.mxu0 %v13901_v16  ;;  %v13968_v16 = vld [vmem:[%s18104_s10 + $0xec0] ss:$16 sps:$4 sm:$0xff]  }
 0x8d7   : > { %7763 = vmatpush1.bf16.msra.mxu1 %v13896_v47 }
 0x8d8   : > { %7804 = vmatpush1.bf16.msra.mxu0 %v13899_v60  ;;  %7764 = vmatprep.subr.bf16.mxu1 %v13904_v50  ;;  %v13971_v60 = vld [vmem:[%s18104_s10 + $0xec8] ss:$16 sps:$4 sm:$0xff]  }
 0x8d9   : > { %7805 = vmatprep.subr.bf16.mxu0 %v13907_v52 }
 0x8db   : > { %7765 = vmatpush1.bf16.msra.mxu1 %v13902_v13 }
 0x8dc   : > { %7806 = vmatpush1.bf16.msra.mxu0 %v13905_v19  ;;  %7766 = vmatprep.subr.bf16.mxu1 %v13910_v62 }
 0x8dd   : > { %7807 = vmatprep.subr.bf16.mxu0 %v13913_v51  ;;  %v13974_v51 = vld [vmem:[%s18104_s10 + $0xea0] ss:$16 sps:$4 sm:$0xff]  }
 0x8df   : > { %7767 = vmatpush1.bf16.msra.mxu1 %v13908_v1  ;;  %v13977_v1 = vld [vmem:[%s18104_s10 + $0xea8] ss:$16 sps:$4 sm:$0xff]  }
 0x8e0   : > { %7808 = vmatpush1.bf16.msra.mxu0 %v13911_v45  ;;  %7768 = vmatprep.subr.bf16.mxu1 %v13916_v59  ;;  %v13985_v59 = vld [vmem:[%s18104_s10 + $0xe8c] ss:$16 sps:$4 sm:$0xff]  }
 0x8e1   : > { %7809 = vmatprep.subr.bf16.mxu0 %v13919_v23  ;;  %v13980_v23 = vld [vmem:[%s18104_s10 + $0xe80] ss:$16 sps:$4 sm:$0xff]  }
 0x8e3   : > { %7769 = vmatpush2.bf16.msra.mxu1 %v13914_v38  ;;  %v13983_v38 = vld [vmem:[%s18104_s10 + $0xe88] ss:$16 sps:$4 sm:$0xff]  }
 0x8e4   : > { %7810 = vmatpush2.bf16.msra.mxu0 %v13917_v53  ;;  %7770 = vmatprep.subr.bf16.mxu1 %v13922_v40  ;;  %v13988_v53 = vld [vmem:[%s18104_s10 + $0xe64] ss:$16 sps:$4 sm:$0xff]   ;;  %v13991_v40 = vld [vmem:[%s18104_s10 + $0xe6c] ss:$16 sps:$4 sm:$0xff]  }
 0x8e5   : > { %7811 = vmatprep.subr.bf16.mxu0 %v13925_v6  ;;  %v13986_v6 = vld [vmem:[%s18104_s10 + $0xe60] ss:$16 sps:$4 sm:$0xff]  }
 0x8e7   : > { %7771 = vmatpush2.bf16.msra.mxu1 %v13920_v35  ;;  %v13989_v35 = vld [vmem:[%s18104_s10 + $0xe68] ss:$16 sps:$4 sm:$0xff]  }
 0x8e8   : > { %7812 = vmatpush2.bf16.msra.mxu0 %v13923_v20  ;;  %7772 = vmatprep.subr.bf16.mxu1 %v13928_v43  ;;  %v13994_v20 = vld [vmem:[%s18104_s10 + $0xe44] ss:$16 sps:$4 sm:$0xff]   ;;  %v13997_v43 = vld [vmem:[%s18104_s10 + $0xe4c] ss:$16 sps:$4 sm:$0xff]  }
 0x8e9   : > { %7813 = vmatprep.subr.bf16.mxu0 %v13931_v28  ;;  %v13992_v28 = vld [vmem:[%s18104_s10 + $0xe40] ss:$16 sps:$4 sm:$0xff]  }
 0x8eb   : > { %7773 = vmatpush2.bf16.msra.mxu1 %v13926_v17  ;;  %v13995_v17 = vld [vmem:[%s18104_s10 + $0xe48] ss:$16 sps:$4 sm:$0xff]  }
 0x8ec   : > { %7814 = vmatpush2.bf16.msra.mxu0 %v13929_v42  ;;  %7774 = vmatprep.subr.bf16.mxu1 %v13934_v33  ;;  %v14000_v42 = vld [vmem:[%s18104_s10 + $0xe24] ss:$16 sps:$4 sm:$0xff]   ;;  %v14003_v33 = vld [vmem:[%s18104_s10 + $0xe2c] ss:$16 sps:$4 sm:$0xff]  }
 0x8ed   : > { %7815 = vmatprep.subr.bf16.mxu0 %v13937_v7  ;;  %v13998_v7 = vld [vmem:[%s18104_s10 + $0xe20] ss:$16 sps:$4 sm:$0xff]  }
 0x8ef   : > { %7775 = vmatpush2.bf16.msra.mxu1 %v13932_v10  ;;  %v14001_v10 = vld [vmem:[%s18104_s10 + $0xe28] ss:$16 sps:$4 sm:$0xff]  }
 0x8f0   : > { %7816 = vmatpush2.bf16.msra.mxu0 %v13935_v54  ;;  %7776 = vmatprep.subr.bf16.mxu1 %v13940_v24  ;;  %v14006_v54 = vld [vmem:[%s18104_s10 + $0xe04] ss:$16 sps:$4 sm:$0xff]   ;;  %v14009_v24 = vld [vmem:[%s18104_s10 + $0xe0c] ss:$16 sps:$4 sm:$0xff]  }
 0x8f1   : > { %7817 = vmatprep.subr.bf16.mxu0 %v13943_v25  ;;  %v14004_v25 = vld [vmem:[%s18104_s10 + $0xe00] ss:$16 sps:$4 sm:$0xff]  }
 0x8f3   : > { %7777 = vmatpush2.bf16.msra.mxu1 %v13938_v30  ;;  %v14007_v30 = vld [vmem:[%s18104_s10 + $0xe08] ss:$16 sps:$4 sm:$0xff]  }
 0x8f4   : > { %7818 = vmatpush2.bf16.msra.mxu0 %v13941_v61  ;;  %7778 = vmatprep.subr.bf16.mxu1 %v13946_v18  ;;  %v14012_v61 = vld [vmem:[%s18104_s10 + $0xfe4] ss:$16 sps:$4 sm:$0xff]   ;;  %v14015_v18 = vld [vmem:[%s18104_s10 + $0xfec] ss:$16 sps:$4 sm:$0xff]  }
 0x8f5   : > { %7819 = vmatprep.subr.bf16.mxu0 %v13949_v37  ;;  %v14010_v37 = vld [vmem:[%s18104_s10 + $0xfe0] ss:$16 sps:$4 sm:$0xff]  }
 0x8f7   : > { %7779 = vmatpush2.bf16.msra.mxu1 %v13944_v58  ;;  %v14013_v58 = vld [vmem:[%s18104_s10 + $0xfe8] ss:$16 sps:$4 sm:$0xff]  }
 0x8f8   : > { %7820 = vmatpush2.bf16.msra.mxu0 %v13947_v5  ;;  %7780 = vmatprep.subr.bf16.mxu1 %v13952_v4  ;;  %v14018_v5 = vld [vmem:[%s18104_s10 + $0xfc4] ss:$16 sps:$4 sm:$0xff]   ;;  %v14021_v4 = vld [vmem:[%s18104_s10 + $0xfcc] ss:$16 sps:$4 sm:$0xff]  }
 0x8f9   : > { %7821 = vmatprep.subr.bf16.mxu0 %v13955_v36  ;;  %v14016_v36 = vld [vmem:[%s18104_s10 + $0xfc0] ss:$16 sps:$4 sm:$0xff]  }
 0x8fb   : > { %7781 = vmatpush2.bf16.msra.mxu1 %v13950_v12  ;;  %v14019_v12 = vld [vmem:[%s18104_s10 + $0xfc8] ss:$16 sps:$4 sm:$0xff]  }
 0x8fc   : > { %7822 = vmatpush2.bf16.msra.mxu0 %v13953_v55  ;;  %7782 = vmatprep.subr.bf16.mxu1 %v13958_v57  ;;  %v14024_v55 = vld [vmem:[%s18104_s10 + $0xfa4] ss:$16 sps:$4 sm:$0xff]   ;;  %v14027_v57 = vld [vmem:[%s18104_s10 + $0xfac] ss:$16 sps:$4 sm:$0xff]  }
 0x8fd   : > { %7823 = vmatprep.subr.bf16.mxu0 %v13961_v39  ;;  %v14022_v39 = vld [vmem:[%s18104_s10 + $0xfa0] ss:$16 sps:$4 sm:$0xff]  }
 0x8ff   : > { %7783 = vmatpush2.bf16.msra.mxu1 %v13956_v8  ;;  %v14025_v8 = vld [vmem:[%s18104_s10 + $0xfa8] ss:$16 sps:$4 sm:$0xff]  }
 0x900   : > { %7824 = vmatpush2.bf16.msra.mxu0 %v13959_v9  ;;  %8229 = vmatprep.subr.bf16.mxu1 %v13964_v44  ;;  %v14030_v9 = vld [vmem:[%s18104_s10 + $0xf84] ss:$16 sps:$4 sm:$0xff]   ;;  %v14033_v44 = vld [vmem:[%s18104_s10 + $0xf8c] ss:$16 sps:$4 sm:$0xff]  }
 0x901   : > { %8270 = vmatprep.subr.bf16.mxu0 %v13967_v0  ;;  %v14028_v0 = vld [vmem:[%s18104_s10 + $0xf80] ss:$16 sps:$4 sm:$0xff]  }
 0x902   : > { %v6363_v56 = vpop.f32.mrf.mxu1  ;;  %7785 = vmatmul.mubr.bf16.vlgmr.msra.gmra.mxu1 %v17170_v41 }
 0x903   : > { %v17184_v27 = vadd.f32 %v6363_v56, %v16972_v48  ;;  %v6404_v2 = vpop.f32.mrf.mxu0  ;;  %7826 = vmatmul.mubr.bf16.vlgmr.msra.gmra.mxu0 %v17170_v41  ;;  %8230 = vmatpush1.bf16.msra.mxu1 %v13962_v32  ;;  %v13976_v48 = vld [vmem:[%s18104_s10 + $0xea4] ss:$16 sps:$4 sm:$0xff]   ;;  %v14031_v32 = vld [vmem:[%s18104_s10 + $0xf88] ss:$16 sps:$4 sm:$0xff]   ;;  %v14034_v56 = vld [vmem:[%s18104_s10 + $0xf60] ss:$16 sps:$4 sm:$0xff]  }
 0x904   : > { %v17191_v47 = vadd.f32 %v6404_v2, %v16978_v31  ;;  %8261 = vmatprep.mubr.bf16.mxu1 %v7906_v21  ;;  %8271 = vmatpush1.bf16.msra.mxu0 %v13965_v15  ;;  %v6365_v14 = vpop.f32.mrf.mxu1  ;;  %v13979_v31 = vld [vmem:[%s18104_s10 + $0xeac] ss:$16 sps:$4 sm:$0xff]   ;;  %v14036_v15 = vld [vmem:[%s18104_s10 + $0xf64] ss:$16 sps:$4 sm:$0xff]  }
 0x905   : > { %8302 = vmatprep.mubr.bf16.mxu0 %v7906_v21  ;;  %v17200_v50 = vadd.f32 %v6365_v14, %v16989_v22  ;;  %v6406_v52 = vpop.f32.mrf.mxu0  ;;  %8231 = vmatprep.subr.bf16.mxu1 %v13970_v3  ;;  %v14039_v3 = vld [vmem:[%s18104_s10 + $0xf6c] ss:$16 sps:$4 sm:$0xff]   ;;  %v14037_v21 = vld [vmem:[%s18104_s10 + $0xf68] ss:$16 sps:$4 sm:$0xff]  }
 0x906   : > { %v17206_v13 = vadd.f32 %v6406_v52, %v16995_v46  ;;  %v6367_v19 = vpop.f32.mrf.mxu1  ;;  %8272 = vmatprep.subr.bf16.mxu0 %v13973_v49  ;;  %v13982_v46 = vld [vmem:[%s18104_s10 + $0xe84] ss:$16 sps:$4 sm:$0xff]   ;;  %v14045_v2 = vld [vmem:[%s18104_s10 + $0xf4c] ss:$16 sps:$4 sm:$0xff]   ;;  %v14043_v14 = vld [vmem:[%s18104_s10 + $0xf48] ss:$16 sps:$4 sm:$0xff]  }
 0x907   : > { %v6408_v62 = vpop.f32.mrf.mxu0  ;;  %8232 = vmatpush1.bf16.msra.mxu1 %v13968_v16  ;;  %v14042_v49 = vld [vmem:[%s18104_s10 + $0xf44] ss:$16 sps:$4 sm:$0xff]   ;;  %v14040_v16 = vld [vmem:[%s18104_s10 + $0xf40] ss:$16 sps:$4 sm:$0xff]  }
 0x908   : > { %8273 = vmatpush1.bf16.msra.mxu0 %v13971_v60  ;;  %v6368_v22 = vpop.f32.mrf.mxu1  ;;  %8233 = vmatprep.subr.bf16.mxu1 %v13976_v48  ;;  %v14048_v60 = vld [vmem:[%s18104_s10 + $0xf24] ss:$16 sps:$4 sm:$0xff]   ;;  %v14051_v48 = vld [vmem:[%s18104_s10 + $0xf2c] ss:$16 sps:$4 sm:$0xff]   ;;  %v14046_v52 = vld [vmem:[%s18104_s10 + $0xf20] ss:$16 sps:$4 sm:$0xff]  }
 0x909   : > { %v6409_v45 = vpop.f32.mrf.mxu0  ;;  %8274 = vmatprep.subr.bf16.mxu0 %v13979_v31  ;;  %v14049_v31 = vld [vmem:[%s18104_s10 + $0xf28] ss:$16 sps:$4 sm:$0xff]   ;;  %v14054_v19 = vld [vmem:[%s18104_s10 + $0xf04] ss:$16 sps:$4 sm:$0xff]   ;;  %v14057_v62 = vld [vmem:[%s18104_s10 + $0xf0c] ss:$16 sps:$4 sm:$0xff]  }
 0x90a   : > { %v14055_v22 = vld [vmem:[%s18104_s10 + $0xf08] ss:$16 sps:$4 sm:$0xff]   ;;  %v14058_v45 = vld [vmem:[%s18104_s10 + $0x10e0] ss:$16 sps:$4 sm:$0xff]  }
 0x90b   : > { %8234 = vmatpush1.bf16.msra.mxu1 %v13974_v51  ;;  %v14052_v51 = vld [vmem:[%s18104_s10 + $0xf00] ss:$16 sps:$4 sm:$0xff]  }
 0x90c   : > { %8275 = vmatpush1.bf16.msra.mxu0 %v13977_v1  ;;  %8235 = vmatprep.subr.bf16.mxu1 %v13982_v46  ;;  %v14060_v1 = vld [vmem:[%s18104_s10 + $0x10e4] ss:$16 sps:$4 sm:$0xff]   ;;  %v14063_v46 = vld [vmem:[%s18104_s10 + $0x10ec] ss:$16 sps:$4 sm:$0xff]  }
 0x90d   : > { %8276 = vmatprep.subr.bf16.mxu0 %v13985_v59  ;;  %v7905_v59 = vrot.slane %v17170_v41, 2  ;;  %v14069_v41 = vld [vmem:[%s18104_s10 + $0x10cc] ss:$16 sps:$4 sm:$0xff]  }
 0x90f   : > { %8236 = vmatpush1.bf16.msra.mxu1 %v13980_v23  ;;  %v14061_v23 = vld [vmem:[%s18104_s10 + $0x10e8] ss:$16 sps:$4 sm:$0xff]  }
 0x910   : > { %8277 = vmatpush1.bf16.msra.mxu0 %v13983_v38  ;;  %8237 = vmatprep.subr.bf16.mxu1 %v13988_v53  ;;  %v14066_v38 = vld [vmem:[%s18104_s10 + $0x10c4] ss:$16 sps:$4 sm:$0xff]   ;;  %v8316_v53 = vpack.c.bf16 %v16125_v29, %v16125_v29 }
 0x911   : > { %8278 = vmatprep.subr.bf16.mxu0 %v13991_v40 }
 0x913   : > { %8238 = vmatpush1.bf16.msra.mxu1 %v13986_v6 }
 0x914   : > { %8279 = vmatpush1.bf16.msra.mxu0 %v13989_v35  ;;  %8239 = vmatprep.subr.bf16.mxu1 %v13994_v20  ;;  %v14064_v20 = vld [vmem:[%s18104_s10 + $0x10c0] ss:$16 sps:$4 sm:$0xff]  }
 0x915   : > { %8280 = vmatprep.subr.bf16.mxu0 %v13997_v43 }
 0x917   : > { %8240 = vmatpush1.bf16.msra.mxu1 %v13992_v28  ;;  %v14067_v28 = vld [vmem:[%s18104_s10 + $0x10c8] ss:$16 sps:$4 sm:$0xff]  }
 0x918   : > { %8281 = vmatpush1.bf16.msra.mxu0 %v13995_v17  ;;  %8241 = vmatprep.subr.bf16.mxu1 %v14000_v42 }
 0x919   : > { %8282 = vmatprep.subr.bf16.mxu0 %v14003_v33 }
 0x91b   : > { %8242 = vmatpush1.bf16.msra.mxu1 %v13998_v7 }
 0x91c   : > { %8283 = vmatpush1.bf16.msra.mxu0 %v14001_v10  ;;  %8243 = vmatprep.subr.bf16.mxu1 %v14006_v54  ;;  %v14070_v54 = vld [vmem:[%s18104_s10 + $0x10a0] ss:$16 sps:$4 sm:$0xff]  }
 0x91d   : > { %8284 = vmatprep.subr.bf16.mxu0 %v14009_v24  ;;  %v14073_v24 = vld [vmem:[%s18104_s10 + $0x10a8] ss:$16 sps:$4 sm:$0xff]  }
 0x91f   : > { %8244 = vmatpush1.bf16.msra.mxu1 %v14004_v25 }
 0x920   : > { %8285 = vmatpush1.bf16.msra.mxu0 %v14007_v30  ;;  %8245 = vmatprep.subr.bf16.mxu1 %v14012_v61  ;;  %v14081_v30 = vld [vmem:[%s18104_s10 + $0x108c] ss:$16 sps:$4 sm:$0xff]   ;;  %v14076_v61 = vld [vmem:[%s18104_s10 + $0x1080] ss:$16 sps:$4 sm:$0xff]  }
 0x921   : > { %8286 = vmatprep.subr.bf16.mxu0 %v14015_v18  ;;  %v14079_v18 = vld [vmem:[%s18104_s10 + $0x1088] ss:$16 sps:$4 sm:$0xff]  }
 0x923   : > { %8246 = vmatpush2.bf16.msra.mxu1 %v14010_v37  ;;  %v14084_v37 = vld [vmem:[%s18104_s10 + $0x1064] ss:$16 sps:$4 sm:$0xff]  }
 0x924   : > { %8287 = vmatpush2.bf16.msra.mxu0 %v14013_v58  ;;  %8247 = vmatprep.subr.bf16.mxu1 %v14018_v5  ;;  %v14087_v58 = vld [vmem:[%s18104_s10 + $0x106c] ss:$16 sps:$4 sm:$0xff]   ;;  %v14082_v5 = vld [vmem:[%s18104_s10 + $0x1060] ss:$16 sps:$4 sm:$0xff]  }
 0x925   : > { %8288 = vmatprep.subr.bf16.mxu0 %v14021_v4  ;;  %v14085_v4 = vld [vmem:[%s18104_s10 + $0x1068] ss:$16 sps:$4 sm:$0xff]  }
 0x927   : > { %8248 = vmatpush2.bf16.msra.mxu1 %v14016_v36  ;;  %v14090_v36 = vld [vmem:[%s18104_s10 + $0x1044] ss:$16 sps:$4 sm:$0xff]  }
 0x928   : > { %8289 = vmatpush2.bf16.msra.mxu0 %v14019_v12  ;;  %8249 = vmatprep.subr.bf16.mxu1 %v14024_v55  ;;  %v14093_v12 = vld [vmem:[%s18104_s10 + $0x104c] ss:$16 sps:$4 sm:$0xff]   ;;  %v14088_v55 = vld [vmem:[%s18104_s10 + $0x1040] ss:$16 sps:$4 sm:$0xff]  }
 0x929   : > { %8290 = vmatprep.subr.bf16.mxu0 %v14027_v57  ;;  %v14091_v57 = vld [vmem:[%s18104_s10 + $0x1048] ss:$16 sps:$4 sm:$0xff]  }
 0x92b   : > { %8250 = vmatpush2.bf16.msra.mxu1 %v14022_v39  ;;  %v14096_v39 = vld [vmem:[%s18104_s10 + $0x1024] ss:$16 sps:$4 sm:$0xff]  }
 0x92c   : > { %8291 = vmatpush2.bf16.msra.mxu0 %v14025_v8  ;;  %8251 = vmatprep.subr.bf16.mxu1 %v14030_v9  ;;  %v14099_v8 = vld [vmem:[%s18104_s10 + $0x102c] ss:$16 sps:$4 sm:$0xff]   ;;  %v14094_v9 = vld [vmem:[%s18104_s10 + $0x1020] ss:$16 sps:$4 sm:$0xff]  }
 0x92d   : > { %8292 = vmatprep.subr.bf16.mxu0 %v14033_v44  ;;  %v14097_v44 = vld [vmem:[%s18104_s10 + $0x1028] ss:$16 sps:$4 sm:$0xff]  }
 0x92f   : > { %8252 = vmatpush2.bf16.msra.mxu1 %v14028_v0  ;;  %v14102_v0 = vld [vmem:[%s18104_s10 + $0x1004] ss:$16 sps:$4 sm:$0xff]  }
 0x930   : > { %8293 = vmatpush2.bf16.msra.mxu0 %v14031_v32  ;;  %8253 = vmatprep.subr.bf16.mxu1 %v14036_v15  ;;  %v14105_v32 = vld [vmem:[%s18104_s10 + $0x100c] ss:$16 sps:$4 sm:$0xff]   ;;  %v14100_v15 = vld [vmem:[%s18104_s10 + $0x1000] ss:$16 sps:$4 sm:$0xff]  }
 0x931   : > { %8294 = vmatprep.subr.bf16.mxu0 %v14039_v3  ;;  %v14103_v3 = vld [vmem:[%s18104_s10 + $0x1008] ss:$16 sps:$4 sm:$0xff]  }
 0x933   : > { %8254 = vmatpush2.bf16.msra.mxu1 %v14034_v56  ;;  %v14108_v56 = vld [vmem:[%s18104_s10 + $0x11e4] ss:$16 sps:$4 sm:$0xff]  }
 0x934   : > { %8295 = vmatpush2.bf16.msra.mxu0 %v14037_v21  ;;  %8255 = vmatprep.subr.bf16.mxu1 %v14042_v49  ;;  %v14111_v21 = vld [vmem:[%s18104_s10 + $0x11ec] ss:$16 sps:$4 sm:$0xff]   ;;  %v14106_v49 = vld [vmem:[%s18104_s10 + $0x11e0] ss:$16 sps:$4 sm:$0xff]  }
 0x935   : > { %8296 = vmatprep.subr.bf16.mxu0 %v14045_v2  ;;  %v14109_v2 = vld [vmem:[%s18104_s10 + $0x11e8] ss:$16 sps:$4 sm:$0xff]  }
 0x937   : > { %8256 = vmatpush2.bf16.msra.mxu1 %v14040_v16  ;;  %v14114_v16 = vld [vmem:[%s18104_s10 + $0x11c4] ss:$16 sps:$4 sm:$0xff]  }
 0x938   : > { %8297 = vmatpush2.bf16.msra.mxu0 %v14043_v14  ;;  %8257 = vmatprep.subr.bf16.mxu1 %v14048_v60  ;;  %v14117_v14 = vld [vmem:[%s18104_s10 + $0x11cc] ss:$16 sps:$4 sm:$0xff]   ;;  %v14112_v60 = vld [vmem:[%s18104_s10 + $0x11c0] ss:$16 sps:$4 sm:$0xff]  }
 0x939   : > { %8298 = vmatprep.subr.bf16.mxu0 %v14051_v48  ;;  %v14115_v48 = vld [vmem:[%s18104_s10 + $0x11c8] ss:$16 sps:$4 sm:$0xff]  }
 0x93b   : > { %8258 = vmatpush2.bf16.msra.mxu1 %v14046_v52  ;;  %v14120_v52 = vld [vmem:[%s18104_s10 + $0x11a4] ss:$16 sps:$4 sm:$0xff]  }
 0x93c   : > { %8299 = vmatpush2.bf16.msra.mxu0 %v14049_v31  ;;  %8259 = vmatprep.subr.bf16.mxu1 %v14054_v19  ;;  %v14123_v31 = vld [vmem:[%s18104_s10 + $0x11ac] ss:$16 sps:$4 sm:$0xff]   ;;  %v14118_v19 = vld [vmem:[%s18104_s10 + $0x11a0] ss:$16 sps:$4 sm:$0xff]  }
 0x93d   : > { %8300 = vmatprep.subr.bf16.mxu0 %v14057_v62  ;;  %v14121_v62 = vld [vmem:[%s18104_s10 + $0x11a8] ss:$16 sps:$4 sm:$0xff]  }
 0x93f   : > { %8260 = vmatpush2.bf16.msra.mxu1 %v14052_v51  ;;  %v14126_v51 = vld [vmem:[%s18104_s10 + $0x1184] ss:$16 sps:$4 sm:$0xff]  }
 0x940   : > { %8301 = vmatpush2.bf16.msra.mxu0 %v14055_v22  ;;  %8702 = vmatprep.subr.bf16.mxu1 %v14060_v1  ;;  %v14129_v22 = vld [vmem:[%s18104_s10 + $0x118c] ss:$16 sps:$4 sm:$0xff]   ;;  %v14124_v1 = vld [vmem:[%s18104_s10 + $0x1180] ss:$16 sps:$4 sm:$0xff]  }
 0x941   : > { %8743 = vmatprep.subr.bf16.mxu0 %v14063_v46  ;;  %v14127_v46 = vld [vmem:[%s18104_s10 + $0x1188] ss:$16 sps:$4 sm:$0xff]  }
 0x942   : > { %v6836_v40 = vpop.f32.mrf.mxu1  ;;  %8262 = vmatmul.mubr.bf16.vlgmr.msra.gmra.mxu1 %v7905_v59 }
 0x943   : > { %v17392_v6 = vadd.f32 %v6836_v40, %v17184_v27  ;;  %v6877_v35 = vpop.f32.mrf.mxu0  ;;  %8303 = vmatmul.mubr.bf16.vlgmr.msra.gmra.mxu0 %v7905_v59  ;;  %8703 = vmatpush1.bf16.msra.mxu1 %v14058_v45  ;;  %v14072_v27 = vld [vmem:[%s18104_s10 + $0x10a4] ss:$16 sps:$4 sm:$0xff]   ;;  %v14135_v59 = vld [vmem:[%s18104_s10 + $0x116c] ss:$16 sps:$4 sm:$0xff]  }
 0x944   : > { %v17398_v43 = vadd.f32 %v6877_v35, %v17191_v47  ;;  %8734 = vmatprep.mubr.bf16.mxu1 %v8316_v53  ;;  %8744 = vmatpush1.bf16.msra.mxu0 %v14061_v23  ;;  %v6838_v29 = vpop.f32.mrf.mxu1  ;;  %v14075_v47 = vld [vmem:[%s18104_s10 + $0x10ac] ss:$16 sps:$4 sm:$0xff]   ;;  %v14132_v45 = vld [vmem:[%s18104_s10 + $0x1164] ss:$16 sps:$4 sm:$0xff]   ;;  %v14130_v23 = vld [vmem:[%s18104_s10 + $0x1160] ss:$16 sps:$4 sm:$0xff]  }
 0x945   : > { %8775 = vmatprep.mubr.bf16.mxu0 %v8316_v53  ;;  %v17407_v17 = vadd.f32 %v6838_v29, %v17200_v50  ;;  %v6879_v42 = vpop.f32.mrf.mxu0  ;;  %8704 = vmatprep.subr.bf16.mxu1 %v14066_v38  ;;  %v14133_v38 = vld [vmem:[%s18104_s10 + $0x1168] ss:$16 sps:$4 sm:$0xff]   ;;  %v14138_v53 = vld [vmem:[%s18104_s10 + $0x1144] ss:$16 sps:$4 sm:$0xff]   ;;  %v14141_v40 = vld [vmem:[%s18104_s10 + $0x114c] ss:$16 sps:$4 sm:$0xff]  }
 0x946   : > { %v17413_v33 = vadd.f32 %v6879_v42, %v17206_v13  ;;  %v6840_v7 = vpop.f32.mrf.mxu1  ;;  %8745 = vmatprep.subr.bf16.mxu0 %v14069_v41  ;;  %v14078_v13 = vld [vmem:[%s18104_s10 + $0x1084] ss:$16 sps:$4 sm:$0xff]   ;;  %v14136_v41 = vld [vmem:[%s18104_s10 + $0x1140] ss:$16 sps:$4 sm:$0xff]   ;;  %v14139_v35 = vld [vmem:[%s18104_s10 + $0x1148] ss:$16 sps:$4 sm:$0xff]  }
 0x947   : > { %v6881_v10 = vpop.f32.mrf.mxu0  ;;  %8705 = vmatpush1.bf16.msra.mxu1 %v14064_v20  ;;  %v14144_v20 = vld [vmem:[%s18104_s10 + $0x1124] ss:$16 sps:$4 sm:$0xff]   ;;  %v14147_v29 = vld [vmem:[%s18104_s10 + $0x112c] ss:$16 sps:$4 sm:$0xff]   ;;  %v14148_v7 = vld [vmem:[%s18104_s10 + $0x1100] ss:$16 sps:$4 sm:$0xff]  }
 0x948   : > { %8746 = vmatpush1.bf16.msra.mxu0 %v14067_v28  ;;  %v6841_v50 = vpop.f32.mrf.mxu1  ;;  %8706 = vmatprep.subr.bf16.mxu1 %v14072_v27  ;;  %v14142_v28 = vld [vmem:[%s18104_s10 + $0x1120] ss:$16 sps:$4 sm:$0xff]   ;;  %v14145_v27 = vld [vmem:[%s18104_s10 + $0x1128] ss:$16 sps:$4 sm:$0xff]   ;;  %v14150_v42 = vld [vmem:[%s18104_s10 + $0x1104] ss:$16 sps:$4 sm:$0xff]  }
 0x949   : > { %v6882_v25 = vpop.f32.mrf.mxu0  ;;  %8747 = vmatprep.subr.bf16.mxu0 %v14075_v47  ;;  %v14153_v47 = vld [vmem:[%s18104_s10 + $0x110c] ss:$16 sps:$4 sm:$0xff]   ;;  %v14151_v10 = vld [vmem:[%s18104_s10 + $0x1108] ss:$16 sps:$4 sm:$0xff]  }
 0x94b   : > { %8707 = vmatpush1.bf16.msra.mxu1 %v14070_v54  ;;  %v8315_v54 = vpack.c.bf16 %v16117_v11, %v16117_v11 }
 0x94c   : > { %8748 = vmatpush1.bf16.msra.mxu0 %v14073_v24  ;;  %8708 = vmatprep.subr.bf16.mxu1 %v14078_v13 }
 0x94d   : > { %8749 = vmatprep.subr.bf16.mxu0 %v14081_v30 }
 0x94f   : > { %8709 = vmatpush1.bf16.msra.mxu1 %v14076_v61 }
 0x950   : > { %8750 = vmatpush1.bf16.msra.mxu0 %v14079_v18  ;;  %8710 = vmatprep.subr.bf16.mxu1 %v14084_v37 }
 0x951   : > { %8751 = vmatprep.subr.bf16.mxu0 %v14087_v58 }
 0x953   : > { %8711 = vmatpush1.bf16.msra.mxu1 %v14082_v5 }
 0x954   : > { %8752 = vmatpush1.bf16.msra.mxu0 %v14085_v4  ;;  %8712 = vmatprep.subr.bf16.mxu1 %v14090_v36 }
 0x955   : > { %8753 = vmatprep.subr.bf16.mxu0 %v14093_v12 }
 0x957   : > { %8713 = vmatpush1.bf16.msra.mxu1 %v14088_v55 }
 0x958   : > { %8754 = vmatpush1.bf16.msra.mxu0 %v14091_v57  ;;  %8714 = vmatprep.subr.bf16.mxu1 %v14096_v39 }
 0x959   : > { %8755 = vmatprep.subr.bf16.mxu0 %v14099_v8 }
 0x95b   : > { %8715 = vmatpush1.bf16.msra.mxu1 %v14094_v9 }
 0x95c   : > { %8756 = vmatpush1.bf16.msra.mxu0 %v14097_v44  ;;  %8716 = vmatprep.subr.bf16.mxu1 %v14102_v0  ;;  %v14154_v0 = vld [vmem:[%s18106_s12 + $0x78] sm:$0xff]  }
 0x95d   : > { %8757 = vmatprep.subr.bf16.mxu0 %v14105_v32  ;;  %v14155_v32 = vld [vmem:[%s18106_s12 + $0xf8] sm:$0xff]  }
 0x95f   : > { %8717 = vmatpush1.bf16.msra.mxu1 %v14100_v15  ;;  %v14156_v15 = vld [vmem:[%s18106_s12 + $0x38] sm:$0xff]  }
 0x960   : > { %8758 = vmatpush1.bf16.msra.mxu0 %v14103_v3  ;;  %8718 = vmatprep.subr.bf16.mxu1 %v14108_v56  ;;  %v14157_v3 = vld [vmem:[%s18106_s12 + $0xb8] sm:$0xff]   ;;  %v14158_v56 = vld [vmem:[%s18106_s12 + $0x70] sm:$0xff]  }
 0x961   : > { %8759 = vmatprep.subr.bf16.mxu0 %v14111_v21  ;;  %v14159_v21 = vld [vmem:[%s18106_s12 + $0xf0] sm:$0xff]  }
 0x963   : > { %8719 = vmatpush2.bf16.msra.mxu1 %v14106_v49  ;;  %v14160_v49 = vld [vmem:[%s18106_s12 + $0x30] sm:$0xff]  }
 0x964   : > { %8760 = vmatpush2.bf16.msra.mxu0 %v14109_v2  ;;  %8720 = vmatprep.subr.bf16.mxu1 %v14114_v16  ;;  %v14161_v2 = vld [vmem:[%s18106_s12 + $0xb0] sm:$0xff]   ;;  %v14162_v16 = vld [vmem:[%s18106_s12 + $0x68] sm:$0xff]  }
 0x965   : > { %8761 = vmatprep.subr.bf16.mxu0 %v14117_v14  ;;  %v14163_v14 = vld [vmem:[%s18106_s12 + $0xe8] sm:$0xff]  }
 0x967   : > { %8721 = vmatpush2.bf16.msra.mxu1 %v14112_v60  ;;  %v14164_v60 = vld [vmem:[%s18106_s12 + $0x28] sm:$0xff]  }
 0x968   : > { %8762 = vmatpush2.bf16.msra.mxu0 %v14115_v48  ;;  %8722 = vmatprep.subr.bf16.mxu1 %v14120_v52  ;;  %v14165_v48 = vld [vmem:[%s18106_s12 + $0xa8] sm:$0xff]   ;;  %v14166_v52 = vld [vmem:[%s18106_s12 + $0x60] sm:$0xff]  }
 0x969   : > { %8763 = vmatprep.subr.bf16.mxu0 %v14123_v31  ;;  %v14167_v31 = vld [vmem:[%s18106_s12 + $0xe0] sm:$0xff]  }
 0x96b   : > { %8723 = vmatpush2.bf16.msra.mxu1 %v14118_v19  ;;  %v14168_v19 = vld [vmem:[%s18106_s12 + $0x20] sm:$0xff]  }
 0x96c   : > { %8764 = vmatpush2.bf16.msra.mxu0 %v14121_v62  ;;  %8724 = vmatprep.subr.bf16.mxu1 %v14126_v51  ;;  %v14169_v62 = vld [vmem:[%s18106_s12 + $0xa0] sm:$0xff]   ;;  %v14170_v51 = vld [vmem:[%s18106_s12 + $0x58] sm:$0xff]  }
 0x96d   : > { %8765 = vmatprep.subr.bf16.mxu0 %v14129_v22  ;;  %v14171_v22 = vld [vmem:[%s18106_s12 + $0xd8] sm:$0xff]  }
 0x96f   : > { %8725 = vmatpush2.bf16.msra.mxu1 %v14124_v1  ;;  %v14172_v1 = vld [vmem:[%s18106_s12 + $0x18] sm:$0xff]  }
 0x970   : > { %8766 = vmatpush2.bf16.msra.mxu0 %v14127_v46  ;;  %8726 = vmatprep.subr.bf16.mxu1 %v14132_v45  ;;  %v14173_v46 = vld [vmem:[%s18106_s12 + $0x98] sm:$0xff]   ;;  %v14174_v45 = vld [vmem:[%s18106_s12 + $0x50] sm:$0xff]  }
 0x971   : > { %8767 = vmatprep.subr.bf16.mxu0 %v14135_v59  ;;  %v14175_v59 = vld [vmem:[%s18106_s12 + $0xd0] sm:$0xff]  }
 0x973   : > { %8727 = vmatpush2.bf16.msra.mxu1 %v14130_v23  ;;  %v14176_v23 = vld [vmem:[%s18106_s12 + $0x10] sm:$0xff]  }
 0x974   : > { %8768 = vmatpush2.bf16.msra.mxu0 %v14133_v38  ;;  %8728 = vmatprep.subr.bf16.mxu1 %v14138_v53  ;;  %v14177_v38 = vld [vmem:[%s18106_s12 + $0x90] sm:$0xff]   ;;  %v14178_v53 = vld [vmem:[%s18106_s12 + $0x48] sm:$0xff]  }
 0x975   : > { %8769 = vmatprep.subr.bf16.mxu0 %v14141_v40  ;;  %v14179_v40 = vld [vmem:[%s18106_s12 + $0xc8] sm:$0xff]  }
 0x977   : > { %8729 = vmatpush2.bf16.msra.mxu1 %v14136_v41  ;;  %v14180_v41 = vld [vmem:[%s18106_s12 + $0x8] sm:$0xff]  }
 0x978   : > { %8770 = vmatpush2.bf16.msra.mxu0 %v14139_v35  ;;  %8730 = vmatprep.subr.bf16.mxu1 %v14144_v20  ;;  %v14181_v35 = vld [vmem:[%s18106_s12 + $0x88] sm:$0xff]   ;;  %v14182_v20 = vld [vmem:[%s18106_s12 + $0x40] sm:$0xff]  }
 0x979   : > { %8771 = vmatprep.subr.bf16.mxu0 %v14147_v29  ;;  %v14183_v29 = vld [vmem:[%s18106_s12 + $0xc0] sm:$0xff]  }
 0x97b   : > { %8731 = vmatpush2.bf16.msra.mxu1 %v14142_v28  ;;  %v14184_v28 = vld [vmem:[%s18106_s12] sm:$0xff]  }
 0x97c   : > { %8772 = vmatpush2.bf16.msra.mxu0 %v14145_v27  ;;  %8732 = vmatprep.subr.bf16.mxu1 %v14150_v42  ;;  %v14185_v27 = vld [vmem:[%s18106_s12 + $0x80] sm:$0xff]   ;;  %v14186_v42 = vld [vmem:[%s18106_s12 + $0x178] sm:$0xff]  }
 0x97d   : > { %8773 = vmatprep.subr.bf16.mxu0 %v14153_v47  ;;  %v14187_v47 = vld [vmem:[%s18106_s12 + $0x1f8] sm:$0xff]  }
 0x97f   : > { %8733 = vmatpush2.bf16.msra.mxu1 %v14148_v7 }
 0x980   : > { %8774 = vmatpush2.bf16.msra.mxu0 %v14151_v10  ;;  %12458 = vmatprep.subr.bf16.mxu1 %v14154_v0 }
 0x981   : > { %12480 = vmatprep.subr.bf16.mxu0 %v14155_v32 }
 0x982   : > { %v7313_v50 = vpop.f32.mrf.mxu1  ;;  %8735 = vmatmul.mubr.bf16.vlgmr.msra.gmra.mxu1 %v8315_v54 }
 0x983   : > { %v7361_v24 = vadd.f32 %v7313_v50, %v17392_v6  ;;  %v7354_v13 = vpop.f32.mrf.mxu0  ;;  %8776 = vmatmul.mubr.bf16.vlgmr.msra.gmra.mxu0 %v8315_v54  ;;  %12459 = vmatpush3.bf16.msra.mxu1 %v14156_v15 }
 0x984   : > { %v7363_v25 = vadd.f32 %v7354_v13, %v17398_v43  ;;  %v7315_v30 = vpop.f32.mrf.mxu1  ;;  %12481 = vmatpush3.bf16.msra.mxu0 %v14157_v3  ;;  %12460 = vmatprep.subr.bf16.mxu1 %v14158_v56 }
 0x985   : > { %v7362_v61 = vadd.f32 %v7315_v30, %v17407_v17  ;;  %v7356_v18 = vpop.f32.mrf.mxu0  ;;  %12482 = vmatprep.subr.bf16.mxu0 %v14159_v21 }
 0x986   : > { %v7364_v37 = vadd.f32 %v7356_v18, %v17413_v33  ;;  %v7317_v58 = vpop.f32.mrf.mxu1 }
 0x987   : > { %v7358_v5 = vpop.f32.mrf.mxu0  ;;  %12461 = vmatpush3.bf16.msra.mxu1 %v14160_v49 }
 0x988   : > { %v7318_v4 = vpop.f32.mrf.mxu1  ;;  %12483 = vmatpush3.bf16.msra.mxu0 %v14161_v2  ;;  %12462 = vmatprep.subr.bf16.mxu1 %v14162_v16  ;;  %v8788_v5 = vld [vmem:[%s18105_s11] sm:$0xf] }
 0x989   : > { %v7359_v36 = vpop.f32.mrf.mxu0  ;;  %12484 = vmatprep.subr.bf16.mxu0 %v14163_v14  ;;  %v8800_v4 = vsub.s32 2, %v15790_v34 }
 0x98a   : > { %v8804_v36 = vsub.s32 3, %v15790_v34 }
 0x98b   : > { %12463 = vmatpush3.bf16.msra.mxu1 %v14164_v60 }
 0x98c   : > { %12485 = vmatpush3.bf16.msra.mxu0 %v14165_v48  ;;  %12464 = vmatprep.subr.bf16.mxu1 %v14166_v52 }
 0x98d   : > { %12486 = vmatprep.subr.bf16.mxu0 %v14167_v31 }
 0x98f   : > { %12465 = vmatpush3.bf16.msra.mxu1 %v14168_v19 }
 0x990   : > { %12487 = vmatpush3.bf16.msra.mxu0 %v14169_v62  ;;  %12466 = vmatprep.subr.bf16.mxu1 %v14170_v51 }
 0x991   : > { %12488 = vmatprep.subr.bf16.mxu0 %v14171_v22 }
 0x993   : > { %12467 = vmatpush3.bf16.msra.mxu1 %v14172_v1 }
 0x994   : > { %12489 = vmatpush3.bf16.msra.mxu0 %v14173_v46  ;;  %12468 = vmatprep.subr.bf16.mxu1 %v14174_v45 }
 0x995   : > { %12490 = vmatprep.subr.bf16.mxu0 %v14175_v59 }
 0x997   : > { %12469 = vmatpush3.bf16.msra.mxu1 %v14176_v23 }
 0x998   : > { %12491 = vmatpush3.bf16.msra.mxu0 %v14177_v38  ;;  %12470 = vmatprep.subr.bf16.mxu1 %v14178_v53 }
 0x999   : > { %12492 = vmatprep.subr.bf16.mxu0 %v14179_v40 }
 0x99b   : > { %12471 = vmatpush3.bf16.msra.mxu1 %v14180_v41 }
 0x99c   : > { %12493 = vmatpush3.bf16.msra.mxu0 %v14181_v35  ;;  %12472 = vmatprep.subr.bf16.mxu1 %v14182_v20 }
 0x99d   : > { %12494 = vmatprep.subr.bf16.mxu0 %v14183_v29 }
 0x99f   : > { %12473 = vmatpush3.bf16.msra.mxu1 %v14184_v28 }
 0x9a0   : > { %12495 = vmatpush3.bf16.msra.mxu0 %v14185_v27  ;;  %12502 = vmatprep.subr.bf16.mxu1 %v14186_v42 }
 0x9a1   : > { %12524 = vmatprep.subr.bf16.mxu0 %v14187_v47 }
 0x9c2   : > { %v7786_v11 = vpop.f32.mrf.mxu1 }
 0x9c3   : > { %v17583_v12 = vadd.f32 %v7786_v11, %v7361_v24  ;;  %v7827_v55 = vpop.f32.mrf.mxu0  ;;  %v8793_v11 = vrot.slane %v8788_v5, %v4354_v63 }
 0x9c4   : > { %v17585_v57 = vadd.f32 %v7827_v55, %v7363_v25  ;;  %v7788_v6 = vpop.f32.mrf.mxu1  ;;  %v8801_v55 = vrot.slane %v8788_v5, %v8800_v4 }
 0x9c5   : > { %v17587_v39 = vadd.f32 %v7788_v6, %v7362_v61  ;;  %v7829_v43 = vpop.f32.mrf.mxu0 }
 0x9c6   : > { %v17589_v8 = vadd.f32 %v7829_v43, %v7364_v37  ;;  %v7790_v17 = vpop.f32.mrf.mxu1 }
 0x9c7   : > { %v7831_v9 = vpop.f32.mrf.mxu0  ;;  %v8805_v17 = vrot.slane %v8788_v5, %v8804_v36 }
 0x9c8   : > { %v7791_v44 = vpop.f32.mrf.mxu1 }
 0x9c9   : > { %v7832_v33 = vpop.f32.mrf.mxu0 }
 0xa02   : > { %v8263_v7 = vpop.f32.mrf.mxu1 }
 0xa03   : > { %v8311_v10 = vadd.f32 %v8263_v7, %v17583_v12  ;;  %v8304_v54 = vpop.f32.mrf.mxu0 }
 0xa04   : > { %v8313_v50 = vadd.f32 %v8304_v54, %v17585_v57  ;;  %v8265_v24 = vpop.f32.mrf.mxu1 }
 0xa05   : > { %v8312_v13 = vadd.f32 %v8265_v24, %v17587_v39  ;;  %v8306_v25 = vpop.f32.mrf.mxu0  ;;  %v8797_v39 = vrot.slane %v8788_v5, %v4358_v26 }
 0xa06   : > { %v8314_v30 = vadd.f32 %v8306_v25, %v17589_v8  ;;  %v8267_v61 = vpop.f32.mrf.mxu1 }
 0xa07   : > { %v8308_v18 = vpop.f32.mrf.mxu0 }
 0xa08   : > { %v8268_v37 = vpop.f32.mrf.mxu1 }
 0xa09   : > { %v8309_v58 = vpop.f32.mrf.mxu0 }
 0xa42   : > { %v8736_v12 = vpop.f32.mrf.mxu1 }
 0xa43   : > { %v8784_v57 = vadd.f32 %v8736_v12, %v8311_v10  ;;  %v8777_v6 = vpop.f32.mrf.mxu0 }
 0xa44   : > { %v8786_v43 = vadd.f32 %v8777_v6, %v8313_v50  ;;  %v8738_v8 = vpop.f32.mrf.mxu1 }
 0xa45   : > { %v8810_v9 = vadd.f32 %v8793_v11, %v8784_v57  ;;  %v8785_v44 = vadd.f32 %v8738_v8, %v8312_v13  ;;  %v8779_v33 = vpop.f32.mrf.mxu0 }
 0xa46   : > { %v8812_v0 = vadd.f32 %v8801_v55, %v8786_v43  ;;  %v8787_v32 = vadd.f32 %v8779_v33, %v8314_v30  ;;  %v8740_v15 = vpop.f32.mrf.mxu1 }
 0xa47   : > { %vm8814_vm0 = vcmp.ge.f32.partialorder %v8810_v9, 0.0  ;;  %v8818_v3 = vmul.f32 0.2, %v8810_v9  ;;  %v8811_v63 = vadd.f32 %v8797_v39, %v8785_v44  ;;  %v8781_v56 = vpop.f32.mrf.mxu0 }
 0xa48   : > { %vm8816_vm2 = vcmp.ge.f32.partialorder %v8812_v0, 0.0  ;;  %v8820_v21 = vmul.f32 0.2, %v8812_v0  ;;  %v8813_v49 = vadd.f32 %v8805_v17, %v8787_v32  ;;  %v8741_v2 = vpop.f32.mrf.mxu1 }
 0xa49   : > { %v17706_v34 = vsel %vm8814_vm0, %v8810_v9, %v8818_v3  ;;  %vm8815_vm3 = vcmp.ge.f32.partialorder %v8811_v63, 0.0  ;;  %v8819_v26 = vmul.f32 0.2, %v8811_v63  ;;  %v8782_v16 = vpop.f32.mrf.mxu0 }
 0xa4a   : > { %v8827_v14 = vsel %vm8826_vm1, %v17706_v34, 0.0  ;;  %v8860_v60 = vmul.f32 %v17706_v34, %v17706_v34  ;;  %v17712_v48 = vsel %vm8816_vm2, %v8812_v0, %v8820_v21  ;;  %vm8817_vm4 = vcmp.ge.f32.partialorder %v8813_v49, 0.0 }
 0xa4b   : > { %v8828_v52 = vrot.slane %v8827_v14, 4  ;;  %v8841_v31 = vsel %vm8826_vm1, %v17712_v48, 0.0  ;;  %v8862_v19 = vmul.f32 %v17712_v48, %v17712_v48  ;;  %v17718_v62 = vsel %vm8815_vm3, %v8811_v63, %v8819_v26 }
 0xa4c   : > { %v8864_v51 = vsel %vm8826_vm1, %v8860_v60, 0.0  ;;  %v8842_v22 = vrot.slane %v8841_v31, 4  ;;  %v8834_v1 = vsel %vm8826_vm1, %v17718_v62, 0.0  ;;  %v8861_v46 = vmul.f32 %v17718_v62, %v17718_v62 }
 0xa4d   : > { %v8829_v45 = vadd.f32 %v8828_v52, %v8827_v14  ;;  %v8865_v59 = vrot.slane %v8864_v51, 4  ;;  %v8878_v23 = vsel %vm8826_vm1, %v8862_v19, 0.0  ;;  %v8835_v38 = vrot.slane %v8834_v1, 4 }
 0xa4e   : > { %v8843_v53 = vadd.f32 %v8842_v22, %v8841_v31  ;;  %v8879_v40 = vrot.slane %v8878_v23, 4  ;;  %v8871_v41 = vsel %vm8826_vm1, %v8861_v46, 0.0  ;;  %v8821_v35 = vmul.f32 0.2, %v8813_v49 }
 0xa4f   : > { %v8830_v20 = vrot.slane %v8829_v45, 2  ;;  %v8866_v29 = vadd.f32 %v8865_v59, %v8864_v51  ;;  %v8836_v28 = vadd.f32 %v8835_v38, %v8834_v1  ;;  %v8872_v27 = vrot.slane %v8871_v41, 4 }
 0xa50   : > { %v8844_v42 = vrot.slane %v8843_v53, 2  ;;  %v8880_v47 = vadd.f32 %v8879_v40, %v8878_v23  ;;  %v17728_v7 = vsel %vm8817_vm4, %v8813_v49, %v8821_v35 }
 0xa51   : > { %v8831_v10 = vadd.f32 %v8830_v20, %v8829_v45  ;;  %v8867_v54 = vrot.slane %v8866_v29, 2  ;;  %v8837_v50 = vrot.slane %v8836_v28, 2  ;;  %v8873_v24 = vadd.f32 %v8872_v27, %v8871_v41 }
 0xa52   : > { %v8845_v13 = vadd.f32 %v8844_v42, %v8843_v53  ;;  %v8881_v25 = vrot.slane %v8880_v47, 2  ;;  %v8848_v30 = vsel %vm8826_vm1, %v17728_v7, 0.0  ;;  %v8863_v61 = vmul.f32 %v17728_v7, %v17728_v7 }
 0xa53   : > { %v8832_v18 = vrot.slane %v8831_v10, 1  ;;  %v8868_v37 = vadd.f32 %v8867_v54, %v8866_v29  ;;  %v8874_v58 = vrot.slane %v8873_v24, 2  ;;  %v8849_v5 = vrot.slane %v8848_v30, 4 }
 0xa54   : > { %v8846_v4 = vrot.slane %v8845_v13, 1  ;;  %v8882_v36 = vadd.f32 %v8881_v25, %v8880_v47  ;;  %v8885_v11 = vsel %vm8826_vm1, %v8863_v61, 0.0  ;;  %v8838_v12 = vadd.f32 %v8837_v50, %v8836_v28 }
 0xa55   : > { %v8833_v55 = vadd.f32 %v8832_v18, %v8831_v10  ;;  %v8869_v57 = vrot.slane %v8868_v37, 1  ;;  %v8875_v6 = vadd.f32 %v8874_v58, %v8873_v24  ;;  %v8850_v39 = vadd.f32 %v8849_v5, %v8848_v30  ;;  %v14188_v58 = vld [vmem:[%s18106_s12 + $0x138] sm:$0xff]  }
 0xa56   : > { %v8847_v43 = vadd.f32 %v8846_v4, %v8845_v13  ;;  %v8883_v8 = vrot.slane %v8882_v36, 1  ;;  %v8886_v17 = vrot.slane %v8885_v11, 4  ;;  %v8839_v9 = vrot.slane %v8838_v12, 1 }
 0xa57   : > { %v8856_v44 = vmul.f32 0.25, %v8833_v55  ;;  %v8870_v33 = vadd.f32 %v8869_v57, %v8868_v37  ;;  %v8876_v0 = vrot.slane %v8875_v6, 1  ;;  %v8851_v32 = vrot.slane %v8850_v39, 2 }
 0xa58   : > { %v8858_v15 = vmul.f32 0.25, %v8847_v43  ;;  %v8884_v3 = vadd.f32 %v8883_v8, %v8882_v36  ;;  %v8887_v63 = vadd.f32 %v8886_v17, %v8885_v11  ;;  %v8840_v56 = vadd.f32 %v8839_v9, %v8838_v12  ;;  %v14191_v43 = vld [vmem:[%s18106_s12 + $0x1f0] sm:$0xff]   ;;  %v14196_v17 = vld [vmem:[%s18106_s12 + $0x128] sm:$0xff]   ;;  %v14198_v9 = vld [vmem:[%s18106_s12 + $0x160] sm:$0xff]  }
 0xa59   : > { %v8892_v21 = vmul.f32 0.25, %v8870_v33  ;;  %v8896_v49 = vmul.f32 %v8856_v44, %v8856_v44  ;;  %v8877_v2 = vadd.f32 %v8876_v0, %v8875_v6  ;;  %v8852_v19 = vadd.f32 %v8851_v32, %v8850_v39  ;;  %v14189_v6 = vld [vmem:[%s18106_s12 + $0x1b8] sm:$0xff]   ;;  %v14195_v33 = vld [vmem:[%s18106_s12 + $0x1e8] sm:$0xff]   ;;  %v14200_v0 = vld [vmem:[%s18106_s12 + $0x120] sm:$0xff]  }
 0xa5a   : > { %v8894_v26 = vmul.f32 0.25, %v8884_v3  ;;  %v8898_v16 = vmul.f32 %v8858_v15, %v8858_v15  ;;  %v8888_v14 = vrot.slane %v8887_v63, 2  ;;  %v8857_v52 = vmul.f32 0.25, %v8840_v56  ;;  %v14202_v32 = vld [vmem:[%s18106_s12 + $0x158] sm:$0xff]   ;;  %v14199_v3 = vld [vmem:[%s18106_s12 + $0x1e0] sm:$0xff]   ;;  %v14206_v56 = vld [vmem:[%s18106_s12 + $0x150] sm:$0xff]  }
 0xa5b   : > { %v8900_v60 = vsub.f32 %v8892_v21, %v8896_v49  ;;  %v8893_v31 = vmul.f32 0.25, %v8877_v2  ;;  %v8853_v45 = vrot.slane %v8852_v19, 1  ;;  %v8908_v24 = vsub.f32 %v17706_v34, %v8856_v44  ;;  %v14190_v34 = vld [vmem:[%s18106_s12 + $0x170] sm:$0xff]   ;;  %v14201_v21 = vld [vmem:[%s18106_s12 + $0x1a0] sm:$0xff]   ;;  %v14203_v49 = vld [vmem:[%s18106_s12 + $0x1d8] sm:$0xff]  }
 0xa5c   : > { %v8902_v51 = vsub.f32 %v8894_v26, %v8898_v16  ;;  %v8889_v22 = vadd.f32 %v8888_v14, %v8887_v63  ;;  %v8897_v46 = vmul.f32 %v8857_v52, %v8857_v52  ;;  %v8909_v13 = vsub.f32 %v17718_v62, %v8857_v52  ;;  %v14193_v44 = vld [vmem:[%s18106_s12 + $0x1b0] sm:$0xff]   ;;  %v14204_v63 = vld [vmem:[%s18106_s12 + $0x118] sm:$0xff]   ;;  %v14210_v26 = vld [vmem:[%s18106_s12 + $0x148] sm:$0xff]  }
 0xa5d   : > { %v8904_v1 = vmax.f32 %v8900_v60, 0.0  ;;  %v8854_v53 = vadd.f32 %v8853_v45, %v8852_v19  ;;  %v8910_v4 = vsub.f32 %v17712_v48, %v8858_v15  ;;  %v14192_v48 = vld [vmem:[%s18106_s12 + $0x130] sm:$0xff]   ;;  %v14197_v15 = vld [vmem:[%s18106_s12 + $0x1a8] sm:$0xff]   ;;  %v14205_v16 = vld [vmem:[%s18106_s12 + $0x198] sm:$0xff]  }
 0xa5e   : > { %v8890_v59 = vrot.slane %v8889_v22, 1  ;;  %v8901_v38 = vsub.f32 %v8893_v31, %v8897_v46  ;;  %v8906_v40 = vmax.f32 %v8902_v51, 0.0  ;;  %v14208_v2 = vld [vmem:[%s18106_s12 + $0x110] sm:$0xff]   ;;  %v14212_v60 = vld [vmem:[%s18106_s12 + $0x108] sm:$0xff]   ;;  %v14214_v52 = vld [vmem:[%s18106_s12 + $0x140] sm:$0xff]  }
 0xa5f   : > { %v8912_v23 = vadd.f32 1e-05, %v8904_v1  ;;  %v8859_v20 = vmul.f32 0.25, %v8854_v53  ;;  %v14207_v14 = vld [vmem:[%s18106_s12 + $0x1d0] sm:$0xff]   ;;  %v14211_v19 = vld [vmem:[%s18106_s12 + $0x1c8] sm:$0xff]   ;;  %v14216_v51 = vld [vmem:[%s18106_s12 + $0x100] sm:$0xff]  }
 0xa60   : > { %v8891_v41 = vadd.f32 %v8890_v59, %v8889_v22  ;;  %v8905_v35 = vmax.f32 %v8901_v38, 0.0  ;;  %v8914_v42 = vadd.f32 1e-05, %v8906_v40  ;;  %v14209_v31 = vld [vmem:[%s18106_s12 + $0x190] sm:$0xff]   ;;  %v14218_v22 = vld [vmem:[%s18106_s12 + $0x278] sm:$0xff]   ;;  %v14213_v1 = vld [vmem:[%s18106_s12 + $0x188] sm:$0xff]  }
 0xa61   : > { %14288 = vrsqrt.f32 %v8912_v23  ;;  %v8899_v27 = vmul.f32 %v8859_v20, %v8859_v20  ;;  %v8911_v62 = vsub.f32 %v17728_v7, %v8859_v20  ;;  %v14194_v7 = vld [vmem:[%s18106_s12 + $0x168] sm:$0xff]   ;;  %v14215_v46 = vld [vmem:[%s18106_s12 + $0x1c0] sm:$0xff]   ;;  %v14220_v45 = vld [vmem:[%s18106_s12 + $0x238] sm:$0xff]  }
 0xa62   : > { %v8895_v29 = vmul.f32 0.25, %v8891_v41  ;;  %v8913_v28 = vadd.f32 1e-05, %v8905_v35  ;;  %v14222_v23 = vld [vmem:[%s18106_s12 + $0x270] sm:$0xff]   ;;  %v14217_v38 = vld [vmem:[%s18106_s12 + $0x180] sm:$0xff]   ;;  %v14219_v40 = vld [vmem:[%s18106_s12 + $0x2f8] sm:$0xff]  }
 0xa63   : > { %v14224_v41 = vld [vmem:[%s18106_s12 + $0x230] sm:$0xff]   ;;  %v14226_v35 = vld [vmem:[%s18106_s12 + $0x268] sm:$0xff]   ;;  %v14221_v20 = vld [vmem:[%s18106_s12 + $0x2b8] sm:$0xff]  }
 0xa64   : > { %14290 = vrsqrt.f32 %v8913_v28  ;;  %v8903_v47 = vsub.f32 %v8895_v29, %v8899_v27  ;;  %v14223_v28 = vld [vmem:[%s18106_s12 + $0x2f0] sm:$0xff]  }
 0xa65   : > { %14292 = vrsqrt.f32 %v8914_v42  ;;  %v14228_v42 = vld [vmem:[%s18106_s12 + $0x228] sm:$0xff]  }
 0xa66   : > { %v8907_v10 = vmax.f32 %v8903_v47, 0.0  ;;  %v14230_v47 = vld [vmem:[%s18106_s12 + $0x260] sm:$0xff]  }
 0xa68   : > { %v8915_v54 = vadd.f32 1e-05, %v8907_v10  ;;  %v14225_v10 = vld [vmem:[%s18106_s12 + $0x2b0] sm:$0xff]  }
 0xa6a   : > { %14294 = vrsqrt.f32 %v8915_v54  ;;  %v14227_v54 = vld [vmem:[%s18106_s12 + $0x2e8] sm:$0xff]  }
 0xa6e   : > { %v14289_v50 = vpop.eup %14288 }
 0xa6f   : > { %v8920_v30 = vmul.f32 %v14289_v50, %v8908_v24  ;;  %v14232_v50 = vld [vmem:[%s18106_s12 + $0x220] sm:$0xff]   ;;  %v14234_v24 = vld [vmem:[%s18106_s12 + $0x258] sm:$0xff]  }
 0xa71   : > { %v14291_v25 = vpop.eup %14290  ;;  %v17742_v5 = vpack.c.bf16 %v8920_v30, %v8920_v30  ;;  %v14236_v30 = vld [vmem:[%s18106_s12 + $0x218] sm:$0xff]  }
 0xa72   : > { %v8921_v61 = vmul.f32 %v14291_v25, %v8909_v13  ;;  %v14293_v18 = vpop.eup %14292  ;;  %v14229_v13 = vld [vmem:[%s18106_s12 + $0x2a8] sm:$0xff]   ;;  %v14231_v25 = vld [vmem:[%s18106_s12 + $0x2e0] sm:$0xff]  }
 0xa73   : > { %v8922_v12 = vmul.f32 %v14293_v18, %v8910_v4  ;;  %v9332_v59 = vshrl.u32 %v17742_v5, 16  ;;  %v14233_v18 = vld [vmem:[%s18106_s12 + $0x2a0] sm:$0xff]   ;;  %v14240_v4 = vld [vmem:[%s18106_s12 + $0x210] sm:$0xff]  }
 0xa74   : > { %v17737_v37 = vpack.c.bf16 %v8921_v61, %v8921_v61  ;;  %v14238_v61 = vld [vmem:[%s18106_s12 + $0x250] sm:$0xff]  }
 0xa75   : > { %v17765_v39 = vpack.c.bf16 %v8922_v12, %v8922_v12  ;;  %v14244_v12 = vld [vmem:[%s18106_s12 + $0x208] sm:$0xff]  }
 0xa76   : > { %9217 = vmatprep.mubr.bf16.mxu1 %v17737_v37  ;;  %v9335_v36 = vshrl.u32 %v17737_v37, 16  ;;  %v9690_v53 = vrot.slane %v17737_v37, 1  ;;  %v14253_v37 = vld [vmem:[%s18106_s12 + $0x3b8] sm:$0xff]  }
 0xa77   : > { %v14295_v11 = vpop.eup %14294  ;;  %9218 = vmatmul.mubr.bf16.vlgmr.msra.gmra.mxu1 %v17742_v5  ;;  %v9338_v29 = vshrl.u32 %v17765_v39, 16 }
 0xa78   : > { %v8923_v55 = vmul.f32 %v14295_v11, %v8911_v62  ;;  %12503 = vmatpush3.bf16.msra.mxu1 %v14188_v58  ;;  %9571 = vmatprep.mubr.bf16.mxu1 %v9335_v36  ;;  %v14235_v58 = vld [vmem:[%s18106_s12 + $0x2d8] sm:$0xff]   ;;  %v14239_v11 = vld [vmem:[%s18106_s12 + $0x2d0] sm:$0xff]  }
 0xa79   : > { %12504 = vmatprep.subr.bf16.mxu1 %v14190_v34  ;;  %v14242_v34 = vld [vmem:[%s18106_s12 + $0x248] sm:$0xff]   ;;  %v14237_v62 = vld [vmem:[%s18106_s12 + $0x298] sm:$0xff]  }
 0xa7a   : > { %v17760_v57 = vpack.c.bf16 %v8923_v55, %v8923_v55  ;;  %v14246_v55 = vld [vmem:[%s18106_s12 + $0x240] sm:$0xff]  }
 0xa7c   : > { %9257 = vmatprep.mubr.bf16.mxu0 %v17760_v57  ;;  %v9341_v8 = vshrl.u32 %v17760_v57, 16  ;;  %12505 = vmatpush3.bf16.msra.mxu1 %v14192_v48  ;;  %v9692_v27 = vrot.slane %v17760_v57, 1  ;;  %v14241_v48 = vld [vmem:[%s18106_s12 + $0x290] sm:$0xff]   ;;  %v14259_v57 = vld [vmem:[%s18106_s12 + $0x3e8] sm:$0xff]  }
 0xa7d   : > { %9258 = vmatmul.mubr.bf16.vlgmr.msra.gmra.mxu0 %v17765_v39  ;;  %12506 = vmatprep.subr.bf16.mxu1 %v14194_v7  ;;  %v14243_v7 = vld [vmem:[%s18106_s12 + $0x2c8] sm:$0xff]  }
 0xa7e   : > { %12525 = vmatpush3.bf16.msra.mxu0 %v14189_v6  ;;  %9611 = vmatprep.mubr.bf16.mxu0 %v9341_v8  ;;  %v14248_v6 = vld [vmem:[%s18106_s12 + $0x200] sm:$0xff]  }
 0xa7f   : > { %12526 = vmatprep.subr.bf16.mxu0 %v14191_v43  ;;  %v14250_v43 = vld [vmem:[%s18106_s12 + $0x378] sm:$0xff]  }
 0xa80   : > { %12507 = vmatpush3.bf16.msra.mxu1 %v14196_v17  ;;  %v14245_v17 = vld [vmem:[%s18106_s12 + $0x288] sm:$0xff]  }
 0xa81   : > { %12508 = vmatprep.subr.bf16.mxu1 %v14198_v9  ;;  %v14247_v9 = vld [vmem:[%s18106_s12 + $0x2c0] sm:$0xff]  }
 0xa82   : > { %12527 = vmatpush3.bf16.msra.mxu0 %v14193_v44  ;;  %v14252_v44 = vld [vmem:[%s18106_s12 + $0x338] sm:$0xff]  }
 0xa83   : > { %12528 = vmatprep.subr.bf16.mxu0 %v14195_v33  ;;  %v9689_v33 = vrot.slane %v17742_v5, 1 }
 0xa84   : > { %12509 = vmatpush3.bf16.msra.mxu1 %v14200_v0  ;;  %v14254_v0 = vld [vmem:[%s18106_s12 + $0x370] sm:$0xff]  }
 0xa85   : > { %12510 = vmatprep.subr.bf16.mxu1 %v14202_v32  ;;  %v14249_v32 = vld [vmem:[%s18106_s12 + $0x280] sm:$0xff]  }
 0xa86   : > { %12529 = vmatpush3.bf16.msra.mxu0 %v14197_v15  ;;  %v10036_v15 = vrot.slane %v9335_v36, 1  ;;  %v9691_v36 = vrot.slane %v17765_v39, 1  ;;  %v8928_v39 = vld [vmem:[%s18107_s13] sm:$0x1] }
 0xa87   : > { %12530 = vmatprep.subr.bf16.mxu0 %v14199_v3  ;;  %v14251_v3 = vld [vmem:[%s18106_s12 + $0x3f8] sm:$0xff]  }
 0xa88   : > { %12511 = vmatpush3.bf16.msra.mxu1 %v14204_v63  ;;  %v14256_v63 = vld [vmem:[%s18106_s12 + $0x330] sm:$0xff]  }
 0xa89   : > { %12512 = vmatprep.subr.bf16.mxu1 %v14206_v56  ;;  %v14258_v56 = vld [vmem:[%s18106_s12 + $0x368] sm:$0xff]  }
 0xa8a   : > { %12531 = vmatpush3.bf16.msra.mxu0 %v14201_v21  ;;  %v14255_v21 = vld [vmem:[%s18106_s12 + $0x3f0] sm:$0xff]  }
 0xa8b   : > { %12532 = vmatprep.subr.bf16.mxu0 %v14203_v49  ;;  %v10038_v49 = vrot.slane %v9341_v8, 1  ;;  %v14264_v8 = vld [vmem:[%s18106_s12 + $0x320] sm:$0xff]  }
 0xa8c   : > { %12513 = vmatpush3.bf16.msra.mxu1 %v14208_v2  ;;  %v14260_v2 = vld [vmem:[%s18106_s12 + $0x328] sm:$0xff]  }
 0xa8d   : > { %12514 = vmatprep.subr.bf16.mxu1 %v14210_v26  ;;  %v14262_v26 = vld [vmem:[%s18106_s12 + $0x360] sm:$0xff]  }
 0xa8e   : > { %12533 = vmatpush3.bf16.msra.mxu0 %v14205_v16  ;;  %v14257_v16 = vld [vmem:[%s18106_s12 + $0x3b0] sm:$0xff]  }
 0xa8f   : > { %12534 = vmatprep.subr.bf16.mxu0 %v14207_v14  ;;  %v14266_v14 = vld [vmem:[%s18106_s12 + $0x358] sm:$0xff]  }
 0xa90   : > { %12515 = vmatpush3.bf16.msra.mxu1 %v14212_v60  ;;  %v14261_v60 = vld [vmem:[%s18106_s12 + $0x3a8] sm:$0xff]  }
 0xa91   : > { %12516 = vmatprep.subr.bf16.mxu1 %v14214_v52  ;;  %v14263_v52 = vld [vmem:[%s18106_s12 + $0x3e0] sm:$0xff]  }
 0xa92   : > { %12535 = vmatpush3.bf16.msra.mxu0 %v14209_v31  ;;  %v14268_v31 = vld [vmem:[%s18106_s12 + $0x318] sm:$0xff]  }
 0xa93   : > { %12536 = vmatprep.subr.bf16.mxu0 %v14211_v19  ;;  %v14270_v19 = vld [vmem:[%s18106_s12 + $0x350] sm:$0xff]  }
 0xa94   : > { %12517 = vmatpush3.bf16.msra.mxu1 %v14216_v51  ;;  %v14265_v51 = vld [vmem:[%s18106_s12 + $0x3a0] sm:$0xff]  }
 0xa95   : > { %12546 = vmatprep.subr.bf16.mxu1 %v14218_v22  ;;  %v14267_v22 = vld [vmem:[%s18106_s12 + $0x3d8] sm:$0xff]  }
 0xa96   : > { %12537 = vmatpush3.bf16.msra.mxu0 %v14213_v1  ;;  %v14272_v1 = vld [vmem:[%s18106_s12 + $0x310] sm:$0xff]  }
 0xa97   : > { %12538 = vmatprep.subr.bf16.mxu0 %v14215_v46  ;;  %9572 = vmatmul.mubr.bf16.vlgmr.msra.gmra.mxu1 %v9332_v59  ;;  %v14274_v46 = vld [vmem:[%s18106_s12 + $0x348] sm:$0xff]  }
 0xa98   : > { %12547 = vmatpush3.bf16.msra.mxu1 %v14220_v45  ;;  %9921 = vmatprep.mubr.bf16.mxu1 %v9690_v53  ;;  %v14269_v45 = vld [vmem:[%s18106_s12 + $0x398] sm:$0xff]   ;;  %v14278_v53 = vld [vmem:[%s18106_s12 + $0x340] sm:$0xff]  }
 0xa99   : > { %12548 = vmatprep.subr.bf16.mxu1 %v14222_v23  ;;  %v14271_v23 = vld [vmem:[%s18106_s12 + $0x3d0] sm:$0xff]  }
 0xa9a   : > { %12539 = vmatpush3.bf16.msra.mxu0 %v14217_v38  ;;  %v14276_v38 = vld [vmem:[%s18106_s12 + $0x308] sm:$0xff]  }
 0xa9b   : > { %12568 = vmatprep.subr.bf16.mxu0 %v14219_v40  ;;  %v14273_v40 = vld [vmem:[%s18106_s12 + $0x390] sm:$0xff]  }
 0xa9c   : > { %12549 = vmatpush3.bf16.msra.mxu1 %v14224_v41  ;;  %v14275_v41 = vld [vmem:[%s18106_s12 + $0x3c8] sm:$0xff]  }
 0xa9d   : > { %9612 = vmatmul.mubr.bf16.vlgmr.msra.gmra.mxu0 %v9338_v29  ;;  %12550 = vmatprep.subr.bf16.mxu1 %v14226_v35  ;;  %v14280_v35 = vld [vmem:[%s18106_s12 + $0x300] sm:$0xff]  }
 0xa9e   : > { %12569 = vmatpush3.bf16.msra.mxu0 %v14221_v20  ;;  %9961 = vmatprep.mubr.bf16.mxu0 %v9692_v27  ;;  %v14277_v20 = vld [vmem:[%s18106_s12 + $0x388] sm:$0xff]   ;;  %v10035_v27 = vrot.slane %v9332_v59, 1 }
 0xa9f   : > { %12570 = vmatprep.subr.bf16.mxu0 %v14223_v28  ;;  %v14279_v28 = vld [vmem:[%s18106_s12 + $0x3c0] sm:$0xff]  }
 0xaa0   : > { %12551 = vmatpush3.bf16.msra.mxu1 %v14228_v42  ;;  %v14281_v42 = vld [vmem:[%s18106_s12 + $0x380] sm:$0xff]  }
 0xaa1   : > { %12552 = vmatprep.subr.bf16.mxu1 %v14230_v47  ;;  %v10037_v47 = vrot.slane %v9338_v29, 1 }
 0xaa2   : > { %12571 = vmatpush3.bf16.msra.mxu0 %v14225_v10 }
 0xaa3   : > { %12572 = vmatprep.subr.bf16.mxu0 %v14227_v54 }
 0xaa4   : > { %12553 = vmatpush3.bf16.msra.mxu1 %v14232_v50 }
 0xaa5   : > { %12554 = vmatprep.subr.bf16.mxu1 %v14234_v24 }
 0xaa6   : > { %12573 = vmatpush3.bf16.msra.mxu0 %v14229_v13 }
 0xaa7   : > { %12574 = vmatprep.subr.bf16.mxu0 %v14231_v25 }
 0xaa8   : > { %12555 = vmatpush3.bf16.msra.mxu1 %v14236_v30 }
 0xaa9   : > { %12556 = vmatprep.subr.bf16.mxu1 %v14238_v61 }
 0xaaa   : > { %12575 = vmatpush3.bf16.msra.mxu0 %v14233_v18 }
 0xaab   : > { %12576 = vmatprep.subr.bf16.mxu0 %v14235_v58 }
 0xaac   : > { %12557 = vmatpush3.bf16.msra.mxu1 %v14240_v4 }
 0xaad   : > { %12558 = vmatprep.subr.bf16.mxu1 %v14242_v34 }
 0xaae   : > { %12577 = vmatpush3.bf16.msra.mxu0 %v14237_v62 }
 0xaaf   : > { %12578 = vmatprep.subr.bf16.mxu0 %v14239_v11 }
 0xab0   : > { %12559 = vmatpush3.bf16.msra.mxu1 %v14244_v12 }
 0xab1   : > { %12560 = vmatprep.subr.bf16.mxu1 %v14246_v55 }
 0xab2   : > { %12579 = vmatpush3.bf16.msra.mxu0 %v14241_v48 }
 0xab3   : > { %12580 = vmatprep.subr.bf16.mxu0 %v14243_v7 }
 0xab4   : > { %12561 = vmatpush3.bf16.msra.mxu1 %v14248_v6 }
 0xab5   : > { %12590 = vmatprep.subr.bf16.mxu1 %v14250_v43 }
 0xab6   : > { %12581 = vmatpush3.bf16.msra.mxu0 %v14245_v17 }
 0xab7   : > { %12582 = vmatprep.subr.bf16.mxu0 %v14247_v9  ;;  %9922 = vmatmul.mubr.bf16.vlgmr.msra.gmra.mxu1 %v9689_v33 }
 0xab8   : > { %12591 = vmatpush3.bf16.msra.mxu1 %v14252_v44  ;;  %10267 = vmatprep.mubr.bf16.mxu1 %v10036_v15 }
 0xab9   : > { %12592 = vmatprep.subr.bf16.mxu1 %v14254_v0 }
 0xaba   : > { %12583 = vmatpush3.bf16.msra.mxu0 %v14249_v32 }
 0xabb   : > { %12612 = vmatprep.subr.bf16.mxu0 %v14251_v3 }
 0xabc   : > { %12593 = vmatpush3.bf16.msra.mxu1 %v14256_v63 }
 0xabd   : > { %9962 = vmatmul.mubr.bf16.vlgmr.msra.gmra.mxu0 %v9691_v36  ;;  %12594 = vmatprep.subr.bf16.mxu1 %v14258_v56 }
 0xabe   : > { %12613 = vmatpush3.bf16.msra.mxu0 %v14253_v37  ;;  %10307 = vmatprep.mubr.bf16.mxu0 %v10038_v49 }
 0xabf   : > { %12614 = vmatprep.subr.bf16.mxu0 %v14255_v21 }
 0xac0   : > { %12595 = vmatpush3.bf16.msra.mxu1 %v14260_v2 }
 0xac1   : > { %12596 = vmatprep.subr.bf16.mxu1 %v14262_v26 }
 0xac2   : > { %12615 = vmatpush3.bf16.msra.mxu0 %v14257_v16 }
 0xac3   : > { %12616 = vmatprep.subr.bf16.mxu0 %v14259_v57 }
 0xac4   : > { %12597 = vmatpush3.bf16.msra.mxu1 %v14264_v8 }
 0xac5   : > { %12598 = vmatprep.subr.bf16.mxu1 %v14266_v14 }
 0xac6   : > { %12617 = vmatpush3.bf16.msra.mxu0 %v14261_v60 }
 0xac7   : > { %12618 = vmatprep.subr.bf16.mxu0 %v14263_v52 }
 0xac8   : > { %12599 = vmatpush3.bf16.msra.mxu1 %v14268_v31 }
 0xac9   : > { %12600 = vmatprep.subr.bf16.mxu1 %v14270_v19 }
 0xaca   : > { %12619 = vmatpush3.bf16.msra.mxu0 %v14265_v51 }
 0xacb   : > { %12620 = vmatprep.subr.bf16.mxu0 %v14267_v22 }
 0xacc   : > { %12601 = vmatpush3.bf16.msra.mxu1 %v14272_v1 }
 0xacd   : > { %12602 = vmatprep.subr.bf16.mxu1 %v14274_v46 }
 0xace   : > { %12621 = vmatpush3.bf16.msra.mxu0 %v14269_v45 }
 0xacf   : > { %12622 = vmatprep.subr.bf16.mxu0 %v14271_v23 }
 0xad0   : > { %12603 = vmatpush3.bf16.msra.mxu1 %v14276_v38 }
 0xad1   : > { %12604 = vmatprep.subr.bf16.mxu1 %v14278_v53 }
 0xad2   : > { %12623 = vmatpush3.bf16.msra.mxu0 %v14273_v40 }
 0xad3   : > { %12624 = vmatprep.subr.bf16.mxu0 %v14275_v41 }
 0xad4   : > { %12605 = vmatpush3.bf16.msra.mxu1 %v14280_v35 }
 0xad6   : > { %12625 = vmatpush3.bf16.msra.mxu0 %v14277_v20 }
 0xad7   : > { %12626 = vmatprep.subr.bf16.mxu0 %v14279_v28  ;;  %10268 = vmatmul.mubr.bf16.vlgmr.msra.gmra.mxu1 %v10035_v27 }
 0xada   : > { %12627 = vmatpush3.bf16.msra.mxu0 %v14281_v42 }
 0xadd   : > { %10308 = vmatmul.mubr.bf16.vlgmr.msra.gmra.mxu0 %v10037_v47 }
 0xb37   : > { %v12474_v10 = vpop.f32.mrf.mxu1 }
 0xb39   : > { %v12475_v54 = vpop.f32.mrf.mxu1 }
 0xb3a   : > { %v12476_v50 = vadd.f32 %v12475_v54, %v12474_v10 }
 0xb3b   : > { %v12477_v24 = vpop.f32.mrf.mxu1 }
 0xb3d   : > { %v12496_v13 = vpop.f32.mrf.mxu0  ;;  %v12478_v25 = vpop.f32.mrf.mxu1 }
 0xb3f   : > { %v12497_v5 = vpop.f32.mrf.mxu0 }
 0xb40   : > { %v12498_v59 = vadd.f32 %v12497_v5, %v12496_v13 }
 0xb41   : > { %v12499_v30 = vpop.f32.mrf.mxu0 }
 0xb42   : > { %v9260_v61 = vadd.f32 %v12498_v59, %v12476_v50 }
 0xb43   : > { %v12500_v18 = vpop.f32.mrf.mxu0 }
 0xb44   : > { %v9265_v7 = vadd.f32 %v9260_v61, %v8928_v39 }
 0xb57   : > { %v12518_v58 = vpop.f32.mrf.mxu1 }
 0xb59   : > { %v12519_v4 = vpop.f32.mrf.mxu1 }
 0xb5a   : > { %v12520_v34 = vadd.f32 %v12519_v4, %v12518_v58 }
 0xb5b   : > { %v12521_v62 = vpop.f32.mrf.mxu1 }
 0xb5d   : > { %v12540_v11 = vpop.f32.mrf.mxu0  ;;  %v12522_v12 = vpop.f32.mrf.mxu1 }
 0xb5f   : > { %v12541_v29 = vpop.f32.mrf.mxu0 }
 0xb60   : > { %v12542_v55 = vadd.f32 %v12541_v29, %v12540_v11 }
 0xb61   : > { %v12543_v48 = vpop.f32.mrf.mxu0 }
 0xb62   : > { %v9614_v6 = vadd.f32 %v12542_v55, %v12520_v34 }
 0xb63   : > { %v12544_v43 = vpop.f32.mrf.mxu0 }
 0xb64   : > { %v9619_v17 = vadd.f32 %v9614_v6, %v9265_v7 }
 0xb77   : > { %v12562_v9 = vpop.f32.mrf.mxu1 }
 0xb79   : > { %v12563_v44 = vpop.f32.mrf.mxu1 }
 0xb7a   : > { %v12564_v36 = vadd.f32 %v12563_v44, %v12562_v9 }
 0xb7b   : > { %v12565_v33 = vpop.f32.mrf.mxu1 }
 0xb7d   : > { %v12584_v0 = vpop.f32.mrf.mxu0  ;;  %v12566_v32 = vpop.f32.mrf.mxu1 }
 0xb7f   : > { %v12585_v15 = vpop.f32.mrf.mxu0 }
 0xb80   : > { %v12586_v21 = vadd.f32 %v12585_v15, %v12584_v0 }
 0xb81   : > { %v12587_v3 = vpop.f32.mrf.mxu0 }
 0xb82   : > { %v9964_v16 = vadd.f32 %v12586_v21, %v12564_v36 }
 0xb83   : > { %v12588_v63 = vpop.f32.mrf.mxu0 }
 0xb84   : > { %v9969_v31 = vadd.f32 %v9964_v16, %v9619_v17 }
 0xb97   : > { %v12606_v56 = vpop.f32.mrf.mxu1 }
 0xb99   : > { %v12607_v37 = vpop.f32.mrf.mxu1 }
 0xb9a   : > { %v12608_v57 = vadd.f32 %v12607_v37, %v12606_v56 }
 0xb9b   : > { %v12609_v49 = vpop.f32.mrf.mxu1 }
 0xb9d   : > { %v12628_v2 = vpop.f32.mrf.mxu0  ;;  %v12610_v26 = vpop.f32.mrf.mxu1 }
 0xb9f   : > { %v12629_v8 = vpop.f32.mrf.mxu0 }
 0xba0   : > { %v12630_v14 = vadd.f32 %v12629_v8, %v12628_v2 }
 0xba1   : > { %v12631_v60 = vpop.f32.mrf.mxu0 }
 0xba2   : > { %v10310_v52 = vadd.f32 %v12630_v14, %v12608_v57 }
 0xba3   : > { %v12632_v19 = vpop.f32.mrf.mxu0 }
 0xba4   : > { %v10315_v51 = vadd.f32 %v10310_v52, %v9969_v31 }
 0xba6   : > { %v10317_v22 = vsel %vm10316_vm5, %v10315_v51, -inf }
 0xba7   : > { %10318 = vmax.xlane.f32.xlu0 %v10317_v22 }
 0xc30   : > { %v10319_v1 = vpop.xlane.xlu0 %10318 }
 0xc31   : > { %v10320_v46 = vsub.f32 %v10315_v51, %v10319_v1 }
 0xc33   : > { %v10321_v45 = vmul.f32 1.442695, %v10320_v46 }
 0xc35   : > { %14296 = vpow2.f32 %v10321_v45 }
 0xc42   : > { %v14297_v23 = vpop.eup %14296 }
 0xc43   : > { %v10323_v38 = vsel %vm10316_vm5, %v14297_v23, 0.0 }
 0xc44   : > { %10324 = vadd.xlane.f32.xlu0 %v10323_v38 }
 0xccd   : > { %v10325_v53 = vpop.xlane.xlu0 %10324 }
 0xcce   : > { %14298 = vrcp.f32 %v10325_v53 }
 0xcdb   : > { %v14299_v40 = vpop.eup %14298 }
 0xcdc   : > { %v10327_v41 = vmul.f32 %v14299_v40, %v14297_v23 }
 0xcde   : > { %10328 = vst [vmem:[%s459_s26] sm:$0x1] %v10327_v41 }
 0xcdf   : > { %14313 = shalt.err (!%p14310_p3)
}
 0xce0   : > { %s14314_s2 = scalar_lea.hbm %s10340_s0, 16  ;;  %s14318_s26 = scalar_lea.hbm %s18108_s14, 32 }
 0xce1   : > { %p14315_p4 = scmp.ne.s32.totalorder %s10340_s0, %s14314_s2  ;;  %p14319_p9 = scmp.lt.s32.totalorder %s10340_s0, %s18108_s14 }
 0xce2   : > { %p14320_p10 = scmp.lt.s32.totalorder %s14318_s26, %s14314_s2 }
 0xce3   : > { %p14316_p7 = pnand %p14315_p4, %p14479_p5 }
 0xce4   : > { %p14321_p11 = por %p14320_p10, %p14319_p9 }
 0xce5   : > { %p14317_p8 = pneg %p14316_p7 }
 0xce7   : > { %p14322_p12 = pnand %p14321_p11, %p14317_p8 }
 0xce9   : > { %14325 = shalt.err (!%p14322_p12)
}
 0xcea   : > { %12858 = dma.vmem_to_hbm [thread:$0]  (%p14479_p5), %s10343_s27, 16, %s10340_s0, %s10330_s20  }
 0xceb PF: > { %p12864_p13 = scmp.ge.s32.totalorder %s14360_s16, 2  ;;  %s10354_s21 = sand.u32 1, %s14348_s29  }
 0xcec   : > { %s10355_s22 = scalar_lea.sflag [#allocation3], %s10354_s21 }
 0xced   : > { %p12861_p0 = pnand %p12864_p13, %p14483_p6 }
 0xcef   : > { %p12862_p1 = pneg %p12861_p0 }
 0xcf1   : > { %14343 = dma.done.wait (%p12862_p1), %s10355_s22, 16  }
 0xcf2   : > { %14345 = vsyncadd (%p12862_p1), %s10355_s22, 4294967280  ;;  %s18120_s1 = sld [smem:[#allocation5_spill]]  ;;  %p24_p2 = scmp.ge.s32.totalorder %s14466_s19, 4  }
 0xcf3   : > { %s18121_s15 = sld [smem:[#allocation6_spill]]  ;;  %s18122_s29 = smov %s14352_s30 }
 0xcf4   : > { %s18124_s16 = smov %s14466_s19  ;;  %26 = sbr.rel (!%p24_p2) target bundleno = 7 (0x7), region = 138 }
 0xcf8   : > { %s18123_s30 = smov %s18120_s1 }
 0xcf9   :  { %10359 = vsyncpa [#allocation3], 1 }
 0xcfa   :  { %10361 = vsyncpa [#allocation3 + $0x1], 1 }

</bundles_post_ra>
